<compile_context>
chip_gen: v7x
topology: tpu7x:2x2x1
jax: 0.10.0
libtpu: 0.0.40
codegen_flags: <defaults>
</compile_context>

<pallas_src>
import jax
import jax.numpy as jnp
from jax.experimental import pallas as pl
from jax.experimental.pallas import tpu as pltpu


# ---------------------------------------------------------------------------
# host-side helpers
# ---------------------------------------------------------------------------
def make_tap_masks(H, W):
    """(9, H*W) validity masks for the 9 taps of a zero-padded 3x3 conv.

    Tap order k = (dh+1)*3 + (dw+1); built from separable (H,) x (W,) edge
    masks so nothing is recomputed inside the kernel."""
    h = jnp.arange(H)
    w = jnp.arange(W)
    rows = []
    for dh in (-1, 0, 1):
        for dw in (-1, 0, 1):
            mh = ((h + dh >= 0) & (h + dh < H)).astype(jnp.float32)   # (H,)
            mw = ((w + dw >= 0) & (w + dw < W)).astype(jnp.float32)   # (W,)
            rows.append((mh[:, None] * mw[None, :]).reshape(H * W))
    return jnp.stack(rows, axis=0)                                    # (9, H*W)


def conv_w_to_taps(w):
    """(..., Cout, Cin, 3, 3) -> (..., 9, Cout, Cin) with tap k = kh*3 + kw."""
    *lead, cout, cin, _, _ = w.shape
    nl = len(lead)
    perm = tuple(range(nl)) + (nl + 2, nl + 3, nl, nl + 1)
    return jnp.transpose(w, perm).reshape(*lead, 9, cout, cin)


# ---------------------------------------------------------------------------
# fused Refine forward as a single Pallas kernel
# ---------------------------------------------------------------------------
def refine_apply(x, p):
    B, C, H, W = x.shape
    P = H * W
    Co = p["last_w"].shape[0]
    assert C % 8 == 0 and P % 128 == 0, "need sublane/lane aligned slabs"
    Co_pad = -(-Co // 8) * 8                     # sublane-aligned output rows

    # ---- images per grid step --------------------------------------------
    # cap G so ~3 live (C, G*P) f32 slabs fit the 64 x 4 KiB register file
    g_cap = max(1, (64 * 4096) // (3 * C * P * 4))
    G = max(1, min(g_cap, B))
    if B >= 2:
        G = min(G, max(1, B // 2))               # keep >=2 grid steps (v7x megacore)
    groups = -(-B // G)
    Bp = groups * G
    N = G * P                                    # pixels per grid step (lanes)

    # ---- host-side packing -------------------------------------------------
    x_flat = x.reshape(B, C, P).astype(jnp.float32)
    if Bp != B:
        x_flat = jnp.pad(x_flat, ((0, Bp - B), (0, 0), (0, 0)))
    x_slab = (x_flat.reshape(groups, G, C, P)
              .transpose(0, 2, 1, 3).reshape(groups, C, N))

    masks = jnp.tile(make_tap_masks(H, W), (1, G))          # (9, N)
    wc = conv_w_to_taps(p["conv3_w"])                       # (5, 9, C, C)
    bc = p["conv3_b"][..., None]                            # (5, C, 1)
    wd1 = p["du_w1"]                                        # (2, C//4, C)
    bd1 = p["du_b1"][..., None]                             # (2, C//4, 1)
    wd2 = p["du_w2"]                                        # (2, C, C//4)
    bd2 = p["du_b2"][..., None]                             # (2, C, 1)
    wl = conv_w_to_taps(p["last_w"])                        # (9, Co, C)
    wl = jnp.pad(wl, ((0, 0), (0, Co_pad - Co), (0, 0)))    # (9, Co_pad, C)
    bl = jnp.pad(p["last_b"], (0, Co_pad - Co))[:, None]    # (Co_pad, 1)

    taps = [(k, k // 3 - 1, k % 3 - 1) for k in range(9) if k != 4]

    def kernel(x_ref, m_ref, wc_ref, bc_ref, wd1_ref, bd1_ref, wd2_ref,
               bd2_ref, wl_ref, bl_ref, o_ref, h_ref, t_ref):

        def conv3x3(v, wget, b):
            # 9 accumulating per-tap MXU dots; taps are XLU lane rotations of
            # the live value, edge-masked by host-precomputed masks.  Centre
            # tap first: no roll, no mask.
            acc = jnp.dot(wget(4), v, preferred_element_type=jnp.float32)
            for k, dh, dw in taps:
                s = (-(dh * W + dw)) % N
                acc = acc + jnp.dot(
                    wget(k), pltpu.roll(v, s, 1) * m_ref[k:k + 1, :],
                    preferred_element_type=jnp.float32)
            return acc + b

        # conv_in
        h_ref[...] = conv3x3(x_ref[0], lambda k: wc_ref[0, k], bc_ref[0])

        # two CALayers
        for i in range(2):
            a, c2 = 1 + 2 * i, 2 + 2 * i
            t_ref[...] = jnp.maximum(
                conv3x3(h_ref[...], lambda k: wc_ref[a, k], bc_ref[a]), 0.0)
            t_ref[...] = conv3x3(t_ref[...], lambda k: wc_ref[c2, k],
                                 bc_ref[c2])
            # per-image channel attention (avg pool over each image's lanes)
            for g in range(G):
                lo, hi = g * P, (g + 1) * P
                y = jnp.mean(t_ref[:, lo:hi], axis=1, keepdims=True)  # (C,1)
                yb = jnp.broadcast_to(y, (C, 128))                    # lane-pad for MXU
                z = jnp.dot(wd1_ref[i], yb,
                            preferred_element_type=jnp.float32) + bd1_ref[i]
                z = jnp.dot(wd2_ref[i], jnp.maximum(z, 0.0),
                            preferred_element_type=jnp.float32) + bd2_ref[i]
                z = pl.reciprocal(1.0 + jnp.exp(-z), approx=True)     # sigmoid (EUP)
                h_ref[:, lo:hi] = h_ref[:, lo:hi] + z[:, :1] * y      # z*y + x

        # conv_last (Cout padded to Co_pad sublanes)
        o_ref[0] = conv3x3(h_ref[...], lambda k: wl_ref[k], bl_ref[...])

    def full(a):
        nd = a.ndim
        return pl.BlockSpec(a.shape, lambda b, _nd=nd: (0,) * _nd)

    out = pl.pallas_call(
        kernel,
        out_shape=jax.ShapeDtypeStruct((groups, Co_pad, N), jnp.float32),
        grid=(groups,),
        in_specs=[pl.BlockSpec((1, C, N), lambda b: (b, 0, 0)),
                  full(masks), full(wc), full(bc), full(wd1), full(bd1),
                  full(wd2), full(bd2), full(wl), full(bl)],
        out_specs=pl.BlockSpec((1, Co_pad, N), lambda b: (b, 0, 0)),
        scratch_shapes=[pltpu.VMEM((C, N), jnp.float32),    # h (carried act)
                        pltpu.VMEM((C, N), jnp.float32)],   # t (CA temp)
        compiler_params=pltpu.CompilerParams(
            dimension_semantics=("parallel",)),
    )(x_slab, masks, wc, bc, wd1, bd1, wd2, bd2, wl, bl)

    out = (out.reshape(groups, Co_pad, G, P).transpose(0, 2, 1, 3)
           .reshape(Bp, Co_pad, P)[:B, :Co].reshape(B, Co, H, W))
    return out


# ---------------------------------------------------------------------------
# deterministic synthetic parameters
# ---------------------------------------------------------------------------
def init_params(key, n_feat, out_channel):
    ks = jax.random.split(key, 8)

    def rnd(k, shape, s=0.1):
        return s * jax.random.normal(k, shape, dtype=jnp.float32)

    return {
        # conv3_w order: conv_in, CA1.conv_a, CA1.conv_b, CA2.conv_a, CA2.conv_b
        "conv3_w": rnd(ks[0], (5, n_feat, n_feat, 3, 3)),
        "conv3_b": rnd(ks[1], (5, n_feat), 0.02),
        "du_w1": rnd(ks[2], (2, n_feat // 4, n_feat)),
        "du_b1": rnd(ks[3], (2, n_feat // 4), 0.02),
        "du_w2": rnd(ks[4], (2, n_feat, n_feat // 4)),
        "du_b2": rnd(ks[5], (2, n_feat), 0.02),
        "last_w": rnd(ks[6], (out_channel, n_feat, 3, 3)),
        "last_b": rnd(ks[7], (out_channel,), 0.02),
    }


# ---------------------------------------------------------------------------
# pure-JAX f32 reference (mirrors the torch module) for correctness checking
# ---------------------------------------------------------------------------
def refine_reference(x, p):
    HI = jax.lax.Precision.HIGHEST

    def conv3(v, w, b):
        o = jax.lax.conv_general_dilated(
            v, w, window_strides=(1, 1), padding=((1, 1), (1, 1)),
            dimension_numbers=("NCHW", "OIHW", "NCHW"), precision=HI)
        return o + b[None, :, None, None]

    def calayer(v, i):
        t = conv3(v, p["conv3_w"][1 + 2 * i], p["conv3_b"][1 + 2 * i])
        t = conv3(jnp.maximum(t, 0.0), p["conv3_w"][2 + 2 * i],
                  p["conv3_b"][2 + 2 * i])
        y = jnp.mean(t, axis=(2, 3), keepdims=True)               # (B,C,1,1)
        z = jnp.einsum("oc,bcij->boij", p["du_w1"][i], y,
                       precision=HI) + p["du_b1"][i][None, :, None, None]
        z = jnp.einsum("oc,bcij->boij", p["du_w2"][i], jnp.maximum(z, 0.0),
                       precision=HI) + p["du_b2"][i][None, :, None, None]
        return jax.nn.sigmoid(z) * y + v                          # z*y + x

    h = conv3(x, p["conv3_w"][0], p["conv3_b"][0])
    h = calayer(h, 0)
    h = calayer(h, 1)
    return conv3(h, p["last_w"], p["last_b"])


# ---------------------------------------------------------------------------
if __name__ == "__main__":
    B, n_feat, out_channel, H, W = 2, 32, 4, 16, 16
    key = jax.random.PRNGKey(0)
    kx, kp = jax.random.split(key)
    x = jax.random.normal(kx, (B, n_feat, H, W), dtype=jnp.float32)
    params = init_params(kp, n_feat, out_channel)

    out = jax.jit(lambda v: refine_apply(v, params))(x)
    jax.block_until_ready(out)

    assert out.shape == (B, out_channel, H, W)
    assert bool(jnp.isfinite(out).all())

    ref = refine_reference(x, params)
    abs_err = float(jnp.max(jnp.abs(out - ref)))
    rel_err = abs_err / max(float(jnp.max(jnp.abs(ref))), 1e-6)
    # kernel matmuls run at DEFAULT precision (single bf16 MXU pass), so the
    # check is relative to the f32 reference magnitude
    assert rel_err < 5e-2, f"kernel/reference mismatch: abs={abs_err} rel={rel_err}"
    print("KERNEL_OK")
</pallas_src>

<mosaic_0001>
module attributes {stable_mosaic.version = 11 : i64} {
  func.func @kernel(%arg0: i32, %arg1: memref<1x32x256xf32, #tpu.memory_space<vmem>>, %arg2: memref<9x256xf32, #tpu.memory_space<vmem>>, %arg3: memref<5x9x32x32xf32, #tpu.memory_space<vmem>>, %arg4: memref<5x32x1xf32, #tpu.memory_space<vmem>>, %arg5: memref<2x8x32xf32, #tpu.memory_space<vmem>>, %arg6: memref<2x8x1xf32, #tpu.memory_space<vmem>>, %arg7: memref<2x32x8xf32, #tpu.memory_space<vmem>>, %arg8: memref<2x32x1xf32, #tpu.memory_space<vmem>>, %arg9: memref<9x8x32xf32, #tpu.memory_space<vmem>>, %arg10: memref<8x1xf32, #tpu.memory_space<vmem>>, %arg11: memref<1x8x256xf32, #tpu.memory_space<vmem>>, %arg12: memref<32x256xf32, #tpu.memory_space<vmem>>, %arg13: memref<32x256xf32, #tpu.memory_space<vmem>>) attributes {dimension_semantics = [#tpu.dimension_semantics<parallel>], iteration_bounds = array<i64: 2>, scalar_prefetch = 0 : i64, scratch_operands = 2 : i64, tpu.core_type = #tpu.core_type<tc>, window_params = [{transform_indices = @transform_0, window_bounds = array<i64: 1, 32, 256>}, {pipeline_mode = #tpu.pipeline_mode<synchronous>, transform_indices = @transform_1, window_bounds = array<i64: 9, 256>}, {pipeline_mode = #tpu.pipeline_mode<synchronous>, transform_indices = @transform_2, window_bounds = array<i64: 5, 9, 32, 32>}, {pipeline_mode = #tpu.pipeline_mode<synchronous>, transform_indices = @transform_3, window_bounds = array<i64: 5, 32, 1>}, {pipeline_mode = #tpu.pipeline_mode<synchronous>, transform_indices = @transform_4, window_bounds = array<i64: 2, 8, 32>}, {pipeline_mode = #tpu.pipeline_mode<synchronous>, transform_indices = @transform_5, window_bounds = array<i64: 2, 8, 1>}, {pipeline_mode = #tpu.pipeline_mode<synchronous>, transform_indices = @transform_6, window_bounds = array<i64: 2, 32, 8>}, {pipeline_mode = #tpu.pipeline_mode<synchronous>, transform_indices = @transform_7, window_bounds = array<i64: 2, 32, 1>}, {pipeline_mode = #tpu.pipeline_mode<synchronous>, transform_indices = @transform_8, window_bounds = array<i64: 9, 8, 32>}, {pipeline_mode = #tpu.pipeline_mode<synchronous>, transform_indices = @transform_9, window_bounds = array<i64: 8, 1>}, {transform_indices = @transform_10, window_bounds = array<i64: 1, 8, 256>}]} {
    %c0 = arith.constant 0 : index
    %c0_0 = arith.constant 0 : index
    %c0_1 = arith.constant 0 : index
    %0 = vector.load %arg1[%c0, %c0_0, %c0_1] : memref<1x32x256xf32, #tpu.memory_space<vmem>>, vector<1x32x256xf32>
    %1 = vector.shape_cast %0 : vector<1x32x256xf32> to vector<32x256xf32>
    %c0_2 = arith.constant 0 : index
    %c0_3 = arith.constant 0 : index
    %c0_4 = arith.constant 0 : index
    %2 = vector.load %arg4[%c0_2, %c0_3, %c0_4] : memref<5x32x1xf32, #tpu.memory_space<vmem>>, vector<1x32x1xf32>
    %3 = vector.shape_cast %2 : vector<1x32x1xf32> to vector<32x1xf32>
    %c0_5 = arith.constant 0 : index
    %c4 = arith.constant 4 : index
    %c0_6 = arith.constant 0 : index
    %c0_7 = arith.constant 0 : index
    %4 = vector.load %arg3[%c0_5, %c4, %c0_6, %c0_7] : memref<5x9x32x32xf32, #tpu.memory_space<vmem>>, vector<1x1x32x32xf32>
    %5 = vector.shape_cast %4 : vector<1x1x32x32xf32> to vector<32x32xf32>
    %cst = arith.constant dense<0.000000e+00> : vector<32x256xf32>
    %6 = tpu.matmul %5, %1, %cst {dimension_numbers = #tpu.dot_dimension_numbers<[1], [0], [0], [1], [0, 0, 1, 1], [], []>} : vector<32x32xf32>, vector<32x256xf32>, vector<32x256xf32> -> vector<32x256xf32>
    %c0_8 = arith.constant 0 : index
    %c0_9 = arith.constant 0 : index
    %c0_10 = arith.constant 0 : index
    %c0_11 = arith.constant 0 : index
    %7 = vector.load %arg3[%c0_8, %c0_9, %c0_10, %c0_11] : memref<5x9x32x32xf32, #tpu.memory_space<vmem>>, vector<1x1x32x32xf32>
    %8 = vector.shape_cast %7 : vector<1x1x32x32xf32> to vector<32x32xf32>
    %c17_i32 = arith.constant 17 : i32
    %9 = tpu.dynamic_rotate %1 by %c17_i32 dim 1 : vector<32x256xf32>, i32 -> vector<32x256xf32>
    %c0_12 = arith.constant 0 : index
    %c0_13 = arith.constant 0 : index
    %10 = vector.load %arg2[%c0_12, %c0_13] : memref<9x256xf32, #tpu.memory_space<vmem>>, vector<1x256xf32>
    %11 = vector.broadcast %10 : vector<1x256xf32> to vector<32x256xf32>
    %12 = arith.mulf %9, %11 : vector<32x256xf32>
    %cst_14 = arith.constant dense<0.000000e+00> : vector<32x256xf32>
    %13 = tpu.matmul %8, %12, %cst_14 {dimension_numbers = #tpu.dot_dimension_numbers<[1], [0], [0], [1], [0, 0, 1, 1], [], []>} : vector<32x32xf32>, vector<32x256xf32>, vector<32x256xf32> -> vector<32x256xf32>
    %14 = arith.addf %6, %13 : vector<32x256xf32>
    %c0_15 = arith.constant 0 : index
    %c1 = arith.constant 1 : index
    %c0_16 = arith.constant 0 : index
    %c0_17 = arith.constant 0 : index
    %15 = vector.load %arg3[%c0_15, %c1, %c0_16, %c0_17] : memref<5x9x32x32xf32, #tpu.memory_space<vmem>>, vector<1x1x32x32xf32>
    %16 = vector.shape_cast %15 : vector<1x1x32x32xf32> to vector<32x32xf32>
    %c16_i32 = arith.constant 16 : i32
    %17 = tpu.dynamic_rotate %1 by %c16_i32 dim 1 : vector<32x256xf32>, i32 -> vector<32x256xf32>
    %c1_18 = arith.constant 1 : index
    %c0_19 = arith.constant 0 : index
    %18 = vector.load %arg2[%c1_18, %c0_19] : memref<9x256xf32, #tpu.memory_space<vmem>>, vector<1x256xf32>
    %19 = vector.broadcast %18 : vector<1x256xf32> to vector<32x256xf32>
    %20 = arith.mulf %17, %19 : vector<32x256xf32>
    %cst_20 = arith.constant dense<0.000000e+00> : vector<32x256xf32>
    %21 = tpu.matmul %16, %20, %cst_20 {dimension_numbers = #tpu.dot_dimension_numbers<[1], [0], [0], [1], [0, 0, 1, 1], [], []>} : vector<32x32xf32>, vector<32x256xf32>, vector<32x256xf32> -> vector<32x256xf32>
    %22 = arith.addf %14, %21 : vector<32x256xf32>
    %c0_21 = arith.constant 0 : index
    %c2 = arith.constant 2 : index
    %c0_22 = arith.constant 0 : index
    %c0_23 = arith.constant 0 : index
    %23 = vector.load %arg3[%c0_21, %c2, %c0_22, %c0_23] : memref<5x9x32x32xf32, #tpu.memory_space<vmem>>, vector<1x1x32x32xf32>
    %24 = vector.shape_cast %23 : vector<1x1x32x32xf32> to vector<32x32xf32>
    %c15_i32 = arith.constant 15 : i32
    %25 = tpu.dynamic_rotate %1 by %c15_i32 dim 1 : vector<32x256xf32>, i32 -> vector<32x256xf32>
    %c2_24 = arith.constant 2 : index
    %c0_25 = arith.constant 0 : index
    %26 = vector.load %arg2[%c2_24, %c0_25] : memref<9x256xf32, #tpu.memory_space<vmem>>, vector<1x256xf32>
    %27 = vector.broadcast %26 : vector<1x256xf32> to vector<32x256xf32>
    %28 = arith.mulf %25, %27 : vector<32x256xf32>
    %cst_26 = arith.constant dense<0.000000e+00> : vector<32x256xf32>
    %29 = tpu.matmul %24, %28, %cst_26 {dimension_numbers = #tpu.dot_dimension_numbers<[1], [0], [0], [1], [0, 0, 1, 1], [], []>} : vector<32x32xf32>, vector<32x256xf32>, vector<32x256xf32> -> vector<32x256xf32>
    %30 = arith.addf %22, %29 : vector<32x256xf32>
    %c0_27 = arith.constant 0 : index
    %c3 = arith.constant 3 : index
    %c0_28 = arith.constant 0 : index
    %c0_29 = arith.constant 0 : index
    %31 = vector.load %arg3[%c0_27, %c3, %c0_28, %c0_29] : memref<5x9x32x32xf32, #tpu.memory_space<vmem>>, vector<1x1x32x32xf32>
    %32 = vector.shape_cast %31 : vector<1x1x32x32xf32> to vector<32x32xf32>
    %c1_i32 = arith.constant 1 : i32
    %33 = tpu.dynamic_rotate %1 by %c1_i32 dim 1 : vector<32x256xf32>, i32 -> vector<32x256xf32>
    %c3_30 = arith.constant 3 : index
    %c0_31 = arith.constant 0 : index
    %34 = vector.load %arg2[%c3_30, %c0_31] : memref<9x256xf32, #tpu.memory_space<vmem>>, vector<1x256xf32>
    %35 = vector.broadcast %34 : vector<1x256xf32> to vector<32x256xf32>
    %36 = arith.mulf %33, %35 : vector<32x256xf32>
    %cst_32 = arith.constant dense<0.000000e+00> : vector<32x256xf32>
    %37 = tpu.matmul %32, %36, %cst_32 {dimension_numbers = #tpu.dot_dimension_numbers<[1], [0], [0], [1], [0, 0, 1, 1], [], []>} : vector<32x32xf32>, vector<32x256xf32>, vector<32x256xf32> -> vector<32x256xf32>
    %38 = arith.addf %30, %37 : vector<32x256xf32>
    %c0_33 = arith.constant 0 : index
    %c5 = arith.constant 5 : index
    %c0_34 = arith.constant 0 : index
    %c0_35 = arith.constant 0 : index
    %39 = vector.load %arg3[%c0_33, %c5, %c0_34, %c0_35] : memref<5x9x32x32xf32, #tpu.memory_space<vmem>>, vector<1x1x32x32xf32>
    %40 = vector.shape_cast %39 : vector<1x1x32x32xf32> to vector<32x32xf32>
    %c255_i32 = arith.constant 255 : i32
    %41 = tpu.dynamic_rotate %1 by %c255_i32 dim 1 : vector<32x256xf32>, i32 -> vector<32x256xf32>
    %c5_36 = arith.constant 5 : index
    %c0_37 = arith.constant 0 : index
    %42 = vector.load %arg2[%c5_36, %c0_37] : memref<9x256xf32, #tpu.memory_space<vmem>>, vector<1x256xf32>
    %43 = vector.broadcast %42 : vector<1x256xf32> to vector<32x256xf32>
    %44 = arith.mulf %41, %43 : vector<32x256xf32>
    %cst_38 = arith.constant dense<0.000000e+00> : vector<32x256xf32>
    %45 = tpu.matmul %40, %44, %cst_38 {dimension_numbers = #tpu.dot_dimension_numbers<[1], [0], [0], [1], [0, 0, 1, 1], [], []>} : vector<32x32xf32>, vector<32x256xf32>, vector<32x256xf32> -> vector<32x256xf32>
    %46 = arith.addf %38, %45 : vector<32x256xf32>
    %c0_39 = arith.constant 0 : index
    %c6 = arith.constant 6 : index
    %c0_40 = arith.constant 0 : index
    %c0_41 = arith.constant 0 : index
    %47 = vector.load %arg3[%c0_39, %c6, %c0_40, %c0_41] : memref<5x9x32x32xf32, #tpu.memory_space<vmem>>, vector<1x1x32x32xf32>
    %48 = vector.shape_cast %47 : vector<1x1x32x32xf32> to vector<32x32xf32>
    %c241_i32 = arith.constant 241 : i32
    %49 = tpu.dynamic_rotate %1 by %c241_i32 dim 1 : vector<32x256xf32>, i32 -> vector<32x256xf32>
    %c6_42 = arith.constant 6 : index
    %c0_43 = arith.constant 0 : index
    %50 = vector.load %arg2[%c6_42, %c0_43] : memref<9x256xf32, #tpu.memory_space<vmem>>, vector<1x256xf32>
    %51 = vector.broadcast %50 : vector<1x256xf32> to vector<32x256xf32>
    %52 = arith.mulf %49, %51 : vector<32x256xf32>
    %cst_44 = arith.constant dense<0.000000e+00> : vector<32x256xf32>
    %53 = tpu.matmul %48, %52, %cst_44 {dimension_numbers = #tpu.dot_dimension_numbers<[1], [0], [0], [1], [0, 0, 1, 1], [], []>} : vector<32x32xf32>, vector<32x256xf32>, vector<32x256xf32> -> vector<32x256xf32>
    %54 = arith.addf %46, %53 : vector<32x256xf32>
    %c0_45 = arith.constant 0 : index
    %c7 = arith.constant 7 : index
    %c0_46 = arith.constant 0 : index
    %c0_47 = arith.constant 0 : index
    %55 = vector.load %arg3[%c0_45, %c7, %c0_46, %c0_47] : memref<5x9x32x32xf32, #tpu.memory_space<vmem>>, vector<1x1x32x32xf32>
    %56 = vector.shape_cast %55 : vector<1x1x32x32xf32> to vector<32x32xf32>
    %c240_i32 = arith.constant 240 : i32
    %57 = tpu.dynamic_rotate %1 by %c240_i32 dim 1 : vector<32x256xf32>, i32 -> vector<32x256xf32>
    %c7_48 = arith.constant 7 : index
    %c0_49 = arith.constant 0 : index
    %58 = vector.load %arg2[%c7_48, %c0_49] : memref<9x256xf32, #tpu.memory_space<vmem>>, vector<1x256xf32>
    %59 = vector.broadcast %58 : vector<1x256xf32> to vector<32x256xf32>
    %60 = arith.mulf %57, %59 : vector<32x256xf32>
    %cst_50 = arith.constant dense<0.000000e+00> : vector<32x256xf32>
    %61 = tpu.matmul %56, %60, %cst_50 {dimension_numbers = #tpu.dot_dimension_numbers<[1], [0], [0], [1], [0, 0, 1, 1], [], []>} : vector<32x32xf32>, vector<32x256xf32>, vector<32x256xf32> -> vector<32x256xf32>
    %62 = arith.addf %54, %61 : vector<32x256xf32>
    %c0_51 = arith.constant 0 : index
    %c8 = arith.constant 8 : index
    %c0_52 = arith.constant 0 : index
    %c0_53 = arith.constant 0 : index
    %63 = vector.load %arg3[%c0_51, %c8, %c0_52, %c0_53] : memref<5x9x32x32xf32, #tpu.memory_space<vmem>>, vector<1x1x32x32xf32>
    %64 = vector.shape_cast %63 : vector<1x1x32x32xf32> to vector<32x32xf32>
    %c239_i32 = arith.constant 239 : i32
    %65 = tpu.dynamic_rotate %1 by %c239_i32 dim 1 : vector<32x256xf32>, i32 -> vector<32x256xf32>
    %c8_54 = arith.constant 8 : index
    %c0_55 = arith.constant 0 : index
    %66 = vector.load %arg2[%c8_54, %c0_55] : memref<9x256xf32, #tpu.memory_space<vmem>>, vector<1x256xf32>
    %67 = vector.broadcast %66 : vector<1x256xf32> to vector<32x256xf32>
    %68 = arith.mulf %65, %67 : vector<32x256xf32>
    %cst_56 = arith.constant dense<0.000000e+00> : vector<32x256xf32>
    %69 = tpu.matmul %64, %68, %cst_56 {dimension_numbers = #tpu.dot_dimension_numbers<[1], [0], [0], [1], [0, 0, 1, 1], [], []>} : vector<32x32xf32>, vector<32x256xf32>, vector<32x256xf32> -> vector<32x256xf32>
    %70 = arith.addf %62, %69 : vector<32x256xf32>
    %71 = vector.broadcast %3 : vector<32x1xf32> to vector<32x256xf32>
    %72 = arith.addf %70, %71 : vector<32x256xf32>
    %c0_57 = arith.constant 0 : index
    %c0_58 = arith.constant 0 : index
    %73 = vector.load %arg12[%c0_57, %c0_58] : memref<32x256xf32, #tpu.memory_space<vmem>>, vector<32x256xf32>
    tpu.vector_store %arg12[%c0_57, %c0_58], %72 {strides = array<i32>} : memref<32x256xf32, #tpu.memory_space<vmem>>, vector<32x256xf32>,
    %c0_59 = arith.constant 0 : index
    %c0_60 = arith.constant 0 : index
    %74 = vector.load %arg12[%c0_59, %c0_60] : memref<32x256xf32, #tpu.memory_space<vmem>>, vector<32x256xf32>
    %c1_61 = arith.constant 1 : index
    %c0_62 = arith.constant 0 : index
    %c0_63 = arith.constant 0 : index
    %75 = vector.load %arg4[%c1_61, %c0_62, %c0_63] : memref<5x32x1xf32, #tpu.memory_space<vmem>>, vector<1x32x1xf32>
    %76 = vector.shape_cast %75 : vector<1x32x1xf32> to vector<32x1xf32>
    %c1_64 = arith.constant 1 : index
    %c4_65 = arith.constant 4 : index
    %c0_66 = arith.constant 0 : index
    %c0_67 = arith.constant 0 : index
    %77 = vector.load %arg3[%c1_64, %c4_65, %c0_66, %c0_67] : memref<5x9x32x32xf32, #tpu.memory_space<vmem>>, vector<1x1x32x32xf32>
    %78 = vector.shape_cast %77 : vector<1x1x32x32xf32> to vector<32x32xf32>
    %cst_68 = arith.constant dense<0.000000e+00> : vector<32x256xf32>
    %79 = tpu.matmul %78, %74, %cst_68 {dimension_numbers = #tpu.dot_dimension_numbers<[1], [0], [0], [1], [0, 0, 1, 1], [], []>} : vector<32x32xf32>, vector<32x256xf32>, vector<32x256xf32> -> vector<32x256xf32>
    %c1_69 = arith.constant 1 : index
    %c0_70 = arith.constant 0 : index
    %c0_71 = arith.constant 0 : index
    %c0_72 = arith.constant 0 : index
    %80 = vector.load %arg3[%c1_69, %c0_70, %c0_71, %c0_72] : memref<5x9x32x32xf32, #tpu.memory_space<vmem>>, vector<1x1x32x32xf32>
    %81 = vector.shape_cast %80 : vector<1x1x32x32xf32> to vector<32x32xf32>
    %c17_i32_73 = arith.constant 17 : i32
    %82 = tpu.dynamic_rotate %74 by %c17_i32_73 dim 1 : vector<32x256xf32>, i32 -> vector<32x256xf32>
    %c0_74 = arith.constant 0 : index
    %c0_75 = arith.constant 0 : index
    %83 = vector.load %arg2[%c0_74, %c0_75] : memref<9x256xf32, #tpu.memory_space<vmem>>, vector<1x256xf32>
    %84 = vector.broadcast %83 : vector<1x256xf32> to vector<32x256xf32>
    %85 = arith.mulf %82, %84 : vector<32x256xf32>
    %cst_76 = arith.constant dense<0.000000e+00> : vector<32x256xf32>
    %86 = tpu.matmul %81, %85, %cst_76 {dimension_numbers = #tpu.dot_dimension_numbers<[1], [0], [0], [1], [0, 0, 1, 1], [], []>} : vector<32x32xf32>, vector<32x256xf32>, vector<32x256xf32> -> vector<32x256xf32>
    %87 = arith.addf %79, %86 : vector<32x256xf32>
    %c1_77 = arith.constant 1 : index
    %c1_78 = arith.constant 1 : index
    %c0_79 = arith.constant 0 : index
    %c0_80 = arith.constant 0 : index
    %88 = vector.load %arg3[%c1_77, %c1_78, %c0_79, %c0_80] : memref<5x9x32x32xf32, #tpu.memory_space<vmem>>, vector<1x1x32x32xf32>
    %89 = vector.shape_cast %88 : vector<1x1x32x32xf32> to vector<32x32xf32>
    %c16_i32_81 = arith.constant 16 : i32
    %90 = tpu.dynamic_rotate %74 by %c16_i32_81 dim 1 : vector<32x256xf32>, i32 -> vector<32x256xf32>
    %c1_82 = arith.constant 1 : index
    %c0_83 = arith.constant 0 : index
    %91 = vector.load %arg2[%c1_82, %c0_83] : memref<9x256xf32, #tpu.memory_space<vmem>>, vector<1x256xf32>
    %92 = vector.broadcast %91 : vector<1x256xf32> to vector<32x256xf32>
    %93 = arith.mulf %90, %92 : vector<32x256xf32>
    %cst_84 = arith.constant dense<0.000000e+00> : vector<32x256xf32>
    %94 = tpu.matmul %89, %93, %cst_84 {dimension_numbers = #tpu.dot_dimension_numbers<[1], [0], [0], [1], [0, 0, 1, 1], [], []>} : vector<32x32xf32>, vector<32x256xf32>, vector<32x256xf32> -> vector<32x256xf32>
    %95 = arith.addf %87, %94 : vector<32x256xf32>
    %c1_85 = arith.constant 1 : index
    %c2_86 = arith.constant 2 : index
    %c0_87 = arith.constant 0 : index
    %c0_88 = arith.constant 0 : index
    %96 = vector.load %arg3[%c1_85, %c2_86, %c0_87, %c0_88] : memref<5x9x32x32xf32, #tpu.memory_space<vmem>>, vector<1x1x32x32xf32>
    %97 = vector.shape_cast %96 : vector<1x1x32x32xf32> to vector<32x32xf32>
    %c15_i32_89 = arith.constant 15 : i32
    %98 = tpu.dynamic_rotate %74 by %c15_i32_89 dim 1 : vector<32x256xf32>, i32 -> vector<32x256xf32>
    %c2_90 = arith.constant 2 : index
    %c0_91 = arith.constant 0 : index
    %99 = vector.load %arg2[%c2_90, %c0_91] : memref<9x256xf32, #tpu.memory_space<vmem>>, vector<1x256xf32>
    %100 = vector.broadcast %99 : vector<1x256xf32> to vector<32x256xf32>
    %101 = arith.mulf %98, %100 : vector<32x256xf32>
    %cst_92 = arith.constant dense<0.000000e+00> : vector<32x256xf32>
    %102 = tpu.matmul %97, %101, %cst_92 {dimension_numbers = #tpu.dot_dimension_numbers<[1], [0], [0], [1], [0, 0, 1, 1], [], []>} : vector<32x32xf32>, vector<32x256xf32>, vector<32x256xf32> -> vector<32x256xf32>
    %103 = arith.addf %95, %102 : vector<32x256xf32>
    %c1_93 = arith.constant 1 : index
    %c3_94 = arith.constant 3 : index
    %c0_95 = arith.constant 0 : index
    %c0_96 = arith.constant 0 : index
    %104 = vector.load %arg3[%c1_93, %c3_94, %c0_95, %c0_96] : memref<5x9x32x32xf32, #tpu.memory_space<vmem>>, vector<1x1x32x32xf32>
    %105 = vector.shape_cast %104 : vector<1x1x32x32xf32> to vector<32x32xf32>
    %c1_i32_97 = arith.constant 1 : i32
    %106 = tpu.dynamic_rotate %74 by %c1_i32_97 dim 1 : vector<32x256xf32>, i32 -> vector<32x256xf32>
    %c3_98 = arith.constant 3 : index
    %c0_99 = arith.constant 0 : index
    %107 = vector.load %arg2[%c3_98, %c0_99] : memref<9x256xf32, #tpu.memory_space<vmem>>, vector<1x256xf32>
    %108 = vector.broadcast %107 : vector<1x256xf32> to vector<32x256xf32>
    %109 = arith.mulf %106, %108 : vector<32x256xf32>
    %cst_100 = arith.constant dense<0.000000e+00> : vector<32x256xf32>
    %110 = tpu.matmul %105, %109, %cst_100 {dimension_numbers = #tpu.dot_dimension_numbers<[1], [0], [0], [1], [0, 0, 1, 1], [], []>} : vector<32x32xf32>, vector<32x256xf32>, vector<32x256xf32> -> vector<32x256xf32>
    %111 = arith.addf %103, %110 : vector<32x256xf32>
    %c1_101 = arith.constant 1 : index
    %c5_102 = arith.constant 5 : index
    %c0_103 = arith.constant 0 : index
    %c0_104 = arith.constant 0 : index
    %112 = vector.load %arg3[%c1_101, %c5_102, %c0_103, %c0_104] : memref<5x9x32x32xf32, #tpu.memory_space<vmem>>, vector<1x1x32x32xf32>
    %113 = vector.shape_cast %112 : vector<1x1x32x32xf32> to vector<32x32xf32>
    %c255_i32_105 = arith.constant 255 : i32
    %114 = tpu.dynamic_rotate %74 by %c255_i32_105 dim 1 : vector<32x256xf32>, i32 -> vector<32x256xf32>
    %c5_106 = arith.constant 5 : index
    %c0_107 = arith.constant 0 : index
    %115 = vector.load %arg2[%c5_106, %c0_107] : memref<9x256xf32, #tpu.memory_space<vmem>>, vector<1x256xf32>
    %116 = vector.broadcast %115 : vector<1x256xf32> to vector<32x256xf32>
    %117 = arith.mulf %114, %116 : vector<32x256xf32>
    %cst_108 = arith.constant dense<0.000000e+00> : vector<32x256xf32>
    %118 = tpu.matmul %113, %117, %cst_108 {dimension_numbers = #tpu.dot_dimension_numbers<[1], [0], [0], [1], [0, 0, 1, 1], [], []>} : vector<32x32xf32>, vector<32x256xf32>, vector<32x256xf32> -> vector<32x256xf32>
    %119 = arith.addf %111, %118 : vector<32x256xf32>
    %c1_109 = arith.constant 1 : index
    %c6_110 = arith.constant 6 : index
    %c0_111 = arith.constant 0 : index
    %c0_112 = arith.constant 0 : index
    %120 = vector.load %arg3[%c1_109, %c6_110, %c0_111, %c0_112] : memref<5x9x32x32xf32, #tpu.memory_space<vmem>>, vector<1x1x32x32xf32>
    %121 = vector.shape_cast %120 : vector<1x1x32x32xf32> to vector<32x32xf32>
    %c241_i32_113 = arith.constant 241 : i32
    %122 = tpu.dynamic_rotate %74 by %c241_i32_113 dim 1 : vector<32x256xf32>, i32 -> vector<32x256xf32>
    %c6_114 = arith.constant 6 : index
    %c0_115 = arith.constant 0 : index
    %123 = vector.load %arg2[%c6_114, %c0_115] : memref<9x256xf32, #tpu.memory_space<vmem>>, vector<1x256xf32>
    %124 = vector.broadcast %123 : vector<1x256xf32> to vector<32x256xf32>
    %125 = arith.mulf %122, %124 : vector<32x256xf32>
    %cst_116 = arith.constant dense<0.000000e+00> : vector<32x256xf32>
    %126 = tpu.matmul %121, %125, %cst_116 {dimension_numbers = #tpu.dot_dimension_numbers<[1], [0], [0], [1], [0, 0, 1, 1], [], []>} : vector<32x32xf32>, vector<32x256xf32>, vector<32x256xf32> -> vector<32x256xf32>
    %127 = arith.addf %119, %126 : vector<32x256xf32>
    %c1_117 = arith.constant 1 : index
    %c7_118 = arith.constant 7 : index
    %c0_119 = arith.constant 0 : index
    %c0_120 = arith.constant 0 : index
    %128 = vector.load %arg3[%c1_117, %c7_118, %c0_119, %c0_120] : memref<5x9x32x32xf32, #tpu.memory_space<vmem>>, vector<1x1x32x32xf32>
    %129 = vector.shape_cast %128 : vector<1x1x32x32xf32> to vector<32x32xf32>
    %c240_i32_121 = arith.constant 240 : i32
    %130 = tpu.dynamic_rotate %74 by %c240_i32_121 dim 1 : vector<32x256xf32>, i32 -> vector<32x256xf32>
    %c7_122 = arith.constant 7 : index
    %c0_123 = arith.constant 0 : index
    %131 = vector.load %arg2[%c7_122, %c0_123] : memref<9x256xf32, #tpu.memory_space<vmem>>, vector<1x256xf32>
    %132 = vector.broadcast %131 : vector<1x256xf32> to vector<32x256xf32>
    %133 = arith.mulf %130, %132 : vector<32x256xf32>
    %cst_124 = arith.constant dense<0.000000e+00> : vector<32x256xf32>
    %134 = tpu.matmul %129, %133, %cst_124 {dimension_numbers = #tpu.dot_dimension_numbers<[1], [0], [0], [1], [0, 0, 1, 1], [], []>} : vector<32x32xf32>, vector<32x256xf32>, vector<32x256xf32> -> vector<32x256xf32>
    %135 = arith.addf %127, %134 : vector<32x256xf32>
    %c1_125 = arith.constant 1 : index
    %c8_126 = arith.constant 8 : index
    %c0_127 = arith.constant 0 : index
    %c0_128 = arith.constant 0 : index
    %136 = vector.load %arg3[%c1_125, %c8_126, %c0_127, %c0_128] : memref<5x9x32x32xf32, #tpu.memory_space<vmem>>, vector<1x1x32x32xf32>
    %137 = vector.shape_cast %136 : vector<1x1x32x32xf32> to vector<32x32xf32>
    %c239_i32_129 = arith.constant 239 : i32
    %138 = tpu.dynamic_rotate %74 by %c239_i32_129 dim 1 : vector<32x256xf32>, i32 -> vector<32x256xf32>
    %c8_130 = arith.constant 8 : index
    %c0_131 = arith.constant 0 : index
    %139 = vector.load %arg2[%c8_130, %c0_131] : memref<9x256xf32, #tpu.memory_space<vmem>>, vector<1x256xf32>
    %140 = vector.broadcast %139 : vector<1x256xf32> to vector<32x256xf32>
    %141 = arith.mulf %138, %140 : vector<32x256xf32>
    %cst_132 = arith.constant dense<0.000000e+00> : vector<32x256xf32>
    %142 = tpu.matmul %137, %141, %cst_132 {dimension_numbers = #tpu.dot_dimension_numbers<[1], [0], [0], [1], [0, 0, 1, 1], [], []>} : vector<32x32xf32>, vector<32x256xf32>, vector<32x256xf32> -> vector<32x256xf32>
    %143 = arith.addf %135, %142 : vector<32x256xf32>
    %144 = vector.broadcast %76 : vector<32x1xf32> to vector<32x256xf32>
    %145 = arith.addf %143, %144 : vector<32x256xf32>
    %cst_133 = arith.constant 0.000000e+00 : f32
    %146 = vector.broadcast %cst_133 : f32 to vector<32x256xf32>
    %147 = arith.maximumf %145, %146 : vector<32x256xf32>
    %c0_134 = arith.constant 0 : index
    %c0_135 = arith.constant 0 : index
    %148 = vector.load %arg13[%c0_134, %c0_135] : memref<32x256xf32, #tpu.memory_space<vmem>>, vector<32x256xf32>
    tpu.vector_store %arg13[%c0_134, %c0_135], %147 {strides = array<i32>} : memref<32x256xf32, #tpu.memory_space<vmem>>, vector<32x256xf32>,
    %c0_136 = arith.constant 0 : index
    %c0_137 = arith.constant 0 : index
    %149 = vector.load %arg13[%c0_136, %c0_137] : memref<32x256xf32, #tpu.memory_space<vmem>>, vector<32x256xf32>
    %c2_138 = arith.constant 2 : index
    %c0_139 = arith.constant 0 : index
    %c0_140 = arith.constant 0 : index
    %150 = vector.load %arg4[%c2_138, %c0_139, %c0_140] : memref<5x32x1xf32, #tpu.memory_space<vmem>>, vector<1x32x1xf32>
    %151 = vector.shape_cast %150 : vector<1x32x1xf32> to vector<32x1xf32>
    %c2_141 = arith.constant 2 : index
    %c4_142 = arith.constant 4 : index
    %c0_143 = arith.constant 0 : index
    %c0_144 = arith.constant 0 : index
    %152 = vector.load %arg3[%c2_141, %c4_142, %c0_143, %c0_144] : memref<5x9x32x32xf32, #tpu.memory_space<vmem>>, vector<1x1x32x32xf32>
    %153 = vector.shape_cast %152 : vector<1x1x32x32xf32> to vector<32x32xf32>
    %cst_145 = arith.constant dense<0.000000e+00> : vector<32x256xf32>
    %154 = tpu.matmul %153, %149, %cst_145 {dimension_numbers = #tpu.dot_dimension_numbers<[1], [0], [0], [1], [0, 0, 1, 1], [], []>} : vector<32x32xf32>, vector<32x256xf32>, vector<32x256xf32> -> vector<32x256xf32>
    %c2_146 = arith.constant 2 : index
    %c0_147 = arith.constant 0 : index
    %c0_148 = arith.constant 0 : index
    %c0_149 = arith.constant 0 : index
    %155 = vector.load %arg3[%c2_146, %c0_147, %c0_148, %c0_149] : memref<5x9x32x32xf32, #tpu.memory_space<vmem>>, vector<1x1x32x32xf32>
    %156 = vector.shape_cast %155 : vector<1x1x32x32xf32> to vector<32x32xf32>
    %c17_i32_150 = arith.constant 17 : i32
    %157 = tpu.dynamic_rotate %149 by %c17_i32_150 dim 1 : vector<32x256xf32>, i32 -> vector<32x256xf32>
    %c0_151 = arith.constant 0 : index
    %c0_152 = arith.constant 0 : index
    %158 = vector.load %arg2[%c0_151, %c0_152] : memref<9x256xf32, #tpu.memory_space<vmem>>, vector<1x256xf32>
    %159 = vector.broadcast %158 : vector<1x256xf32> to vector<32x256xf32>
    %160 = arith.mulf %157, %159 : vector<32x256xf32>
    %cst_153 = arith.constant dense<0.000000e+00> : vector<32x256xf32>
    %161 = tpu.matmul %156, %160, %cst_153 {dimension_numbers = #tpu.dot_dimension_numbers<[1], [0], [0], [1], [0, 0, 1, 1], [], []>} : vector<32x32xf32>, vector<32x256xf32>, vector<32x256xf32> -> vector<32x256xf32>
    %162 = arith.addf %154, %161 : vector<32x256xf32>
    %c2_154 = arith.constant 2 : index
    %c1_155 = arith.constant 1 : index
    %c0_156 = arith.constant 0 : index
    %c0_157 = arith.constant 0 : index
    %163 = vector.load %arg3[%c2_154, %c1_155, %c0_156, %c0_157] : memref<5x9x32x32xf32, #tpu.memory_space<vmem>>, vector<1x1x32x32xf32>
    %164 = vector.shape_cast %163 : vector<1x1x32x32xf32> to vector<32x32xf32>
    %c16_i32_158 = arith.constant 16 : i32
    %165 = tpu.dynamic_rotate %149 by %c16_i32_158 dim 1 : vector<32x256xf32>, i32 -> vector<32x256xf32>
    %c1_159 = arith.constant 1 : index
    %c0_160 = arith.constant 0 : index
    %166 = vector.load %arg2[%c1_159, %c0_160] : memref<9x256xf32, #tpu.memory_space<vmem>>, vector<1x256xf32>
    %167 = vector.broadcast %166 : vector<1x256xf32> to vector<32x256xf32>
    %168 = arith.mulf %165, %167 : vector<32x256xf32>
    %cst_161 = arith.constant dense<0.000000e+00> : vector<32x256xf32>
    %169 = tpu.matmul %164, %168, %cst_161 {dimension_numbers = #tpu.dot_dimension_numbers<[1], [0], [0], [1], [0, 0, 1, 1], [], []>} : vector<32x32xf32>, vector<32x256xf32>, vector<32x256xf32> -> vector<32x256xf32>
    %170 = arith.addf %162, %169 : vector<32x256xf32>
    %c2_162 = arith.constant 2 : index
    %c2_163 = arith.constant 2 : index
    %c0_164 = arith.constant 0 : index
    %c0_165 = arith.constant 0 : index
    %171 = vector.load %arg3[%c2_162, %c2_163, %c0_164, %c0_165] : memref<5x9x32x32xf32, #tpu.memory_space<vmem>>, vector<1x1x32x32xf32>
    %172 = vector.shape_cast %171 : vector<1x1x32x32xf32> to vector<32x32xf32>
    %c15_i32_166 = arith.constant 15 : i32
    %173 = tpu.dynamic_rotate %149 by %c15_i32_166 dim 1 : vector<32x256xf32>, i32 -> vector<32x256xf32>
    %c2_167 = arith.constant 2 : index
    %c0_168 = arith.constant 0 : index
    %174 = vector.load %arg2[%c2_167, %c0_168] : memref<9x256xf32, #tpu.memory_space<vmem>>, vector<1x256xf32>
    %175 = vector.broadcast %174 : vector<1x256xf32> to vector<32x256xf32>
    %176 = arith.mulf %173, %175 : vector<32x256xf32>
    %cst_169 = arith.constant dense<0.000000e+00> : vector<32x256xf32>
    %177 = tpu.matmul %172, %176, %cst_169 {dimension_numbers = #tpu.dot_dimension_numbers<[1], [0], [0], [1], [0, 0, 1, 1], [], []>} : vector<32x32xf32>, vector<32x256xf32>, vector<32x256xf32> -> vector<32x256xf32>
    %178 = arith.addf %170, %177 : vector<32x256xf32>
    %c2_170 = arith.constant 2 : index
    %c3_171 = arith.constant 3 : index
    %c0_172 = arith.constant 0 : index
    %c0_173 = arith.constant 0 : index
    %179 = vector.load %arg3[%c2_170, %c3_171, %c0_172, %c0_173] : memref<5x9x32x32xf32, #tpu.memory_space<vmem>>, vector<1x1x32x32xf32>
    %180 = vector.shape_cast %179 : vector<1x1x32x32xf32> to vector<32x32xf32>
    %c1_i32_174 = arith.constant 1 : i32
    %181 = tpu.dynamic_rotate %149 by %c1_i32_174 dim 1 : vector<32x256xf32>, i32 -> vector<32x256xf32>
    %c3_175 = arith.constant 3 : index
    %c0_176 = arith.constant 0 : index
    %182 = vector.load %arg2[%c3_175, %c0_176] : memref<9x256xf32, #tpu.memory_space<vmem>>, vector<1x256xf32>
    %183 = vector.broadcast %182 : vector<1x256xf32> to vector<32x256xf32>
    %184 = arith.mulf %181, %183 : vector<32x256xf32>
    %cst_177 = arith.constant dense<0.000000e+00> : vector<32x256xf32>
    %185 = tpu.matmul %180, %184, %cst_177 {dimension_numbers = #tpu.dot_dimension_numbers<[1], [0], [0], [1], [0, 0, 1, 1], [], []>} : vector<32x32xf32>, vector<32x256xf32>, vector<32x256xf32> -> vector<32x256xf32>
    %186 = arith.addf %178, %185 : vector<32x256xf32>
    %c2_178 = arith.constant 2 : index
    %c5_179 = arith.constant 5 : index
    %c0_180 = arith.constant 0 : index
    %c0_181 = arith.constant 0 : index
    %187 = vector.load %arg3[%c2_178, %c5_179, %c0_180, %c0_181] : memref<5x9x32x32xf32, #tpu.memory_space<vmem>>, vector<1x1x32x32xf32>
    %188 = vector.shape_cast %187 : vector<1x1x32x32xf32> to vector<32x32xf32>
    %c255_i32_182 = arith.constant 255 : i32
    %189 = tpu.dynamic_rotate %149 by %c255_i32_182 dim 1 : vector<32x256xf32>, i32 -> vector<32x256xf32>
    %c5_183 = arith.constant 5 : index
    %c0_184 = arith.constant 0 : index
    %190 = vector.load %arg2[%c5_183, %c0_184] : memref<9x256xf32, #tpu.memory_space<vmem>>, vector<1x256xf32>
    %191 = vector.broadcast %190 : vector<1x256xf32> to vector<32x256xf32>
    %192 = arith.mulf %189, %191 : vector<32x256xf32>
    %cst_185 = arith.constant dense<0.000000e+00> : vector<32x256xf32>
    %193 = tpu.matmul %188, %192, %cst_185 {dimension_numbers = #tpu.dot_dimension_numbers<[1], [0], [0], [1], [0, 0, 1, 1], [], []>} : vector<32x32xf32>, vector<32x256xf32>, vector<32x256xf32> -> vector<32x256xf32>
    %194 = arith.addf %186, %193 : vector<32x256xf32>
    %c2_186 = arith.constant 2 : index
    %c6_187 = arith.constant 6 : index
    %c0_188 = arith.constant 0 : index
    %c0_189 = arith.constant 0 : index
    %195 = vector.load %arg3[%c2_186, %c6_187, %c0_188, %c0_189] : memref<5x9x32x32xf32, #tpu.memory_space<vmem>>, vector<1x1x32x32xf32>
    %196 = vector.shape_cast %195 : vector<1x1x32x32xf32> to vector<32x32xf32>
    %c241_i32_190 = arith.constant 241 : i32
    %197 = tpu.dynamic_rotate %149 by %c241_i32_190 dim 1 : vector<32x256xf32>, i32 -> vector<32x256xf32>
    %c6_191 = arith.constant 6 : index
    %c0_192 = arith.constant 0 : index
    %198 = vector.load %arg2[%c6_191, %c0_192] : memref<9x256xf32, #tpu.memory_space<vmem>>, vector<1x256xf32>
    %199 = vector.broadcast %198 : vector<1x256xf32> to vector<32x256xf32>
    %200 = arith.mulf %197, %199 : vector<32x256xf32>
    %cst_193 = arith.constant dense<0.000000e+00> : vector<32x256xf32>
    %201 = tpu.matmul %196, %200, %cst_193 {dimension_numbers = #tpu.dot_dimension_numbers<[1], [0], [0], [1], [0, 0, 1, 1], [], []>} : vector<32x32xf32>, vector<32x256xf32>, vector<32x256xf32> -> vector<32x256xf32>
    %202 = arith.addf %194, %201 : vector<32x256xf32>
    %c2_194 = arith.constant 2 : index
    %c7_195 = arith.constant 7 : index
    %c0_196 = arith.constant 0 : index
    %c0_197 = arith.constant 0 : index
    %203 = vector.load %arg3[%c2_194, %c7_195, %c0_196, %c0_197] : memref<5x9x32x32xf32, #tpu.memory_space<vmem>>, vector<1x1x32x32xf32>
    %204 = vector.shape_cast %203 : vector<1x1x32x32xf32> to vector<32x32xf32>
    %c240_i32_198 = arith.constant 240 : i32
    %205 = tpu.dynamic_rotate %149 by %c240_i32_198 dim 1 : vector<32x256xf32>, i32 -> vector<32x256xf32>
    %c7_199 = arith.constant 7 : index
    %c0_200 = arith.constant 0 : index
    %206 = vector.load %arg2[%c7_199, %c0_200] : memref<9x256xf32, #tpu.memory_space<vmem>>, vector<1x256xf32>
    %207 = vector.broadcast %206 : vector<1x256xf32> to vector<32x256xf32>
    %208 = arith.mulf %205, %207 : vector<32x256xf32>
    %cst_201 = arith.constant dense<0.000000e+00> : vector<32x256xf32>
    %209 = tpu.matmul %204, %208, %cst_201 {dimension_numbers = #tpu.dot_dimension_numbers<[1], [0], [0], [1], [0, 0, 1, 1], [], []>} : vector<32x32xf32>, vector<32x256xf32>, vector<32x256xf32> -> vector<32x256xf32>
    %210 = arith.addf %202, %209 : vector<32x256xf32>
    %c2_202 = arith.constant 2 : index
    %c8_203 = arith.constant 8 : index
    %c0_204 = arith.constant 0 : index
    %c0_205 = arith.constant 0 : index
    %211 = vector.load %arg3[%c2_202, %c8_203, %c0_204, %c0_205] : memref<5x9x32x32xf32, #tpu.memory_space<vmem>>, vector<1x1x32x32xf32>
    %212 = vector.shape_cast %211 : vector<1x1x32x32xf32> to vector<32x32xf32>
    %c239_i32_206 = arith.constant 239 : i32
    %213 = tpu.dynamic_rotate %149 by %c239_i32_206 dim 1 : vector<32x256xf32>, i32 -> vector<32x256xf32>
    %c8_207 = arith.constant 8 : index
    %c0_208 = arith.constant 0 : index
    %214 = vector.load %arg2[%c8_207, %c0_208] : memref<9x256xf32, #tpu.memory_space<vmem>>, vector<1x256xf32>
    %215 = vector.broadcast %214 : vector<1x256xf32> to vector<32x256xf32>
    %216 = arith.mulf %213, %215 : vector<32x256xf32>
    %cst_209 = arith.constant dense<0.000000e+00> : vector<32x256xf32>
    %217 = tpu.matmul %212, %216, %cst_209 {dimension_numbers = #tpu.dot_dimension_numbers<[1], [0], [0], [1], [0, 0, 1, 1], [], []>} : vector<32x32xf32>, vector<32x256xf32>, vector<32x256xf32> -> vector<32x256xf32>
    %218 = arith.addf %210, %217 : vector<32x256xf32>
    %219 = vector.broadcast %151 : vector<32x1xf32> to vector<32x256xf32>
    %220 = arith.addf %218, %219 : vector<32x256xf32>
    %c0_210 = arith.constant 0 : index
    %c0_211 = arith.constant 0 : index
    %221 = vector.load %arg13[%c0_210, %c0_211] : memref<32x256xf32, #tpu.memory_space<vmem>>, vector<32x256xf32>
    tpu.vector_store %arg13[%c0_210, %c0_211], %220 {strides = array<i32>} : memref<32x256xf32, #tpu.memory_space<vmem>>, vector<32x256xf32>,
    %c0_212 = arith.constant 0 : index
    %c0_213 = arith.constant 0 : index
    %222 = vector.load %arg13[%c0_212, %c0_213] : memref<32x256xf32, #tpu.memory_space<vmem>>, vector<32x256xf32>
    %cst_214 = arith.constant dense<0.000000e+00> : vector<32xf32>
    %223 = vector.multi_reduction <add>, %222, %cst_214 [1] : vector<32x256xf32> to vector<32xf32>
    %224 = vector.shape_cast %223 : vector<32xf32> to vector<32x1xf32>
    %cst_215 = arith.constant 2.560000e+02 : f32
    %225 = vector.broadcast %cst_215 : f32 to vector<32x1xf32>
    %226 = arith.divf %224, %225 : vector<32x1xf32>
    %227 = vector.shape_cast %226 : vector<32x1xf32> to vector<32x1xf32>
    %228 = vector.broadcast %227 : vector<32x1xf32> to vector<32x128xf32>
    %c0_216 = arith.constant 0 : index
    %c0_217 = arith.constant 0 : index
    %c0_218 = arith.constant 0 : index
    %229 = vector.load %arg5[%c0_216, %c0_217, %c0_218] : memref<2x8x32xf32, #tpu.memory_space<vmem>>, vector<1x8x32xf32>
    %230 = vector.shape_cast %229 : vector<1x8x32xf32> to vector<8x32xf32>
    %cst_219 = arith.constant dense<0.000000e+00> : vector<8x128xf32>
    %231 = tpu.matmul %230, %228, %cst_219 {dimension_numbers = #tpu.dot_dimension_numbers<[1], [0], [0], [1], [0, 0, 1, 1], [], []>} : vector<8x32xf32>, vector<32x128xf32>, vector<8x128xf32> -> vector<8x128xf32>
    %c0_220 = arith.constant 0 : index
    %c0_221 = arith.constant 0 : index
    %c0_222 = arith.constant 0 : index
    %232 = vector.load %arg6[%c0_220, %c0_221, %c0_222] : memref<2x8x1xf32, #tpu.memory_space<vmem>>, vector<1x8x1xf32>
    %233 = vector.shape_cast %232 : vector<1x8x1xf32> to vector<8x1xf32>
    %234 = vector.broadcast %233 : vector<8x1xf32> to vector<8x128xf32>
    %235 = arith.addf %231, %234 : vector<8x128xf32>
    %c0_223 = arith.constant 0 : index
    %c0_224 = arith.constant 0 : index
    %c0_225 = arith.constant 0 : index
    %236 = vector.load %arg7[%c0_223, %c0_224, %c0_225] : memref<2x32x8xf32, #tpu.memory_space<vmem>>, vector<1x32x8xf32>
    %237 = vector.shape_cast %236 : vector<1x32x8xf32> to vector<32x8xf32>
    %cst_226 = arith.constant 0.000000e+00 : f32
    %238 = vector.broadcast %cst_226 : f32 to vector<8x128xf32>
    %239 = arith.maximumf %235, %238 : vector<8x128xf32>
    %cst_227 = arith.constant dense<0.000000e+00> : vector<32x128xf32>
    %240 = tpu.matmul %237, %239, %cst_227 {dimension_numbers = #tpu.dot_dimension_numbers<[1], [0], [0], [1], [0, 0, 1, 1], [], []>} : vector<32x8xf32>, vector<8x128xf32>, vector<32x128xf32> -> vector<32x128xf32>
    %c0_228 = arith.constant 0 : index
    %c0_229 = arith.constant 0 : index
    %c0_230 = arith.constant 0 : index
    %241 = vector.load %arg8[%c0_228, %c0_229, %c0_230] : memref<2x32x1xf32, #tpu.memory_space<vmem>>, vector<1x32x1xf32>
    %242 = vector.shape_cast %241 : vector<1x32x1xf32> to vector<32x1xf32>
    %243 = vector.broadcast %242 : vector<32x1xf32> to vector<32x128xf32>
    %244 = arith.addf %240, %243 : vector<32x128xf32>
    %cst_231 = arith.constant 0.000000e+00 : f32
    %245 = vector.broadcast %cst_231 : f32 to vector<32x128xf32>
    %246 = arith.subf %245, %244 : vector<32x128xf32>
    %247 = math.exp %246 : vector<32x128xf32>
    %cst_232 = arith.constant 1.000000e+00 : f32
    %248 = vector.broadcast %cst_232 : f32 to vector<32x128xf32>
    %249 = arith.addf %248, %247 : vector<32x128xf32>
    %250 = tpu.reciprocal %249 {approx = true} : vector<32x128xf32> -> vector<32x128xf32>
    %c0_233 = arith.constant 0 : index
    %c0_234 = arith.constant 0 : index
    %251 = vector.load %arg12[%c0_233, %c0_234] : memref<32x256xf32, #tpu.memory_space<vmem>>, vector<32x256xf32>
    %252 = vector.extract_strided_slice %250 {offsets = [0, 0], sizes = [32, 1], strides = [1, 1]} : vector<32x128xf32> to vector<32x1xf32>
    %253 = arith.mulf %252, %226 : vector<32x1xf32>
    %254 = vector.broadcast %253 : vector<32x1xf32> to vector<32x256xf32>
    %255 = arith.addf %251, %254 : vector<32x256xf32>
    %c0_235 = arith.constant 0 : index
    %c0_236 = arith.constant 0 : index
    %256 = vector.load %arg12[%c0_235, %c0_236] : memref<32x256xf32, #tpu.memory_space<vmem>>, vector<32x256xf32>
    tpu.vector_store %arg12[%c0_235, %c0_236], %255 {strides = array<i32>} : memref<32x256xf32, #tpu.memory_space<vmem>>, vector<32x256xf32>,
    %c0_237 = arith.constant 0 : index
    %c0_238 = arith.constant 0 : index
    %257 = vector.load %arg12[%c0_237, %c0_238] : memref<32x256xf32, #tpu.memory_space<vmem>>, vector<32x256xf32>
    %c3_239 = arith.constant 3 : index
    %c0_240 = arith.constant 0 : index
    %c0_241 = arith.constant 0 : index
    %258 = vector.load %arg4[%c3_239, %c0_240, %c0_241] : memref<5x32x1xf32, #tpu.memory_space<vmem>>, vector<1x32x1xf32>
    %259 = vector.shape_cast %258 : vector<1x32x1xf32> to vector<32x1xf32>
    %c3_242 = arith.constant 3 : index
    %c4_243 = arith.constant 4 : index
    %c0_244 = arith.constant 0 : index
    %c0_245 = arith.constant 0 : index
    %260 = vector.load %arg3[%c3_242, %c4_243, %c0_244, %c0_245] : memref<5x9x32x32xf32, #tpu.memory_space<vmem>>, vector<1x1x32x32xf32>
    %261 = vector.shape_cast %260 : vector<1x1x32x32xf32> to vector<32x32xf32>
    %cst_246 = arith.constant dense<0.000000e+00> : vector<32x256xf32>
    %262 = tpu.matmul %261, %257, %cst_246 {dimension_numbers = #tpu.dot_dimension_numbers<[1], [0], [0], [1], [0, 0, 1, 1], [], []>} : vector<32x32xf32>, vector<32x256xf32>, vector<32x256xf32> -> vector<32x256xf32>
    %c3_247 = arith.constant 3 : index
    %c0_248 = arith.constant 0 : index
    %c0_249 = arith.constant 0 : index
    %c0_250 = arith.constant 0 : index
    %263 = vector.load %arg3[%c3_247, %c0_248, %c0_249, %c0_250] : memref<5x9x32x32xf32, #tpu.memory_space<vmem>>, vector<1x1x32x32xf32>
    %264 = vector.shape_cast %263 : vector<1x1x32x32xf32> to vector<32x32xf32>
    %c17_i32_251 = arith.constant 17 : i32
    %265 = tpu.dynamic_rotate %257 by %c17_i32_251 dim 1 : vector<32x256xf32>, i32 -> vector<32x256xf32>
    %c0_252 = arith.constant 0 : index
    %c0_253 = arith.constant 0 : index
    %266 = vector.load %arg2[%c0_252, %c0_253] : memref<9x256xf32, #tpu.memory_space<vmem>>, vector<1x256xf32>
    %267 = vector.broadcast %266 : vector<1x256xf32> to vector<32x256xf32>
    %268 = arith.mulf %265, %267 : vector<32x256xf32>
    %cst_254 = arith.constant dense<0.000000e+00> : vector<32x256xf32>
    %269 = tpu.matmul %264, %268, %cst_254 {dimension_numbers = #tpu.dot_dimension_numbers<[1], [0], [0], [1], [0, 0, 1, 1], [], []>} : vector<32x32xf32>, vector<32x256xf32>, vector<32x256xf32> -> vector<32x256xf32>
    %270 = arith.addf %262, %269 : vector<32x256xf32>
    %c3_255 = arith.constant 3 : index
    %c1_256 = arith.constant 1 : index
    %c0_257 = arith.constant 0 : index
    %c0_258 = arith.constant 0 : index
    %271 = vector.load %arg3[%c3_255, %c1_256, %c0_257, %c0_258] : memref<5x9x32x32xf32, #tpu.memory_space<vmem>>, vector<1x1x32x32xf32>
    %272 = vector.shape_cast %271 : vector<1x1x32x32xf32> to vector<32x32xf32>
    %c16_i32_259 = arith.constant 16 : i32
    %273 = tpu.dynamic_rotate %257 by %c16_i32_259 dim 1 : vector<32x256xf32>, i32 -> vector<32x256xf32>
    %c1_260 = arith.constant 1 : index
    %c0_261 = arith.constant 0 : index
    %274 = vector.load %arg2[%c1_260, %c0_261] : memref<9x256xf32, #tpu.memory_space<vmem>>, vector<1x256xf32>
    %275 = vector.broadcast %274 : vector<1x256xf32> to vector<32x256xf32>
    %276 = arith.mulf %273, %275 : vector<32x256xf32>
    %cst_262 = arith.constant dense<0.000000e+00> : vector<32x256xf32>
    %277 = tpu.matmul %272, %276, %cst_262 {dimension_numbers = #tpu.dot_dimension_numbers<[1], [0], [0], [1], [0, 0, 1, 1], [], []>} : vector<32x32xf32>, vector<32x256xf32>, vector<32x256xf32> -> vector<32x256xf32>
    %278 = arith.addf %270, %277 : vector<32x256xf32>
    %c3_263 = arith.constant 3 : index
    %c2_264 = arith.constant 2 : index
    %c0_265 = arith.constant 0 : index
    %c0_266 = arith.constant 0 : index
    %279 = vector.load %arg3[%c3_263, %c2_264, %c0_265, %c0_266] : memref<5x9x32x32xf32, #tpu.memory_space<vmem>>, vector<1x1x32x32xf32>
    %280 = vector.shape_cast %279 : vector<1x1x32x32xf32> to vector<32x32xf32>
    %c15_i32_267 = arith.constant 15 : i32
    %281 = tpu.dynamic_rotate %257 by %c15_i32_267 dim 1 : vector<32x256xf32>, i32 -> vector<32x256xf32>
    %c2_268 = arith.constant 2 : index
    %c0_269 = arith.constant 0 : index
    %282 = vector.load %arg2[%c2_268, %c0_269] : memref<9x256xf32, #tpu.memory_space<vmem>>, vector<1x256xf32>
    %283 = vector.broadcast %282 : vector<1x256xf32> to vector<32x256xf32>
    %284 = arith.mulf %281, %283 : vector<32x256xf32>
    %cst_270 = arith.constant dense<0.000000e+00> : vector<32x256xf32>
    %285 = tpu.matmul %280, %284, %cst_270 {dimension_numbers = #tpu.dot_dimension_numbers<[1], [0], [0], [1], [0, 0, 1, 1], [], []>} : vector<32x32xf32>, vector<32x256xf32>, vector<32x256xf32> -> vector<32x256xf32>
    %286 = arith.addf %278, %285 : vector<32x256xf32>
    %c3_271 = arith.constant 3 : index
    %c3_272 = arith.constant 3 : index
    %c0_273 = arith.constant 0 : index
    %c0_274 = arith.constant 0 : index
    %287 = vector.load %arg3[%c3_271, %c3_272, %c0_273, %c0_274] : memref<5x9x32x32xf32, #tpu.memory_space<vmem>>, vector<1x1x32x32xf32>
    %288 = vector.shape_cast %287 : vector<1x1x32x32xf32> to vector<32x32xf32>
    %c1_i32_275 = arith.constant 1 : i32
    %289 = tpu.dynamic_rotate %257 by %c1_i32_275 dim 1 : vector<32x256xf32>, i32 -> vector<32x256xf32>
    %c3_276 = arith.constant 3 : index
    %c0_277 = arith.constant 0 : index
    %290 = vector.load %arg2[%c3_276, %c0_277] : memref<9x256xf32, #tpu.memory_space<vmem>>, vector<1x256xf32>
    %291 = vector.broadcast %290 : vector<1x256xf32> to vector<32x256xf32>
    %292 = arith.mulf %289, %291 : vector<32x256xf32>
    %cst_278 = arith.constant dense<0.000000e+00> : vector<32x256xf32>
    %293 = tpu.matmul %288, %292, %cst_278 {dimension_numbers = #tpu.dot_dimension_numbers<[1], [0], [0], [1], [0, 0, 1, 1], [], []>} : vector<32x32xf32>, vector<32x256xf32>, vector<32x256xf32> -> vector<32x256xf32>
    %294 = arith.addf %286, %293 : vector<32x256xf32>
    %c3_279 = arith.constant 3 : index
    %c5_280 = arith.constant 5 : index
    %c0_281 = arith.constant 0 : index
    %c0_282 = arith.constant 0 : index
    %295 = vector.load %arg3[%c3_279, %c5_280, %c0_281, %c0_282] : memref<5x9x32x32xf32, #tpu.memory_space<vmem>>, vector<1x1x32x32xf32>
    %296 = vector.shape_cast %295 : vector<1x1x32x32xf32> to vector<32x32xf32>
    %c255_i32_283 = arith.constant 255 : i32
    %297 = tpu.dynamic_rotate %257 by %c255_i32_283 dim 1 : vector<32x256xf32>, i32 -> vector<32x256xf32>
    %c5_284 = arith.constant 5 : index
    %c0_285 = arith.constant 0 : index
    %298 = vector.load %arg2[%c5_284, %c0_285] : memref<9x256xf32, #tpu.memory_space<vmem>>, vector<1x256xf32>
    %299 = vector.broadcast %298 : vector<1x256xf32> to vector<32x256xf32>
    %300 = arith.mulf %297, %299 : vector<32x256xf32>
    %cst_286 = arith.constant dense<0.000000e+00> : vector<32x256xf32>
    %301 = tpu.matmul %296, %300, %cst_286 {dimension_numbers = #tpu.dot_dimension_numbers<[1], [0], [0], [1], [0, 0, 1, 1], [], []>} : vector<32x32xf32>, vector<32x256xf32>, vector<32x256xf32> -> vector<32x256xf32>
    %302 = arith.addf %294, %301 : vector<32x256xf32>
    %c3_287 = arith.constant 3 : index
    %c6_288 = arith.constant 6 : index
    %c0_289 = arith.constant 0 : index
    %c0_290 = arith.constant 0 : index
    %303 = vector.load %arg3[%c3_287, %c6_288, %c0_289, %c0_290] : memref<5x9x32x32xf32, #tpu.memory_space<vmem>>, vector<1x1x32x32xf32>
    %304 = vector.shape_cast %303 : vector<1x1x32x32xf32> to vector<32x32xf32>
    %c241_i32_291 = arith.constant 241 : i32
    %305 = tpu.dynamic_rotate %257 by %c241_i32_291 dim 1 : vector<32x256xf32>, i32 -> vector<32x256xf32>
    %c6_292 = arith.constant 6 : index
    %c0_293 = arith.constant 0 : index
    %306 = vector.load %arg2[%c6_292, %c0_293] : memref<9x256xf32, #tpu.memory_space<vmem>>, vector<1x256xf32>
    %307 = vector.broadcast %306 : vector<1x256xf32> to vector<32x256xf32>
    %308 = arith.mulf %305, %307 : vector<32x256xf32>
    %cst_294 = arith.constant dense<0.000000e+00> : vector<32x256xf32>
    %309 = tpu.matmul %304, %308, %cst_294 {dimension_numbers = #tpu.dot_dimension_numbers<[1], [0], [0], [1], [0, 0, 1, 1], [], []>} : vector<32x32xf32>, vector<32x256xf32>, vector<32x256xf32> -> vector<32x256xf32>
    %310 = arith.addf %302, %309 : vector<32x256xf32>
    %c3_295 = arith.constant 3 : index
    %c7_296 = arith.constant 7 : index
    %c0_297 = arith.constant 0 : index
    %c0_298 = arith.constant 0 : index
    %311 = vector.load %arg3[%c3_295, %c7_296, %c0_297, %c0_298] : memref<5x9x32x32xf32, #tpu.memory_space<vmem>>, vector<1x1x32x32xf32>
    %312 = vector.shape_cast %311 : vector<1x1x32x32xf32> to vector<32x32xf32>
    %c240_i32_299 = arith.constant 240 : i32
    %313 = tpu.dynamic_rotate %257 by %c240_i32_299 dim 1 : vector<32x256xf32>, i32 -> vector<32x256xf32>
    %c7_300 = arith.constant 7 : index
    %c0_301 = arith.constant 0 : index
    %314 = vector.load %arg2[%c7_300, %c0_301] : memref<9x256xf32, #tpu.memory_space<vmem>>, vector<1x256xf32>
    %315 = vector.broadcast %314 : vector<1x256xf32> to vector<32x256xf32>
    %316 = arith.mulf %313, %315 : vector<32x256xf32>
    %cst_302 = arith.constant dense<0.000000e+00> : vector<32x256xf32>
    %317 = tpu.matmul %312, %316, %cst_302 {dimension_numbers = #tpu.dot_dimension_numbers<[1], [0], [0], [1], [0, 0, 1, 1], [], []>} : vector<32x32xf32>, vector<32x256xf32>, vector<32x256xf32> -> vector<32x256xf32>
    %318 = arith.addf %310, %317 : vector<32x256xf32>
    %c3_303 = arith.constant 3 : index
    %c8_304 = arith.constant 8 : index
    %c0_305 = arith.constant 0 : index
    %c0_306 = arith.constant 0 : index
    %319 = vector.load %arg3[%c3_303, %c8_304, %c0_305, %c0_306] : memref<5x9x32x32xf32, #tpu.memory_space<vmem>>, vector<1x1x32x32xf32>
    %320 = vector.shape_cast %319 : vector<1x1x32x32xf32> to vector<32x32xf32>
    %c239_i32_307 = arith.constant 239 : i32
    %321 = tpu.dynamic_rotate %257 by %c239_i32_307 dim 1 : vector<32x256xf32>, i32 -> vector<32x256xf32>
    %c8_308 = arith.constant 8 : index
    %c0_309 = arith.constant 0 : index
    %322 = vector.load %arg2[%c8_308, %c0_309] : memref<9x256xf32, #tpu.memory_space<vmem>>, vector<1x256xf32>
    %323 = vector.broadcast %322 : vector<1x256xf32> to vector<32x256xf32>
    %324 = arith.mulf %321, %323 : vector<32x256xf32>
    %cst_310 = arith.constant dense<0.000000e+00> : vector<32x256xf32>
    %325 = tpu.matmul %320, %324, %cst_310 {dimension_numbers = #tpu.dot_dimension_numbers<[1], [0], [0], [1], [0, 0, 1, 1], [], []>} : vector<32x32xf32>, vector<32x256xf32>, vector<32x256xf32> -> vector<32x256xf32>
    %326 = arith.addf %318, %325 : vector<32x256xf32>
    %327 = vector.broadcast %259 : vector<32x1xf32> to vector<32x256xf32>
    %328 = arith.addf %326, %327 : vector<32x256xf32>
    %cst_311 = arith.constant 0.000000e+00 : f32
    %329 = vector.broadcast %cst_311 : f32 to vector<32x256xf32>
    %330 = arith.maximumf %328, %329 : vector<32x256xf32>
    %c0_312 = arith.constant 0 : index
    %c0_313 = arith.constant 0 : index
    %331 = vector.load %arg13[%c0_312, %c0_313] : memref<32x256xf32, #tpu.memory_space<vmem>>, vector<32x256xf32>
    tpu.vector_store %arg13[%c0_312, %c0_313], %330 {strides = array<i32>} : memref<32x256xf32, #tpu.memory_space<vmem>>, vector<32x256xf32>,
    %c0_314 = arith.constant 0 : index
    %c0_315 = arith.constant 0 : index
    %332 = vector.load %arg13[%c0_314, %c0_315] : memref<32x256xf32, #tpu.memory_space<vmem>>, vector<32x256xf32>
    %c4_316 = arith.constant 4 : index
    %c0_317 = arith.constant 0 : index
    %c0_318 = arith.constant 0 : index
    %333 = vector.load %arg4[%c4_316, %c0_317, %c0_318] : memref<5x32x1xf32, #tpu.memory_space<vmem>>, vector<1x32x1xf32>
    %334 = vector.shape_cast %333 : vector<1x32x1xf32> to vector<32x1xf32>
    %c4_319 = arith.constant 4 : index
    %c4_320 = arith.constant 4 : index
    %c0_321 = arith.constant 0 : index
    %c0_322 = arith.constant 0 : index
    %335 = vector.load %arg3[%c4_319, %c4_320, %c0_321, %c0_322] : memref<5x9x32x32xf32, #tpu.memory_space<vmem>>, vector<1x1x32x32xf32>
    %336 = vector.shape_cast %335 : vector<1x1x32x32xf32> to vector<32x32xf32>
    %cst_323 = arith.constant dense<0.000000e+00> : vector<32x256xf32>
    %337 = tpu.matmul %336, %332, %cst_323 {dimension_numbers = #tpu.dot_dimension_numbers<[1], [0], [0], [1], [0, 0, 1, 1], [], []>} : vector<32x32xf32>, vector<32x256xf32>, vector<32x256xf32> -> vector<32x256xf32>
    %c4_324 = arith.constant 4 : index
    %c0_325 = arith.constant 0 : index
    %c0_326 = arith.constant 0 : index
    %c0_327 = arith.constant 0 : index
    %338 = vector.load %arg3[%c4_324, %c0_325, %c0_326, %c0_327] : memref<5x9x32x32xf32, #tpu.memory_space<vmem>>, vector<1x1x32x32xf32>
    %339 = vector.shape_cast %338 : vector<1x1x32x32xf32> to vector<32x32xf32>
    %c17_i32_328 = arith.constant 17 : i32
    %340 = tpu.dynamic_rotate %332 by %c17_i32_328 dim 1 : vector<32x256xf32>, i32 -> vector<32x256xf32>
    %c0_329 = arith.constant 0 : index
    %c0_330 = arith.constant 0 : index
    %341 = vector.load %arg2[%c0_329, %c0_330] : memref<9x256xf32, #tpu.memory_space<vmem>>, vector<1x256xf32>
    %342 = vector.broadcast %341 : vector<1x256xf32> to vector<32x256xf32>
    %343 = arith.mulf %340, %342 : vector<32x256xf32>
    %cst_331 = arith.constant dense<0.000000e+00> : vector<32x256xf32>
    %344 = tpu.matmul %339, %343, %cst_331 {dimension_numbers = #tpu.dot_dimension_numbers<[1], [0], [0], [1], [0, 0, 1, 1], [], []>} : vector<32x32xf32>, vector<32x256xf32>, vector<32x256xf32> -> vector<32x256xf32>
    %345 = arith.addf %337, %344 : vector<32x256xf32>
    %c4_332 = arith.constant 4 : index
    %c1_333 = arith.constant 1 : index
    %c0_334 = arith.constant 0 : index
    %c0_335 = arith.constant 0 : index
    %346 = vector.load %arg3[%c4_332, %c1_333, %c0_334, %c0_335] : memref<5x9x32x32xf32, #tpu.memory_space<vmem>>, vector<1x1x32x32xf32>
    %347 = vector.shape_cast %346 : vector<1x1x32x32xf32> to vector<32x32xf32>
    %c16_i32_336 = arith.constant 16 : i32
    %348 = tpu.dynamic_rotate %332 by %c16_i32_336 dim 1 : vector<32x256xf32>, i32 -> vector<32x256xf32>
    %c1_337 = arith.constant 1 : index
    %c0_338 = arith.constant 0 : index
    %349 = vector.load %arg2[%c1_337, %c0_338] : memref<9x256xf32, #tpu.memory_space<vmem>>, vector<1x256xf32>
    %350 = vector.broadcast %349 : vector<1x256xf32> to vector<32x256xf32>
    %351 = arith.mulf %348, %350 : vector<32x256xf32>
    %cst_339 = arith.constant dense<0.000000e+00> : vector<32x256xf32>
    %352 = tpu.matmul %347, %351, %cst_339 {dimension_numbers = #tpu.dot_dimension_numbers<[1], [0], [0], [1], [0, 0, 1, 1], [], []>} : vector<32x32xf32>, vector<32x256xf32>, vector<32x256xf32> -> vector<32x256xf32>
    %353 = arith.addf %345, %352 : vector<32x256xf32>
    %c4_340 = arith.constant 4 : index
    %c2_341 = arith.constant 2 : index
    %c0_342 = arith.constant 0 : index
    %c0_343 = arith.constant 0 : index
    %354 = vector.load %arg3[%c4_340, %c2_341, %c0_342, %c0_343] : memref<5x9x32x32xf32, #tpu.memory_space<vmem>>, vector<1x1x32x32xf32>
    %355 = vector.shape_cast %354 : vector<1x1x32x32xf32> to vector<32x32xf32>
    %c15_i32_344 = arith.constant 15 : i32
    %356 = tpu.dynamic_rotate %332 by %c15_i32_344 dim 1 : vector<32x256xf32>, i32 -> vector<32x256xf32>
    %c2_345 = arith.constant 2 : index
    %c0_346 = arith.constant 0 : index
    %357 = vector.load %arg2[%c2_345, %c0_346] : memref<9x256xf32, #tpu.memory_space<vmem>>, vector<1x256xf32>
    %358 = vector.broadcast %357 : vector<1x256xf32> to vector<32x256xf32>
    %359 = arith.mulf %356, %358 : vector<32x256xf32>
    %cst_347 = arith.constant dense<0.000000e+00> : vector<32x256xf32>
    %360 = tpu.matmul %355, %359, %cst_347 {dimension_numbers = #tpu.dot_dimension_numbers<[1], [0], [0], [1], [0, 0, 1, 1], [], []>} : vector<32x32xf32>, vector<32x256xf32>, vector<32x256xf32> -> vector<32x256xf32>
    %361 = arith.addf %353, %360 : vector<32x256xf32>
    %c4_348 = arith.constant 4 : index
    %c3_349 = arith.constant 3 : index
    %c0_350 = arith.constant 0 : index
    %c0_351 = arith.constant 0 : index
    %362 = vector.load %arg3[%c4_348, %c3_349, %c0_350, %c0_351] : memref<5x9x32x32xf32, #tpu.memory_space<vmem>>, vector<1x1x32x32xf32>
    %363 = vector.shape_cast %362 : vector<1x1x32x32xf32> to vector<32x32xf32>
    %c1_i32_352 = arith.constant 1 : i32
    %364 = tpu.dynamic_rotate %332 by %c1_i32_352 dim 1 : vector<32x256xf32>, i32 -> vector<32x256xf32>
    %c3_353 = arith.constant 3 : index
    %c0_354 = arith.constant 0 : index
    %365 = vector.load %arg2[%c3_353, %c0_354] : memref<9x256xf32, #tpu.memory_space<vmem>>, vector<1x256xf32>
    %366 = vector.broadcast %365 : vector<1x256xf32> to vector<32x256xf32>
    %367 = arith.mulf %364, %366 : vector<32x256xf32>
    %cst_355 = arith.constant dense<0.000000e+00> : vector<32x256xf32>
    %368 = tpu.matmul %363, %367, %cst_355 {dimension_numbers = #tpu.dot_dimension_numbers<[1], [0], [0], [1], [0, 0, 1, 1], [], []>} : vector<32x32xf32>, vector<32x256xf32>, vector<32x256xf32> -> vector<32x256xf32>
    %369 = arith.addf %361, %368 : vector<32x256xf32>
    %c4_356 = arith.constant 4 : index
    %c5_357 = arith.constant 5 : index
    %c0_358 = arith.constant 0 : index
    %c0_359 = arith.constant 0 : index
    %370 = vector.load %arg3[%c4_356, %c5_357, %c0_358, %c0_359] : memref<5x9x32x32xf32, #tpu.memory_space<vmem>>, vector<1x1x32x32xf32>
    %371 = vector.shape_cast %370 : vector<1x1x32x32xf32> to vector<32x32xf32>
    %c255_i32_360 = arith.constant 255 : i32
    %372 = tpu.dynamic_rotate %332 by %c255_i32_360 dim 1 : vector<32x256xf32>, i32 -> vector<32x256xf32>
    %c5_361 = arith.constant 5 : index
    %c0_362 = arith.constant 0 : index
    %373 = vector.load %arg2[%c5_361, %c0_362] : memref<9x256xf32, #tpu.memory_space<vmem>>, vector<1x256xf32>
    %374 = vector.broadcast %373 : vector<1x256xf32> to vector<32x256xf32>
    %375 = arith.mulf %372, %374 : vector<32x256xf32>
    %cst_363 = arith.constant dense<0.000000e+00> : vector<32x256xf32>
    %376 = tpu.matmul %371, %375, %cst_363 {dimension_numbers = #tpu.dot_dimension_numbers<[1], [0], [0], [1], [0, 0, 1, 1], [], []>} : vector<32x32xf32>, vector<32x256xf32>, vector<32x256xf32> -> vector<32x256xf32>
    %377 = arith.addf %369, %376 : vector<32x256xf32>
    %c4_364 = arith.constant 4 : index
    %c6_365 = arith.constant 6 : index
    %c0_366 = arith.constant 0 : index
    %c0_367 = arith.constant 0 : index
    %378 = vector.load %arg3[%c4_364, %c6_365, %c0_366, %c0_367] : memref<5x9x32x32xf32, #tpu.memory_space<vmem>>, vector<1x1x32x32xf32>
    %379 = vector.shape_cast %378 : vector<1x1x32x32xf32> to vector<32x32xf32>
    %c241_i32_368 = arith.constant 241 : i32
    %380 = tpu.dynamic_rotate %332 by %c241_i32_368 dim 1 : vector<32x256xf32>, i32 -> vector<32x256xf32>
    %c6_369 = arith.constant 6 : index
    %c0_370 = arith.constant 0 : index
    %381 = vector.load %arg2[%c6_369, %c0_370] : memref<9x256xf32, #tpu.memory_space<vmem>>, vector<1x256xf32>
    %382 = vector.broadcast %381 : vector<1x256xf32> to vector<32x256xf32>
    %383 = arith.mulf %380, %382 : vector<32x256xf32>
    %cst_371 = arith.constant dense<0.000000e+00> : vector<32x256xf32>
    %384 = tpu.matmul %379, %383, %cst_371 {dimension_numbers = #tpu.dot_dimension_numbers<[1], [0], [0], [1], [0, 0, 1, 1], [], []>} : vector<32x32xf32>, vector<32x256xf32>, vector<32x256xf32> -> vector<32x256xf32>
    %385 = arith.addf %377, %384 : vector<32x256xf32>
    %c4_372 = arith.constant 4 : index
    %c7_373 = arith.constant 7 : index
    %c0_374 = arith.constant 0 : index
    %c0_375 = arith.constant 0 : index
    %386 = vector.load %arg3[%c4_372, %c7_373, %c0_374, %c0_375] : memref<5x9x32x32xf32, #tpu.memory_space<vmem>>, vector<1x1x32x32xf32>
    %387 = vector.shape_cast %386 : vector<1x1x32x32xf32> to vector<32x32xf32>
    %c240_i32_376 = arith.constant 240 : i32
    %388 = tpu.dynamic_rotate %332 by %c240_i32_376 dim 1 : vector<32x256xf32>, i32 -> vector<32x256xf32>
    %c7_377 = arith.constant 7 : index
    %c0_378 = arith.constant 0 : index
    %389 = vector.load %arg2[%c7_377, %c0_378] : memref<9x256xf32, #tpu.memory_space<vmem>>, vector<1x256xf32>
    %390 = vector.broadcast %389 : vector<1x256xf32> to vector<32x256xf32>
    %391 = arith.mulf %388, %390 : vector<32x256xf32>
    %cst_379 = arith.constant dense<0.000000e+00> : vector<32x256xf32>
    %392 = tpu.matmul %387, %391, %cst_379 {dimension_numbers = #tpu.dot_dimension_numbers<[1], [0], [0], [1], [0, 0, 1, 1], [], []>} : vector<32x32xf32>, vector<32x256xf32>, vector<32x256xf32> -> vector<32x256xf32>
    %393 = arith.addf %385, %392 : vector<32x256xf32>
    %c4_380 = arith.constant 4 : index
    %c8_381 = arith.constant 8 : index
    %c0_382 = arith.constant 0 : index
    %c0_383 = arith.constant 0 : index
    %394 = vector.load %arg3[%c4_380, %c8_381, %c0_382, %c0_383] : memref<5x9x32x32xf32, #tpu.memory_space<vmem>>, vector<1x1x32x32xf32>
    %395 = vector.shape_cast %394 : vector<1x1x32x32xf32> to vector<32x32xf32>
    %c239_i32_384 = arith.constant 239 : i32
    %396 = tpu.dynamic_rotate %332 by %c239_i32_384 dim 1 : vector<32x256xf32>, i32 -> vector<32x256xf32>
    %c8_385 = arith.constant 8 : index
    %c0_386 = arith.constant 0 : index
    %397 = vector.load %arg2[%c8_385, %c0_386] : memref<9x256xf32, #tpu.memory_space<vmem>>, vector<1x256xf32>
    %398 = vector.broadcast %397 : vector<1x256xf32> to vector<32x256xf32>
    %399 = arith.mulf %396, %398 : vector<32x256xf32>
    %cst_387 = arith.constant dense<0.000000e+00> : vector<32x256xf32>
    %400 = tpu.matmul %395, %399, %cst_387 {dimension_numbers = #tpu.dot_dimension_numbers<[1], [0], [0], [1], [0, 0, 1, 1], [], []>} : vector<32x32xf32>, vector<32x256xf32>, vector<32x256xf32> -> vector<32x256xf32>
    %401 = arith.addf %393, %400 : vector<32x256xf32>
    %402 = vector.broadcast %334 : vector<32x1xf32> to vector<32x256xf32>
    %403 = arith.addf %401, %402 : vector<32x256xf32>
    %c0_388 = arith.constant 0 : index
    %c0_389 = arith.constant 0 : index
    %404 = vector.load %arg13[%c0_388, %c0_389] : memref<32x256xf32, #tpu.memory_space<vmem>>, vector<32x256xf32>
    tpu.vector_store %arg13[%c0_388, %c0_389], %403 {strides = array<i32>} : memref<32x256xf32, #tpu.memory_space<vmem>>, vector<32x256xf32>,
    %c0_390 = arith.constant 0 : index
    %c0_391 = arith.constant 0 : index
    %405 = vector.load %arg13[%c0_390, %c0_391] : memref<32x256xf32, #tpu.memory_space<vmem>>, vector<32x256xf32>
    %cst_392 = arith.constant dense<0.000000e+00> : vector<32xf32>
    %406 = vector.multi_reduction <add>, %405, %cst_392 [1] : vector<32x256xf32> to vector<32xf32>
    %407 = vector.shape_cast %406 : vector<32xf32> to vector<32x1xf32>
    %cst_393 = arith.constant 2.560000e+02 : f32
    %408 = vector.broadcast %cst_393 : f32 to vector<32x1xf32>
    %409 = arith.divf %407, %408 : vector<32x1xf32>
    %410 = vector.shape_cast %409 : vector<32x1xf32> to vector<32x1xf32>
    %411 = vector.broadcast %410 : vector<32x1xf32> to vector<32x128xf32>
    %c1_394 = arith.constant 1 : index
    %c0_395 = arith.constant 0 : index
    %c0_396 = arith.constant 0 : index
    %412 = vector.load %arg5[%c1_394, %c0_395, %c0_396] : memref<2x8x32xf32, #tpu.memory_space<vmem>>, vector<1x8x32xf32>
    %413 = vector.shape_cast %412 : vector<1x8x32xf32> to vector<8x32xf32>
    %cst_397 = arith.constant dense<0.000000e+00> : vector<8x128xf32>
    %414 = tpu.matmul %413, %411, %cst_397 {dimension_numbers = #tpu.dot_dimension_numbers<[1], [0], [0], [1], [0, 0, 1, 1], [], []>} : vector<8x32xf32>, vector<32x128xf32>, vector<8x128xf32> -> vector<8x128xf32>
    %c1_398 = arith.constant 1 : index
    %c0_399 = arith.constant 0 : index
    %c0_400 = arith.constant 0 : index
    %415 = vector.load %arg6[%c1_398, %c0_399, %c0_400] : memref<2x8x1xf32, #tpu.memory_space<vmem>>, vector<1x8x1xf32>
    %416 = vector.shape_cast %415 : vector<1x8x1xf32> to vector<8x1xf32>
    %417 = vector.broadcast %416 : vector<8x1xf32> to vector<8x128xf32>
    %418 = arith.addf %414, %417 : vector<8x128xf32>
    %c1_401 = arith.constant 1 : index
    %c0_402 = arith.constant 0 : index
    %c0_403 = arith.constant 0 : index
    %419 = vector.load %arg7[%c1_401, %c0_402, %c0_403] : memref<2x32x8xf32, #tpu.memory_space<vmem>>, vector<1x32x8xf32>
    %420 = vector.shape_cast %419 : vector<1x32x8xf32> to vector<32x8xf32>
    %cst_404 = arith.constant 0.000000e+00 : f32
    %421 = vector.broadcast %cst_404 : f32 to vector<8x128xf32>
    %422 = arith.maximumf %418, %421 : vector<8x128xf32>
    %cst_405 = arith.constant dense<0.000000e+00> : vector<32x128xf32>
    %423 = tpu.matmul %420, %422, %cst_405 {dimension_numbers = #tpu.dot_dimension_numbers<[1], [0], [0], [1], [0, 0, 1, 1], [], []>} : vector<32x8xf32>, vector<8x128xf32>, vector<32x128xf32> -> vector<32x128xf32>
    %c1_406 = arith.constant 1 : index
    %c0_407 = arith.constant 0 : index
    %c0_408 = arith.constant 0 : index
    %424 = vector.load %arg8[%c1_406, %c0_407, %c0_408] : memref<2x32x1xf32, #tpu.memory_space<vmem>>, vector<1x32x1xf32>
    %425 = vector.shape_cast %424 : vector<1x32x1xf32> to vector<32x1xf32>
    %426 = vector.broadcast %425 : vector<32x1xf32> to vector<32x128xf32>
    %427 = arith.addf %423, %426 : vector<32x128xf32>
    %cst_409 = arith.constant 0.000000e+00 : f32
    %428 = vector.broadcast %cst_409 : f32 to vector<32x128xf32>
    %429 = arith.subf %428, %427 : vector<32x128xf32>
    %430 = math.exp %429 : vector<32x128xf32>
    %cst_410 = arith.constant 1.000000e+00 : f32
    %431 = vector.broadcast %cst_410 : f32 to vector<32x128xf32>
    %432 = arith.addf %431, %430 : vector<32x128xf32>
    %433 = tpu.reciprocal %432 {approx = true} : vector<32x128xf32> -> vector<32x128xf32>
    %c0_411 = arith.constant 0 : index
    %c0_412 = arith.constant 0 : index
    %434 = vector.load %arg12[%c0_411, %c0_412] : memref<32x256xf32, #tpu.memory_space<vmem>>, vector<32x256xf32>
    %435 = vector.extract_strided_slice %433 {offsets = [0, 0], sizes = [32, 1], strides = [1, 1]} : vector<32x128xf32> to vector<32x1xf32>
    %436 = arith.mulf %435, %409 : vector<32x1xf32>
    %437 = vector.broadcast %436 : vector<32x1xf32> to vector<32x256xf32>
    %438 = arith.addf %434, %437 : vector<32x256xf32>
    %c0_413 = arith.constant 0 : index
    %c0_414 = arith.constant 0 : index
    %439 = vector.load %arg12[%c0_413, %c0_414] : memref<32x256xf32, #tpu.memory_space<vmem>>, vector<32x256xf32>
    tpu.vector_store %arg12[%c0_413, %c0_414], %438 {strides = array<i32>} : memref<32x256xf32, #tpu.memory_space<vmem>>, vector<32x256xf32>,
    %c0_415 = arith.constant 0 : index
    %c0_416 = arith.constant 0 : index
    %440 = vector.load %arg12[%c0_415, %c0_416] : memref<32x256xf32, #tpu.memory_space<vmem>>, vector<32x256xf32>
    %c0_417 = arith.constant 0 : index
    %c0_418 = arith.constant 0 : index
    %441 = vector.load %arg10[%c0_417, %c0_418] : memref<8x1xf32, #tpu.memory_space<vmem>>, vector<8x1xf32>
    %c4_419 = arith.constant 4 : index
    %c0_420 = arith.constant 0 : index
    %c0_421 = arith.constant 0 : index
    %442 = vector.load %arg9[%c4_419, %c0_420, %c0_421] : memref<9x8x32xf32, #tpu.memory_space<vmem>>, vector<1x8x32xf32>
    %443 = vector.shape_cast %442 : vector<1x8x32xf32> to vector<8x32xf32>
    %cst_422 = arith.constant dense<0.000000e+00> : vector<8x256xf32>
    %444 = tpu.matmul %443, %440, %cst_422 {dimension_numbers = #tpu.dot_dimension_numbers<[1], [0], [0], [1], [0, 0, 1, 1], [], []>} : vector<8x32xf32>, vector<32x256xf32>, vector<8x256xf32> -> vector<8x256xf32>
    %c0_423 = arith.constant 0 : index
    %c0_424 = arith.constant 0 : index
    %c0_425 = arith.constant 0 : index
    %445 = vector.load %arg9[%c0_423, %c0_424, %c0_425] : memref<9x8x32xf32, #tpu.memory_space<vmem>>, vector<1x8x32xf32>
    %446 = vector.shape_cast %445 : vector<1x8x32xf32> to vector<8x32xf32>
    %c17_i32_426 = arith.constant 17 : i32
    %447 = tpu.dynamic_rotate %440 by %c17_i32_426 dim 1 : vector<32x256xf32>, i32 -> vector<32x256xf32>
    %c0_427 = arith.constant 0 : index
    %c0_428 = arith.constant 0 : index
    %448 = vector.load %arg2[%c0_427, %c0_428] : memref<9x256xf32, #tpu.memory_space<vmem>>, vector<1x256xf32>
    %449 = vector.broadcast %448 : vector<1x256xf32> to vector<32x256xf32>
    %450 = arith.mulf %447, %449 : vector<32x256xf32>
    %cst_429 = arith.constant dense<0.000000e+00> : vector<8x256xf32>
    %451 = tpu.matmul %446, %450, %cst_429 {dimension_numbers = #tpu.dot_dimension_numbers<[1], [0], [0], [1], [0, 0, 1, 1], [], []>} : vector<8x32xf32>, vector<32x256xf32>, vector<8x256xf32> -> vector<8x256xf32>
    %452 = arith.addf %444, %451 : vector<8x256xf32>
    %c1_430 = arith.constant 1 : index
    %c0_431 = arith.constant 0 : index
    %c0_432 = arith.constant 0 : index
    %453 = vector.load %arg9[%c1_430, %c0_431, %c0_432] : memref<9x8x32xf32, #tpu.memory_space<vmem>>, vector<1x8x32xf32>
    %454 = vector.shape_cast %453 : vector<1x8x32xf32> to vector<8x32xf32>
    %c16_i32_433 = arith.constant 16 : i32
    %455 = tpu.dynamic_rotate %440 by %c16_i32_433 dim 1 : vector<32x256xf32>, i32 -> vector<32x256xf32>
    %c1_434 = arith.constant 1 : index
    %c0_435 = arith.constant 0 : index
    %456 = vector.load %arg2[%c1_434, %c0_435] : memref<9x256xf32, #tpu.memory_space<vmem>>, vector<1x256xf32>
    %457 = vector.broadcast %456 : vector<1x256xf32> to vector<32x256xf32>
    %458 = arith.mulf %455, %457 : vector<32x256xf32>
    %cst_436 = arith.constant dense<0.000000e+00> : vector<8x256xf32>
    %459 = tpu.matmul %454, %458, %cst_436 {dimension_numbers = #tpu.dot_dimension_numbers<[1], [0], [0], [1], [0, 0, 1, 1], [], []>} : vector<8x32xf32>, vector<32x256xf32>, vector<8x256xf32> -> vector<8x256xf32>
    %460 = arith.addf %452, %459 : vector<8x256xf32>
    %c2_437 = arith.constant 2 : index
    %c0_438 = arith.constant 0 : index
    %c0_439 = arith.constant 0 : index
    %461 = vector.load %arg9[%c2_437, %c0_438, %c0_439] : memref<9x8x32xf32, #tpu.memory_space<vmem>>, vector<1x8x32xf32>
    %462 = vector.shape_cast %461 : vector<1x8x32xf32> to vector<8x32xf32>
    %c15_i32_440 = arith.constant 15 : i32
    %463 = tpu.dynamic_rotate %440 by %c15_i32_440 dim 1 : vector<32x256xf32>, i32 -> vector<32x256xf32>
    %c2_441 = arith.constant 2 : index
    %c0_442 = arith.constant 0 : index
    %464 = vector.load %arg2[%c2_441, %c0_442] : memref<9x256xf32, #tpu.memory_space<vmem>>, vector<1x256xf32>
    %465 = vector.broadcast %464 : vector<1x256xf32> to vector<32x256xf32>
    %466 = arith.mulf %463, %465 : vector<32x256xf32>
    %cst_443 = arith.constant dense<0.000000e+00> : vector<8x256xf32>
    %467 = tpu.matmul %462, %466, %cst_443 {dimension_numbers = #tpu.dot_dimension_numbers<[1], [0], [0], [1], [0, 0, 1, 1], [], []>} : vector<8x32xf32>, vector<32x256xf32>, vector<8x256xf32> -> vector<8x256xf32>
    %468 = arith.addf %460, %467 : vector<8x256xf32>
    %c3_444 = arith.constant 3 : index
    %c0_445 = arith.constant 0 : index
    %c0_446 = arith.constant 0 : index
    %469 = vector.load %arg9[%c3_444, %c0_445, %c0_446] : memref<9x8x32xf32, #tpu.memory_space<vmem>>, vector<1x8x32xf32>
    %470 = vector.shape_cast %469 : vector<1x8x32xf32> to vector<8x32xf32>
    %c1_i32_447 = arith.constant 1 : i32
    %471 = tpu.dynamic_rotate %440 by %c1_i32_447 dim 1 : vector<32x256xf32>, i32 -> vector<32x256xf32>
    %c3_448 = arith.constant 3 : index
    %c0_449 = arith.constant 0 : index
    %472 = vector.load %arg2[%c3_448, %c0_449] : memref<9x256xf32, #tpu.memory_space<vmem>>, vector<1x256xf32>
    %473 = vector.broadcast %472 : vector<1x256xf32> to vector<32x256xf32>
    %474 = arith.mulf %471, %473 : vector<32x256xf32>
    %cst_450 = arith.constant dense<0.000000e+00> : vector<8x256xf32>
    %475 = tpu.matmul %470, %474, %cst_450 {dimension_numbers = #tpu.dot_dimension_numbers<[1], [0], [0], [1], [0, 0, 1, 1], [], []>} : vector<8x32xf32>, vector<32x256xf32>, vector<8x256xf32> -> vector<8x256xf32>
    %476 = arith.addf %468, %475 : vector<8x256xf32>
    %c5_451 = arith.constant 5 : index
    %c0_452 = arith.constant 0 : index
    %c0_453 = arith.constant 0 : index
    %477 = vector.load %arg9[%c5_451, %c0_452, %c0_453] : memref<9x8x32xf32, #tpu.memory_space<vmem>>, vector<1x8x32xf32>
    %478 = vector.shape_cast %477 : vector<1x8x32xf32> to vector<8x32xf32>
    %c255_i32_454 = arith.constant 255 : i32
    %479 = tpu.dynamic_rotate %440 by %c255_i32_454 dim 1 : vector<32x256xf32>, i32 -> vector<32x256xf32>
    %c5_455 = arith.constant 5 : index
    %c0_456 = arith.constant 0 : index
    %480 = vector.load %arg2[%c5_455, %c0_456] : memref<9x256xf32, #tpu.memory_space<vmem>>, vector<1x256xf32>
    %481 = vector.broadcast %480 : vector<1x256xf32> to vector<32x256xf32>
    %482 = arith.mulf %479, %481 : vector<32x256xf32>
    %cst_457 = arith.constant dense<0.000000e+00> : vector<8x256xf32>
    %483 = tpu.matmul %478, %482, %cst_457 {dimension_numbers = #tpu.dot_dimension_numbers<[1], [0], [0], [1], [0, 0, 1, 1], [], []>} : vector<8x32xf32>, vector<32x256xf32>, vector<8x256xf32> -> vector<8x256xf32>
    %484 = arith.addf %476, %483 : vector<8x256xf32>
    %c6_458 = arith.constant 6 : index
    %c0_459 = arith.constant 0 : index
    %c0_460 = arith.constant 0 : index
    %485 = vector.load %arg9[%c6_458, %c0_459, %c0_460] : memref<9x8x32xf32, #tpu.memory_space<vmem>>, vector<1x8x32xf32>
    %486 = vector.shape_cast %485 : vector<1x8x32xf32> to vector<8x32xf32>
    %c241_i32_461 = arith.constant 241 : i32
    %487 = tpu.dynamic_rotate %440 by %c241_i32_461 dim 1 : vector<32x256xf32>, i32 -> vector<32x256xf32>
    %c6_462 = arith.constant 6 : index
    %c0_463 = arith.constant 0 : index
    %488 = vector.load %arg2[%c6_462, %c0_463] : memref<9x256xf32, #tpu.memory_space<vmem>>, vector<1x256xf32>
    %489 = vector.broadcast %488 : vector<1x256xf32> to vector<32x256xf32>
    %490 = arith.mulf %487, %489 : vector<32x256xf32>
    %cst_464 = arith.constant dense<0.000000e+00> : vector<8x256xf32>
    %491 = tpu.matmul %486, %490, %cst_464 {dimension_numbers = #tpu.dot_dimension_numbers<[1], [0], [0], [1], [0, 0, 1, 1], [], []>} : vector<8x32xf32>, vector<32x256xf32>, vector<8x256xf32> -> vector<8x256xf32>
    %492 = arith.addf %484, %491 : vector<8x256xf32>
    %c7_465 = arith.constant 7 : index
    %c0_466 = arith.constant 0 : index
    %c0_467 = arith.constant 0 : index
    %493 = vector.load %arg9[%c7_465, %c0_466, %c0_467] : memref<9x8x32xf32, #tpu.memory_space<vmem>>, vector<1x8x32xf32>
    %494 = vector.shape_cast %493 : vector<1x8x32xf32> to vector<8x32xf32>
    %c240_i32_468 = arith.constant 240 : i32
    %495 = tpu.dynamic_rotate %440 by %c240_i32_468 dim 1 : vector<32x256xf32>, i32 -> vector<32x256xf32>
    %c7_469 = arith.constant 7 : index
    %c0_470 = arith.constant 0 : index
    %496 = vector.load %arg2[%c7_469, %c0_470] : memref<9x256xf32, #tpu.memory_space<vmem>>, vector<1x256xf32>
    %497 = vector.broadcast %496 : vector<1x256xf32> to vector<32x256xf32>
    %498 = arith.mulf %495, %497 : vector<32x256xf32>
    %cst_471 = arith.constant dense<0.000000e+00> : vector<8x256xf32>
    %499 = tpu.matmul %494, %498, %cst_471 {dimension_numbers = #tpu.dot_dimension_numbers<[1], [0], [0], [1], [0, 0, 1, 1], [], []>} : vector<8x32xf32>, vector<32x256xf32>, vector<8x256xf32> -> vector<8x256xf32>
    %500 = arith.addf %492, %499 : vector<8x256xf32>
    %c8_472 = arith.constant 8 : index
    %c0_473 = arith.constant 0 : index
    %c0_474 = arith.constant 0 : index
    %501 = vector.load %arg9[%c8_472, %c0_473, %c0_474] : memref<9x8x32xf32, #tpu.memory_space<vmem>>, vector<1x8x32xf32>
    %502 = vector.shape_cast %501 : vector<1x8x32xf32> to vector<8x32xf32>
    %c239_i32_475 = arith.constant 239 : i32
    %503 = tpu.dynamic_rotate %440 by %c239_i32_475 dim 1 : vector<32x256xf32>, i32 -> vector<32x256xf32>
    %c8_476 = arith.constant 8 : index
    %c0_477 = arith.constant 0 : index
    %504 = vector.load %arg2[%c8_476, %c0_477] : memref<9x256xf32, #tpu.memory_space<vmem>>, vector<1x256xf32>
    %505 = vector.broadcast %504 : vector<1x256xf32> to vector<32x256xf32>
    %506 = arith.mulf %503, %505 : vector<32x256xf32>
    %cst_478 = arith.constant dense<0.000000e+00> : vector<8x256xf32>
    %507 = tpu.matmul %502, %506, %cst_478 {dimension_numbers = #tpu.dot_dimension_numbers<[1], [0], [0], [1], [0, 0, 1, 1], [], []>} : vector<8x32xf32>, vector<32x256xf32>, vector<8x256xf32> -> vector<8x256xf32>
    %508 = arith.addf %500, %507 : vector<8x256xf32>
    %509 = vector.broadcast %441 : vector<8x1xf32> to vector<8x256xf32>
    %510 = arith.addf %508, %509 : vector<8x256xf32>
    %c0_479 = arith.constant 0 : index
    %c0_480 = arith.constant 0 : index
    %c0_481 = arith.constant 0 : index
    %511 = vector.load %arg11[%c0_479, %c0_480, %c0_481] : memref<1x8x256xf32, #tpu.memory_space<vmem>>, vector<1x8x256xf32>
    %512 = vector.shape_cast %511 : vector<1x8x256xf32> to vector<8x256xf32>
    %513 = vector.shape_cast %510 : vector<8x256xf32> to vector<1x8x256xf32>
    tpu.vector_store %arg11[%c0_479, %c0_480, %c0_481], %513 {strides = array<i32>} : memref<1x8x256xf32, #tpu.memory_space<vmem>>, vector<1x8x256xf32>,
    return
  }
  func.func @transform_0(%arg0: i32) -> (i32, i32, i32) {
    %c0_i32 = arith.constant 0 : i32
    %c0_i32_0 = arith.constant 0 : i32
    %c0_i32_1 = arith.constant 0 : i32
    return %arg0, %c0_i32, %c0_i32_0 : i32, i32, i32
  }
  func.func @transform_1(%arg0: i32) -> (i32, i32) {
    %c0_i32 = arith.constant 0 : i32
    %c0_i32_0 = arith.constant 0 : i32
    %c0_i32_1 = arith.constant 0 : i32
    return %c0_i32, %c0_i32_0 : i32, i32
  }
  func.func @transform_2(%arg0: i32) -> (i32, i32, i32, i32) {
    %c0_i32 = arith.constant 0 : i32
    %c0_i32_0 = arith.constant 0 : i32
    %c0_i32_1 = arith.constant 0 : i32
    %c0_i32_2 = arith.constant 0 : i32
    %c0_i32_3 = arith.constant 0 : i32
    return %c0_i32, %c0_i32_0, %c0_i32_1, %c0_i32_2 : i32, i32, i32, i32
  }
  func.func @transform_3(%arg0: i32) -> (i32, i32, i32) {
    %c0_i32 = arith.constant 0 : i32
    %c0_i32_0 = arith.constant 0 : i32
    %c0_i32_1 = arith.constant 0 : i32
    %c0_i32_2 = arith.constant 0 : i32
    return %c0_i32, %c0_i32_0, %c0_i32_1 : i32, i32, i32
  }
  func.func @transform_4(%arg0: i32) -> (i32, i32, i32) {
    %c0_i32 = arith.constant 0 : i32
    %c0_i32_0 = arith.constant 0 : i32
    %c0_i32_1 = arith.constant 0 : i32
    %c0_i32_2 = arith.constant 0 : i32
    return %c0_i32, %c0_i32_0, %c0_i32_1 : i32, i32, i32
  }
  func.func @transform_5(%arg0: i32) -> (i32, i32, i32) {
    %c0_i32 = arith.constant 0 : i32
    %c0_i32_0 = arith.constant 0 : i32
    %c0_i32_1 = arith.constant 0 : i32
    %c0_i32_2 = arith.constant 0 : i32
    return %c0_i32, %c0_i32_0, %c0_i32_1 : i32, i32, i32
  }
  func.func @transform_6(%arg0: i32) -> (i32, i32, i32) {
    %c0_i32 = arith.constant 0 : i32
    %c0_i32_0 = arith.constant 0 : i32
    %c0_i32_1 = arith.constant 0 : i32
    %c0_i32_2 = arith.constant 0 : i32
    return %c0_i32, %c0_i32_0, %c0_i32_1 : i32, i32, i32
  }
  func.func @transform_7(%arg0: i32) -> (i32, i32, i32) {
    %c0_i32 = arith.constant 0 : i32
    %c0_i32_0 = arith.constant 0 : i32
    %c0_i32_1 = arith.constant 0 : i32
    %c0_i32_2 = arith.constant 0 : i32
    return %c0_i32, %c0_i32_0, %c0_i32_1 : i32, i32, i32
  }
  func.func @transform_8(%arg0: i32) -> (i32, i32, i32) {
    %c0_i32 = arith.constant 0 : i32
    %c0_i32_0 = arith.constant 0 : i32
    %c0_i32_1 = arith.constant 0 : i32
    %c0_i32_2 = arith.constant 0 : i32
    return %c0_i32, %c0_i32_0, %c0_i32_1 : i32, i32, i32
  }
  func.func @transform_9(%arg0: i32) -> (i32, i32) {
    %c0_i32 = arith.constant 0 : i32
    %c0_i32_0 = arith.constant 0 : i32
    %c0_i32_1 = arith.constant 0 : i32
    return %c0_i32, %c0_i32_0 : i32, i32
  }
  func.func @transform_10(%arg0: i32) -> (i32, i32, i32) {
    %c0_i32 = arith.constant 0 : i32
    %c0_i32_0 = arith.constant 0 : i32
    %c0_i32_1 = arith.constant 0 : i32
    return %arg0, %c0_i32, %c0_i32_0 : i32, i32, i32
  }
}

</mosaic_0001>

<bundles_post_ra>
// kernel: _lambda_.1
= control target key start
LH: loop header
LB: loop body
LE: loop exit
PB: predicated region body
PF: predicated region fallthrough
CT: control target
= control target key end

     0   :  { %15 = vsyncpa [#allocation5], 0  ;;  %s10507_s13 = smov 0   ;;  %s13341_s0 = inlined_call_operand.vmem [shape: f32[2,32,256], index: 0, kind: input, shape index: {}]   ;;  %s13342_s1 = inlined_call_operand.vmem [shape: f32[9,256], index: 1, kind: input, shape index: {}]   ;;  %s13343_s2 = inlined_call_operand.hbm [shape: f32[5,9,32,32], index: 2, kind: input, shape index: {}]   ;;  %s13344_s3 = inlined_call_operand.vmem [shape: f32[5,32,1], index: 3, kind: input, shape index: {}]   ;;  %s13345_s4 = inlined_call_operand.vmem [shape: f32[2,8,32], index: 4, kind: input, shape index: {}]   ;;  %s13346_s5 = inlined_call_operand.vmem [shape: f32[2,8,1], index: 5, kind: input, shape index: {}]   ;;  %s13347_s6 = inlined_call_operand.vmem [shape: f32[2,32,8], index: 6, kind: input, shape index: {}]   ;;  %s13348_s7 = inlined_call_operand.vmem [shape: f32[2,32,1], index: 7, kind: input, shape index: {}]   ;;  %s13349_s8 = inlined_call_operand.vmem [shape: f32[9,8,32], index: 8, kind: input, shape index: {}]   ;;  %s13350_s9 = inlined_call_operand.vmem [shape: f32[8,1], index: 9, kind: input, shape index: {}]   ;;  %s13351_s10 = inlined_call_operand.vmem [shape: f32[2,8,256], index: 10, kind: output, shape index: {}]  }
   0x1 LB: > { %s10513_s14 = sadd.s32 4294967295, %s10435_s13   ;;  %p9200_p0 = scmp.ge.s32.totalorder %s10435_s13, 1  ;;  %s10435_s13 = sphi %s10507_s13, %s21_s13  }
   0x2   : > { %p267_p1 = scmp.lt.s32.totalorder %s10435_s13, 3  ;;  %s10437_s15 = smov [#allocation4]  }
   0x3   : > { %s282_s16 = sshll.u32 %s10437_s15, 4  ;;  %p13352_p3 = scmp.eq.s32.totalorder %s10513_s14, 0  ;;  %s283_s16 = int_to_ptr.vmem [resolvable:$true] %s282_s16 }
   0x4   : > { %p10517_p2 = pnand %p9200_p0, %p267_p1  ;;  %s10397_s21 = scalar_lea.hbm %s13343_s2, 23040 }
   0x5   : > { %p10398_p6 = scmp.ne.s32.totalorder %s13343_s2, %s10397_s21  ;;  %p10404_p10 = scmp.lt.u32.totalorder %s10397_s21, %s13343_s2 }
   0x6   : > { %s13370_s17 = scalar_select %p10517_p2, 1, 0 }
   0x7   : > { %p10334_p4 = pneg %p10517_p2 }
   0x9   : > { %p10526_p5 = pnand %p13352_p3, %p10334_p4 }
   0xb   : > { %p10399_p7 = pneg %p10526_p5 }
   0xd   : > { %p10400_p8 = pnand %p10399_p7, %p10398_p6 }
   0xf   : > { %p10401_p9 = pneg %p10400_p8 }
  0x11   : > { %p10406_p11 = pnand %p10404_p10, %p10401_p9 }
  0x13   : > { %10409 = shalt.err (!%p10406_p11)
}
  0x14   : > { %s10410_s26 = scalar_lea.vmem %s283_s16, 23040  ;;  %p10418_p1 = scmp.lt.s32.totalorder %s283_s16, %s283_s16 }
  0x15   : > { %p10411_p12 = scmp.ne.s32.totalorder %s283_s16, %s10410_s26  ;;  %p10419_p4 = scmp.lt.s32.totalorder %s10410_s26, %s10410_s26 }
  0x17   : > { %p10413_p13 = pnand %p10411_p12, %p10399_p7  ;;  %p10420_p3 = por %p10419_p4, %p10418_p1 }
  0x19   : > { %p10414_p0 = pneg %p10413_p13 }
  0x1b   : > { %p10421_p2 = pnand %p10420_p3, %p10414_p0 }
  0x1d   : > { %10424 = shalt.err (!%p10421_p2)
}
  0x1e   : > { %s10438_s27 = smov 128   ;;  %s10439_s28 = smov 8  }
  0x1f   : > { %10337 = dma.hbm_to_vmem [thread:$0]  (!%p10526_p5), %s13343_s2, 23040, %s283_s16, [#allocation5], %s10438_s27, %s10438_s27, %s10439_s28  }
  0x20   : > { %p13372_p6 = scmp.ne.s32.totalorder %s13370_s17, 0 }
  0x22   : > { %327 = sbr.rel (%p13372_p6) target bundleno = 4420 (0x1144), region = 60 }
  0x29   : > { %p13373_p8 = scmp.eq.s32.totalorder %s10513_s14, 0 }
  0x2b   : > { %10430 = dma.done.wait (%p13373_p8), [#allocation5], 23040   ;;  %p13374_p7 = pmov %p13373_p8 }
  0x2c   : > { %p365_p2 = scmp.lt.s32.totalorder %s10513_s14, 1  ;;  %v13354_v0 = vmov 0.0   ;;  %s10441_s17 = smov 16   ;;  %v388_v13 = vld [vmem:[#allocation4 + $0x80] sm:$0xff]  ;;  %vm443_vm0 = vcmask 261120   ;;  %v389_v14 = vld [vmem:[#allocation4 + $0x88] sm:$0xff]  ;;  %v412_v15 = vlaneseq }
  0x2d   : > { %10432 = vsyncadd (%p13374_p7), [#allocation5], 4294944256  ;;  %621 = vmatprep.mubr.f32.mxu0 %v13354_v0  ;;  %520 = vmatprep.mubr.f32.mxu1 %v13354_v0  ;;  %s10442_s18 = smov 15   ;;  %s10443_s19 = smov 1   ;;  %v384_v56 = vld [vmem:[%s13344_s3 + $0x8] sm:$0xff]  ;;  %v383_v57 = vld [vmem:[%s13344_s3] sm:$0xff] }
  0x2e   : > { %s13407_s14 = smov (!%p365_p2, %s10513_s14), 1  ;;  %s10444_s20 = smov 127   ;;  %v426_v16 = vshrl.u32 %v412_v15, 7  ;;  %v10714_v17 = vand.u32 127, %v412_v15  ;;  %v647_v58 = vld [vmem:[#allocation4 + $0x20] sm:$0xff]  ;;  %v10449_v59 = vmov 0  }
  0x2f   : > { %s9486_s11 = sshll.u32 %s13407_s14, 6  ;;  %s10445_s21 = smov 113   ;;  %v9217_v20 = vld [vmem:[%s13342_s1 + $0x1] ss:$8 sm:$0x3]  ;;  %10364 = vset.pattern.permute.xlu1 %v10449_v59  ;;  %10363 = vset.pattern.permute.xlu0 %v10449_v59  ;;  %vm10451_vm9 = vmmov 0  }
  0x30   : > { %s369_s16 = scalar_lea.vmem %s13341_s0, %s9486_s11  ;;  %s10446_s22 = smov 112   ;;  %v10716_v18 = vsub.s32 0, %v426_v16  ;;  %v10722_v19 = vsub.s32 1, %v426_v16  ;;  %vm667_vm1 = vcmp.lt.s32.totalorder %v10714_v17, 16  ;;  %vm827_vm2 = vcmp.lt.s32.totalorder %v10714_v17, 15 }
  0x31   : > { %v10562_v1 = vld [vmem:[%s369_s16 + $0x8] sm:$0xff]  ;;  %v10564_v2 = vld [vmem:[%s369_s16] sm:$0xff]  ;;  %v10566_v3 = vld [vmem:[%s369_s16 + $0x18] sm:$0xff]  ;;  %s10447_s23 = smov 17   ;;  %s10448_s24 = smov 111   ;;  %vm987_vm3 = vcmp.lt.s32.totalorder %v10714_v17, 1 }
  0x32   : > { %659 = vrot.lane.b32.xlu1 %v10562_v1, %s10441_s17  ;;  %651 = vrot.lane.b32.xlu0 %v10564_v2, %s10441_s17  ;;  %v10572_v4 = vld [vmem:[%s369_s16 + $0x10] sm:$0xff]  ;;  %v10576_v5 = vpack.c.bf16 %v10566_v3, %v10562_v1  ;;  %v10578_v6 = vld [vmem:[%s369_s16 + $0x38] sm:$0xff]  ;;  %13375 = vst [vmem:[#allocation7_spill] sm:$0xff] %v10716_v18  ;;  %v682_v23 = vrot.slane %v9217_v20, %v10716_v18  ;;  %vm1147_vm4 = vcmp.lt.s32.totalorder %v10714_v17, 127  ;;  %vm1307_vm5 = vcmp.lt.s32.totalorder %v10714_v17, 113 }
  0x33   : > { %v10580_v7 = vld [vmem:[%s369_s16 + $0x28] sm:$0xff]  ;;  %v10584_v8 = vpack.c.bf16 %v10572_v4, %v10564_v2  ;;  %v10586_v9 = vld [vmem:[%s369_s16 + $0x30] sm:$0xff]  ;;  %v10588_v10 = vld [vmem:[%s369_s16 + $0x20] sm:$0xff]  ;;  %v686_v24 = vrot.slane %v9217_v20, %v10722_v19  ;;  %vm1467_vm6 = vcmp.lt.s32.totalorder %v10714_v17, 112  ;;  %vm414_vm7 = vcmp.lt.s32.totalorder %v10714_v17, 17 }
  0x34   : > { %9555 = vmatprep.subr.bf16.mxu0 %v10576_v5  ;;  %v10593_v11 = vpack.c.bf16 %v10578_v6, %v10580_v7  ;;  %v10598_v12 = vpack.c.bf16 %v10586_v9, %v10588_v10  ;;  %v9222_v49 = vld [vmem:[%s13342_s1 + $0x2] ss:$8 sm:$0x3]  ;;  %vm1627_vm8 = vcmp.lt.s32.totalorder %v10714_v17, 111  ;;  %vm4766_vm10 = vcmask 64512  }
  0x35   : > { %9557 = vmatpush1.bf16.msra.mxu0 %v10584_v8  ;;  %v842_v54 = vrot.slane %v9222_v49, %v10716_v18  ;;  %v846_v55 = vrot.slane %v9222_v49, %v10722_v19 }
  0x36   : > { %661 = vrot.lane.b32.xlu1 %v10566_v3, %s10441_s17  ;;  %653 = vrot.lane.b32.xlu0 %v10572_v4, %s10441_s17 }
  0x37   : > { %9559 = vmatprep.subr.bf16.mxu0 %v10593_v11 }
  0x39   : > { %9561 = vmatpush1.bf16.msra.mxu0 %v10598_v12 }
  0x3a   : > { %657 = vrot.lane.b32.xlu1 %v10586_v9, %s10441_s17  ;;  %655 = vrot.lane.b32.xlu0 %v10588_v10, %s10441_s17 }
  0x3c   : > { %9213 = vmatmul.mubr.msk.f32.vlgmr.msra.gmra.mrb[0].mxu0 %vm443_vm0, %v388_v13  ;;  %v648_v13 = vld [vmem:[#allocation4 + $0x28] sm:$0xff] }
  0x3d   : > { %627 = vmatprep.mubr.f32.mxu0 %v13354_v0 }
  0x3e   : > { %665 = vrot.lane.b32.xlu1 %v10578_v6, %s10441_s17  ;;  %663 = vrot.lane.b32.xlu0 %v10580_v7, %s10441_s17 }
  0x40   : > { %9214 = vmatmul.mubr.msk.f32.gmra.mrb[2].mxu0 %vm443_vm0, %v389_v14 }
  0x41   : > { %773 = vmatprep.mubr.f32.mxu0 %v13354_v0 }
  0x42   : > { %813 = vrot.lane.b32.xlu1 %v10572_v4, %s10442_s18  ;;  %811 = vrot.lane.b32.xlu0 %v10564_v2, %s10442_s18 }
  0x46   : > { %821 = vrot.lane.b32.xlu1 %v10566_v3, %s10442_s18  ;;  %819 = vrot.lane.b32.xlu0 %v10562_v1, %s10442_s18 }
  0x4a   : > { %817 = vrot.lane.b32.xlu1 %v10586_v9, %s10442_s18  ;;  %815 = vrot.lane.b32.xlu0 %v10588_v10, %s10442_s18 }
  0x4e   : > { %825 = vrot.lane.b32.xlu1 %v10578_v6, %s10442_s18  ;;  %823 = vrot.lane.b32.xlu0 %v10580_v7, %s10442_s18 }
  0x52   : > { %973 = vrot.lane.b32.xlu1 %v10572_v4, %s10443_s19  ;;  %971 = vrot.lane.b32.xlu0 %v10564_v2, %s10443_s19 }
  0x56   : > { %981 = vrot.lane.b32.xlu1 %v10566_v3, %s10443_s19  ;;  %979 = vrot.lane.b32.xlu0 %v10562_v1, %s10443_s19 }
  0x5a   : > { %977 = vrot.lane.b32.xlu1 %v10586_v9, %s10443_s19  ;;  %975 = vrot.lane.b32.xlu0 %v10588_v10, %s10443_s19 }
  0x5e   : > { %985 = vrot.lane.b32.xlu1 %v10578_v6, %s10443_s19  ;;  %983 = vrot.lane.b32.xlu0 %v10580_v7, %s10443_s19 }
  0x62   : > { %1133 = vrot.lane.b32.xlu1 %v10572_v4, %s10444_s20  ;;  %1131 = vrot.lane.b32.xlu0 %v10564_v2, %s10444_s20 }
  0x66   : > { %1141 = vrot.lane.b32.xlu1 %v10566_v3, %s10444_s20  ;;  %1139 = vrot.lane.b32.xlu0 %v10562_v1, %s10444_s20 }
  0x6a   : > { %1137 = vrot.lane.b32.xlu1 %v10586_v9, %s10444_s20  ;;  %1135 = vrot.lane.b32.xlu0 %v10588_v10, %s10444_s20 }
  0x6e   : > { %1145 = vrot.lane.b32.xlu1 %v10578_v6, %s10444_s20  ;;  %1143 = vrot.lane.b32.xlu0 %v10580_v7, %s10444_s20 }
  0x72   : > { %1293 = vrot.lane.b32.xlu1 %v10572_v4, %s10445_s21  ;;  %1291 = vrot.lane.b32.xlu0 %v10564_v2, %s10445_s21 }
  0x76   : > { %1301 = vrot.lane.b32.xlu1 %v10566_v3, %s10445_s21  ;;  %1299 = vrot.lane.b32.xlu0 %v10562_v1, %s10445_s21 }
  0x7a   : > { %1297 = vrot.lane.b32.xlu1 %v10586_v9, %s10445_s21  ;;  %1295 = vrot.lane.b32.xlu0 %v10588_v10, %s10445_s21 }
  0x7e   : > { %1305 = vrot.lane.b32.xlu1 %v10578_v6, %s10445_s21  ;;  %1303 = vrot.lane.b32.xlu0 %v10580_v7, %s10445_s21 }
  0x82   : > { %1453 = vrot.lane.b32.xlu1 %v10572_v4, %s10446_s22  ;;  %1451 = vrot.lane.b32.xlu0 %v10564_v2, %s10446_s22 }
  0x86   : > { %1461 = vrot.lane.b32.xlu1 %v10566_v3, %s10446_s22  ;;  %1459 = vrot.lane.b32.xlu0 %v10562_v1, %s10446_s22 }
  0x8a   : > { %1457 = vrot.lane.b32.xlu1 %v10586_v9, %s10446_s22  ;;  %1455 = vrot.lane.b32.xlu0 %v10588_v10, %s10446_s22 }
  0x8e   : > { %1465 = vrot.lane.b32.xlu1 %v10578_v6, %s10446_s22  ;;  %1463 = vrot.lane.b32.xlu0 %v10580_v7, %s10446_s22 }
  0x92   : > { %398 = vrot.lane.b32.xlu1 %v10572_v4, %s10447_s23  ;;  %396 = vrot.lane.b32.xlu0 %v10564_v2, %s10447_s23 }
  0x96   : > { %406 = vrot.lane.b32.xlu1 %v10566_v3, %s10447_s23  ;;  %404 = vrot.lane.b32.xlu0 %v10562_v1, %s10447_s23 }
  0x9a   : > { %402 = vrot.lane.b32.xlu1 %v10586_v9, %s10447_s23  ;;  %400 = vrot.lane.b32.xlu0 %v10588_v10, %s10447_s23 }
  0x9e   : > { %410 = vrot.lane.b32.xlu1 %v10578_v6, %s10447_s23  ;;  %408 = vrot.lane.b32.xlu0 %v10580_v7, %s10447_s23 }
  0xa2   : > { %1613 = vrot.lane.b32.xlu1 %v10572_v4, %s10448_s24  ;;  %1611 = vrot.lane.b32.xlu0 %v10564_v2, %s10448_s24 }
  0xa4   : > { %v660_v21 = vpop.permute.xlu1 %659  ;;  %v652_v22 = vpop.permute.xlu0 %651 }
  0xa5   : > { %v672_v25 = vsel %vm667_vm1, %v660_v21, %v652_v22  ;;  %v668_v26 = vsel %vm667_vm1, %v652_v22, %v660_v21  ;;  %v649_v21 = vld [vmem:[#allocation4 + $0x30] sm:$0xff] }
  0xa6   : > { %1621 = vrot.lane.b32.xlu1 %v10566_v3, %s10448_s24  ;;  %1619 = vrot.lane.b32.xlu0 %v10562_v1, %s10448_s24  ;;  %v689_v29 = vmul.f32 %v682_v23, %v672_v25  ;;  %v690_v32 = vmul.f32 %v686_v24, %v668_v26  ;;  %v385_v3 = vld [vmem:[%s13344_s3 + $0x10] sm:$0xff] }
  0xa8   : > { %v662_v27 = vpop.permute.xlu1 %661  ;;  %v654_v28 = vpop.permute.xlu0 %653 }
  0xa9   : > { %v669_v30 = vsel %vm667_vm1, %v654_v28, %v662_v27  ;;  %v673_v31 = vsel %vm667_vm1, %v662_v27, %v654_v28 }
  0xaa   : > { %v691_v33 = vmul.f32 %v682_v23, %v673_v31  ;;  %v692_v34 = vmul.f32 %v686_v24, %v669_v30  ;;  %1617 = vrot.lane.b32.xlu1 %v10586_v9, %s10448_s24  ;;  %1615 = vrot.lane.b32.xlu0 %v10588_v10, %s10448_s24  ;;  %v386_v10 = vld [vmem:[%s13344_s3 + $0x18] sm:$0xff] }
  0xac   : > { %v9564_v35 = vpack.c.bf16 %v691_v33, %v689_v29  ;;  %v658_v36 = vpop.permute.xlu1 %657  ;;  %v656_v37 = vpop.permute.xlu0 %655  ;;  %v9562_v38 = vpack.c.bf16 %v692_v34, %v690_v32  ;;  %v9227_v32 = vld [vmem:[%s13342_s1 + $0x3] ss:$8 sm:$0x3]  ;;  %v650_v33 = vld [vmem:[#allocation4 + $0x38] sm:$0xff] }
  0xae   : > { %1625 = vrot.lane.b32.xlu1 %v10578_v6, %s10448_s24  ;;  %1623 = vrot.lane.b32.xlu0 %v10580_v7, %s10448_s24 }
  0xaf   : > { %9563 = vmatprep.subr.bf16.mxu0 %v9562_v38  ;;  %v1002_v38 = vrot.slane %v9227_v32, %v10716_v18 }
  0xb0   : > { %9565 = vmatpush1.bf16.msra.mxu0 %v9564_v35  ;;  %v666_v39 = vpop.permute.xlu1 %665  ;;  %v664_v40 = vpop.permute.xlu0 %663 }
  0xb1   : > { %v671_v41 = vsel %vm667_vm1, %v658_v36, %v666_v39  ;;  %v675_v42 = vsel %vm667_vm1, %v666_v39, %v658_v36  ;;  %v670_v43 = vsel %vm667_vm1, %v656_v37, %v664_v40  ;;  %v674_v44 = vsel %vm667_vm1, %v664_v40, %v656_v37  ;;  %v807_v40 = vld [vmem:[#allocation4 + $0x40] sm:$0xff] }
  0xb2   : > { %v695_v45 = vmul.f32 %v682_v23, %v675_v42  ;;  %v696_v46 = vmul.f32 %v686_v24, %v671_v41  ;;  %v693_v47 = vmul.f32 %v682_v23, %v674_v44  ;;  %v694_v48 = vmul.f32 %v686_v24, %v670_v43  ;;  %1773 = vperm.xlu1 %10364, %v384_v56   ;;  %v809_v56 = vld [vmem:[#allocation4 + $0x50] sm:$0xff] }
  0xb3   : > { %1768 = vperm.xlu0 %10363, %v383_v57   ;;  %v1006_v39 = vrot.slane %v9227_v32, %v10722_v19 }
  0xb4   : > { %v9568_v50 = vpack.c.bf16 %v695_v45, %v693_v47  ;;  %v814_v51 = vpop.permute.xlu1 %813  ;;  %v812_v52 = vpop.permute.xlu0 %811  ;;  %v9566_v53 = vpack.c.bf16 %v696_v46, %v694_v48 }
  0xb6   : > { %9567 = vmatprep.subr.bf16.mxu0 %v9566_v53  ;;  %1778 = vperm.xlu1 %10364, %v385_v3  }
  0xb7   : > { %9569 = vmatpush1.bf16.msra.mxu0 %v9568_v50  ;;  %1783 = vperm.xlu0 %10363, %v386_v10  }
  0xb8   : > { %v822_v60 = vpop.permute.xlu1 %821  ;;  %v820_v61 = vpop.permute.xlu0 %819 }
  0xb9   : > { %v829_v62 = vsel %vm827_vm2, %v814_v51, %v822_v60  ;;  %v833_v63 = vsel %vm827_vm2, %v822_v60, %v814_v51  ;;  %v828_v1 = vsel %vm827_vm2, %v812_v52, %v820_v61  ;;  %v832_v2 = vsel %vm827_vm2, %v820_v61, %v812_v52  ;;  %v808_v51 = vld [vmem:[#allocation4 + $0x48] sm:$0xff] }
  0xba   : > { %v851_v4 = vmul.f32 %v842_v54, %v833_v63  ;;  %v852_v6 = vmul.f32 %v846_v55, %v829_v62  ;;  %v849_v7 = vmul.f32 %v842_v54, %v832_v2  ;;  %v850_v9 = vmul.f32 %v846_v55, %v828_v1  ;;  %9218 = vmatmul.mubr.msk.f32.vlgmr.msra.gmra.mrb[0].mxu0 %vm443_vm0, %v647_v58 }
  0xbb   : > { %779 = vmatprep.mubr.f32.mxu0 %v13354_v0 }
  0xbc   : > { %v9572_v14 = vpack.c.bf16 %v851_v4, %v849_v7  ;;  %v818_v15 = vpop.permute.xlu1 %817  ;;  %v816_v16 = vpop.permute.xlu0 %815  ;;  %v9570_v20 = vpack.c.bf16 %v852_v6, %v850_v9  ;;  %v9232_v4 = vld [vmem:[%s13342_s1 + $0x5] ss:$8 sm:$0x3]  ;;  %v810_v6 = vld [vmem:[#allocation4 + $0x58] sm:$0xff] }
  0xbe   : > { %9571 = vmatprep.subr.bf16.mxu0 %v9570_v20  ;;  %9219 = vmatmul.mubr.msk.f32.gmra.mrb[2].mxu0 %vm443_vm0, %v648_v13 }
  0xbf   : > { %9573 = vmatpush1.bf16.msra.mxu0 %v9572_v14  ;;  %785 = vmatprep.mubr.f32.mxu0 %v13354_v0  ;;  %v1162_v14 = vrot.slane %v9232_v4, %v10716_v18 }
  0xc0   : > { %v826_v22 = vpop.permute.xlu1 %825  ;;  %v824_v23 = vpop.permute.xlu0 %823 }
  0xc1   : > { %v831_v24 = vsel %vm827_vm2, %v818_v15, %v826_v22  ;;  %v835_v25 = vsel %vm827_vm2, %v826_v22, %v818_v15  ;;  %v830_v26 = vsel %vm827_vm2, %v816_v16, %v824_v23  ;;  %v834_v27 = vsel %vm827_vm2, %v824_v23, %v816_v16  ;;  %v967_v16 = vld [vmem:[#allocation4 + $0x60] sm:$0xff] }
  0xc2   : > { %v855_v28 = vmul.f32 %v842_v54, %v835_v25  ;;  %v856_v29 = vmul.f32 %v846_v55, %v831_v24  ;;  %v853_v30 = vmul.f32 %v842_v54, %v834_v27  ;;  %v854_v31 = vmul.f32 %v846_v55, %v830_v26  ;;  %9220 = vmatmul.mubr.msk.f32.gmra.mrb[4].mxu0 %vm443_vm0, %v649_v21 }
  0xc3   : > { %791 = vmatprep.mubr.f32.mxu0 %v13354_v0  ;;  %v1166_v15 = vrot.slane %v9232_v4, %v10722_v19 }
  0xc4   : > { %v9576_v34 = vpack.c.bf16 %v855_v28, %v853_v30  ;;  %v974_v35 = vpop.permute.xlu1 %973  ;;  %v972_v36 = vpop.permute.xlu0 %971  ;;  %v9574_v37 = vpack.c.bf16 %v856_v29, %v854_v31  ;;  %v968_v30 = vld [vmem:[#allocation4 + $0x68] sm:$0xff] }
  0xc6   : > { %9575 = vmatprep.subr.bf16.mxu0 %v9574_v37  ;;  %9221 = vmatmul.mubr.msk.f32.gmra.mrb[6].mxu0 %vm443_vm0, %v650_v33 }
  0xc7   : > { %9577 = vmatpush1.bf16.msra.mxu0 %v9576_v34  ;;  %933 = vmatprep.mubr.f32.mxu0 %v13354_v0 }
  0xc8   : > { %v982_v41 = vpop.permute.xlu1 %981  ;;  %v980_v42 = vpop.permute.xlu0 %979 }
  0xc9   : > { %v989_v43 = vsel %vm987_vm3, %v974_v35, %v982_v41  ;;  %v993_v44 = vsel %vm987_vm3, %v982_v41, %v974_v35  ;;  %v988_v45 = vsel %vm987_vm3, %v972_v36, %v980_v42  ;;  %v992_v46 = vsel %vm987_vm3, %v980_v42, %v972_v36  ;;  %v969_v35 = vld [vmem:[#allocation4 + $0x70] sm:$0xff] }
  0xca   : > { %v1011_v47 = vmul.f32 %v1002_v38, %v993_v44  ;;  %v1012_v48 = vmul.f32 %v1006_v39, %v989_v43  ;;  %v1009_v49 = vmul.f32 %v1002_v38, %v992_v46  ;;  %v1010_v50 = vmul.f32 %v1006_v39, %v988_v45  ;;  %9223 = vmatmul.mubr.msk.f32.vlgmr.msra.gmra.mrb[0].mxu0 %vm443_vm0, %v807_v40  ;;  %v9237_v46 = vld [vmem:[%s13342_s1 + $0x6] ss:$8 sm:$0x3] }
  0xcb   : > { %939 = vmatprep.mubr.f32.mxu0 %v13354_v0 }
  0xcc   : > { %v9580_v52 = vpack.c.bf16 %v1011_v47, %v1009_v49  ;;  %v978_v53 = vpop.permute.xlu1 %977  ;;  %v976_v54 = vpop.permute.xlu0 %975  ;;  %v9578_v55 = vpack.c.bf16 %v1012_v48, %v1010_v50  ;;  %v970_v47 = vld [vmem:[#allocation4 + $0x78] sm:$0xff] }
  0xce   : > { %9579 = vmatprep.subr.bf16.mxu0 %v9578_v55  ;;  %9224 = vmatmul.mubr.msk.f32.gmra.mrb[2].mxu0 %vm443_vm0, %v808_v51 }
  0xcf   : > { %9581 = vmatpush1.bf16.msra.mxu0 %v9580_v52  ;;  %945 = vmatprep.mubr.f32.mxu0 %v13354_v0  ;;  %v1322_v52 = vrot.slane %v9237_v46, %v10716_v18 }
  0xd0   : > { %v986_v57 = vpop.permute.xlu1 %985  ;;  %v984_v58 = vpop.permute.xlu0 %983 }
  0xd1   : > { %v991_v59 = vsel %vm987_vm3, %v978_v53, %v986_v57  ;;  %v995_v60 = vsel %vm987_vm3, %v986_v57, %v978_v53  ;;  %v990_v61 = vsel %vm987_vm3, %v976_v54, %v984_v58  ;;  %v994_v62 = vsel %vm987_vm3, %v984_v58, %v976_v54  ;;  %v1127_v54 = vld [vmem:[#allocation4 + $0xa0] sm:$0xff] }
  0xd2   : > { %v1015_v63 = vmul.f32 %v1002_v38, %v995_v60  ;;  %v1016_v1 = vmul.f32 %v1006_v39, %v991_v59  ;;  %v1013_v2 = vmul.f32 %v1002_v38, %v994_v62  ;;  %v1014_v3 = vmul.f32 %v1006_v39, %v990_v61  ;;  %9225 = vmatmul.mubr.msk.f32.gmra.mrb[4].mxu0 %vm443_vm0, %v809_v56 }
  0xd3   : > { %951 = vmatprep.mubr.f32.mxu0 %v13354_v0  ;;  %v1326_v53 = vrot.slane %v9237_v46, %v10722_v19 }
  0xd4   : > { %v9584_v7 = vpack.c.bf16 %v1015_v63, %v1013_v2  ;;  %v1134_v9 = vpop.permute.xlu1 %1133  ;;  %v1132_v10 = vpop.permute.xlu0 %1131  ;;  %v9582_v13 = vpack.c.bf16 %v1016_v1, %v1014_v3  ;;  %v1128_v2 = vld [vmem:[#allocation4 + $0xa8] sm:$0xff] }
  0xd6   : > { %9583 = vmatprep.subr.bf16.mxu0 %v9582_v13  ;;  %9226 = vmatmul.mubr.msk.f32.gmra.mrb[6].mxu0 %vm443_vm0, %v810_v6 }
  0xd7   : > { %9585 = vmatpush1.bf16.msra.mxu0 %v9584_v7  ;;  %1093 = vmatprep.mubr.f32.mxu0 %v13354_v0 }
  0xd8   : > { %v1142_v20 = vpop.permute.xlu1 %1141  ;;  %v1140_v21 = vpop.permute.xlu0 %1139 }
  0xd9   : > { %v1149_v22 = vsel %vm1147_vm4, %v1134_v9, %v1142_v20  ;;  %v1153_v23 = vsel %vm1147_vm4, %v1142_v20, %v1134_v9  ;;  %v1148_v24 = vsel %vm1147_vm4, %v1132_v10, %v1140_v21  ;;  %v1152_v25 = vsel %vm1147_vm4, %v1140_v21, %v1132_v10  ;;  %v1129_v9 = vld [vmem:[#allocation4 + $0xb0] sm:$0xff] }
  0xda   : > { %v1171_v26 = vmul.f32 %v1162_v14, %v1149_v22  ;;  %v1172_v27 = vmul.f32 %v1166_v15, %v1153_v23  ;;  %v1169_v28 = vmul.f32 %v1162_v14, %v1148_v24  ;;  %v1170_v29 = vmul.f32 %v1166_v15, %v1152_v25  ;;  %9228 = vmatmul.mubr.msk.f32.vlgmr.msra.gmra.mrb[0].mxu0 %vm443_vm0, %v967_v16  ;;  %v9242_v25 = vld [vmem:[%s13342_s1 + $0x7] ss:$8 sm:$0x3] }
  0xdb   : > { %1099 = vmatprep.mubr.f32.mxu0 %v13354_v0 }
  0xdc   : > { %v9588_v31 = vpack.c.bf16 %v1171_v26, %v1169_v28  ;;  %v1138_v32 = vpop.permute.xlu1 %1137  ;;  %v1136_v33 = vpop.permute.xlu0 %1135  ;;  %v9586_v34 = vpack.c.bf16 %v1172_v27, %v1170_v29  ;;  %v1130_v26 = vld [vmem:[#allocation4 + $0xb8] sm:$0xff] }
  0xde   : > { %9587 = vmatprep.subr.bf16.mxu0 %v9586_v34  ;;  %9229 = vmatmul.mubr.msk.f32.gmra.mrb[2].mxu0 %vm443_vm0, %v968_v30 }
  0xdf   : > { %9589 = vmatpush1.bf16.msra.mxu0 %v9588_v31  ;;  %1105 = vmatprep.mubr.f32.mxu0 %v13354_v0  ;;  %v1482_v31 = vrot.slane %v9242_v25, %v10716_v18 }
  0xe0   : > { %v1146_v36 = vpop.permute.xlu1 %1145  ;;  %v1144_v37 = vpop.permute.xlu0 %1143 }
  0xe1   : > { %v1151_v38 = vsel %vm1147_vm4, %v1138_v32, %v1146_v36  ;;  %v1155_v39 = vsel %vm1147_vm4, %v1146_v36, %v1138_v32  ;;  %v1150_v40 = vsel %vm1147_vm4, %v1136_v33, %v1144_v37  ;;  %v1154_v41 = vsel %vm1147_vm4, %v1144_v37, %v1136_v33  ;;  %v1287_v33 = vld [vmem:[#allocation4 + $0xc0] sm:$0xff] }
  0xe2   : > { %v1175_v42 = vmul.f32 %v1162_v14, %v1151_v38  ;;  %v1176_v43 = vmul.f32 %v1166_v15, %v1155_v39  ;;  %v1173_v44 = vmul.f32 %v1162_v14, %v1150_v40  ;;  %v1174_v45 = vmul.f32 %v1166_v15, %v1154_v41  ;;  %9230 = vmatmul.mubr.msk.f32.gmra.mrb[4].mxu0 %vm443_vm0, %v969_v35 }
  0xe3   : > { %1111 = vmatprep.mubr.f32.mxu0 %v13354_v0  ;;  %v1486_v32 = vrot.slane %v9242_v25, %v10722_v19 }
  0xe4   : > { %v9592_v48 = vpack.c.bf16 %v1175_v42, %v1173_v44  ;;  %v1294_v49 = vpop.permute.xlu1 %1293  ;;  %v1292_v50 = vpop.permute.xlu0 %1291  ;;  %v9590_v51 = vpack.c.bf16 %v1176_v43, %v1174_v45  ;;  %v1288_v44 = vld [vmem:[#allocation4 + $0xc8] sm:$0xff] }
  0xe6   : > { %9591 = vmatprep.subr.bf16.mxu0 %v9590_v51  ;;  %9231 = vmatmul.mubr.msk.f32.gmra.mrb[6].mxu0 %vm443_vm0, %v970_v47 }
  0xe7   : > { %9593 = vmatpush1.bf16.msra.mxu0 %v9592_v48  ;;  %1253 = vmatprep.mubr.f32.mxu0 %v13354_v0 }
  0xe8   : > { %v1302_v55 = vpop.permute.xlu1 %1301  ;;  %v1300_v56 = vpop.permute.xlu0 %1299 }
  0xe9   : > { %v1309_v57 = vsel %vm1307_vm5, %v1294_v49, %v1302_v55  ;;  %v1313_v58 = vsel %vm1307_vm5, %v1302_v55, %v1294_v49  ;;  %v1308_v59 = vsel %vm1307_vm5, %v1292_v50, %v1300_v56  ;;  %v1312_v60 = vsel %vm1307_vm5, %v1300_v56, %v1292_v50  ;;  %v1289_v49 = vld [vmem:[#allocation4 + $0xd0] sm:$0xff] }
  0xea   : > { %v1331_v61 = vmul.f32 %v1322_v52, %v1309_v57  ;;  %v1332_v62 = vmul.f32 %v1326_v53, %v1313_v58  ;;  %v1329_v63 = vmul.f32 %v1322_v52, %v1308_v59  ;;  %v1330_v1 = vmul.f32 %v1326_v53, %v1312_v60  ;;  %9233 = vmatmul.mubr.msk.f32.vlgmr.msra.gmra.mrb[0].mxu0 %vm443_vm0, %v1127_v54  ;;  %v423_v60 = vld [vmem:[%s13342_s1] ss:$8 sm:$0x3] }
  0xeb   : > { %1259 = vmatprep.mubr.f32.mxu0 %v13354_v0 }
  0xec   : > { %v9596_v3 = vpack.c.bf16 %v1331_v61, %v1329_v63  ;;  %v1298_v4 = vpop.permute.xlu1 %1297  ;;  %v1296_v6 = vpop.permute.xlu0 %1295  ;;  %v9594_v7 = vpack.c.bf16 %v1332_v62, %v1330_v1  ;;  %v1290_v61 = vld [vmem:[#allocation4 + $0xd8] sm:$0xff] }
  0xee   : > { %9595 = vmatprep.subr.bf16.mxu0 %v9594_v7  ;;  %9234 = vmatmul.mubr.msk.f32.gmra.mrb[2].mxu0 %vm443_vm0, %v1128_v2 }
  0xef   : > { %9597 = vmatpush1.bf16.msra.mxu0 %v9596_v3  ;;  %1265 = vmatprep.mubr.f32.mxu0 %v13354_v0  ;;  %v432_v3 = vrot.slane %v423_v60, %v10722_v19 }
  0xf0   : > { %v1306_v10 = vpop.permute.xlu1 %1305  ;;  %v1304_v13 = vpop.permute.xlu0 %1303 }
  0xf1   : > { %v1311_v14 = vsel %vm1307_vm5, %v1298_v4, %v1306_v10  ;;  %v1315_v15 = vsel %vm1307_vm5, %v1306_v10, %v1298_v4  ;;  %v1310_v16 = vsel %vm1307_vm5, %v1296_v6, %v1304_v13  ;;  %v1314_v20 = vsel %vm1307_vm5, %v1304_v13, %v1296_v6  ;;  %v1447_v6 = vld [vmem:[#allocation4 + $0xe0] sm:$0xff] }
  0xf2   : > { %v1335_v21 = vmul.f32 %v1322_v52, %v1311_v14  ;;  %v1336_v22 = vmul.f32 %v1326_v53, %v1315_v15  ;;  %v1333_v23 = vmul.f32 %v1322_v52, %v1310_v16  ;;  %v1334_v24 = vmul.f32 %v1326_v53, %v1314_v20  ;;  %9235 = vmatmul.mubr.msk.f32.gmra.mrb[4].mxu0 %vm443_vm0, %v1129_v9 }
  0xf3   : > { %1271 = vmatprep.mubr.f32.mxu0 %v13354_v0  ;;  %v428_v4 = vrot.slane %v423_v60, %v10716_v18 }
  0xf4   : > { %v9600_v27 = vpack.c.bf16 %v1335_v21, %v1333_v23  ;;  %v1454_v28 = vpop.permute.xlu1 %1453  ;;  %v1452_v29 = vpop.permute.xlu0 %1451  ;;  %v9598_v30 = vpack.c.bf16 %v1336_v22, %v1334_v24  ;;  %v1448_v23 = vld [vmem:[#allocation4 + $0xe8] sm:$0xff] }
  0xf6   : > { %9599 = vmatprep.subr.bf16.mxu0 %v9598_v30  ;;  %9236 = vmatmul.mubr.msk.f32.gmra.mrb[6].mxu0 %vm443_vm0, %v1130_v26 }
  0xf7   : > { %9601 = vmatpush1.bf16.msra.mxu0 %v9600_v27  ;;  %1413 = vmatprep.mubr.f32.mxu0 %v13354_v0 }
  0xf8   : > { %v1462_v34 = vpop.permute.xlu1 %1461  ;;  %v1460_v35 = vpop.permute.xlu0 %1459 }
  0xf9   : > { %v1469_v36 = vsel %vm1467_vm6, %v1454_v28, %v1462_v34  ;;  %v1473_v37 = vsel %vm1467_vm6, %v1462_v34, %v1454_v28  ;;  %v1468_v38 = vsel %vm1467_vm6, %v1452_v29, %v1460_v35  ;;  %v1472_v39 = vsel %vm1467_vm6, %v1460_v35, %v1452_v29  ;;  %v1449_v28 = vld [vmem:[#allocation4 + $0xf0] sm:$0xff] }
  0xfa   : > { %v1491_v40 = vmul.f32 %v1482_v31, %v1469_v36  ;;  %v1492_v41 = vmul.f32 %v1486_v32, %v1473_v37  ;;  %v1489_v42 = vmul.f32 %v1482_v31, %v1468_v38  ;;  %v1490_v43 = vmul.f32 %v1486_v32, %v1472_v39  ;;  %9238 = vmatmul.mubr.msk.f32.vlgmr.msra.gmra.mrb[0].mxu0 %vm443_vm0, %v1287_v33  ;;  %v9247_v39 = vld [vmem:[%s13342_s1 + $0x10] ss:$8 sm:$0x3] }
  0xfb   : > { %1419 = vmatprep.mubr.f32.mxu0 %v13354_v0 }
  0xfc   : > { %v9604_v45 = vpack.c.bf16 %v1491_v40, %v1489_v42  ;;  %v1458_v46 = vpop.permute.xlu1 %1457  ;;  %v1456_v47 = vpop.permute.xlu0 %1455  ;;  %v9602_v48 = vpack.c.bf16 %v1492_v41, %v1490_v43  ;;  %v1450_v40 = vld [vmem:[#allocation4 + $0xf8] sm:$0xff] }
  0xfe   : > { %9603 = vmatprep.subr.bf16.mxu0 %v9602_v48  ;;  %9239 = vmatmul.mubr.msk.f32.gmra.mrb[2].mxu0 %vm443_vm0, %v1288_v44 }
  0xff   : > { %9605 = vmatpush1.bf16.msra.mxu0 %v9604_v45  ;;  %1425 = vmatprep.mubr.f32.mxu0 %v13354_v0  ;;  %v1642_v45 = vrot.slane %v9247_v39, %v10716_v18 }
 0x100   : > { %v1466_v50 = vpop.permute.xlu1 %1465  ;;  %v1464_v51 = vpop.permute.xlu0 %1463 }
 0x101   : > { %v1471_v52 = vsel %vm1467_vm6, %v1458_v46, %v1466_v50  ;;  %v1475_v53 = vsel %vm1467_vm6, %v1466_v50, %v1458_v46  ;;  %v1470_v54 = vsel %vm1467_vm6, %v1456_v47, %v1464_v51  ;;  %v1474_v55 = vsel %vm1467_vm6, %v1464_v51, %v1456_v47  ;;  %v392_v47 = vld [vmem:[#allocation4] sm:$0xff] }
 0x102   : > { %v1495_v56 = vmul.f32 %v1482_v31, %v1471_v52  ;;  %v1496_v57 = vmul.f32 %v1486_v32, %v1475_v53  ;;  %v1493_v58 = vmul.f32 %v1482_v31, %v1470_v54  ;;  %v1494_v59 = vmul.f32 %v1486_v32, %v1474_v55  ;;  %9240 = vmatmul.mubr.msk.f32.gmra.mrb[4].mxu0 %vm443_vm0, %v1289_v49 }
 0x103   : > { %1431 = vmatprep.mubr.f32.mxu0 %v13354_v0  ;;  %v1646_v46 = vrot.slane %v9247_v39, %v10722_v19 }
 0x104   : > { %v9608_v62 = vpack.c.bf16 %v1495_v56, %v1493_v58  ;;  %v399_v63 = vpop.permute.xlu1 %398  ;;  %v397_v1 = vpop.permute.xlu0 %396  ;;  %v9606_v2 = vpack.c.bf16 %v1496_v57, %v1494_v59 }
 0x106   : > { %9607 = vmatprep.subr.bf16.mxu0 %v9606_v2  ;;  %9241 = vmatmul.mubr.msk.f32.gmra.mrb[6].mxu0 %vm443_vm0, %v1290_v61 }
 0x107   : > { %9609 = vmatpush1.bf16.msra.mxu0 %v9608_v62  ;;  %1573 = vmatprep.mubr.f32.mxu0 %v13354_v0  ;;  %v394_v62 = vld [vmem:[#allocation4 + $0x10] sm:$0xff] }
 0x108   : > { %v407_v7 = vpop.permute.xlu1 %406  ;;  %v405_v9 = vpop.permute.xlu0 %404 }
 0x109   : > { %v420_v10 = vsel %vm414_vm7, %v407_v7, %v399_v63  ;;  %v419_v13 = vsel %vm414_vm7, %v405_v9, %v397_v1  ;;  %v415_v14 = vsel %vm414_vm7, %v397_v1, %v405_v9  ;;  %v416_v15 = vsel %vm414_vm7, %v399_v63, %v407_v7 }
 0x10a   : > { %v436_v16 = vmul.f32 %v432_v3, %v415_v14  ;;  %v438_v20 = vmul.f32 %v432_v3, %v416_v15  ;;  %v435_v21 = vmul.f32 %v428_v4, %v419_v13  ;;  %v437_v22 = vmul.f32 %v428_v4, %v420_v10  ;;  %9243 = vmatmul.mubr.msk.f32.vlgmr.msra.gmra.mrb[0].mxu0 %vm443_vm0, %v1447_v6  ;;  %v390_v14 = vld [vmem:[#allocation4 + $0x90] sm:$0xff]  ;;  %v1607_v15 = vld [vmem:[#allocation4 + $0x100] sm:$0xff] }
 0x10b   : > { %1579 = vmatprep.mubr.f32.mxu0 %v13354_v0 }
 0x10c   : > { %v403_v24 = vpop.permute.xlu1 %402  ;;  %v401_v25 = vpop.permute.xlu0 %400  ;;  %v9546_v26 = vpack.c.bf16 %v438_v20, %v436_v16  ;;  %v9548_v27 = vpack.c.bf16 %v437_v22, %v435_v21  ;;  %v391_v16 = vld [vmem:[#allocation4 + $0x98] sm:$0xff]  ;;  %v1608_v20 = vld [vmem:[#allocation4 + $0x108] sm:$0xff]  ;;  %v1609_v21 = vld [vmem:[#allocation4 + $0x110] sm:$0xff] }
 0x10d   : > { %v1610_v22 = vld [vmem:[#allocation4 + $0x118] sm:$0xff] }
 0x10e   : > { %9547 = vmatprep.subr.bf16.mxu1 %v9546_v26  ;;  %9244 = vmatmul.mubr.msk.f32.gmra.mrb[2].mxu0 %vm443_vm0, %v1448_v23 }
 0x10f   : > { %9549 = vmatpush1.bf16.msra.mxu1 %v9548_v27  ;;  %1585 = vmatprep.mubr.f32.mxu0 %v13354_v0 }
 0x110   : > { %v411_v29 = vpop.permute.xlu1 %410  ;;  %v409_v30 = vpop.permute.xlu0 %408 }
 0x111   : > { %v418_v31 = vsel %vm414_vm7, %v403_v24, %v411_v29  ;;  %v422_v32 = vsel %vm414_vm7, %v411_v29, %v403_v24  ;;  %v417_v33 = vsel %vm414_vm7, %v401_v25, %v409_v30  ;;  %v421_v34 = vsel %vm414_vm7, %v409_v30, %v401_v25 }
 0x112   : > { %v441_v35 = vmul.f32 %v428_v4, %v422_v32  ;;  %v442_v36 = vmul.f32 %v432_v3, %v418_v31  ;;  %v439_v37 = vmul.f32 %v428_v4, %v421_v34  ;;  %v440_v38 = vmul.f32 %v432_v3, %v417_v33  ;;  %9245 = vmatmul.mubr.msk.f32.gmra.mrb[4].mxu0 %vm443_vm0, %v1449_v28 }
 0x113   : > { %1591 = vmatprep.mubr.f32.mxu0 %v13354_v0 }
 0x114   : > { %v1614_v41 = vpop.permute.xlu1 %1613  ;;  %v1612_v42 = vpop.permute.xlu0 %1611  ;;  %v9550_v43 = vpack.c.bf16 %v442_v36, %v440_v38  ;;  %v9552_v44 = vpack.c.bf16 %v441_v35, %v439_v37 }
 0x116   : > { %9551 = vmatprep.subr.bf16.mxu1 %v9550_v43  ;;  %9246 = vmatmul.mubr.msk.f32.gmra.mrb[6].mxu0 %vm443_vm0, %v1450_v40 }
 0x117   : > { %9553 = vmatpush1.bf16.msra.mxu1 %v9552_v44  ;;  %1733 = vmatprep.mubr.f32.mxu0 %v13354_v0 }
 0x118   : > { %v1622_v48 = vpop.permute.xlu1 %1621  ;;  %v1620_v49 = vpop.permute.xlu0 %1619  ;;  %9990 = vmatprep.subr.bf16.mxu1 %v10576_v5  ;;  %v393_v5 = vld [vmem:[#allocation4 + $0x8] sm:$0xff] }
 0x119   : > { %v1629_v50 = vsel %vm1627_vm8, %v1614_v41, %v1622_v48  ;;  %v1633_v51 = vsel %vm1627_vm8, %v1622_v48, %v1614_v41  ;;  %v1628_v52 = vsel %vm1627_vm8, %v1612_v42, %v1620_v49  ;;  %v1632_v53 = vsel %vm1627_vm8, %v1620_v49, %v1612_v42 }
 0x11a   : > { %v1651_v54 = vmul.f32 %v1642_v45, %v1629_v50  ;;  %v1652_v55 = vmul.f32 %v1646_v46, %v1633_v51  ;;  %v1649_v56 = vmul.f32 %v1642_v45, %v1628_v52  ;;  %v1650_v57 = vmul.f32 %v1646_v46, %v1632_v53  ;;  %9209 = vmatmul.mubr.msk.f32.vlgmr.msra.gmra.mrb[0].mxu1 %vm443_vm0, %v392_v47 }
 0x11b   : > { %526 = vmatprep.mubr.f32.mxu1 %v13354_v0  ;;  %9992 = vmatpush1.bf16.msra.mxu1 %v10584_v8 }
 0x11c   : > { %v9612_v58 = vpack.c.bf16 %v1651_v54, %v1649_v56  ;;  %v1618_v59 = vpop.permute.xlu1 %1617  ;;  %v1616_v60 = vpop.permute.xlu0 %1615  ;;  %v9610_v61 = vpack.c.bf16 %v1652_v55, %v1650_v57  ;;  %9991 = vmatprep.subr.bf16.mxu1 %v10593_v11 }
 0x11e   : > { %9210 = vmatmul.mubr.msk.f32.gmra.mrb[2].mxu1 %vm443_vm0, %v393_v5  ;;  %9611 = vmatprep.subr.bf16.mxu0 %v9610_v61 }
 0x11f   : > { %9613 = vmatpush1.bf16.msra.mxu0 %v9612_v58  ;;  %532 = vmatprep.mubr.f32.mxu1 %v13354_v0 }
 0x120   : > { %v1626_v63 = vpop.permute.xlu1 %1625  ;;  %v1624_v1 = vpop.permute.xlu0 %1623  ;;  %9993 = vmatpush1.bf16.msra.mxu1 %v10598_v12  ;;  %v395_v12 = vld [vmem:[#allocation4 + $0x18] sm:$0xff] }
 0x121   : > { %v1631_v8 = vsel %vm1627_vm8, %v1618_v59, %v1626_v63  ;;  %v1635_v2 = vsel %vm1627_vm8, %v1626_v63, %v1618_v59  ;;  %v1630_v11 = vsel %vm1627_vm8, %v1616_v60, %v1624_v1  ;;  %v1634_v3 = vsel %vm1627_vm8, %v1624_v1, %v1616_v60  ;;  %v1849_v59 = vld [vmem:[%s13342_s1] ss:$8 sm:$0x3] }
 0x122   : > { %v1655_v4 = vmul.f32 %v1642_v45, %v1631_v8  ;;  %v1656_v6 = vmul.f32 %v1646_v46, %v1635_v2  ;;  %v1653_v7 = vmul.f32 %v1642_v45, %v1630_v11  ;;  %v1654_v9 = vmul.f32 %v1646_v46, %v1634_v3  ;;  %9211 = vmatmul.mubr.msk.f32.gmra.mrb[4].mxu1 %vm443_vm0, %v394_v62 }
 0x123   : > { %538 = vmatprep.mubr.f32.mxu1 %v13354_v0  ;;  %v1854_v62 = vrot.slane %v1849_v59, %v10716_v18  ;;  %v1858_v63 = vrot.slane %v1849_v59, %v10722_v19 }
 0x124   : > { %v9616_v10 = vpack.c.bf16 %v1655_v4, %v1653_v7  ;;  %v9614_v13 = vpack.c.bf16 %v1656_v6, %v1654_v9 }
 0x126   : > { %9212 = vmatmul.mubr.msk.f32.gmra.mrb[6].mxu1 %vm443_vm0, %v395_v12  ;;  %9615 = vmatprep.subr.bf16.mxu0 %v9614_v13 }
 0x127   : > { %9617 = vmatpush1.bf16.msra.mxu0 %v9616_v10  ;;  %633 = vmatprep.mubr.f32.mxu1 %v13354_v0  ;;  %v9252_v10 = vld [vmem:[%s13344_s3 + $0x20] sm:$0xff] }
 0x12a   : > { %9215 = vmatmul.mubr.msk.f32.vlgmr.msra.gmra.mrb[4].mxu1 %vm443_vm0, %v390_v14  ;;  %9248 = vmatmul.mubr.msk.f32.vlgmr.msra.gmra.mrb[0].mxu0 %vm443_vm0, %v1607_v15 }
 0x12b   : > { %639 = vmatprep.mubr.f32.mxu1 %v13354_v0  ;;  %1739 = vmatprep.mubr.f32.mxu0 %v13354_v0 }
 0x12e   : > { %9216 = vmatmul.mubr.msk.f32.gmra.mrb[6].mxu1 %vm443_vm0, %v391_v16  ;;  %9249 = vmatmul.mubr.msk.f32.gmra.mrb[2].mxu0 %vm443_vm0, %v1608_v20 }
 0x12f   : > { %1745 = vmatprep.mubr.f32.mxu0 %v13354_v0  ;;  %1945 = vmatprep.mubr.f32.mxu1 %v13354_v0 }
 0x131   : > { %v1774_v34 = vpop.permute.xlu1 %1773 }
 0x132   : > { %9250 = vmatmul.mubr.msk.f32.gmra.mrb[4].mxu0 %vm443_vm0, %v1609_v21  ;;  %v1769_v27 = vpop.permute.xlu0 %1768 }
 0x133   : > { %1751 = vmatprep.mubr.f32.mxu0 %v13354_v0 }
 0x135   : > { %v1779_v47 = vpop.permute.xlu1 %1778 }
 0x136   : > { %9251 = vmatmul.mubr.msk.f32.gmra.mrb[6].mxu0 %vm443_vm0, %v1610_v22  ;;  %v1784_v54 = vpop.permute.xlu0 %1783  ;;  %v9254_v22 = vld [vmem:[%s13344_s3 + $0x30] sm:$0xff] }
 0x137   : > { %3364 = vmatprep.mubr.f32.mxu0 %v13354_v0 }
 0x1ed   : > { %v522_v23 = vpop.f32.mrb[0].mxu1 }
 0x1ee   : > { %v524_v24 = vpop.f32.mrb[1].mxu1 }
 0x1f1   : > { %v528_v25 = vpop.f32.mrb[2].mxu1 }
 0x1f2   : > { %v530_v26 = vpop.f32.mrb[3].mxu1 }
 0x1fd   : > { %v635_v28 = vpop.f32.mrb[4].mxu1  ;;  %v1735_v29 = vpop.f32.mrb[0].mxu0 }
 0x1fe   : > { %v9994_v30 = vadd.f32 %v1735_v29, %v522_v23  ;;  %v637_v31 = vpop.f32.mrb[5].mxu1  ;;  %v1737_v32 = vpop.f32.mrb[1].mxu0 }
 0x1ff   : > { %v9995_v33 = vadd.f32 %v1737_v32, %v524_v24 }
 0x200   : > { %v10996_v35 = vadd.f32 %v9994_v30, %v1769_v27 }
 0x201   : > { %v641_v36 = vpop.f32.mrb[6].mxu1  ;;  %v1741_v37 = vpop.f32.mrb[2].mxu0  ;;  %v11000_v42 = vadd.f32 %v9995_v33, %v1769_v27 }
 0x202   : > { %v9996_v38 = vadd.f32 %v1741_v37, %v528_v25  ;;  %v643_v39 = vpop.f32.mrb[7].mxu1  ;;  %1825 = vrot.lane.b32.xlu1 %v10996_v35, %s10447_s23  ;;  %v1743_v40 = vpop.f32.mrb[3].mxu0  ;;  %v9253_v25 = vld [vmem:[%s13344_s3 + $0x28] sm:$0xff] }
 0x203   : > { %v9997_v41 = vadd.f32 %v1743_v40, %v530_v26  ;;  %v1821_v40 = vld [vmem:[#allocation4 + $0x120] sm:$0xff] }
 0x204   : > { %v11002_v43 = vadd.f32 %v9996_v38, %v1774_v34  ;;  %v9264_v38 = vld [vmem:[%s13342_s1 + $0x1] ss:$8 sm:$0x3] }
 0x205   : > { %v1747_v44 = vpop.f32.mrb[4].mxu0  ;;  %v11008_v49 = vadd.f32 %v9997_v41, %v1774_v34  ;;  %v2109_v41 = vrot.slane %v9264_v38, %v10722_v19 }
 0x206   : > { %v9998_v45 = vadd.f32 %v1747_v44, %v635_v28  ;;  %1833 = vrot.lane.b32.xlu1 %v11000_v42, %s10447_s23  ;;  %1827 = vrot.lane.b32.xlu0 %v11002_v43, %s10447_s23  ;;  %v1749_v46 = vpop.f32.mrb[5].mxu0 }
 0x207   : > { %v9999_v48 = vadd.f32 %v1749_v46, %v637_v31 }
 0x208   : > { %v11010_v50 = vadd.f32 %v9998_v45, %v1779_v47 }
 0x209   : > { %v1753_v51 = vpop.f32.mrb[6].mxu0  ;;  %v11016_v56 = vadd.f32 %v9999_v48, %v1779_v47  ;;  %v9628_v48 = vpack.c.bf16 %v11002_v43, %v10996_v35 }
 0x20a   : > { %v10000_v52 = vadd.f32 %v1753_v51, %v641_v36  ;;  %1835 = vrot.lane.b32.xlu0 %v11008_v49, %s10447_s23  ;;  %1829 = vrot.lane.b32.xlu1 %v11010_v50, %s10447_s23  ;;  %v1755_v53 = vpop.f32.mrb[7].mxu0  ;;  %v9255_v36 = vld [vmem:[%s13344_s3 + $0x38] sm:$0xff] }
 0x20b   : > { %v10001_v55 = vadd.f32 %v1755_v53, %v643_v39  ;;  %v9626_v39 = vpack.c.bf16 %v11008_v49, %v11000_v42  ;;  %v1822_v53 = vld [vmem:[#allocation4 + $0x128] sm:$0xff] }
 0x20c   : > { %v11018_v57 = vadd.f32 %v10000_v52, %v1784_v54 }
 0x20d   : > { %v11024_v5 = vadd.f32 %v10001_v55, %v1784_v54 }
 0x20e   : > { %1837 = vrot.lane.b32.xlu1 %v11016_v56, %s10447_s23  ;;  %1831 = vrot.lane.b32.xlu0 %v11018_v57, %s10447_s23  ;;  %v9632_v59 = vpack.c.bf16 %v11018_v57, %v11010_v50 }
 0x20f   : > { %v9630_v52 = vpack.c.bf16 %v11024_v5, %v11016_v56 }
 0x212   : > { %2076 = vrot.lane.b32.xlu1 %v10996_v35, %s10441_s17  ;;  %1839 = vrot.lane.b32.xlu0 %v11024_v5, %s10447_s23 }
 0x216   : > { %2084 = vrot.lane.b32.xlu1 %v11000_v42, %s10441_s17  ;;  %2078 = vrot.lane.b32.xlu0 %v11002_v43, %s10441_s17 }
 0x21a   : > { %2080 = vrot.lane.b32.xlu1 %v11010_v50, %s10441_s17  ;;  %2086 = vrot.lane.b32.xlu0 %v11008_v49, %s10441_s17 }
 0x21e   : > { %2088 = vrot.lane.b32.xlu1 %v11016_v56, %s10441_s17  ;;  %2082 = vrot.lane.b32.xlu0 %v11018_v57, %s10441_s17 }
 0x222   : > { %2234 = vrot.lane.b32.xlu1 %v10996_v35, %s10442_s18  ;;  %2090 = vrot.lane.b32.xlu0 %v11024_v5, %s10441_s17 }
 0x226   : > { %2242 = vrot.lane.b32.xlu1 %v11000_v42, %s10442_s18  ;;  %2236 = vrot.lane.b32.xlu0 %v11002_v43, %s10442_s18 }
 0x22a   : > { %2238 = vrot.lane.b32.xlu1 %v11010_v50, %s10442_s18  ;;  %2244 = vrot.lane.b32.xlu0 %v11008_v49, %s10442_s18 }
 0x22e   : > { %2246 = vrot.lane.b32.xlu1 %v11016_v56, %s10442_s18  ;;  %2240 = vrot.lane.b32.xlu0 %v11018_v57, %s10442_s18 }
 0x232   : > { %2392 = vrot.lane.b32.xlu1 %v10996_v35, %s10443_s19  ;;  %2248 = vrot.lane.b32.xlu0 %v11024_v5, %s10442_s18 }
 0x236   : > { %2400 = vrot.lane.b32.xlu1 %v11000_v42, %s10443_s19  ;;  %2394 = vrot.lane.b32.xlu0 %v11002_v43, %s10443_s19 }
 0x23a   : > { %2396 = vrot.lane.b32.xlu1 %v11010_v50, %s10443_s19  ;;  %2402 = vrot.lane.b32.xlu0 %v11008_v49, %s10443_s19 }
 0x23e   : > { %2404 = vrot.lane.b32.xlu1 %v11016_v56, %s10443_s19  ;;  %2398 = vrot.lane.b32.xlu0 %v11018_v57, %s10443_s19 }
 0x242   : > { %2550 = vrot.lane.b32.xlu1 %v10996_v35, %s10444_s20  ;;  %2406 = vrot.lane.b32.xlu0 %v11024_v5, %s10443_s19 }
 0x246   : > { %2558 = vrot.lane.b32.xlu1 %v11000_v42, %s10444_s20  ;;  %2552 = vrot.lane.b32.xlu0 %v11002_v43, %s10444_s20 }
 0x24a   : > { %2554 = vrot.lane.b32.xlu1 %v11010_v50, %s10444_s20  ;;  %2560 = vrot.lane.b32.xlu0 %v11008_v49, %s10444_s20 }
 0x24e   : > { %2562 = vrot.lane.b32.xlu1 %v11016_v56, %s10444_s20  ;;  %2556 = vrot.lane.b32.xlu0 %v11018_v57, %s10444_s20 }
 0x252   : > { %2708 = vrot.lane.b32.xlu1 %v10996_v35, %s10445_s21  ;;  %2564 = vrot.lane.b32.xlu0 %v11024_v5, %s10444_s20 }
 0x256   : > { %2716 = vrot.lane.b32.xlu1 %v11000_v42, %s10445_s21  ;;  %2710 = vrot.lane.b32.xlu0 %v11002_v43, %s10445_s21 }
 0x25a   : > { %2712 = vrot.lane.b32.xlu1 %v11010_v50, %s10445_s21  ;;  %2718 = vrot.lane.b32.xlu0 %v11008_v49, %s10445_s21 }
 0x25e   : > { %2720 = vrot.lane.b32.xlu1 %v11016_v56, %s10445_s21  ;;  %2714 = vrot.lane.b32.xlu0 %v11018_v57, %s10445_s21 }
 0x262   : > { %2866 = vrot.lane.b32.xlu1 %v10996_v35, %s10446_s22  ;;  %2722 = vrot.lane.b32.xlu0 %v11024_v5, %s10445_s21 }
 0x266   : > { %2874 = vrot.lane.b32.xlu1 %v11000_v42, %s10446_s22  ;;  %2868 = vrot.lane.b32.xlu0 %v11002_v43, %s10446_s22 }
 0x26a   : > { %2870 = vrot.lane.b32.xlu1 %v11010_v50, %s10446_s22  ;;  %2876 = vrot.lane.b32.xlu0 %v11008_v49, %s10446_s22 }
 0x26e   : > { %2878 = vrot.lane.b32.xlu1 %v11016_v56, %s10446_s22  ;;  %2872 = vrot.lane.b32.xlu0 %v11018_v57, %s10446_s22 }
 0x272   : > { %3024 = vrot.lane.b32.xlu1 %v10996_v35, %s10448_s24  ;;  %2880 = vrot.lane.b32.xlu0 %v11024_v5, %s10446_s22 }
 0x274   : > { %v1826_v58 = vpop.permute.xlu1 %1825 }
 0x276   : > { %3032 = vrot.lane.b32.xlu1 %v11000_v42, %s10448_s24  ;;  %3026 = vrot.lane.b32.xlu0 %v11002_v43, %s10448_s24 }
 0x278   : > { %v1834_v60 = vpop.permute.xlu1 %1833  ;;  %v1828_v61 = vpop.permute.xlu0 %1827 }
 0x279   : > { %v1845_v1 = vsel %vm414_vm7, %v1834_v60, %v1826_v58  ;;  %v1841_v8 = vsel %vm414_vm7, %v1826_v58, %v1834_v60 }
 0x27a   : > { %3028 = vrot.lane.b32.xlu1 %v11010_v50, %s10448_s24  ;;  %3034 = vrot.lane.b32.xlu0 %v11008_v49, %s10448_s24  ;;  %v1861_v3 = vmul.f32 %v1854_v62, %v1845_v1  ;;  %v1862_v7 = vmul.f32 %v1858_v63, %v1841_v8  ;;  %v2105_v8 = vrot.slane %v9264_v38, %v10716_v18  ;;  %v1818_v38 = vld [vmem:[#allocation4 + $0x1b0] sm:$0xff] }
 0x27c   : > { %v1836_v2 = vpop.permute.xlu0 %1835  ;;  %v1830_v11 = vpop.permute.xlu1 %1829 }
 0x27d   : > { %v1842_v4 = vsel %vm414_vm7, %v1828_v61, %v1836_v2  ;;  %v1846_v6 = vsel %vm414_vm7, %v1836_v2, %v1828_v61  ;;  %v1823_v61 = vld [vmem:[#allocation4 + $0x130] sm:$0xff] }
 0x27e   : > { %v1863_v9 = vmul.f32 %v1854_v62, %v1846_v6  ;;  %v1864_v12 = vmul.f32 %v1858_v63, %v1842_v4  ;;  %3036 = vrot.lane.b32.xlu1 %v11016_v56, %s10448_s24  ;;  %3030 = vrot.lane.b32.xlu0 %v11018_v57, %s10448_s24 }
 0x280   : > { %v9620_v13 = vpack.c.bf16 %v1863_v9, %v1861_v3  ;;  %v1838_v14 = vpop.permute.xlu1 %1837  ;;  %v1832_v15 = vpop.permute.xlu0 %1831  ;;  %v9618_v16 = vpack.c.bf16 %v1864_v12, %v1862_v7  ;;  %v1824_v3 = vld [vmem:[#allocation4 + $0x138] sm:$0xff] }
 0x281   : > { %v1843_v20 = vsel %vm414_vm7, %v1830_v11, %v1838_v14  ;;  %v1847_v21 = vsel %vm414_vm7, %v1838_v14, %v1830_v11  ;;  %v9269_v11 = vld [vmem:[%s13342_s1 + $0x2] ss:$8 sm:$0x3] }
 0x282   : > { %9619 = vmatprep.subr.bf16.mxu1 %v9618_v16  ;;  %3179 = vperm.xlu1 %10364, %v9252_v10   ;;  %v1865_v28 = vmul.f32 %v1854_v62, %v1847_v21  ;;  %v1866_v29 = vmul.f32 %v1858_v63, %v1843_v20  ;;  %v2267_v14 = vrot.slane %v9269_v11, %v10722_v19  ;;  %v1816_v20 = vld [vmem:[#allocation4 + $0x1a0] sm:$0xff] }
 0x283   : > { %3038 = vrot.lane.b32.xlu0 %v11024_v5, %s10448_s24  ;;  %9621 = vmatpush1.bf16.msra.mxu1 %v9620_v13 }
 0x284   : > { %v2077_v23 = vpop.permute.xlu1 %2076  ;;  %v1840_v24 = vpop.permute.xlu0 %1839 }
 0x285   : > { %v1844_v26 = vsel %vm414_vm7, %v1832_v15, %v1840_v24  ;;  %v1848_v27 = vsel %vm414_vm7, %v1840_v24, %v1832_v15 }
 0x286   : > { %v1867_v30 = vmul.f32 %v1854_v62, %v1848_v27  ;;  %v1868_v31 = vmul.f32 %v1858_v63, %v1844_v26  ;;  %3189 = vperm.xlu1 %10364, %v9254_v22  }
 0x287   : > { %3184 = vperm.xlu0 %10363, %v9253_v25  }
 0x288   : > { %v9624_v32 = vpack.c.bf16 %v1867_v30, %v1865_v28  ;;  %v2085_v33 = vpop.permute.xlu1 %2084  ;;  %v2079_v34 = vpop.permute.xlu0 %2078  ;;  %v9622_v37 = vpack.c.bf16 %v1868_v31, %v1866_v29 }
 0x289   : > { %v2092_v46 = vsel %vm667_vm1, %v2077_v23, %v2085_v33  ;;  %v2096_v4 = vsel %vm667_vm1, %v2085_v33, %v2077_v23 }
 0x28a   : > { %9623 = vmatprep.subr.bf16.mxu1 %v9622_v37  ;;  %v2113_v54 = vmul.f32 %v2109_v41, %v2092_v46  ;;  %v2112_v15 = vmul.f32 %v2105_v8, %v2096_v4  ;;  %v9274_v46 = vld [vmem:[%s13342_s1 + $0x3] ss:$8 sm:$0x3] }
 0x28b   : > { %3194 = vperm.xlu0 %10363, %v9255_v36   ;;  %9625 = vmatpush1.bf16.msra.mxu1 %v9624_v32  ;;  %v1817_v32 = vld [vmem:[#allocation4 + $0x1a8] sm:$0xff] }
 0x28c   : > { %v2081_v44 = vpop.permute.xlu1 %2080  ;;  %9627 = vmatprep.subr.bf16.mxu1 %v9626_v39  ;;  %v2087_v45 = vpop.permute.xlu0 %2086 }
 0x28d   : > { %v2093_v47 = vsel %vm667_vm1, %v2079_v34, %v2087_v45  ;;  %v2097_v1 = vsel %vm667_vm1, %v2087_v45, %v2079_v34 }
 0x28e   : > { %v2115_v51 = vmul.f32 %v2109_v41, %v2093_v47  ;;  %9256 = vmatmul.mubr.msk.f32.vlgmr.msra.gmra.mrb[8].mxu1 %vm443_vm0, %v1821_v40  ;;  %v2114_v9 = vmul.f32 %v2105_v8, %v2097_v1  ;;  %v1819_v47 = vld [vmem:[#allocation4 + $0x1b8] sm:$0xff] }
 0x28f   : > { %9629 = vmatpush1.bf16.msra.mxu1 %v9628_v48  ;;  %1951 = vmatprep.mubr.f32.mxu1 %v13354_v0 }
 0x290   : > { %v2089_v55 = vpop.permute.xlu1 %2088  ;;  %v2083_v58 = vpop.permute.xlu0 %2082  ;;  %9631 = vmatprep.subr.bf16.mxu1 %v9630_v52  ;;  %v9634_v60 = vpack.c.bf16 %v2115_v51, %v2113_v54  ;;  %v9636_v25 = vpack.c.bf16 %v2114_v9, %v2112_v15 }
 0x291   : > { %v2094_v12 = vsel %vm667_vm1, %v2081_v44, %v2089_v55  ;;  %v2098_v21 = vsel %vm667_vm1, %v2089_v55, %v2081_v44  ;;  %v2263_v44 = vrot.slane %v9269_v11, %v10716_v18 }
 0x292   : > { %9257 = vmatmul.mubr.msk.f32.gmra.mrb[10].mxu1 %vm443_vm0, %v1822_v53  ;;  %v2117_v22 = vmul.f32 %v2109_v41, %v2094_v12  ;;  %v2116_v31 = vmul.f32 %v2105_v8, %v2098_v21 }
 0x293   : > { %9633 = vmatpush1.bf16.msra.mxu1 %v9632_v59  ;;  %1957 = vmatprep.mubr.f32.mxu1 %v13354_v0  ;;  %v2425_v59 = vrot.slane %v9274_v46, %v10722_v19 }
 0x294   : > { %v2235_v62 = vpop.permute.xlu1 %2234  ;;  %v2091_v63 = vpop.permute.xlu0 %2090  ;;  %9635 = vmatprep.subr.bf16.mxu1 %v9634_v60 }
 0x295   : > { %v2095_v2 = vsel %vm667_vm1, %v2083_v58, %v2091_v63  ;;  %v2099_v10 = vsel %vm667_vm1, %v2091_v63, %v2083_v58 }
 0x296   : > { %9258 = vmatmul.mubr.msk.f32.gmra.mrb[12].mxu1 %vm443_vm0, %v1823_v61  ;;  %v2119_v13 = vmul.f32 %v2109_v41, %v2095_v2  ;;  %v2118_v26 = vmul.f32 %v2105_v8, %v2099_v10  ;;  %v2073_v10 = vld [vmem:[#allocation4 + $0x148] sm:$0xff] }
 0x297   : > { %1963 = vmatprep.mubr.f32.mxu1 %v13354_v0 }
 0x298   : > { %v2243_v6 = vpop.permute.xlu1 %2242  ;;  %v2237_v7 = vpop.permute.xlu0 %2236  ;;  %v9638_v30 = vpack.c.bf16 %v2119_v13, %v2117_v22  ;;  %v9640_v37 = vpack.c.bf16 %v2118_v26, %v2116_v31  ;;  %v9279_v26 = vld [vmem:[%s13342_s1 + $0x5] ss:$8 sm:$0x3] }
 0x299   : > { %v2250_v16 = vsel %vm827_vm2, %v2235_v62, %v2243_v6  ;;  %v2254_v48 = vsel %vm827_vm2, %v2243_v6, %v2235_v62  ;;  %v2072_v62 = vld [vmem:[#allocation4 + $0x140] sm:$0xff] }
 0x29a   : > { %9259 = vmatmul.mubr.msk.f32.gmra.mrb[14].mxu1 %vm443_vm0, %v1824_v3  ;;  %v2271_v28 = vmul.f32 %v2267_v14, %v2250_v16  ;;  %v2270_v60 = vmul.f32 %v2263_v44, %v2254_v48 }
 0x29b   : > { %2046 = vmatprep.mubr.f32.mxu1 %v13354_v0 }
 0x29c   : > { %v2239_v23 = vpop.permute.xlu1 %2238  ;;  %v2245_v24 = vpop.permute.xlu0 %2244 }
 0x29d   : > { %v2251_v27 = vsel %vm827_vm2, %v2237_v7, %v2245_v24  ;;  %v2255_v41 = vsel %vm827_vm2, %v2245_v24, %v2237_v7  ;;  %v2421_v24 = vrot.slane %v9274_v46, %v10716_v18 }
 0x29e   : > { %v2273_v29 = vmul.f32 %v2267_v14, %v2251_v27  ;;  %9260 = vmatmul.mubr.msk.f32.vlgmr.msra.gmra.mrb[8].mxu1 %vm443_vm0, %v1816_v20  ;;  %v2272_v53 = vmul.f32 %v2263_v44, %v2255_v41  ;;  %v2074_v20 = vld [vmem:[#allocation4 + $0x150] sm:$0xff]  ;;  %v2075_v27 = vld [vmem:[#allocation4 + $0x158] sm:$0xff] }
 0x29f   : > { %9637 = vmatpush1.bf16.msra.mxu1 %v9636_v25  ;;  %2052 = vmatprep.mubr.f32.mxu1 %v13354_v0 }
 0x2a0   : > { %9639 = vmatprep.subr.bf16.mxu1 %v9638_v30  ;;  %v2247_v33 = vpop.permute.xlu1 %2246  ;;  %v2241_v34 = vpop.permute.xlu0 %2240  ;;  %v9642_v36 = vpack.c.bf16 %v2273_v29, %v2271_v28  ;;  %v9644_v11 = vpack.c.bf16 %v2272_v53, %v2270_v60 }
 0x2a1   : > { %v2252_v54 = vsel %vm827_vm2, %v2239_v23, %v2247_v33  ;;  %v2256_v63 = vsel %vm827_vm2, %v2247_v33, %v2239_v23 }
 0x2a2   : > { %9261 = vmatmul.mubr.msk.f32.gmra.mrb[10].mxu1 %vm443_vm0, %v1817_v32  ;;  %v2275_v1 = vmul.f32 %v2267_v14, %v2252_v54  ;;  %v2274_v12 = vmul.f32 %v2263_v44, %v2256_v63 }
 0x2a3   : > { %9641 = vmatpush1.bf16.msra.mxu1 %v9640_v37  ;;  %2058 = vmatprep.mubr.f32.mxu1 %v13354_v0 }
 0x2a4   : > { %9643 = vmatprep.subr.bf16.mxu1 %v9642_v36  ;;  %v2393_v39 = vpop.permute.xlu1 %2392  ;;  %v2249_v40 = vpop.permute.xlu0 %2248  ;;  %v2583_v36 = vrot.slane %v9279_v26, %v10722_v19 }
 0x2a5   : > { %v2253_v45 = vsel %vm827_vm2, %v2241_v34, %v2249_v40  ;;  %v2257_v55 = vsel %vm827_vm2, %v2249_v40, %v2241_v34 }
 0x2a6   : > { %9262 = vmatmul.mubr.msk.f32.gmra.mrb[12].mxu1 %vm443_vm0, %v1818_v38  ;;  %v2277_v58 = vmul.f32 %v2267_v14, %v2253_v45  ;;  %v2276_v3 = vmul.f32 %v2263_v44, %v2257_v55  ;;  %v2231_v55 = vld [vmem:[#allocation4 + $0x168] sm:$0xff] }
 0x2a7   : > { %2064 = vmatprep.mubr.f32.mxu1 %v13354_v0 }
 0x2a8   : > { %v2401_v51 = vpop.permute.xlu1 %2400  ;;  %v2395_v52 = vpop.permute.xlu0 %2394  ;;  %v9646_v9 = vpack.c.bf16 %v2277_v58, %v2275_v1  ;;  %v9648_v16 = vpack.c.bf16 %v2276_v3, %v2274_v12  ;;  %v9284_v3 = vld [vmem:[%s13342_s1 + $0x6] ss:$8 sm:$0x3] }
 0x2a9   : > { %v2408_v61 = vsel %vm987_vm3, %v2393_v39, %v2401_v51  ;;  %v2412_v28 = vsel %vm987_vm3, %v2401_v51, %v2393_v39  ;;  %v2230_v39 = vld [vmem:[#allocation4 + $0x160] sm:$0xff] }
 0x2aa   : > { %9263 = vmatmul.mubr.msk.f32.gmra.mrb[14].mxu1 %vm443_vm0, %v1819_v47  ;;  %v2429_v6 = vmul.f32 %v2425_v59, %v2408_v61  ;;  %v2428_v37 = vmul.f32 %v2421_v24, %v2412_v28 }
 0x2ab   : > { %2196 = vmatprep.mubr.f32.mxu1 %v13354_v0 }
 0x2ac   : > { %v2397_v8 = vpop.permute.xlu1 %2396  ;;  %v2403_v2 = vpop.permute.xlu0 %2402 }
 0x2ad   : > { %v2409_v4 = vsel %vm987_vm3, %v2395_v52, %v2403_v2  ;;  %v2413_v23 = vsel %vm987_vm3, %v2403_v2, %v2395_v52  ;;  %v2579_v2 = vrot.slane %v9279_v26, %v10716_v18 }
 0x2ae   : > { %v2431_v7 = vmul.f32 %v2425_v59, %v2409_v4  ;;  %9265 = vmatmul.mubr.msk.f32.vlgmr.msra.gmra.mrb[8].mxu1 %vm443_vm0, %v2072_v62  ;;  %v2430_v31 = vmul.f32 %v2421_v24, %v2413_v23  ;;  %v2232_v62 = vld [vmem:[#allocation4 + $0x170] sm:$0xff]  ;;  %v2233_v4 = vld [vmem:[#allocation4 + $0x178] sm:$0xff] }
 0x2af   : > { %9645 = vmatpush1.bf16.msra.mxu1 %v9644_v11  ;;  %2202 = vmatprep.mubr.f32.mxu1 %v13354_v0 }
 0x2b0   : > { %9647 = vmatprep.subr.bf16.mxu1 %v9646_v9  ;;  %v2405_v13 = vpop.permute.xlu1 %2404  ;;  %v2399_v14 = vpop.permute.xlu0 %2398  ;;  %v9650_v15 = vpack.c.bf16 %v2431_v7, %v2429_v6  ;;  %v9652_v46 = vpack.c.bf16 %v2430_v31, %v2428_v37 }
 0x2b1   : > { %v2410_v32 = vsel %vm987_vm3, %v2397_v8, %v2405_v13  ;;  %v2414_v40 = vsel %vm987_vm3, %v2405_v13, %v2397_v8 }
 0x2b2   : > { %9266 = vmatmul.mubr.msk.f32.gmra.mrb[10].mxu1 %vm443_vm0, %v2073_v10  ;;  %v2433_v41 = vmul.f32 %v2425_v59, %v2410_v32  ;;  %v2432_v54 = vmul.f32 %v2421_v24, %v2414_v40 }
 0x2b3   : > { %9649 = vmatpush1.bf16.msra.mxu1 %v9648_v16  ;;  %2208 = vmatprep.mubr.f32.mxu1 %v13354_v0 }
 0x2b4   : > { %9651 = vmatprep.subr.bf16.mxu1 %v9650_v15  ;;  %v2551_v21 = vpop.permute.xlu1 %2550  ;;  %v2407_v22 = vpop.permute.xlu0 %2406  ;;  %v2741_v15 = vrot.slane %v9284_v3, %v10722_v19 }
 0x2b5   : > { %v2411_v25 = vsel %vm987_vm3, %v2399_v14, %v2407_v22  ;;  %v2415_v33 = vsel %vm987_vm3, %v2407_v22, %v2399_v14 }
 0x2b6   : > { %9267 = vmatmul.mubr.msk.f32.gmra.mrb[12].mxu1 %vm443_vm0, %v2074_v20  ;;  %v2435_v34 = vmul.f32 %v2425_v59, %v2411_v25  ;;  %v2434_v47 = vmul.f32 %v2421_v24, %v2415_v33  ;;  %v2389_v33 = vld [vmem:[#allocation4 + $0x188] sm:$0xff] }
 0x2b7   : > { %2214 = vmatprep.mubr.f32.mxu1 %v13354_v0 }
 0x2b8   : > { %v2559_v29 = vpop.permute.xlu1 %2558  ;;  %v2553_v30 = vpop.permute.xlu0 %2552  ;;  %v9654_v53 = vpack.c.bf16 %v2435_v34, %v2433_v41  ;;  %v9656_v61 = vpack.c.bf16 %v2434_v47, %v2432_v54  ;;  %v9289_v47 = vld [vmem:[%s13342_s1 + $0x7] ss:$8 sm:$0x3] }
 0x2b9   : > { %v2570_v38 = vsel %vm1147_vm4, %v2559_v29, %v2551_v21  ;;  %v2566_v6 = vsel %vm1147_vm4, %v2551_v21, %v2559_v29  ;;  %v2388_v21 = vld [vmem:[#allocation4 + $0x180] sm:$0xff] }
 0x2ba   : > { %9268 = vmatmul.mubr.msk.f32.gmra.mrb[14].mxu1 %vm443_vm0, %v2075_v27  ;;  %v2587_v51 = vmul.f32 %v2583_v36, %v2570_v38  ;;  %v2586_v16 = vmul.f32 %v2579_v2, %v2566_v6 }
 0x2bb   : > { %2354 = vmatprep.mubr.f32.mxu1 %v13354_v0 }
 0x2bc   : > { %v2555_v44 = vpop.permute.xlu1 %2554  ;;  %v2561_v45 = vpop.permute.xlu0 %2560 }
 0x2bd   : > { %v2571_v48 = vsel %vm1147_vm4, %v2561_v45, %v2553_v30  ;;  %v2567_v8 = vsel %vm1147_vm4, %v2553_v30, %v2561_v45  ;;  %v2737_v45 = vrot.slane %v9284_v3, %v10716_v18 }
 0x2be   : > { %v2589_v52 = vmul.f32 %v2583_v36, %v2571_v48  ;;  %9270 = vmatmul.mubr.msk.f32.vlgmr.msra.gmra.mrb[8].mxu1 %vm443_vm0, %v2230_v39  ;;  %v2588_v12 = vmul.f32 %v2579_v2, %v2567_v8  ;;  %v2390_v39 = vld [vmem:[#allocation4 + $0x190] sm:$0xff]  ;;  %v2391_v48 = vld [vmem:[#allocation4 + $0x198] sm:$0xff] }
 0x2bf   : > { %9653 = vmatpush1.bf16.msra.mxu1 %v9652_v46  ;;  %2360 = vmatprep.mubr.f32.mxu1 %v13354_v0 }
 0x2c0   : > { %9655 = vmatprep.subr.bf16.mxu1 %v9654_v53  ;;  %v2563_v58 = vpop.permute.xlu1 %2562  ;;  %v2557_v59 = vpop.permute.xlu0 %2556  ;;  %v9658_v60 = vpack.c.bf16 %v2589_v52, %v2587_v51  ;;  %v9660_v26 = vpack.c.bf16 %v2588_v12, %v2586_v16 }
 0x2c1   : > { %v2572_v10 = vsel %vm1147_vm4, %v2563_v58, %v2555_v44  ;;  %v2568_v22 = vsel %vm1147_vm4, %v2555_v44, %v2563_v58 }
 0x2c2   : > { %9271 = vmatmul.mubr.msk.f32.gmra.mrb[10].mxu1 %vm443_vm0, %v2231_v55  ;;  %v2591_v23 = vmul.f32 %v2583_v36, %v2572_v10  ;;  %v2590_v32 = vmul.f32 %v2579_v2, %v2568_v22 }
 0x2c3   : > { %9657 = vmatpush1.bf16.msra.mxu1 %v9656_v61  ;;  %2366 = vmatprep.mubr.f32.mxu1 %v13354_v0 }
 0x2c4   : > { %9659 = vmatprep.subr.bf16.mxu1 %v9658_v60  ;;  %v2709_v63 = vpop.permute.xlu1 %2708  ;;  %v2565_v1 = vpop.permute.xlu0 %2564  ;;  %v2899_v60 = vrot.slane %v9289_v47, %v10722_v19 }
 0x2c5   : > { %v2573_v11 = vsel %vm1147_vm4, %v2565_v1, %v2557_v59  ;;  %v2569_v13 = vsel %vm1147_vm4, %v2557_v59, %v2565_v1 }
 0x2c6   : > { %9272 = vmatmul.mubr.msk.f32.gmra.mrb[12].mxu1 %vm443_vm0, %v2232_v62  ;;  %v2593_v14 = vmul.f32 %v2583_v36, %v2573_v11  ;;  %v2592_v27 = vmul.f32 %v2579_v2, %v2569_v13  ;;  %v2547_v13 = vld [vmem:[#allocation4 + $0x1c8] sm:$0xff] }
 0x2c7   : > { %2372 = vmatprep.mubr.f32.mxu1 %v13354_v0 }
 0x2c8   : > { %v2717_v7 = vpop.permute.xlu1 %2716  ;;  %v2711_v9 = vpop.permute.xlu0 %2710  ;;  %v9662_v31 = vpack.c.bf16 %v2593_v14, %v2591_v23  ;;  %v9664_v38 = vpack.c.bf16 %v2592_v27, %v2590_v32  ;;  %v9294_v27 = vld [vmem:[%s13342_s1 + $0x10] ss:$8 sm:$0x3] }
 0x2c9   : > { %v2728_v20 = vsel %vm1307_vm5, %v2717_v7, %v2709_v63  ;;  %v2724_v51 = vsel %vm1307_vm5, %v2709_v63, %v2717_v7  ;;  %v2546_v63 = vld [vmem:[#allocation4 + $0x1c0] sm:$0xff] }
 0x2ca   : > { %9273 = vmatmul.mubr.msk.f32.gmra.mrb[14].mxu1 %vm443_vm0, %v2233_v4  ;;  %v2745_v29 = vmul.f32 %v2741_v15, %v2728_v20  ;;  %v2744_v61 = vmul.f32 %v2737_v45, %v2724_v51 }
 0x2cb   : > { %2512 = vmatprep.mubr.f32.mxu1 %v13354_v0 }
 0x2cc   : > { %v2713_v24 = vpop.permute.xlu1 %2712  ;;  %v2719_v25 = vpop.permute.xlu0 %2718 }
 0x2cd   : > { %v2729_v28 = vsel %vm1307_vm5, %v2719_v25, %v2711_v9  ;;  %v2725_v44 = vsel %vm1307_vm5, %v2711_v9, %v2719_v25  ;;  %v2895_v25 = vrot.slane %v9289_v47, %v10716_v18 }
 0x2ce   : > { %v2747_v30 = vmul.f32 %v2741_v15, %v2729_v28  ;;  %9275 = vmatmul.mubr.msk.f32.vlgmr.msra.gmra.mrb[8].mxu1 %vm443_vm0, %v2388_v21  ;;  %v2746_v54 = vmul.f32 %v2737_v45, %v2725_v44  ;;  %v2548_v21 = vld [vmem:[#allocation4 + $0x1d0] sm:$0xff]  ;;  %v2549_v28 = vld [vmem:[#allocation4 + $0x1d8] sm:$0xff] }
 0x2cf   : > { %9661 = vmatpush1.bf16.msra.mxu1 %v9660_v26  ;;  %2518 = vmatprep.mubr.f32.mxu1 %v13354_v0 }
 0x2d0   : > { %9663 = vmatprep.subr.bf16.mxu1 %v9662_v31  ;;  %v2721_v34 = vpop.permute.xlu1 %2720  ;;  %v2715_v36 = vpop.permute.xlu0 %2714  ;;  %v9666_v37 = vpack.c.bf16 %v2747_v30, %v2745_v29  ;;  %v9668_v3 = vpack.c.bf16 %v2746_v54, %v2744_v61 }
 0x2d1   : > { %v2730_v55 = vsel %vm1307_vm5, %v2721_v34, %v2713_v24  ;;  %v2726_v1 = vsel %vm1307_vm5, %v2713_v24, %v2721_v34 }
 0x2d2   : > { %9276 = vmatmul.mubr.msk.f32.gmra.mrb[10].mxu1 %vm443_vm0, %v2389_v33  ;;  %v2749_v8 = vmul.f32 %v2741_v15, %v2730_v55  ;;  %v2748_v10 = vmul.f32 %v2737_v45, %v2726_v1  ;;  %v2705_v55 = vld [vmem:[#allocation4 + $0x1e8] sm:$0xff] }
 0x2d3   : > { %9665 = vmatpush1.bf16.msra.mxu1 %v9664_v38  ;;  %2524 = vmatprep.mubr.f32.mxu1 %v13354_v0 }
 0x2d4   : > { %9667 = vmatprep.subr.bf16.mxu1 %v9666_v37  ;;  %v2867_v40 = vpop.permute.xlu1 %2866  ;;  %v2723_v41 = vpop.permute.xlu0 %2722  ;;  %v3057_v37 = vrot.slane %v9294_v27, %v10722_v19 }
 0x2d5   : > { %v2731_v46 = vsel %vm1307_vm5, %v2723_v41, %v2715_v36  ;;  %v2727_v58 = vsel %vm1307_vm5, %v2715_v36, %v2723_v41 }
 0x2d6   : > { %9277 = vmatmul.mubr.msk.f32.gmra.mrb[12].mxu1 %vm443_vm0, %v2390_v39  ;;  %v2751_v59 = vmul.f32 %v2741_v15, %v2731_v46  ;;  %v2750_v4 = vmul.f32 %v2737_v45, %v2727_v58 }
 0x2d7   : > { %2530 = vmatprep.mubr.f32.mxu1 %v13354_v0 }
 0x2d8   : > { %v2875_v52 = vpop.permute.xlu1 %2874  ;;  %v2869_v53 = vpop.permute.xlu0 %2868  ;;  %v9670_v12 = vpack.c.bf16 %v2751_v59, %v2749_v8  ;;  %v9672_v20 = vpack.c.bf16 %v2750_v4, %v2748_v10 }
 0x2d9   : > { %v2886_v62 = vsel %vm1467_vm6, %v2875_v52, %v2867_v40  ;;  %v2882_v29 = vsel %vm1467_vm6, %v2867_v40, %v2875_v52  ;;  %v2704_v40 = vld [vmem:[#allocation4 + $0x1e0] sm:$0xff] }
 0x2da   : > { %9278 = vmatmul.mubr.msk.f32.gmra.mrb[14].mxu1 %vm443_vm0, %v2391_v48  ;;  %v2903_v7 = vmul.f32 %v2899_v60, %v2886_v62  ;;  %v2902_v38 = vmul.f32 %v2895_v25, %v2882_v29  ;;  %v2706_v62 = vld [vmem:[#allocation4 + $0x1f0] sm:$0xff] }
 0x2db   : > { %2670 = vmatprep.mubr.f32.mxu1 %v13354_v0  ;;  %v3022_v29 = vld [vmem:[#allocation4 + $0x230] sm:$0xff] }
 0x2dc   : > { %v2871_v2 = vpop.permute.xlu1 %2870  ;;  %v2877_v11 = vpop.permute.xlu0 %2876 }
 0x2dd   : > { %v2887_v6 = vsel %vm1467_vm6, %v2877_v11, %v2869_v53  ;;  %v2883_v24 = vsel %vm1467_vm6, %v2869_v53, %v2877_v11 }
 0x2de   : > { %v2905_v9 = vmul.f32 %v2899_v60, %v2887_v6  ;;  %9280 = vmatmul.mubr.msk.f32.vlgmr.msra.gmra.mrb[8].mxu1 %vm443_vm0, %v2546_v63  ;;  %v2904_v32 = vmul.f32 %v2895_v25, %v2883_v24 }
 0x2df   : > { %9669 = vmatpush1.bf16.msra.mxu1 %v9668_v3  ;;  %2676 = vmatprep.mubr.f32.mxu1 %v13354_v0  ;;  %v2707_v3 = vld [vmem:[#allocation4 + $0x1f8] sm:$0xff] }
 0x2e0   : > { %9671 = vmatprep.subr.bf16.mxu1 %v9670_v12  ;;  %v2879_v14 = vpop.permute.xlu1 %2878  ;;  %v2873_v15 = vpop.permute.xlu0 %2872  ;;  %v9674_v16 = vpack.c.bf16 %v2905_v9, %v2903_v7  ;;  %v9676_v46 = vpack.c.bf16 %v2904_v32, %v2902_v38 }
 0x2e1   : > { %v2888_v33 = vsel %vm1467_vm6, %v2879_v14, %v2871_v2  ;;  %v2884_v41 = vsel %vm1467_vm6, %v2871_v2, %v2879_v14  ;;  %v3053_v2 = vrot.slane %v9294_v27, %v10716_v18  ;;  %v3020_v27 = vld [vmem:[#allocation4 + $0x220] sm:$0xff] }
 0x2e2   : > { %9281 = vmatmul.mubr.msk.f32.gmra.mrb[10].mxu1 %vm443_vm0, %v2547_v13  ;;  %v2907_v44 = vmul.f32 %v2899_v60, %v2888_v33  ;;  %v2906_v54 = vmul.f32 %v2895_v25, %v2884_v41  ;;  %v2862_v13 = vld [vmem:[#allocation4 + $0x200] sm:$0xff] }
 0x2e3   : > { %9673 = vmatpush1.bf16.msra.mxu1 %v9672_v20  ;;  %2682 = vmatprep.mubr.f32.mxu1 %v13354_v0 }
 0x2e4   : > { %9675 = vmatprep.subr.bf16.mxu1 %v9674_v16  ;;  %v3025_v22 = vpop.permute.xlu1 %3024  ;;  %v2881_v23 = vpop.permute.xlu0 %2880 }
 0x2e5   : > { %v2889_v26 = vsel %vm1467_vm6, %v2881_v23, %v2873_v15  ;;  %v2885_v34 = vsel %vm1467_vm6, %v2873_v15, %v2881_v23  ;;  %v2863_v23 = vld [vmem:[#allocation4 + $0x208] sm:$0xff] }
 0x2e6   : > { %9282 = vmatmul.mubr.msk.f32.gmra.mrb[12].mxu1 %vm443_vm0, %v2548_v21  ;;  %v2909_v36 = vmul.f32 %v2899_v60, %v2889_v26  ;;  %v2908_v47 = vmul.f32 %v2895_v25, %v2885_v34  ;;  %v2864_v25 = vld [vmem:[#allocation4 + $0x210] sm:$0xff]  ;;  %v2865_v26 = vld [vmem:[#allocation4 + $0x218] sm:$0xff] }
 0x2e7   : > { %2688 = vmatprep.mubr.f32.mxu1 %v13354_v0 }
 0x2e8   : > { %v3033_v30 = vpop.permute.xlu1 %3032  ;;  %v3027_v31 = vpop.permute.xlu0 %3026  ;;  %v9678_v53 = vpack.c.bf16 %v2909_v36, %v2907_v44  ;;  %v9680_v61 = vpack.c.bf16 %v2908_v47, %v2906_v54 }
 0x2e9   : > { %v3044_v39 = vsel %vm1627_vm8, %v3033_v30, %v3025_v22  ;;  %v3040_v4 = vsel %vm1627_vm8, %v3025_v22, %v3033_v30  ;;  %v3023_v30 = vld [vmem:[#allocation4 + $0x238] sm:$0xff] }
 0x2ea   : > { %9283 = vmatmul.mubr.msk.f32.gmra.mrb[14].mxu1 %vm443_vm0, %v2549_v28  ;;  %v3061_v51 = vmul.f32 %v3057_v37, %v3044_v39  ;;  %v3060_v10 = vmul.f32 %v3053_v2, %v3040_v4  ;;  %v3021_v28 = vld [vmem:[#allocation4 + $0x228] sm:$0xff] }
 0x2eb   : > { %2828 = vmatprep.mubr.f32.mxu1 %v13354_v0 }
 0x2ec   : > { %v3035_v45 = vpop.permute.xlu0 %3034  ;;  %v3029_v58 = vpop.permute.xlu1 %3028 }
 0x2ed   : > { %v3045_v48 = vsel %vm1627_vm8, %v3035_v45, %v3027_v31  ;;  %v3041_v1 = vsel %vm1627_vm8, %v3027_v31, %v3035_v45 }
 0x2ee   : > { %v3063_v52 = vmul.f32 %v3057_v37, %v3045_v48  ;;  %9285 = vmatmul.mubr.msk.f32.vlgmr.msra.gmra.mrb[8].mxu1 %vm443_vm0, %v2704_v40  ;;  %v3062_v6 = vmul.f32 %v3053_v2, %v3041_v1 }
 0x2ef   : > { %9677 = vmatpush1.bf16.msra.mxu1 %v9676_v46  ;;  %2834 = vmatprep.mubr.f32.mxu1 %v13354_v0 }
 0x2f0   : > { %9679 = vmatprep.subr.bf16.mxu1 %v9678_v53  ;;  %v3031_v59 = vpop.permute.xlu0 %3030  ;;  %v9682_v60 = vpack.c.bf16 %v3063_v52, %v3061_v51  ;;  %v3037_v8 = vpop.permute.xlu1 %3036  ;;  %v9684_v16 = vpack.c.bf16 %v3062_v6, %v3060_v10 }
 0x2f1   : > { %v3046_v7 = vsel %vm1627_vm8, %v3037_v8, %v3029_v58  ;;  %v3042_v14 = vsel %vm1627_vm8, %v3029_v58, %v3037_v8 }
 0x2f2   : > { %9286 = vmatmul.mubr.msk.f32.gmra.mrb[10].mxu1 %vm443_vm0, %v2705_v55  ;;  %v3065_v15 = vmul.f32 %v3057_v37, %v3046_v7  ;;  %v3064_v22 = vmul.f32 %v3053_v2, %v3042_v14 }
 0x2f3   : > { %9681 = vmatpush1.bf16.msra.mxu1 %v9680_v61  ;;  %2840 = vmatprep.mubr.f32.mxu1 %v13354_v0 }
 0x2f4   : > { %9683 = vmatprep.subr.bf16.mxu1 %v9682_v60 }
 0x2f5   : > { %v3039_v63 = vpop.permute.xlu0 %3038 }
 0x2f6   : > { %9287 = vmatmul.mubr.msk.f32.gmra.mrb[12].mxu1 %vm443_vm0, %v2706_v62  ;;  %v3047_v11 = vsel %vm1627_vm8, %v3039_v63, %v3031_v59  ;;  %v3043_v9 = vsel %vm1627_vm8, %v3031_v59, %v3039_v63 }
 0x2f7   : > { %2846 = vmatprep.mubr.f32.mxu1 %v13354_v0  ;;  %v3067_v12 = vmul.f32 %v3057_v37, %v3047_v11  ;;  %v3066_v20 = vmul.f32 %v3053_v2, %v3043_v9  ;;  %v3268_v11 = vld [vmem:[%s13342_s1] ss:$8 sm:$0x3] }
 0x2f8   : > { %v3273_v6 = vrot.slane %v3268_v11, %v10716_v18  ;;  %v3277_v7 = vrot.slane %v3268_v11, %v10722_v19 }
 0x2f9   : > { %v9686_v21 = vpack.c.bf16 %v3067_v12, %v3065_v15  ;;  %v9688_v24 = vpack.c.bf16 %v3066_v20, %v3064_v22 }
 0x2fa   : > { %9288 = vmatmul.mubr.msk.f32.gmra.mrb[14].mxu1 %vm443_vm0, %v2707_v3 }
 0x2fb   : > { %2986 = vmatprep.mubr.f32.mxu1 %v13354_v0 }
 0x2fe   : > { %9290 = vmatmul.mubr.msk.f32.vlgmr.msra.gmra.mrb[8].mxu1 %vm443_vm0, %v2862_v13 }
 0x2ff   : > { %9685 = vmatpush1.bf16.msra.mxu1 %v9684_v16  ;;  %2992 = vmatprep.mubr.f32.mxu1 %v13354_v0 }
 0x300   : > { %9687 = vmatprep.subr.bf16.mxu1 %v9686_v21 }
 0x301   : > { %v3180_v31 = vpop.permute.xlu1 %3179 }
 0x302   : > { %9291 = vmatmul.mubr.msk.f32.gmra.mrb[10].mxu1 %vm443_vm0, %v2863_v23  ;;  %v9299_v23 = vld [vmem:[%s13344_s3 + $0x40] sm:$0xff] }
 0x303   : > { %9689 = vmatpush1.bf16.msra.mxu1 %v9688_v24  ;;  %2998 = vmatprep.mubr.f32.mxu1 %v13354_v0 }
 0x305   : > { %v3190_v47 = vpop.permute.xlu1 %3189 }
 0x306   : > { %9292 = vmatmul.mubr.msk.f32.gmra.mrb[12].mxu1 %vm443_vm0, %v2864_v25  ;;  %v3185_v38 = vpop.permute.xlu0 %3184 }
 0x307   : > { %3004 = vmatprep.mubr.f32.mxu1 %v13354_v0 }
 0x30a   : > { %9293 = vmatmul.mubr.msk.f32.gmra.mrb[14].mxu1 %vm443_vm0, %v2865_v26  ;;  %v3195_v58 = vpop.permute.xlu0 %3194 }
 0x30b   : > { %3144 = vmatprep.mubr.f32.mxu1 %v13354_v0 }
 0x30e   : > { %9295 = vmatmul.mubr.msk.f32.vlgmr.msra.gmra.mrb[8].mxu1 %vm443_vm0, %v3020_v27 }
 0x30f   : > { %3150 = vmatprep.mubr.f32.mxu1 %v13354_v0 }
 0x312   : > { %9296 = vmatmul.mubr.msk.f32.gmra.mrb[10].mxu1 %vm443_vm0, %v3021_v28 }
 0x313   : > { %3156 = vmatprep.mubr.f32.mxu1 %v13354_v0 }
 0x316   : > { %9297 = vmatmul.mubr.msk.f32.gmra.mrb[12].mxu1 %vm443_vm0, %v3022_v29 }
 0x317   : > { %3162 = vmatprep.mubr.f32.mxu1 %v13354_v0 }
 0x31a   : > { %9298 = vmatmul.mubr.msk.f32.gmra.mrb[14].mxu1 %vm443_vm0, %v3023_v30  ;;  %v9301_v30 = vld [vmem:[%s13344_s3 + $0x50] sm:$0xff] }
 0x31b   : > { %9516 = vmatprep.mubr.msk.f32.mxu1 %vm10451_vm9, %v13354_v0 }
 0x3e1   : > { %v3146_v32 = vpop.f32.mrb[8].mxu1 }
 0x3e2   : > { %v3197_v33 = vadd.f32 %v3180_v31, %v3146_v32  ;;  %v3148_v34 = vpop.f32.mrb[9].mxu1 }
 0x3e3   : > { %v3198_v37 = vadd.f32 %v3180_v31, %v3148_v34 }
 0x3e4   : > { %v11399_v36 = vmax.f32 %v3197_v33, 0.0  ;;  %v9300_v33 = vld [vmem:[%s13344_s3 + $0x48] sm:$0xff] }
 0x3e5   : > { %v3152_v39 = vpop.f32.mrb[10].mxu1  ;;  %v11403_v44 = vmax.f32 %v3198_v37, 0.0 }
 0x3e6   : > { %v3199_v40 = vadd.f32 %v3185_v38, %v3152_v39  ;;  %3244 = vrot.lane.b32.xlu1 %v11399_v36, %s10447_s23  ;;  %v3154_v41 = vpop.f32.mrb[11].mxu1 }
 0x3e7   : > { %v3200_v46 = vadd.f32 %v3185_v38, %v3154_v41 }
 0x3e8   : > { %v11405_v45 = vmax.f32 %v3199_v40, 0.0 }
 0x3e9   : > { %v3158_v48 = vpop.f32.mrb[12].mxu1  ;;  %v11411_v53 = vmax.f32 %v3200_v46, 0.0 }
 0x3ea   : > { %v3201_v51 = vadd.f32 %v3190_v47, %v3158_v48  ;;  %3252 = vrot.lane.b32.xlu1 %v11403_v44, %s10447_s23  ;;  %3246 = vrot.lane.b32.xlu0 %v11405_v45, %s10447_s23  ;;  %v3160_v52 = vpop.f32.mrb[13].mxu1 }
 0x3eb   : > { %v3202_v55 = vadd.f32 %v3190_v47, %v3160_v52 }
 0x3ec   : > { %v11413_v54 = vmax.f32 %v3201_v51, 0.0  ;;  %v9302_v51 = vld [vmem:[%s13344_s3 + $0x58] sm:$0xff] }
 0x3ed   : > { %v3164_v59 = vpop.f32.mrb[14].mxu1  ;;  %v11419_v62 = vmax.f32 %v3202_v55, 0.0  ;;  %v9311_v55 = vld [vmem:[%s13342_s1 + $0x1] ss:$8 sm:$0x3] }
 0x3ee   : > { %v3203_v60 = vadd.f32 %v3195_v58, %v3164_v59  ;;  %3254 = vrot.lane.b32.xlu0 %v11411_v53, %s10447_s23  ;;  %3248 = vrot.lane.b32.xlu1 %v11413_v54, %s10447_s23  ;;  %v3166_v61 = vpop.f32.mrb[15].mxu1  ;;  %v3240_v59 = vld [vmem:[#allocation4 + $0x240] sm:$0xff] }
 0x3ef   : > { %v3204_v1 = vadd.f32 %v3195_v58, %v3166_v61  ;;  %v9698_v58 = vpack.c.bf16 %v11411_v53, %v11403_v44 }
 0x3f0   : > { %v11421_v63 = vmax.f32 %v3203_v60, 0.0  ;;  %v3528_v60 = vrot.slane %v9311_v55, %v10722_v19 }
 0x3f1   : > { %v11427_v8 = vmax.f32 %v3204_v1, 0.0 }
 0x3f2   : > { %3256 = vrot.lane.b32.xlu1 %v11419_v62, %s10447_s23  ;;  %3250 = vrot.lane.b32.xlu0 %v11421_v63, %s10447_s23 }
 0x3f6   : > { %3495 = vrot.lane.b32.xlu1 %v11399_v36, %s10441_s17  ;;  %3258 = vrot.lane.b32.xlu0 %v11427_v8, %s10447_s23 }
 0x3fa   : > { %3503 = vrot.lane.b32.xlu1 %v11403_v44, %s10441_s17  ;;  %3497 = vrot.lane.b32.xlu0 %v11405_v45, %s10441_s17 }
 0x3fe   : > { %3499 = vrot.lane.b32.xlu1 %v11413_v54, %s10441_s17  ;;  %3505 = vrot.lane.b32.xlu0 %v11411_v53, %s10441_s17 }
 0x402   : > { %3507 = vrot.lane.b32.xlu1 %v11419_v62, %s10441_s17  ;;  %3501 = vrot.lane.b32.xlu0 %v11421_v63, %s10441_s17 }
 0x406   : > { %3653 = vrot.lane.b32.xlu1 %v11399_v36, %s10442_s18  ;;  %3509 = vrot.lane.b32.xlu0 %v11427_v8, %s10441_s17 }
 0x40a   : > { %3661 = vrot.lane.b32.xlu1 %v11403_v44, %s10442_s18  ;;  %3655 = vrot.lane.b32.xlu0 %v11405_v45, %s10442_s18 }
 0x40e   : > { %3657 = vrot.lane.b32.xlu1 %v11413_v54, %s10442_s18  ;;  %3663 = vrot.lane.b32.xlu0 %v11411_v53, %s10442_s18 }
 0x412   : > { %3665 = vrot.lane.b32.xlu1 %v11419_v62, %s10442_s18  ;;  %3659 = vrot.lane.b32.xlu0 %v11421_v63, %s10442_s18 }
 0x416   : > { %3811 = vrot.lane.b32.xlu1 %v11399_v36, %s10443_s19  ;;  %3667 = vrot.lane.b32.xlu0 %v11427_v8, %s10442_s18 }
 0x41a   : > { %3819 = vrot.lane.b32.xlu1 %v11403_v44, %s10443_s19  ;;  %3813 = vrot.lane.b32.xlu0 %v11405_v45, %s10443_s19 }
 0x41e   : > { %3815 = vrot.lane.b32.xlu1 %v11413_v54, %s10443_s19  ;;  %3821 = vrot.lane.b32.xlu0 %v11411_v53, %s10443_s19 }
 0x422   : > { %3823 = vrot.lane.b32.xlu1 %v11419_v62, %s10443_s19  ;;  %3817 = vrot.lane.b32.xlu0 %v11421_v63, %s10443_s19 }
 0x426   : > { %3969 = vrot.lane.b32.xlu1 %v11399_v36, %s10444_s20  ;;  %3825 = vrot.lane.b32.xlu0 %v11427_v8, %s10443_s19 }
 0x42a   : > { %3977 = vrot.lane.b32.xlu1 %v11403_v44, %s10444_s20  ;;  %3971 = vrot.lane.b32.xlu0 %v11405_v45, %s10444_s20 }
 0x42e   : > { %3973 = vrot.lane.b32.xlu1 %v11413_v54, %s10444_s20  ;;  %3979 = vrot.lane.b32.xlu0 %v11411_v53, %s10444_s20 }
 0x432   : > { %3981 = vrot.lane.b32.xlu1 %v11419_v62, %s10444_s20  ;;  %3975 = vrot.lane.b32.xlu0 %v11421_v63, %s10444_s20 }
 0x436   : > { %4127 = vrot.lane.b32.xlu1 %v11399_v36, %s10445_s21  ;;  %3983 = vrot.lane.b32.xlu0 %v11427_v8, %s10444_s20 }
 0x43a   : > { %4135 = vrot.lane.b32.xlu1 %v11403_v44, %s10445_s21  ;;  %4129 = vrot.lane.b32.xlu0 %v11405_v45, %s10445_s21 }
 0x43e   : > { %4131 = vrot.lane.b32.xlu1 %v11413_v54, %s10445_s21  ;;  %4137 = vrot.lane.b32.xlu0 %v11411_v53, %s10445_s21 }
 0x442   : > { %4139 = vrot.lane.b32.xlu1 %v11419_v62, %s10445_s21  ;;  %4133 = vrot.lane.b32.xlu0 %v11421_v63, %s10445_s21 }
 0x446   : > { %4285 = vrot.lane.b32.xlu1 %v11399_v36, %s10446_s22  ;;  %4141 = vrot.lane.b32.xlu0 %v11427_v8, %s10445_s21 }
 0x44a   : > { %4293 = vrot.lane.b32.xlu1 %v11403_v44, %s10446_s22  ;;  %4287 = vrot.lane.b32.xlu0 %v11405_v45, %s10446_s22 }
 0x44e   : > { %4289 = vrot.lane.b32.xlu1 %v11413_v54, %s10446_s22  ;;  %4295 = vrot.lane.b32.xlu0 %v11411_v53, %s10446_s22 }
 0x452   : > { %4297 = vrot.lane.b32.xlu1 %v11419_v62, %s10446_s22  ;;  %4291 = vrot.lane.b32.xlu0 %v11421_v63, %s10446_s22 }
 0x456   : > { %4443 = vrot.lane.b32.xlu1 %v11399_v36, %s10448_s24  ;;  %4299 = vrot.lane.b32.xlu0 %v11427_v8, %s10446_s22 }
 0x458   : > { %v3245_v2 = vpop.permute.xlu1 %3244 }
 0x45a   : > { %4451 = vrot.lane.b32.xlu1 %v11403_v44, %s10448_s24  ;;  %4445 = vrot.lane.b32.xlu0 %v11405_v45, %s10448_s24  ;;  %v9702_v44 = vpack.c.bf16 %v11427_v8, %v11419_v62 }
 0x45c   : > { %v3253_v3 = vpop.permute.xlu1 %3252  ;;  %v3247_v4 = vpop.permute.xlu0 %3246 }
 0x45d   : > { %v3264_v9 = vsel %vm414_vm7, %v3253_v3, %v3245_v2  ;;  %v3260_v12 = vsel %vm414_vm7, %v3245_v2, %v3253_v3  ;;  %v9700_v3 = vpack.c.bf16 %v11405_v45, %v11399_v36  ;;  %v3242_v45 = vld [vmem:[#allocation4 + $0x250] sm:$0xff] }
 0x45e   : > { %4447 = vrot.lane.b32.xlu1 %v11413_v54, %s10448_s24  ;;  %4453 = vrot.lane.b32.xlu0 %v11411_v53, %s10448_s24  ;;  %v3280_v14 = vmul.f32 %v3273_v6, %v3264_v9  ;;  %v3281_v20 = vmul.f32 %v3277_v7, %v3260_v12  ;;  %v3241_v53 = vld [vmem:[#allocation4 + $0x248] sm:$0xff]  ;;  %v9704_v12 = vpack.c.bf16 %v11421_v63, %v11413_v54 }
 0x460   : > { %v3255_v10 = vpop.permute.xlu0 %3254  ;;  %v3249_v13 = vpop.permute.xlu1 %3248 }
 0x461   : > { %v3261_v15 = vsel %vm414_vm7, %v3247_v4, %v3255_v10  ;;  %v3265_v16 = vsel %vm414_vm7, %v3255_v10, %v3247_v4 }
 0x462   : > { %v3282_v21 = vmul.f32 %v3273_v6, %v3265_v16  ;;  %v3283_v22 = vmul.f32 %v3277_v7, %v3261_v15  ;;  %4455 = vrot.lane.b32.xlu1 %v11419_v62, %s10448_s24  ;;  %4449 = vrot.lane.b32.xlu0 %v11421_v63, %s10448_s24  ;;  %v9316_v63 = vld [vmem:[%s13342_s1 + $0x2] ss:$8 sm:$0x3] }
 0x464   : > { %v9692_v24 = vpack.c.bf16 %v3282_v21, %v3280_v14  ;;  %v3257_v25 = vpop.permute.xlu1 %3256  ;;  %v3251_v26 = vpop.permute.xlu0 %3250  ;;  %v9690_v27 = vpack.c.bf16 %v3283_v22, %v3281_v20  ;;  %v3243_v14 = vld [vmem:[#allocation4 + $0x258] sm:$0xff] }
 0x465   : > { %v3262_v28 = vsel %vm414_vm7, %v3249_v13, %v3257_v25  ;;  %v3266_v29 = vsel %vm414_vm7, %v3257_v25, %v3249_v13  ;;  %v3524_v13 = vrot.slane %v9311_v55, %v10716_v18  ;;  %v3686_v25 = vrot.slane %v9316_v63, %v10722_v19  ;;  %v3237_v55 = vld [vmem:[#allocation4 + $0x2d0] sm:$0xff] }
 0x466   : > { %9691 = vmatprep.subr.bf16.mxu0 %v9690_v27  ;;  %4598 = vperm.xlu1 %10364, %v9299_v23   ;;  %v3284_v38 = vmul.f32 %v3273_v6, %v3266_v29  ;;  %v3285_v39 = vmul.f32 %v3277_v7, %v3262_v28  ;;  %v3235_v28 = vld [vmem:[#allocation4 + $0x2c0] sm:$0xff] }
 0x467   : > { %4457 = vrot.lane.b32.xlu0 %v11427_v8, %s10448_s24  ;;  %9693 = vmatpush1.bf16.msra.mxu0 %v9692_v24 }
 0x468   : > { %v3496_v31 = vpop.permute.xlu1 %3495  ;;  %v3259_v32 = vpop.permute.xlu0 %3258 }
 0x469   : > { %v3263_v34 = vsel %vm414_vm7, %v3251_v26, %v3259_v32  ;;  %v3267_v37 = vsel %vm414_vm7, %v3259_v32, %v3251_v26 }
 0x46a   : > { %v3286_v40 = vmul.f32 %v3273_v6, %v3267_v37  ;;  %v3287_v41 = vmul.f32 %v3277_v7, %v3263_v34  ;;  %4608 = vperm.xlu1 %10364, %v9301_v30  }
 0x46b   : > { %4603 = vperm.xlu0 %10363, %v9300_v33  }
 0x46c   : > { %v9696_v46 = vpack.c.bf16 %v3286_v40, %v3284_v38  ;;  %v3504_v47 = vpop.permute.xlu1 %3503  ;;  %v3498_v48 = vpop.permute.xlu0 %3497  ;;  %v9694_v52 = vpack.c.bf16 %v3287_v41, %v3285_v39 }
 0x46d   : > { %v3511_v2 = vsel %vm667_vm1, %v3496_v31, %v3504_v47  ;;  %v3515_v15 = vsel %vm667_vm1, %v3504_v47, %v3496_v31 }
 0x46e   : > { %9695 = vmatprep.subr.bf16.mxu0 %v9694_v52  ;;  %v3532_v6 = vmul.f32 %v3528_v60, %v3511_v2  ;;  %v3531_v26 = vmul.f32 %v3524_v13, %v3515_v15  ;;  %v9321_v2 = vld [vmem:[%s13342_s1 + $0x3] ss:$8 sm:$0x3] }
 0x46f   : > { %4613 = vperm.xlu0 %10363, %v9302_v51   ;;  %9697 = vmatpush1.bf16.msra.mxu0 %v9696_v46  ;;  %v3236_v46 = vld [vmem:[#allocation4 + $0x2c8] sm:$0xff] }
 0x470   : > { %v3500_v61 = vpop.permute.xlu1 %3499  ;;  %9699 = vmatprep.subr.bf16.mxu0 %v9698_v58  ;;  %v3506_v1 = vpop.permute.xlu0 %3505 }
 0x471   : > { %v3512_v11 = vsel %vm667_vm1, %v3498_v48, %v3506_v1  ;;  %v3516_v8 = vsel %vm667_vm1, %v3506_v1, %v3498_v48 }
 0x472   : > { %v3534_v4 = vmul.f32 %v3528_v60, %v3512_v11  ;;  %9303 = vmatmul.mubr.msk.f32.vlgmr.msra.gmra.mrb[8].mxu0 %vm443_vm0, %v3240_v59  ;;  %v3533_v21 = vmul.f32 %v3524_v13, %v3516_v8  ;;  %v3238_v11 = vld [vmem:[#allocation4 + $0x2d8] sm:$0xff] }
 0x473   : > { %9701 = vmatpush1.bf16.msra.mxu0 %v9700_v3  ;;  %3370 = vmatprep.mubr.f32.mxu0 %v13354_v0 }
 0x474   : > { %v3508_v7 = vpop.permute.xlu1 %3507  ;;  %v3502_v9 = vpop.permute.xlu0 %3501  ;;  %9703 = vmatprep.subr.bf16.mxu0 %v9702_v44  ;;  %v9706_v36 = vpack.c.bf16 %v3534_v4, %v3532_v6  ;;  %v9708_v33 = vpack.c.bf16 %v3533_v21, %v3531_v26 }
 0x475   : > { %v3513_v22 = vsel %vm667_vm1, %v3500_v61, %v3508_v7  ;;  %v3517_v29 = vsel %vm667_vm1, %v3508_v7, %v3500_v61  ;;  %v3682_v61 = vrot.slane %v9316_v63, %v10716_v18 }
 0x476   : > { %9304 = vmatmul.mubr.msk.f32.gmra.mrb[10].mxu0 %vm443_vm0, %v3241_v53  ;;  %v3536_v30 = vmul.f32 %v3528_v60, %v3513_v22  ;;  %v3535_v41 = vmul.f32 %v3524_v13, %v3517_v29 }
 0x477   : > { %9705 = vmatpush1.bf16.msra.mxu0 %v9704_v12  ;;  %3376 = vmatprep.mubr.f32.mxu0 %v13354_v0  ;;  %v3844_v12 = vrot.slane %v9321_v2, %v10722_v19 }
 0x478   : > { %v3654_v10 = vpop.permute.xlu1 %3653  ;;  %v3510_v62 = vpop.permute.xlu0 %3509  ;;  %9707 = vmatprep.subr.bf16.mxu0 %v9706_v36 }
 0x479   : > { %v3514_v54 = vsel %vm667_vm1, %v3502_v9, %v3510_v62  ;;  %v3518_v23 = vsel %vm667_vm1, %v3510_v62, %v3502_v9 }
 0x47a   : > { %9305 = vmatmul.mubr.msk.f32.gmra.mrb[12].mxu0 %vm443_vm0, %v3242_v45  ;;  %v3538_v24 = vmul.f32 %v3528_v60, %v3514_v54  ;;  %v3537_v34 = vmul.f32 %v3524_v13, %v3518_v23  ;;  %v3492_v23 = vld [vmem:[#allocation4 + $0x268] sm:$0xff] }
 0x47b   : > { %3382 = vmatprep.mubr.f32.mxu0 %v13354_v0 }
 0x47c   : > { %v3662_v16 = vpop.permute.xlu1 %3661  ;;  %v3656_v20 = vpop.permute.xlu0 %3655  ;;  %v9710_v40 = vpack.c.bf16 %v3538_v24, %v3536_v30  ;;  %v9712_v52 = vpack.c.bf16 %v3537_v34, %v3535_v41  ;;  %v9326_v34 = vld [vmem:[%s13342_s1 + $0x5] ss:$8 sm:$0x3] }
 0x47d   : > { %v3669_v27 = vsel %vm827_vm2, %v3654_v10, %v3662_v16  ;;  %v3673_v3 = vsel %vm827_vm2, %v3662_v16, %v3654_v10  ;;  %v3491_v10 = vld [vmem:[#allocation4 + $0x260] sm:$0xff] }
 0x47e   : > { %9306 = vmatmul.mubr.msk.f32.gmra.mrb[14].mxu0 %vm443_vm0, %v3243_v14  ;;  %v3690_v38 = vmul.f32 %v3686_v25, %v3669_v27  ;;  %v3689_v36 = vmul.f32 %v3682_v61, %v3673_v3 }
 0x47f   : > { %3465 = vmatprep.mubr.f32.mxu0 %v13354_v0 }
 0x480   : > { %v3658_v31 = vpop.permute.xlu1 %3657  ;;  %v3664_v32 = vpop.permute.xlu0 %3663 }
 0x481   : > { %v3670_v37 = vsel %vm827_vm2, %v3656_v20, %v3664_v32  ;;  %v3674_v60 = vsel %vm827_vm2, %v3664_v32, %v3656_v20  ;;  %v3840_v32 = vrot.slane %v9321_v2, %v10716_v18 }
 0x482   : > { %v3692_v39 = vmul.f32 %v3686_v25, %v3670_v37  ;;  %9307 = vmatmul.mubr.msk.f32.vlgmr.msra.gmra.mrb[8].mxu0 %vm443_vm0, %v3235_v28  ;;  %v3691_v53 = vmul.f32 %v3682_v61, %v3674_v60  ;;  %v3493_v28 = vld [vmem:[#allocation4 + $0x270] sm:$0xff]  ;;  %v3494_v37 = vld [vmem:[#allocation4 + $0x278] sm:$0xff] }
 0x483   : > { %9709 = vmatpush1.bf16.msra.mxu0 %v9708_v33  ;;  %3471 = vmatprep.mubr.f32.mxu0 %v13354_v0 }
 0x484   : > { %9711 = vmatprep.subr.bf16.mxu0 %v9710_v40  ;;  %v3666_v47 = vpop.permute.xlu1 %3665  ;;  %v3660_v48 = vpop.permute.xlu0 %3659  ;;  %v9714_v51 = vpack.c.bf16 %v3692_v39, %v3690_v38  ;;  %v9716_v63 = vpack.c.bf16 %v3691_v53, %v3689_v36 }
 0x485   : > { %v3671_v6 = vsel %vm827_vm2, %v3658_v31, %v3666_v47  ;;  %v3675_v62 = vsel %vm827_vm2, %v3666_v47, %v3658_v31 }
 0x486   : > { %9308 = vmatmul.mubr.msk.f32.gmra.mrb[10].mxu0 %vm443_vm0, %v3236_v46  ;;  %v3694_v8 = vmul.f32 %v3686_v25, %v3671_v6  ;;  %v3693_v22 = vmul.f32 %v3682_v61, %v3675_v62 }
 0x487   : > { %9713 = vmatpush1.bf16.msra.mxu0 %v9712_v52  ;;  %3477 = vmatprep.mubr.f32.mxu0 %v13354_v0 }
 0x488   : > { %9715 = vmatprep.subr.bf16.mxu0 %v9714_v51  ;;  %v3812_v58 = vpop.permute.xlu1 %3811  ;;  %v3668_v59 = vpop.permute.xlu0 %3667  ;;  %v4002_v51 = vrot.slane %v9326_v34, %v10722_v19 }
 0x489   : > { %v3672_v1 = vsel %vm827_vm2, %v3660_v48, %v3668_v59  ;;  %v3676_v7 = vsel %vm827_vm2, %v3668_v59, %v3660_v48 }
 0x48a   : > { %9309 = vmatmul.mubr.msk.f32.gmra.mrb[12].mxu0 %vm443_vm0, %v3237_v55  ;;  %v3696_v9 = vmul.f32 %v3686_v25, %v3672_v1  ;;  %v3695_v14 = vmul.f32 %v3682_v61, %v3676_v7  ;;  %v3650_v7 = vld [vmem:[#allocation4 + $0x288] sm:$0xff] }
 0x48b   : > { %3483 = vmatprep.mubr.f32.mxu0 %v13354_v0 }
 0x48c   : > { %v3820_v4 = vpop.permute.xlu1 %3819  ;;  %v3814_v44 = vpop.permute.xlu0 %3813  ;;  %v9718_v21 = vpack.c.bf16 %v3696_v9, %v3694_v8  ;;  %v9720_v27 = vpack.c.bf16 %v3695_v14, %v3693_v22  ;;  %v9331_v14 = vld [vmem:[%s13342_s1 + $0x6] ss:$8 sm:$0x3] }
 0x48d   : > { %v3827_v45 = vsel %vm987_vm3, %v3812_v58, %v3820_v4  ;;  %v3831_v38 = vsel %vm987_vm3, %v3820_v4, %v3812_v58  ;;  %v3649_v58 = vld [vmem:[#allocation4 + $0x280] sm:$0xff] }
 0x48e   : > { %9310 = vmatmul.mubr.msk.f32.gmra.mrb[14].mxu0 %vm443_vm0, %v3238_v11  ;;  %v3848_v16 = vmul.f32 %v3844_v12, %v3827_v45  ;;  %v3847_v52 = vmul.f32 %v3840_v32, %v3831_v38 }
 0x48f   : > { %3615 = vmatprep.mubr.f32.mxu0 %v13354_v0 }
 0x490   : > { %v3816_v13 = vpop.permute.xlu1 %3815  ;;  %v3822_v54 = vpop.permute.xlu0 %3821 }
 0x491   : > { %v3828_v15 = vsel %vm987_vm3, %v3814_v44, %v3822_v54  ;;  %v3832_v31 = vsel %vm987_vm3, %v3822_v54, %v3814_v44  ;;  %v3998_v54 = vrot.slane %v9326_v34, %v10716_v18 }
 0x492   : > { %v3850_v20 = vmul.f32 %v3844_v12, %v3828_v15  ;;  %9312 = vmatmul.mubr.msk.f32.vlgmr.msra.gmra.mrb[8].mxu0 %vm443_vm0, %v3491_v10  ;;  %v3849_v41 = vmul.f32 %v3840_v32, %v3832_v31  ;;  %v3651_v10 = vld [vmem:[#allocation4 + $0x290] sm:$0xff]  ;;  %v3652_v15 = vld [vmem:[#allocation4 + $0x298] sm:$0xff] }
 0x493   : > { %9717 = vmatpush1.bf16.msra.mxu0 %v9716_v63  ;;  %3621 = vmatprep.mubr.f32.mxu0 %v13354_v0 }
 0x494   : > { %9719 = vmatprep.subr.bf16.mxu0 %v9718_v21  ;;  %v3824_v24 = vpop.permute.xlu1 %3823  ;;  %v3818_v25 = vpop.permute.xlu0 %3817  ;;  %v9722_v26 = vpack.c.bf16 %v3850_v20, %v3848_v16  ;;  %v9724_v2 = vpack.c.bf16 %v3849_v41, %v3847_v52 }
 0x495   : > { %v3829_v46 = vsel %vm987_vm3, %v3816_v13, %v3824_v24  ;;  %v3833_v59 = vsel %vm987_vm3, %v3824_v24, %v3816_v13 }
 0x496   : > { %9313 = vmatmul.mubr.msk.f32.gmra.mrb[10].mxu0 %vm443_vm0, %v3492_v23  ;;  %v3852_v60 = vmul.f32 %v3844_v12, %v3829_v46  ;;  %v3851_v6 = vmul.f32 %v3840_v32, %v3833_v59 }
 0x497   : > { %9721 = vmatpush1.bf16.msra.mxu0 %v9720_v27  ;;  %3627 = vmatprep.mubr.f32.mxu0 %v13354_v0 }
 0x498   : > { %9723 = vmatprep.subr.bf16.mxu0 %v9722_v26  ;;  %v3970_v29 = vpop.permute.xlu1 %3969  ;;  %v3826_v30 = vpop.permute.xlu0 %3825  ;;  %v4160_v26 = vrot.slane %v9331_v14, %v10722_v19 }
 0x499   : > { %v3830_v33 = vsel %vm987_vm3, %v3818_v25, %v3826_v30  ;;  %v3834_v47 = vsel %vm987_vm3, %v3826_v30, %v3818_v25 }
 0x49a   : > { %9314 = vmatmul.mubr.msk.f32.gmra.mrb[12].mxu0 %vm443_vm0, %v3493_v28  ;;  %v3854_v48 = vmul.f32 %v3844_v12, %v3830_v33  ;;  %v3853_v11 = vmul.f32 %v3840_v32, %v3834_v47  ;;  %v3808_v47 = vld [vmem:[#allocation4 + $0x2a8] sm:$0xff] }
 0x49b   : > { %3633 = vmatprep.mubr.f32.mxu0 %v13354_v0 }
 0x49c   : > { %v3978_v39 = vpop.permute.xlu1 %3977  ;;  %v3972_v40 = vpop.permute.xlu0 %3971  ;;  %v9726_v53 = vpack.c.bf16 %v3854_v48, %v3852_v60  ;;  %v9728_v45 = vpack.c.bf16 %v3853_v11, %v3851_v6  ;;  %v9336_v11 = vld [vmem:[%s13342_s1 + $0x7] ss:$8 sm:$0x3] }
 0x49d   : > { %v3989_v55 = vsel %vm1147_vm4, %v3978_v39, %v3970_v29  ;;  %v3985_v16 = vsel %vm1147_vm4, %v3970_v29, %v3978_v39  ;;  %v3807_v29 = vld [vmem:[#allocation4 + $0x2a0] sm:$0xff] }
 0x49e   : > { %9315 = vmatmul.mubr.msk.f32.gmra.mrb[14].mxu0 %vm443_vm0, %v3494_v37  ;;  %v4006_v4 = vmul.f32 %v4002_v51, %v3989_v55  ;;  %v4005_v27 = vmul.f32 %v3998_v54, %v3985_v16 }
 0x49f   : > { %3773 = vmatprep.mubr.f32.mxu0 %v13354_v0 }
 0x4a0   : > { %v3974_v61 = vpop.permute.xlu1 %3973  ;;  %v3980_v1 = vpop.permute.xlu0 %3979 }
 0x4a1   : > { %v3990_v3 = vsel %vm1147_vm4, %v3980_v1, %v3972_v40  ;;  %v3986_v13 = vsel %vm1147_vm4, %v3972_v40, %v3980_v1  ;;  %v4156_v1 = vrot.slane %v9331_v14, %v10716_v18 }
 0x4a2   : > { %v4008_v44 = vmul.f32 %v4002_v51, %v3990_v3  ;;  %9317 = vmatmul.mubr.msk.f32.vlgmr.msra.gmra.mrb[8].mxu0 %vm443_vm0, %v3649_v58  ;;  %v4007_v22 = vmul.f32 %v3998_v54, %v3986_v13  ;;  %v3809_v58 = vld [vmem:[#allocation4 + $0x2b0] sm:$0xff]  ;;  %v3810_v3 = vld [vmem:[#allocation4 + $0x2b8] sm:$0xff] }
 0x4a3   : > { %9725 = vmatpush1.bf16.msra.mxu0 %v9724_v2  ;;  %3779 = vmatprep.mubr.f32.mxu0 %v13354_v0 }
 0x4a4   : > { %9727 = vmatprep.subr.bf16.mxu0 %v9726_v53  ;;  %v3982_v9 = vpop.permute.xlu1 %3981  ;;  %v3976_v12 = vpop.permute.xlu0 %3975  ;;  %v9730_v36 = vpack.c.bf16 %v4008_v44, %v4006_v4  ;;  %v9732_v34 = vpack.c.bf16 %v4007_v22, %v4005_v27 }
 0x4a5   : > { %v3991_v23 = vsel %vm1147_vm4, %v3982_v9, %v3974_v61  ;;  %v3987_v30 = vsel %vm1147_vm4, %v3974_v61, %v3982_v9 }
 0x4a6   : > { %9318 = vmatmul.mubr.msk.f32.gmra.mrb[10].mxu0 %vm443_vm0, %v3650_v7  ;;  %v4010_v31 = vmul.f32 %v4002_v51, %v3991_v23  ;;  %v4009_v46 = vmul.f32 %v3998_v54, %v3987_v30 }
 0x4a7   : > { %9729 = vmatpush1.bf16.msra.mxu0 %v9728_v45  ;;  %3785 = vmatprep.mubr.f32.mxu0 %v13354_v0 }
 0x4a8   : > { %9731 = vmatprep.subr.bf16.mxu0 %v9730_v36  ;;  %v4128_v62 = vpop.permute.xlu1 %4127  ;;  %v3984_v8 = vpop.permute.xlu0 %3983  ;;  %v4318_v36 = vrot.slane %v9336_v11, %v10722_v19 }
 0x4a9   : > { %v3992_v63 = vsel %vm1147_vm4, %v3984_v8, %v3976_v12  ;;  %v3988_v24 = vsel %vm1147_vm4, %v3976_v12, %v3984_v8 }
 0x4aa   : > { %9319 = vmatmul.mubr.msk.f32.gmra.mrb[12].mxu0 %vm443_vm0, %v3651_v10  ;;  %v4012_v25 = vmul.f32 %v4002_v51, %v3992_v63  ;;  %v4011_v37 = vmul.f32 %v3998_v54, %v3988_v24  ;;  %v3966_v24 = vld [vmem:[#allocation4 + $0x2e8] sm:$0xff] }
 0x4ab   : > { %3791 = vmatprep.mubr.f32.mxu0 %v13354_v0 }
 0x4ac   : > { %v4136_v20 = vpop.permute.xlu1 %4135  ;;  %v4130_v21 = vpop.permute.xlu0 %4129  ;;  %v9734_v41 = vpack.c.bf16 %v4012_v25, %v4010_v31  ;;  %v9736_v55 = vpack.c.bf16 %v4011_v37, %v4009_v46  ;;  %v9341_v37 = vld [vmem:[%s13342_s1 + $0x10] ss:$8 sm:$0x3] }
 0x4ad   : > { %v4147_v28 = vsel %vm1307_vm5, %v4136_v20, %v4128_v62  ;;  %v4143_v4 = vsel %vm1307_vm5, %v4128_v62, %v4136_v20  ;;  %v3965_v62 = vld [vmem:[#allocation4 + $0x2e0] sm:$0xff] }
 0x4ae   : > { %9320 = vmatmul.mubr.msk.f32.gmra.mrb[14].mxu0 %vm443_vm0, %v3652_v15  ;;  %v4164_v39 = vmul.f32 %v4160_v26, %v4147_v28  ;;  %v4163_v45 = vmul.f32 %v4156_v1, %v4143_v4 }
 0x4af   : > { %3931 = vmatprep.mubr.f32.mxu0 %v13354_v0 }
 0x4b0   : > { %v4132_v32 = vpop.permute.xlu1 %4131  ;;  %v4138_v33 = vpop.permute.xlu0 %4137 }
 0x4b1   : > { %v4148_v38 = vsel %vm1307_vm5, %v4138_v33, %v4130_v21  ;;  %v4144_v61 = vsel %vm1307_vm5, %v4130_v21, %v4138_v33  ;;  %v4314_v33 = vrot.slane %v9336_v11, %v10716_v18 }
 0x4b2   : > { %v4166_v40 = vmul.f32 %v4160_v26, %v4148_v38  ;;  %9322 = vmatmul.mubr.msk.f32.vlgmr.msra.gmra.mrb[8].mxu0 %vm443_vm0, %v3807_v29  ;;  %v4165_v6 = vmul.f32 %v4156_v1, %v4144_v61  ;;  %v3967_v29 = vld [vmem:[#allocation4 + $0x2f0] sm:$0xff]  ;;  %v3968_v38 = vld [vmem:[#allocation4 + $0x2f8] sm:$0xff] }
 0x4b3   : > { %9733 = vmatpush1.bf16.msra.mxu0 %v9732_v34  ;;  %3937 = vmatprep.mubr.f32.mxu0 %v13354_v0 }
 0x4b4   : > { %9735 = vmatprep.subr.bf16.mxu0 %v9734_v41  ;;  %v4140_v48 = vpop.permute.xlu1 %4139  ;;  %v4134_v51 = vpop.permute.xlu0 %4133  ;;  %v9738_v52 = vpack.c.bf16 %v4166_v40, %v4164_v39  ;;  %v9740_v14 = vpack.c.bf16 %v4165_v6, %v4163_v45 }
 0x4b5   : > { %v4149_v7 = vsel %vm1307_vm5, %v4140_v48, %v4132_v32  ;;  %v4145_v8 = vsel %vm1307_vm5, %v4132_v32, %v4140_v48 }
 0x4b6   : > { %9323 = vmatmul.mubr.msk.f32.gmra.mrb[10].mxu0 %vm443_vm0, %v3808_v47  ;;  %v4168_v13 = vmul.f32 %v4160_v26, %v4149_v7  ;;  %v4167_v23 = vmul.f32 %v4156_v1, %v4145_v8  ;;  %v4124_v7 = vld [vmem:[#allocation4 + $0x308] sm:$0xff] }
 0x4b7   : > { %9737 = vmatpush1.bf16.msra.mxu0 %v9736_v55  ;;  %3943 = vmatprep.mubr.f32.mxu0 %v13354_v0 }
 0x4b8   : > { %9739 = vmatprep.subr.bf16.mxu0 %v9738_v52  ;;  %v4286_v59 = vpop.permute.xlu1 %4285  ;;  %v4142_v60 = vpop.permute.xlu0 %4141  ;;  %v4476_v52 = vrot.slane %v9341_v37, %v10722_v19 }
 0x4b9   : > { %v4150_v2 = vsel %vm1307_vm5, %v4142_v60, %v4134_v51  ;;  %v4146_v9 = vsel %vm1307_vm5, %v4134_v51, %v4142_v60 }
 0x4ba   : > { %9324 = vmatmul.mubr.msk.f32.gmra.mrb[12].mxu0 %vm443_vm0, %v3809_v58  ;;  %v4170_v12 = vmul.f32 %v4160_v26, %v4150_v2  ;;  %v4169_v15 = vmul.f32 %v4156_v1, %v4146_v9 }
 0x4bb   : > { %3949 = vmatprep.mubr.f32.mxu0 %v13354_v0 }
 0x4bc   : > { %v4294_v44 = vpop.permute.xlu1 %4293  ;;  %v4288_v53 = vpop.permute.xlu0 %4287  ;;  %v9742_v22 = vpack.c.bf16 %v4170_v12, %v4168_v13  ;;  %v9744_v28 = vpack.c.bf16 %v4169_v15, %v4167_v23 }
 0x4bd   : > { %v4305_v10 = vsel %vm1467_vm6, %v4294_v44, %v4286_v59  ;;  %v4301_v39 = vsel %vm1467_vm6, %v4286_v59, %v4294_v44  ;;  %v4123_v59 = vld [vmem:[#allocation4 + $0x300] sm:$0xff] }
 0x4be   : > { %9325 = vmatmul.mubr.msk.f32.gmra.mrb[14].mxu0 %vm443_vm0, %v3810_v3  ;;  %v4322_v20 = vmul.f32 %v4318_v36, %v4305_v10  ;;  %v4321_v55 = vmul.f32 %v4314_v33, %v4301_v39  ;;  %v4125_v10 = vld [vmem:[#allocation4 + $0x310] sm:$0xff] }
 0x4bf   : > { %4089 = vmatprep.mubr.f32.mxu0 %v13354_v0  ;;  %v4441_v39 = vld [vmem:[#allocation4 + $0x350] sm:$0xff] }
 0x4c0   : > { %v4290_v54 = vpop.permute.xlu1 %4289  ;;  %v4296_v63 = vpop.permute.xlu0 %4295 }
 0x4c1   : > { %v4306_v16 = vsel %vm1467_vm6, %v4296_v63, %v4288_v53  ;;  %v4302_v32 = vsel %vm1467_vm6, %v4288_v53, %v4296_v63 }
 0x4c2   : > { %v4324_v21 = vmul.f32 %v4318_v36, %v4306_v16  ;;  %9327 = vmatmul.mubr.msk.f32.vlgmr.msra.gmra.mrb[8].mxu0 %vm443_vm0, %v3965_v62  ;;  %v4323_v46 = vmul.f32 %v4314_v33, %v4302_v32 }
 0x4c3   : > { %9741 = vmatpush1.bf16.msra.mxu0 %v9740_v14  ;;  %4095 = vmatprep.mubr.f32.mxu0 %v13354_v0  ;;  %v4126_v14 = vld [vmem:[#allocation4 + $0x318] sm:$0xff] }
 0x4c4   : > { %9743 = vmatprep.subr.bf16.mxu0 %v9742_v22  ;;  %v4298_v25 = vpop.permute.xlu1 %4297  ;;  %v4292_v26 = vpop.permute.xlu0 %4291  ;;  %v9746_v27 = vpack.c.bf16 %v4324_v21, %v4322_v20  ;;  %v9748_v2 = vpack.c.bf16 %v4323_v46, %v4321_v55 }
 0x4c5   : > { %v4307_v47 = vsel %vm1467_vm6, %v4298_v25, %v4290_v54  ;;  %v4303_v60 = vsel %vm1467_vm6, %v4290_v54, %v4298_v25  ;;  %v4472_v54 = vrot.slane %v9341_v37, %v10716_v18  ;;  %v4439_v37 = vld [vmem:[#allocation4 + $0x340] sm:$0xff] }
 0x4c6   : > { %9328 = vmatmul.mubr.msk.f32.gmra.mrb[10].mxu0 %vm443_vm0, %v3966_v24  ;;  %v4326_v61 = vmul.f32 %v4318_v36, %v4307_v47  ;;  %v4325_v6 = vmul.f32 %v4314_v33, %v4303_v60  ;;  %v4281_v24 = vld [vmem:[#allocation4 + $0x320] sm:$0xff] }
 0x4c7   : > { %9745 = vmatpush1.bf16.msra.mxu0 %v9744_v28  ;;  %4101 = vmatprep.mubr.f32.mxu0 %v13354_v0 }
 0x4c8   : > { %9747 = vmatprep.subr.bf16.mxu0 %v9746_v27  ;;  %v4444_v30 = vpop.permute.xlu1 %4443  ;;  %v4300_v31 = vpop.permute.xlu0 %4299 }
 0x4c9   : > { %v4308_v34 = vsel %vm1467_vm6, %v4300_v31, %v4292_v26  ;;  %v4304_v48 = vsel %vm1467_vm6, %v4292_v26, %v4300_v31  ;;  %v4282_v31 = vld [vmem:[#allocation4 + $0x328] sm:$0xff] }
 0x4ca   : > { %9329 = vmatmul.mubr.msk.f32.gmra.mrb[12].mxu0 %vm443_vm0, %v3967_v29  ;;  %v4328_v51 = vmul.f32 %v4318_v36, %v4308_v34  ;;  %v4327_v11 = vmul.f32 %v4314_v33, %v4304_v48  ;;  %v4283_v33 = vld [vmem:[#allocation4 + $0x330] sm:$0xff]  ;;  %v4284_v34 = vld [vmem:[#allocation4 + $0x338] sm:$0xff] }
 0x4cb   : > { %4107 = vmatprep.mubr.f32.mxu0 %v13354_v0 }
 0x4cc   : > { %v4452_v40 = vpop.permute.xlu1 %4451  ;;  %v4446_v41 = vpop.permute.xlu0 %4445  ;;  %v9750_v53 = vpack.c.bf16 %v4328_v51, %v4326_v61  ;;  %v9752_v45 = vpack.c.bf16 %v4327_v11, %v4325_v6 }
 0x4cd   : > { %v4463_v58 = vsel %vm1627_vm8, %v4452_v40, %v4444_v30  ;;  %v4459_v15 = vsel %vm1627_vm8, %v4444_v30, %v4452_v40  ;;  %v4442_v40 = vld [vmem:[#allocation4 + $0x358] sm:$0xff] }
 0x4ce   : > { %9330 = vmatmul.mubr.msk.f32.gmra.mrb[14].mxu0 %vm443_vm0, %v3968_v38  ;;  %v4480_v4 = vmul.f32 %v4476_v52, %v4463_v58  ;;  %v4479_v23 = vmul.f32 %v4472_v54, %v4459_v15  ;;  %v4440_v38 = vld [vmem:[#allocation4 + $0x348] sm:$0xff] }
 0x4cf   : > { %4247 = vmatprep.mubr.f32.mxu0 %v13354_v0 }
 0x4d0   : > { %v4454_v1 = vpop.permute.xlu0 %4453  ;;  %v4448_v9 = vpop.permute.xlu1 %4447 }
 0x4d1   : > { %v4464_v3 = vsel %vm1627_vm8, %v4454_v1, %v4446_v41  ;;  %v4460_v8 = vsel %vm1627_vm8, %v4446_v41, %v4454_v1 }
 0x4d2   : > { %v4482_v44 = vmul.f32 %v4476_v52, %v4464_v3  ;;  %9332 = vmatmul.mubr.msk.f32.vlgmr.msra.gmra.mrb[8].mxu0 %vm443_vm0, %v4123_v59  ;;  %v4481_v16 = vmul.f32 %v4472_v54, %v4460_v8  ;;  %v4658_v8 = vld [vmem:[%s13346_s5] sm:$0xff] }
 0x4d3   : > { %9749 = vmatpush1.bf16.msra.mxu0 %v9748_v2  ;;  %4253 = vmatprep.mubr.f32.mxu0 %v13354_v0 }
 0x4d4   : > { %9751 = vmatprep.subr.bf16.mxu0 %v9750_v53  ;;  %v4450_v12 = vpop.permute.xlu0 %4449  ;;  %v9754_v36 = vpack.c.bf16 %v4482_v44, %v4480_v4  ;;  %v4456_v13 = vpop.permute.xlu1 %4455  ;;  %v9756_v27 = vpack.c.bf16 %v4481_v16, %v4479_v23 }
 0x4d5   : > { %v4465_v20 = vsel %vm1627_vm8, %v4456_v13, %v4448_v9  ;;  %v4461_v25 = vsel %vm1627_vm8, %v4448_v9, %v4456_v13  ;;  %v4743_v13 = vld [vmem:[%s13348_s7 + $0x8] sm:$0xff] }
 0x4d6   : > { %9333 = vmatmul.mubr.msk.f32.gmra.mrb[10].mxu0 %vm443_vm0, %v4124_v7  ;;  %v4484_v26 = vmul.f32 %v4476_v52, %v4465_v20  ;;  %v4483_v30 = vmul.f32 %v4472_v54, %v4461_v25 }
 0x4d7   : > { %9753 = vmatpush1.bf16.msra.mxu0 %v9752_v45  ;;  %4259 = vmatprep.mubr.f32.mxu0 %v13354_v0 }
 0x4d8   : > { %9755 = vmatprep.subr.bf16.mxu0 %v9754_v36 }
 0x4d9   : > { %v4458_v62 = vpop.permute.xlu0 %4457 }
 0x4da   : > { %9334 = vmatmul.mubr.msk.f32.gmra.mrb[12].mxu0 %vm443_vm0, %v4125_v10  ;;  %v4466_v63 = vsel %vm1627_vm8, %v4458_v62, %v4450_v12  ;;  %v4462_v21 = vsel %vm1627_vm8, %v4450_v12, %v4458_v62  ;;  %v10450_v10 = vmov 0.0|0.0   ;;  %v4742_v62 = vld [vmem:[%s13348_s7] sm:$0xff] }
 0x4db   : > { %4265 = vmatprep.mubr.f32.mxu0 %v13354_v0  ;;  %v4486_v22 = vmul.f32 %v4476_v52, %v4466_v63  ;;  %v4485_v28 = vmul.f32 %v4472_v54, %v4462_v21  ;;  %9762 = vmatprep.subr.bf16.mxu1 %v10450_v10  ;;  %v4744_v54 = vld [vmem:[%s13348_s7 + $0x10] sm:$0xff]  ;;  %v4745_v63 = vld [vmem:[%s13348_s7 + $0x18] sm:$0xff] }
 0x4dd   : > { %v9758_v29 = vpack.c.bf16 %v4486_v22, %v4484_v26  ;;  %v9760_v32 = vpack.c.bf16 %v4485_v28, %v4483_v30  ;;  %v4737_v28 = vld [vmem:[%s13347_s6] sm:$0xff] }
 0x4de   : > { %9335 = vmatmul.mubr.msk.f32.gmra.mrb[14].mxu0 %vm443_vm0, %v4126_v14 }
 0x4df   : > { %4405 = vmatprep.mubr.f32.mxu0 %v13354_v0 }
 0x4e2   : > { %9337 = vmatmul.mubr.msk.f32.vlgmr.msra.gmra.mrb[8].mxu0 %vm443_vm0, %v4281_v24 }
 0x4e3   : > { %9757 = vmatpush1.bf16.msra.mxu0 %v9756_v27  ;;  %4411 = vmatprep.mubr.f32.mxu0 %v13354_v0  ;;  %v4657_v27 = vld [vmem:[%s13345_s4] sm:$0xff] }
 0x4e4   : > { %9759 = vmatprep.subr.bf16.mxu0 %v9758_v29 }
 0x4e5   : > { %v4599_v41 = vpop.permute.xlu1 %4598 }
 0x4e6   : > { %9338 = vmatmul.mubr.msk.f32.gmra.mrb[10].mxu0 %vm443_vm0, %v4282_v31 }
 0x4e7   : > { %9761 = vmatpush1.bf16.msra.mxu0 %v9760_v32  ;;  %4417 = vmatprep.mubr.f32.mxu0 %v13354_v0 }
 0x4e9   : > { %v4609_v1 = vpop.permute.xlu1 %4608 }
 0x4ea   : > { %9339 = vmatmul.mubr.msk.f32.gmra.mrb[12].mxu0 %vm443_vm0, %v4283_v33  ;;  %v4604_v52 = vpop.permute.xlu0 %4603 }
 0x4eb   : > { %4423 = vmatprep.mubr.f32.mxu0 %v13354_v0 }
 0x4ee   : > { %9340 = vmatmul.mubr.msk.f32.gmra.mrb[14].mxu0 %vm443_vm0, %v4284_v34  ;;  %v4614_v53 = vpop.permute.xlu0 %4613  ;;  %v4738_v34 = vld [vmem:[%s13347_s6 + $0x8] sm:$0xff] }
 0x4ef   : > { %4563 = vmatprep.mubr.f32.mxu0 %v13354_v0 }
 0x4f2   : > { %9342 = vmatmul.mubr.msk.f32.vlgmr.msra.gmra.mrb[8].mxu0 %vm443_vm0, %v4439_v37  ;;  %v4739_v37 = vld [vmem:[%s13347_s6 + $0x10] sm:$0xff] }
 0x4f3   : > { %4569 = vmatprep.mubr.f32.mxu0 %v13354_v0 }
 0x4f6   : > { %9343 = vmatmul.mubr.msk.f32.gmra.mrb[10].mxu0 %vm443_vm0, %v4440_v38  ;;  %v4740_v38 = vld [vmem:[%s13347_s6 + $0x18] sm:$0xff] }
 0x4f7   : > { %4575 = vmatprep.mubr.f32.mxu0 %v13354_v0 }
 0x4fa   : > { %9344 = vmatmul.mubr.msk.f32.gmra.mrb[12].mxu0 %vm443_vm0, %v4441_v39 }
 0x4fb   : > { %4581 = vmatprep.mubr.f32.mxu0 %v13354_v0 }
 0x4fe   : > { %9345 = vmatmul.mubr.msk.f32.gmra.mrb[14].mxu0 %vm443_vm0, %v4442_v40 }
 0x4ff   : > { %6494 = vmatprep.mubr.f32.mxu0 %v13354_v0 }
 0x5c5   : > { %v4565_v46 = vpop.f32.mrb[8].mxu0 }
 0x5c6   : > { %v4616_v47 = vadd.f32 %v4599_v41, %v4565_v46  ;;  %v4567_v48 = vpop.f32.mrb[9].mxu0 }
 0x5c7   : > { %v4617_v51 = vadd.f32 %v4599_v41, %v4567_v48 }
 0x5c9   : > { %v4640_v55 = vadd.f32 %v4617_v51, %v4616_v47  ;;  %v4571_v58 = vpop.f32.mrb[10].mxu0 }
 0x5ca   : > { %v4618_v59 = vadd.f32 %v4604_v52, %v4571_v58  ;;  %v4573_v60 = vpop.f32.mrb[11].mxu0 }
 0x5cb   : > { %v4619_v61 = vadd.f32 %v4604_v52, %v4573_v60  ;;  %4641 = vadd.xlane.f32.xlu1 %v4640_v55 }
 0x5cd   : > { %v4643_v2 = vadd.f32 %v4619_v61, %v4618_v59  ;;  %v4577_v11 = vpop.f32.mrb[12].mxu0 }
 0x5ce   : > { %v4620_v3 = vadd.f32 %v4609_v1, %v4577_v11  ;;  %v4579_v4 = vpop.f32.mrb[13].mxu0 }
 0x5cf   : > { %v4621_v44 = vadd.f32 %v4609_v1, %v4579_v4  ;;  %4644 = vadd.xlane.f32.xlu0 %v4643_v2 }
 0x5d1   : > { %v4646_v6 = vadd.f32 %v4621_v44, %v4620_v3  ;;  %v4583_v7 = vpop.f32.mrb[14].mxu0 }
 0x5d2   : > { %v4622_v9 = vadd.f32 %v4614_v53, %v4583_v7  ;;  %v4585_v12 = vpop.f32.mrb[15].mxu0 }
 0x5d3   : > { %v4623_v36 = vadd.f32 %v4614_v53, %v4585_v12  ;;  %4647 = vadd.xlane.f32.xlu0 %v4646_v6 }
 0x5d5   : > { %v4649_v45 = vadd.f32 %v4623_v36, %v4622_v9 }
 0x5d7   : > { %4650 = vadd.xlane.f32.xlu1 %v4649_v45 }
 0x5e8   : > { %4748 = vperm.xlu1 %10364, %v4742_v62  }
 0x5e9   : > { %4661 = vperm.xlu0 %10363, %v4658_v8  }
 0x5ec   : > { %4753 = vperm.xlu1 %10364, %v4743_v13  }
 0x5ed   : > { %4758 = vperm.xlu0 %10363, %v4744_v54  }
 0x5f0   : > { %4763 = vperm.xlu1 %10364, %v4745_v63  }
 0x658   : > { %v4642_v14 = vpop.xlane.xlu1 %4641 }
 0x659   : > { %v11821_v16 = vmul.f32 0.00390625, %v4642_v14 }
 0x65c   : > { %v4645_v15 = vpop.xlane.xlu0 %4644 }
 0x65d   : > { %v11823_v20 = vmul.f32 0.00390625, %v4645_v15 }
 0x65f   : > { %v9763_v21 = vpack.c.bf16 %v11823_v20, %v11821_v16 }
 0x660   : > { %v4648_v22 = vpop.xlane.xlu0 %4647 }
 0x661   : > { %9764 = vmatpush3.bf16.msra.mxu1 %v9763_v21  ;;  %v11828_v24 = vmul.f32 0.00390625, %v4648_v22 }
 0x662   : > { %9765 = vmatprep.subr.bf16.mxu1 %v10450_v10 }
 0x664   : > { %v4651_v23 = vpop.xlane.xlu1 %4650 }
 0x665   : > { %v11830_v25 = vmul.f32 0.00390625, %v4651_v23 }
 0x667   : > { %v9766_v26 = vpack.c.bf16 %v11830_v25, %v11828_v24 }
 0x668   : > { %v4662_v29 = vpop.permute.xlu0 %4661  ;;  %v4749_v39 = vpop.permute.xlu1 %4748 }
 0x669   : > { %9767 = vmatpush3.bf16.msra.mxu1 %v9766_v26 }
 0x66c   : > { %9517 = vmatmul.mubr.msk.f32.vlgmr.msra.gmra.mrb[16].mxu1 %vm443_vm0, %v4657_v27  ;;  %v4754_v40 = vpop.permute.xlu1 %4753  ;;  %v4759_v59 = vpop.permute.xlu0 %4758 }
 0x66d   : > { %9521 = vmatprep.mubr.msk.f32.mxu1 %vm4766_vm10, %v4737_v28 }
 0x670   : > { %v4764_v52 = vpop.permute.xlu1 %4763 }
 0x73f   : > { %v4733_v30 = vpop.f32.mrb[16].mxu1 }
 0x740   : > { %v4734_v31 = vadd.f32 %v4733_v30, %v4662_v29  ;;  %v9518_v32 = vpop.f32.mrb[17].mxu1 }
 0x742   : > { %v4741_v33 = vmax.f32 %v4734_v31, 0.0 }
 0x744   : > { %9519 = vmatprep.subr.mxu1 %v4741_v33 }
 0x745   : > { %9520 = vmatpush3.msra.mxu1 %v4741_v33 }
 0x746   : > { %9522 = vmatmul.mubr.msk.f32.vlgmr.msra.gmra.mrb[18].mxu1 %vm4766_vm10, %v4738_v34 }
 0x747   : > { %9524 = vmatprep.mubr.msk.f32.mxu1 %vm4766_vm10, %v4739_v37 }
 0x74a   : > { %9525 = vmatmul.mubr.msk.f32.gmra.mrb[20].mxu1 %vm4766_vm10, %v4740_v38 }
 0x74b   : > { %5075 = vmatprep.mubr.f32.mxu1 %v13354_v0 }
 0x819   : > { %v9523_v41 = vpop.f32.mrb[18].mxu1 }
 0x81a   : > { %v4851_v46 = vadd.f32 %v9523_v41, %v4754_v40  ;;  %v4845_v47 = vpop.f32.mrb[19].mxu1 }
 0x81b   : > { %v4846_v48 = vadd.f32 %v4845_v47, %v4749_v39 }
 0x81c   : > { %v4865_v51 = vsub.f32 0.0, %v4851_v46 }
 0x81d   : > { %v4864_v55 = vsub.f32 0.0, %v4846_v48  ;;  %v9526_v58 = vpop.f32.mrb[20].mxu1 }
 0x81e   : > { %v4870_v60 = vmul.f32 1.442695, %v4865_v51  ;;  %v4861_v61 = vadd.f32 %v9526_v58, %v4764_v52  ;;  %v4855_v1 = vpop.f32.mrb[21].mxu1 }
 0x81f   : > { %v4868_v2 = vmul.f32 1.442695, %v4864_v55  ;;  %v4856_v11 = vadd.f32 %v4855_v1, %v4759_v59  ;;  %v9352_v55 = vld [vmem:[%s13344_s3 + $0x68] sm:$0xff]  ;;  %v9351_v59 = vld [vmem:[%s13344_s3 + $0x60] sm:$0xff] }
 0x820   : > { %10365 = vpow2.f32 %v4870_v60  ;;  %v4867_v3 = vsub.f32 0.0, %v4861_v61 }
 0x821   : > { %10367 = vpow2.f32 %v4868_v2  ;;  %v4866_v4 = vsub.f32 0.0, %v4856_v11 }
 0x822   : > { %v4874_v44 = vmul.f32 1.442695, %v4867_v3 }
 0x823   : > { %v4872_v53 = vmul.f32 1.442695, %v4866_v4 }
 0x824   : > { %10369 = vpow2.f32 %v4874_v44 }
 0x825   : > { %10371 = vpow2.f32 %v4872_v53 }
 0x82a   : > { %v10366_v6 = vpop.eup %10365 }
 0x82b   : > { %v10368_v7 = vpop.eup %10367  ;;  %v4877_v9 = vadd.f32 1.0, %v10366_v6  ;;  %v9354_v6 = vld [vmem:[%s13344_s3 + $0x78] sm:$0xff] }
 0x82c   : > { %v4876_v12 = vadd.f32 1.0, %v10368_v7 }
 0x82d   : > { %10373 = vrcp.f32 %v4877_v9  ;;  %v9353_v9 = vld [vmem:[%s13344_s3 + $0x70] sm:$0xff] }
 0x82e   : > { %v10370_v36 = vpop.eup %10369  ;;  %10375 = vrcp.f32 %v4876_v12  ;;  %v9363_v12 = vld [vmem:[%s13342_s1 + $0x1] ss:$8 sm:$0x3] }
 0x82f   : > { %v10372_v45 = vpop.eup %10371  ;;  %v4879_v62 = vadd.f32 1.0, %v10370_v36 }
 0x830   : > { %v4878_v8 = vadd.f32 1.0, %v10372_v45 }
 0x831   : > { %10377 = vrcp.f32 %v4879_v62 }
 0x832   : > { %10379 = vrcp.f32 %v4878_v8  ;;  %v5239_v8 = vrot.slane %v9363_v12, %v10722_v19 }
 0x837   : > { %v10374_v13 = vpop.eup %10373 }
 0x838   : > { %v10376_v54 = vpop.eup %10375  ;;  %v4893_v63 = vmul.f32 %v10374_v13, %v11823_v20 }
 0x839   : > { %v4892_v14 = vmul.f32 %v10376_v54, %v11821_v16 }
 0x83a   : > { %4903 = vperm.xlu1 %10364, %v4893_v63   ;;  %v4951_v63 = vld [vmem:[#allocation4 + $0x360] sm:$0xff] }
 0x83b   : > { %v10378_v15 = vpop.eup %10377  ;;  %4898 = vperm.xlu0 %10363, %v4892_v14  }
 0x83c   : > { %v10380_v21 = vpop.eup %10379  ;;  %v4895_v22 = vmul.f32 %v10378_v15, %v11830_v25 }
 0x83d   : > { %v4894_v23 = vmul.f32 %v10380_v21, %v11828_v24 }
 0x83e   : > { %4913 = vperm.xlu1 %10364, %v4895_v22  }
 0x83f   : > { %4908 = vperm.xlu0 %10363, %v4894_v23  }
 0x8b9   : > { %v4904_v26 = vpop.permute.xlu1 %4903 }
 0x8ba   : > { %v11860_v27 = vadd.f32 %v4904_v26, %v11002_v43  ;;  %v4899_v28 = vpop.permute.xlu0 %4898  ;;  %v11870_v16 = vadd.f32 %v4904_v26, %v11008_v49 }
 0x8bb   : > { %v11863_v29 = vadd.f32 %v4899_v28, %v10996_v35  ;;  %v11873_v20 = vadd.f32 %v4899_v28, %v11000_v42 }
 0x8bc   : > { %4957 = vrot.lane.b32.xlu1 %v11860_v27, %s10447_s23 }
 0x8bd   : > { %4955 = vrot.lane.b32.xlu0 %v11863_v29, %s10447_s23  ;;  %v4914_v24 = vpop.permute.xlu1 %4913  ;;  %v9776_v13 = vpack.c.bf16 %v11870_v16, %v11873_v20  ;;  %v9778_v22 = vpack.c.bf16 %v11860_v27, %v11863_v29 }
 0x8be   : > { %v4909_v25 = vpop.permute.xlu0 %4908  ;;  %v11880_v35 = vadd.f32 %v4914_v24, %v11018_v57  ;;  %v11890_v42 = vadd.f32 %v4914_v24, %v11024_v5 }
 0x8bf   : > { %v11883_v43 = vadd.f32 %v4909_v25, %v11010_v50  ;;  %v11893_v49 = vadd.f32 %v4909_v25, %v11016_v56  ;;  %v4979_v50 = vld [vmem:[%s13342_s1] ss:$8 sm:$0x3] }
 0x8c0   : > { %4965 = vrot.lane.b32.xlu1 %v11870_v16, %s10447_s23  ;;  %v4984_v5 = vrot.slane %v4979_v50, %v10716_v18  ;;  %v4988_v30 = vrot.slane %v4979_v50, %v10722_v19  ;;  %v4952_v25 = vld [vmem:[#allocation4 + $0x368] sm:$0xff] }
 0x8c1   : > { %4963 = vrot.lane.b32.xlu0 %v11873_v20, %s10447_s23  ;;  %v9780_v28 = vpack.c.bf16 %v11890_v42, %v11893_v49 }
 0x8c4   : > { %4961 = vrot.lane.b32.xlu1 %v11880_v35, %s10447_s23 }
 0x8c5   : > { %4959 = vrot.lane.b32.xlu0 %v11883_v43, %s10447_s23 }
 0x8c8   : > { %4969 = vrot.lane.b32.xlu1 %v11890_v42, %s10447_s23 }
 0x8c9   : > { %4967 = vrot.lane.b32.xlu0 %v11893_v49, %s10447_s23 }
 0x8cc   : > { %5208 = vrot.lane.b32.xlu1 %v11860_v27, %s10441_s17 }
 0x8cd   : > { %5206 = vrot.lane.b32.xlu0 %v11863_v29, %s10441_s17 }
 0x8d0   : > { %5216 = vrot.lane.b32.xlu1 %v11870_v16, %s10441_s17 }
 0x8d1   : > { %5214 = vrot.lane.b32.xlu0 %v11873_v20, %s10441_s17 }
 0x8d4   : > { %5212 = vrot.lane.b32.xlu1 %v11880_v35, %s10441_s17 }
 0x8d5   : > { %5210 = vrot.lane.b32.xlu0 %v11883_v43, %s10441_s17 }
 0x8d8   : > { %5220 = vrot.lane.b32.xlu1 %v11890_v42, %s10441_s17 }
 0x8d9   : > { %5218 = vrot.lane.b32.xlu0 %v11893_v49, %s10441_s17 }
 0x8dc   : > { %5366 = vrot.lane.b32.xlu1 %v11860_v27, %s10442_s18 }
 0x8dd   : > { %5364 = vrot.lane.b32.xlu0 %v11863_v29, %s10442_s18 }
 0x8e0   : > { %5374 = vrot.lane.b32.xlu1 %v11870_v16, %s10442_s18 }
 0x8e1   : > { %5372 = vrot.lane.b32.xlu0 %v11873_v20, %s10442_s18 }
 0x8e4   : > { %5370 = vrot.lane.b32.xlu1 %v11880_v35, %s10442_s18 }
 0x8e5   : > { %5368 = vrot.lane.b32.xlu0 %v11883_v43, %s10442_s18 }
 0x8e8   : > { %5378 = vrot.lane.b32.xlu1 %v11890_v42, %s10442_s18 }
 0x8e9   : > { %5376 = vrot.lane.b32.xlu0 %v11893_v49, %s10442_s18 }
 0x8ec   : > { %5524 = vrot.lane.b32.xlu1 %v11860_v27, %s10443_s19 }
 0x8ed   : > { %5522 = vrot.lane.b32.xlu0 %v11863_v29, %s10443_s19 }
 0x8f0   : > { %5532 = vrot.lane.b32.xlu1 %v11870_v16, %s10443_s19 }
 0x8f1   : > { %5530 = vrot.lane.b32.xlu0 %v11873_v20, %s10443_s19 }
 0x8f4   : > { %5528 = vrot.lane.b32.xlu1 %v11880_v35, %s10443_s19 }
 0x8f5   : > { %5526 = vrot.lane.b32.xlu0 %v11883_v43, %s10443_s19 }
 0x8f8   : > { %5536 = vrot.lane.b32.xlu1 %v11890_v42, %s10443_s19 }
 0x8f9   : > { %5534 = vrot.lane.b32.xlu0 %v11893_v49, %s10443_s19 }
 0x8fc   : > { %5682 = vrot.lane.b32.xlu1 %v11860_v27, %s10444_s20 }
 0x8fd   : > { %5680 = vrot.lane.b32.xlu0 %v11863_v29, %s10444_s20 }
 0x900   : > { %5690 = vrot.lane.b32.xlu1 %v11870_v16, %s10444_s20 }
 0x901   : > { %5688 = vrot.lane.b32.xlu0 %v11873_v20, %s10444_s20 }
 0x904   : > { %5686 = vrot.lane.b32.xlu1 %v11880_v35, %s10444_s20 }
 0x905   : > { %5684 = vrot.lane.b32.xlu0 %v11883_v43, %s10444_s20 }
 0x908   : > { %5694 = vrot.lane.b32.xlu1 %v11890_v42, %s10444_s20 }
 0x909   : > { %5692 = vrot.lane.b32.xlu0 %v11893_v49, %s10444_s20 }
 0x90c   : > { %5840 = vrot.lane.b32.xlu1 %v11860_v27, %s10445_s21 }
 0x90d   : > { %5838 = vrot.lane.b32.xlu0 %v11863_v29, %s10445_s21 }
 0x910   : > { %5848 = vrot.lane.b32.xlu1 %v11870_v16, %s10445_s21 }
 0x911   : > { %5846 = vrot.lane.b32.xlu0 %v11873_v20, %s10445_s21 }
 0x914   : > { %5844 = vrot.lane.b32.xlu1 %v11880_v35, %s10445_s21 }
 0x915   : > { %5842 = vrot.lane.b32.xlu0 %v11883_v43, %s10445_s21 }
 0x918   : > { %5852 = vrot.lane.b32.xlu1 %v11890_v42, %s10445_s21 }
 0x919   : > { %5850 = vrot.lane.b32.xlu0 %v11893_v49, %s10445_s21 }
 0x91c   : > { %5998 = vrot.lane.b32.xlu1 %v11860_v27, %s10446_s22 }
 0x91d   : > { %5996 = vrot.lane.b32.xlu0 %v11863_v29, %s10446_s22 }
 0x920   : > { %6006 = vrot.lane.b32.xlu1 %v11870_v16, %s10446_s22 }
 0x921   : > { %6004 = vrot.lane.b32.xlu0 %v11873_v20, %s10446_s22 }
 0x924   : > { %6002 = vrot.lane.b32.xlu1 %v11880_v35, %s10446_s22 }
 0x925   : > { %6000 = vrot.lane.b32.xlu0 %v11883_v43, %s10446_s22 }
 0x928   : > { %6010 = vrot.lane.b32.xlu1 %v11890_v42, %s10446_s22 }
 0x929   : > { %6008 = vrot.lane.b32.xlu0 %v11893_v49, %s10446_s22 }
 0x92c   : > { %6156 = vrot.lane.b32.xlu1 %v11860_v27, %s10448_s24 }
 0x92d   : > { %6154 = vrot.lane.b32.xlu0 %v11863_v29, %s10448_s24 }
 0x92e   : > { %v4958_v56 = vpop.permute.xlu1 %4957 }
 0x92f   : > { %v4956_v57 = vpop.permute.xlu0 %4955 }
 0x930   : > { %6164 = vrot.lane.b32.xlu1 %v11870_v16, %s10448_s24 }
 0x931   : > { %6162 = vrot.lane.b32.xlu0 %v11873_v20, %s10448_s24 }
 0x932   : > { %v4966_v31 = vpop.permute.xlu1 %4965 }
 0x933   : > { %v4972_v32 = vsel %vm414_vm7, %v4958_v56, %v4966_v31  ;;  %v4976_v33 = vsel %vm414_vm7, %v4966_v31, %v4958_v56  ;;  %v4964_v34 = vpop.permute.xlu0 %4963  ;;  %v9782_v56 = vpack.c.bf16 %v11880_v35, %v11883_v43  ;;  %v5235_v31 = vrot.slane %v9363_v12, %v10716_v18  ;;  %v4947_v12 = vld [vmem:[#allocation4 + $0x3e8] sm:$0xff] }
 0x934   : > { %v4993_v37 = vmul.f32 %v4984_v5, %v4976_v33  ;;  %v4994_v38 = vmul.f32 %v4988_v30, %v4972_v32  ;;  %v4971_v39 = vsel %vm414_vm7, %v4956_v57, %v4964_v34  ;;  %v4975_v40 = vsel %vm414_vm7, %v4964_v34, %v4956_v57  ;;  %6160 = vrot.lane.b32.xlu1 %v11880_v35, %s10448_s24 }
 0x935   : > { %v4991_v41 = vmul.f32 %v4984_v5, %v4975_v40  ;;  %v4992_v46 = vmul.f32 %v4988_v30, %v4971_v39  ;;  %6158 = vrot.lane.b32.xlu0 %v11883_v43, %s10448_s24 }
 0x936   : > { %v4962_v47 = vpop.permute.xlu1 %4961 }
 0x937   : > { %v9770_v48 = vpack.c.bf16 %v4993_v37, %v4991_v41  ;;  %v4960_v51 = vpop.permute.xlu0 %4959  ;;  %v9768_v52 = vpack.c.bf16 %v4994_v38, %v4992_v46  ;;  %v9368_v37 = vld [vmem:[%s13342_s1 + $0x2] ss:$8 sm:$0x3]  ;;  %v4954_v41 = vld [vmem:[#allocation4 + $0x378] sm:$0xff] }
 0x938   : > { %6168 = vrot.lane.b32.xlu1 %v11890_v42, %s10448_s24 }
 0x939   : > { %6166 = vrot.lane.b32.xlu0 %v11893_v49, %s10448_s24  ;;  %9769 = vmatprep.subr.bf16.mxu1 %v9768_v52 }
 0x93a   : > { %9771 = vmatpush1.bf16.msra.mxu1 %v9770_v48  ;;  %v4970_v58 = vpop.permute.xlu1 %4969 }
 0x93b   : > { %v4974_v60 = vsel %vm414_vm7, %v4962_v47, %v4970_v58  ;;  %v4978_v61 = vsel %vm414_vm7, %v4970_v58, %v4962_v47  ;;  %v4968_v1 = vpop.permute.xlu0 %4967 }
 0x93c   : > { %v4997_v2 = vmul.f32 %v4984_v5, %v4978_v61  ;;  %v4998_v11 = vmul.f32 %v4988_v30, %v4974_v60  ;;  %v4973_v3 = vsel %vm414_vm7, %v4960_v51, %v4968_v1  ;;  %v4977_v4 = vsel %vm414_vm7, %v4968_v1, %v4960_v51  ;;  %6314 = vperm.xlu1 %10364, %v9352_v55   ;;  %v4946_v61 = vld [vmem:[#allocation4 + $0x3e0] sm:$0xff] }
 0x93d   : > { %v4995_v44 = vmul.f32 %v4984_v5, %v4977_v4  ;;  %v4996_v53 = vmul.f32 %v4988_v30, %v4973_v3  ;;  %6309 = vperm.xlu0 %10363, %v9351_v59   ;;  %v4953_v30 = vld [vmem:[#allocation4 + $0x370] sm:$0xff]  ;;  %v5397_v51 = vrot.slane %v9368_v37, %v10722_v19 }
 0x93e   : > { %v5209_v7 = vpop.permute.xlu1 %5208 }
 0x93f   : > { %v9774_v36 = vpack.c.bf16 %v4997_v2, %v4995_v44  ;;  %v5207_v45 = vpop.permute.xlu0 %5206  ;;  %v9772_v62 = vpack.c.bf16 %v4998_v11, %v4996_v53 }
 0x940   : > { %6324 = vperm.xlu1 %10364, %v9354_v6  }
 0x941   : > { %6319 = vperm.xlu0 %10363, %v9353_v9   ;;  %9773 = vmatprep.subr.bf16.mxu1 %v9772_v62 }
 0x942   : > { %9775 = vmatpush1.bf16.msra.mxu1 %v9774_v36  ;;  %v5217_v54 = vpop.permute.xlu1 %5216 }
 0x943   : > { %v5223_v14 = vsel %vm667_vm1, %v5209_v7, %v5217_v54  ;;  %v5215_v15 = vpop.permute.xlu0 %5214  ;;  %9777 = vmatprep.subr.bf16.mxu1 %v9776_v13  ;;  %v5227_v33 = vsel %vm667_vm1, %v5217_v54, %v5209_v7  ;;  %v4948_v13 = vld [vmem:[#allocation4 + $0x3f0] sm:$0xff]  ;;  %v5393_v54 = vrot.slane %v9368_v37, %v10716_v18 }
 0x944   : > { %v5222_v21 = vsel %vm667_vm1, %v5207_v45, %v5215_v15  ;;  %v5245_v23 = vmul.f32 %v5239_v8, %v5223_v14  ;;  %v5226_v34 = vsel %vm667_vm1, %v5215_v15, %v5207_v45  ;;  %v5244_v46 = vmul.f32 %v5235_v31, %v5227_v33  ;;  %v5202_v33 = vld [vmem:[#allocation4 + $0x380] sm:$0xff] }
 0x945   : > { %v5243_v26 = vmul.f32 %v5239_v8, %v5222_v21  ;;  %9355 = vmatmul.mubr.msk.f32.vlgmr.msra.gmra.mrb[22].mxu1 %vm443_vm0, %v4951_v63  ;;  %v5242_v47 = vmul.f32 %v5235_v31, %v5226_v34  ;;  %v9373_v21 = vld [vmem:[%s13342_s1 + $0x3] ss:$8 sm:$0x3] }
 0x946   : > { %9779 = vmatpush1.bf16.msra.mxu1 %v9778_v22  ;;  %v5213_v24 = vpop.permute.xlu1 %5212  ;;  %5081 = vmatprep.mubr.f32.mxu1 %v13354_v0 }
 0x947   : > { %v5211_v50 = vpop.permute.xlu0 %5210  ;;  %9781 = vmatprep.subr.bf16.mxu1 %v9780_v28  ;;  %v9784_v57 = vpack.c.bf16 %v5245_v23, %v5243_v26  ;;  %v9786_v1 = vpack.c.bf16 %v5244_v46, %v5242_v47  ;;  %v4949_v28 = vld [vmem:[#allocation4 + $0x3f8] sm:$0xff] }
 0x949   : > { %9356 = vmatmul.mubr.msk.f32.gmra.mrb[24].mxu1 %vm443_vm0, %v4952_v25 }
 0x94a   : > { %9783 = vmatpush1.bf16.msra.mxu1 %v9782_v56  ;;  %v5221_v5 = vpop.permute.xlu1 %5220  ;;  %5087 = vmatprep.mubr.f32.mxu1 %v13354_v0  ;;  %v5555_v56 = vrot.slane %v9373_v21, %v10722_v19 }
 0x94b   : > { %v5219_v32 = vpop.permute.xlu0 %5218  ;;  %9785 = vmatprep.subr.bf16.mxu1 %v9784_v57  ;;  %v5225_v38 = vsel %vm667_vm1, %v5213_v24, %v5221_v5  ;;  %v5229_v52 = vsel %vm667_vm1, %v5221_v5, %v5213_v24 }
 0x94c   : > { %v5224_v39 = vsel %vm667_vm1, %v5211_v50, %v5219_v32  ;;  %v5249_v55 = vmul.f32 %v5239_v8, %v5225_v38  ;;  %v5228_v58 = vsel %vm667_vm1, %v5219_v32, %v5211_v50  ;;  %v5248_v3 = vmul.f32 %v5235_v31, %v5229_v52  ;;  %v5203_v52 = vld [vmem:[#allocation4 + $0x388] sm:$0xff] }
 0x94d   : > { %9357 = vmatmul.mubr.msk.f32.gmra.mrb[26].mxu1 %vm443_vm0, %v4953_v30  ;;  %v5247_v59 = vmul.f32 %v5239_v8, %v5224_v39  ;;  %v5246_v4 = vmul.f32 %v5235_v31, %v5228_v58 }
 0x94e   : > { %v5367_v40 = vpop.permute.xlu1 %5366  ;;  %5093 = vmatprep.mubr.f32.mxu1 %v13354_v0 }
 0x94f   : > { %v5365_v48 = vpop.permute.xlu0 %5364  ;;  %v9788_v7 = vpack.c.bf16 %v5249_v55, %v5247_v59  ;;  %v9790_v62 = vpack.c.bf16 %v5248_v3, %v5246_v4  ;;  %v9378_v4 = vld [vmem:[%s13342_s1 + $0x5] ss:$8 sm:$0x3] }
 0x951   : > { %9358 = vmatmul.mubr.msk.f32.gmra.mrb[28].mxu1 %vm443_vm0, %v4954_v41 }
 0x952   : > { %v5375_v60 = vpop.permute.xlu1 %5374  ;;  %5176 = vmatprep.mubr.f32.mxu1 %v13354_v0 }
 0x953   : > { %v5381_v2 = vsel %vm827_vm2, %v5367_v40, %v5375_v60  ;;  %v5373_v11 = vpop.permute.xlu0 %5372  ;;  %v5385_v14 = vsel %vm827_vm2, %v5375_v60, %v5367_v40 }
 0x954   : > { %v5403_v44 = vmul.f32 %v5397_v51, %v5381_v2  ;;  %v5380_v53 = vsel %vm827_vm2, %v5365_v48, %v5373_v11  ;;  %v5384_v15 = vsel %vm827_vm2, %v5373_v11, %v5365_v48  ;;  %v5402_v24 = vmul.f32 %v5393_v54, %v5385_v14  ;;  %v5360_v14 = vld [vmem:[#allocation4 + $0x3a0] sm:$0xff] }
 0x955   : > { %v5401_v6 = vmul.f32 %v5397_v51, %v5380_v53  ;;  %9359 = vmatmul.mubr.msk.f32.vlgmr.msra.gmra.mrb[22].mxu1 %vm443_vm0, %v4946_v61  ;;  %v5400_v25 = vmul.f32 %v5393_v54, %v5384_v15  ;;  %v5204_v61 = vld [vmem:[#allocation4 + $0x390] sm:$0xff] }
 0x956   : > { %9787 = vmatpush1.bf16.msra.mxu1 %v9786_v1  ;;  %v5371_v9 = vpop.permute.xlu1 %5370  ;;  %5182 = vmatprep.mubr.f32.mxu1 %v13354_v0  ;;  %v5551_v1 = vrot.slane %v9373_v21, %v10716_v18 }
 0x957   : > { %9789 = vmatprep.subr.bf16.mxu1 %v9788_v7  ;;  %v5369_v36 = vpop.permute.xlu0 %5368  ;;  %v9792_v45 = vpack.c.bf16 %v5403_v44, %v5401_v6  ;;  %v9794_v34 = vpack.c.bf16 %v5402_v24, %v5400_v25  ;;  %v5205_v7 = vld [vmem:[#allocation4 + $0x398] sm:$0xff] }
 0x959   : > { %9360 = vmatmul.mubr.msk.f32.gmra.mrb[24].mxu1 %vm443_vm0, %v4947_v12 }
 0x95a   : > { %9791 = vmatpush1.bf16.msra.mxu1 %v9790_v62  ;;  %v5379_v8 = vpop.permute.xlu1 %5378  ;;  %5188 = vmatprep.mubr.f32.mxu1 %v13354_v0 }
 0x95b   : > { %9793 = vmatprep.subr.bf16.mxu1 %v9792_v45  ;;  %v5377_v63 = vpop.permute.xlu0 %5376  ;;  %v5383_v22 = vsel %vm827_vm2, %v5371_v9, %v5379_v8  ;;  %v5387_v57 = vsel %vm827_vm2, %v5379_v8, %v5371_v9  ;;  %v5713_v45 = vrot.slane %v9378_v4, %v10722_v19 }
 0x95c   : > { %v5382_v23 = vsel %vm827_vm2, %v5369_v36, %v5377_v63  ;;  %v5407_v5 = vmul.f32 %v5397_v51, %v5383_v22  ;;  %v5386_v30 = vsel %vm827_vm2, %v5377_v63, %v5369_v36  ;;  %v5406_v39 = vmul.f32 %v5393_v54, %v5387_v57  ;;  %v5361_v57 = vld [vmem:[#allocation4 + $0x3a8] sm:$0xff] }
 0x95d   : > { %9361 = vmatmul.mubr.msk.f32.gmra.mrb[26].mxu1 %vm443_vm0, %v4948_v13  ;;  %v5405_v31 = vmul.f32 %v5397_v51, %v5382_v23  ;;  %v5404_v40 = vmul.f32 %v5393_v54, %v5386_v30 }
 0x95e   : > { %v5525_v26 = vpop.permute.xlu1 %5524  ;;  %5194 = vmatprep.mubr.f32.mxu1 %v13354_v0 }
 0x95f   : > { %v5523_v50 = vpop.permute.xlu0 %5522  ;;  %v9796_v48 = vpack.c.bf16 %v5407_v5, %v5405_v31  ;;  %v9798_v59 = vpack.c.bf16 %v5406_v39, %v5404_v40  ;;  %v9383_v40 = vld [vmem:[%s13342_s1 + $0x6] ss:$8 sm:$0x3] }
 0x961   : > { %9362 = vmatmul.mubr.msk.f32.gmra.mrb[28].mxu1 %vm443_vm0, %v4949_v28 }
 0x962   : > { %v5533_v32 = vpop.permute.xlu1 %5532  ;;  %5326 = vmatprep.mubr.f32.mxu1 %v13354_v0 }
 0x963   : > { %v5539_v37 = vsel %vm987_vm3, %v5525_v26, %v5533_v32  ;;  %v5531_v38 = vpop.permute.xlu0 %5530  ;;  %v5543_v11 = vsel %vm987_vm3, %v5533_v32, %v5525_v26 }
 0x964   : > { %v5561_v41 = vmul.f32 %v5555_v56, %v5539_v37  ;;  %v5538_v46 = vsel %vm987_vm3, %v5523_v50, %v5531_v38  ;;  %v5542_v3 = vsel %vm987_vm3, %v5531_v38, %v5523_v50  ;;  %v5560_v9 = vmul.f32 %v5551_v1, %v5543_v11  ;;  %v5518_v11 = vld [vmem:[#allocation4 + $0x3c0] sm:$0xff] }
 0x965   : > { %v5559_v47 = vmul.f32 %v5555_v56, %v5538_v46  ;;  %9364 = vmatmul.mubr.msk.f32.vlgmr.msra.gmra.mrb[22].mxu1 %vm443_vm0, %v5202_v33  ;;  %v5558_v12 = vmul.f32 %v5551_v1, %v5542_v3  ;;  %v5362_v33 = vld [vmem:[#allocation4 + $0x3b0] sm:$0xff] }
 0x966   : > { %9795 = vmatpush1.bf16.msra.mxu1 %v9794_v34  ;;  %v5529_v51 = vpop.permute.xlu1 %5528  ;;  %5332 = vmatprep.mubr.f32.mxu1 %v13354_v0  ;;  %v5709_v34 = vrot.slane %v9378_v4, %v10716_v18 }
 0x967   : > { %9797 = vmatprep.subr.bf16.mxu1 %v9796_v48  ;;  %v5527_v55 = vpop.permute.xlu0 %5526  ;;  %v9800_v58 = vpack.c.bf16 %v5561_v41, %v5559_v47  ;;  %v9802_v15 = vpack.c.bf16 %v5560_v9, %v5558_v12  ;;  %v5363_v48 = vld [vmem:[#allocation4 + $0x3b8] sm:$0xff] }
 0x969   : > { %9365 = vmatmul.mubr.msk.f32.gmra.mrb[24].mxu1 %vm443_vm0, %v5203_v52 }
 0x96a   : > { %9799 = vmatpush1.bf16.msra.mxu1 %v9798_v59  ;;  %v5537_v60 = vpop.permute.xlu1 %5536  ;;  %5338 = vmatprep.mubr.f32.mxu1 %v13354_v0 }
 0x96b   : > { %9801 = vmatprep.subr.bf16.mxu1 %v9800_v58  ;;  %v5535_v2 = vpop.permute.xlu0 %5534  ;;  %v5541_v44 = vsel %vm987_vm3, %v5529_v51, %v5537_v60  ;;  %v5545_v62 = vsel %vm987_vm3, %v5537_v60, %v5529_v51  ;;  %v5871_v58 = vrot.slane %v9383_v40, %v10722_v19 }
 0x96c   : > { %v5540_v53 = vsel %vm987_vm3, %v5527_v55, %v5535_v2  ;;  %v5565_v8 = vmul.f32 %v5555_v56, %v5541_v44  ;;  %v5544_v13 = vsel %vm987_vm3, %v5535_v2, %v5527_v55  ;;  %v5564_v23 = vmul.f32 %v5551_v1, %v5545_v62  ;;  %v5519_v62 = vld [vmem:[#allocation4 + $0x3c8] sm:$0xff] }
 0x96d   : > { %9366 = vmatmul.mubr.msk.f32.gmra.mrb[26].mxu1 %vm443_vm0, %v5204_v61  ;;  %v5563_v54 = vmul.f32 %v5555_v56, %v5540_v53  ;;  %v5562_v26 = vmul.f32 %v5551_v1, %v5544_v13 }
 0x96e   : > { %v5683_v6 = vpop.permute.xlu1 %5682  ;;  %5344 = vmatprep.mubr.f32.mxu1 %v13354_v0 }
 0x96f   : > { %v5681_v36 = vpop.permute.xlu0 %5680  ;;  %v9804_v50 = vpack.c.bf16 %v5565_v8, %v5563_v54  ;;  %v9806_v31 = vpack.c.bf16 %v5564_v23, %v5562_v26  ;;  %v9388_v26 = vld [vmem:[%s13342_s1 + $0x7] ss:$8 sm:$0x3] }
 0x971   : > { %9367 = vmatmul.mubr.msk.f32.gmra.mrb[28].mxu1 %vm443_vm0, %v5205_v7 }
 0x972   : > { %v5691_v63 = vpop.permute.xlu1 %5690  ;;  %5484 = vmatprep.mubr.f32.mxu1 %v13354_v0 }
 0x973   : > { %v5701_v21 = vsel %vm1147_vm4, %v5691_v63, %v5683_v6  ;;  %v5689_v22 = vpop.permute.xlu0 %5688  ;;  %v5697_v38 = vsel %vm1147_vm4, %v5683_v6, %v5691_v63 }
 0x974   : > { %v5719_v28 = vmul.f32 %v5713_v45, %v5701_v21  ;;  %v5700_v24 = vsel %vm1147_vm4, %v5689_v22, %v5681_v36  ;;  %v5696_v39 = vsel %vm1147_vm4, %v5681_v36, %v5689_v22  ;;  %v5718_v51 = vmul.f32 %v5709_v34, %v5697_v38  ;;  %v5676_v38 = vld [vmem:[#allocation4 + $0x400] sm:$0xff] }
 0x975   : > { %v5717_v25 = vmul.f32 %v5713_v45, %v5700_v24  ;;  %9369 = vmatmul.mubr.msk.f32.vlgmr.msra.gmra.mrb[22].mxu1 %vm443_vm0, %v5360_v14  ;;  %v5716_v52 = vmul.f32 %v5709_v34, %v5696_v39  ;;  %v5520_v14 = vld [vmem:[#allocation4 + $0x3d0] sm:$0xff] }
 0x976   : > { %9803 = vmatpush1.bf16.msra.mxu1 %v9802_v15  ;;  %v5687_v56 = vpop.permute.xlu1 %5686  ;;  %5490 = vmatprep.mubr.f32.mxu1 %v13354_v0  ;;  %v5867_v15 = vrot.slane %v9383_v40, %v10716_v18 }
 0x977   : > { %9805 = vmatprep.subr.bf16.mxu1 %v9804_v50  ;;  %v5685_v5 = vpop.permute.xlu0 %5684  ;;  %v9808_v30 = vpack.c.bf16 %v5719_v28, %v5717_v25  ;;  %v9810_v3 = vpack.c.bf16 %v5718_v51, %v5716_v52  ;;  %v5521_v50 = vld [vmem:[#allocation4 + $0x3d8] sm:$0xff] }
 0x979   : > { %9370 = vmatmul.mubr.msk.f32.gmra.mrb[24].mxu1 %vm443_vm0, %v5361_v57 }
 0x97a   : > { %9807 = vmatpush1.bf16.msra.mxu1 %v9806_v31  ;;  %v5695_v32 = vpop.permute.xlu1 %5694  ;;  %5496 = vmatprep.mubr.f32.mxu1 %v13354_v0 }
 0x97b   : > { %9809 = vmatprep.subr.bf16.mxu1 %v9808_v30  ;;  %v5693_v37 = vpop.permute.xlu0 %5692  ;;  %v5703_v41 = vsel %vm1147_vm4, %v5695_v32, %v5687_v56  ;;  %v5699_v59 = vsel %vm1147_vm4, %v5687_v56, %v5695_v32  ;;  %v6029_v30 = vrot.slane %v9388_v26, %v10722_v19 }
 0x97c   : > { %v5702_v46 = vsel %vm1147_vm4, %v5693_v37, %v5685_v5  ;;  %v5723_v60 = vmul.f32 %v5713_v45, %v5703_v41  ;;  %v5698_v61 = vsel %vm1147_vm4, %v5685_v5, %v5693_v37  ;;  %v5722_v53 = vmul.f32 %v5709_v34, %v5699_v59  ;;  %v5677_v59 = vld [vmem:[#allocation4 + $0x408] sm:$0xff] }
 0x97d   : > { %9371 = vmatmul.mubr.msk.f32.gmra.mrb[26].mxu1 %vm443_vm0, %v5362_v33  ;;  %v5721_v1 = vmul.f32 %v5713_v45, %v5702_v46  ;;  %v5720_v6 = vmul.f32 %v5709_v34, %v5698_v61 }
 0x97e   : > { %v5841_v47 = vpop.permute.xlu1 %5840  ;;  %5502 = vmatprep.mubr.f32.mxu1 %v13354_v0 }
 0x97f   : > { %v5839_v55 = vpop.permute.xlu0 %5838  ;;  %v9812_v36 = vpack.c.bf16 %v5723_v60, %v5721_v1  ;;  %v9814_v54 = vpack.c.bf16 %v5722_v53, %v5720_v6  ;;  %v9393_v6 = vld [vmem:[%s13342_s1 + $0x10] ss:$8 sm:$0x3] }
 0x981   : > { %9372 = vmatmul.mubr.msk.f32.gmra.mrb[28].mxu1 %vm443_vm0, %v5363_v48 }
 0x982   : > { %v5849_v2 = vpop.permute.xlu1 %5848  ;;  %5642 = vmatprep.mubr.f32.mxu1 %v13354_v0 }
 0x983   : > { %v5859_v4 = vsel %vm1307_vm5, %v5849_v2, %v5841_v47  ;;  %v5847_v44 = vpop.permute.xlu0 %5846  ;;  %v5855_v22 = vsel %vm1307_vm5, %v5841_v47, %v5849_v2 }
 0x984   : > { %v5877_v7 = vmul.f32 %v5871_v58, %v5859_v4  ;;  %v5858_v9 = vsel %vm1307_vm5, %v5847_v44, %v5839_v55  ;;  %v5854_v23 = vsel %vm1307_vm5, %v5839_v55, %v5847_v44  ;;  %v5876_v56 = vmul.f32 %v5867_v15, %v5855_v22  ;;  %v5834_v22 = vld [vmem:[#allocation4 + $0x420] sm:$0xff] }
 0x985   : > { %v5875_v12 = vmul.f32 %v5871_v58, %v5858_v9  ;;  %9374 = vmatmul.mubr.msk.f32.vlgmr.msra.gmra.mrb[22].mxu1 %vm443_vm0, %v5518_v11  ;;  %v5874_v57 = vmul.f32 %v5867_v15, %v5854_v23  ;;  %v5678_v11 = vld [vmem:[#allocation4 + $0x410] sm:$0xff] }
 0x986   : > { %9811 = vmatpush1.bf16.msra.mxu1 %v9810_v3  ;;  %v5845_v45 = vpop.permute.xlu1 %5844  ;;  %5648 = vmatprep.mubr.f32.mxu1 %v13354_v0  ;;  %v6025_v3 = vrot.slane %v9388_v26, %v10716_v18 }
 0x987   : > { %9813 = vmatprep.subr.bf16.mxu1 %v9812_v36  ;;  %v5843_v8 = vpop.permute.xlu0 %5842  ;;  %v9816_v13 = vpack.c.bf16 %v5877_v7, %v5875_v12  ;;  %v9818_v39 = vpack.c.bf16 %v5876_v56, %v5874_v57  ;;  %v5679_v36 = vld [vmem:[#allocation4 + $0x418] sm:$0xff] }
 0x989   : > { %9375 = vmatmul.mubr.msk.f32.gmra.mrb[24].mxu1 %vm443_vm0, %v5519_v62 }
 0x98a   : > { %9815 = vmatpush1.bf16.msra.mxu1 %v9814_v54  ;;  %v5853_v63 = vpop.permute.xlu1 %5852  ;;  %5654 = vmatprep.mubr.f32.mxu1 %v13354_v0 }
 0x98b   : > { %9817 = vmatprep.subr.bf16.mxu1 %v9816_v13  ;;  %v5851_v21 = vpop.permute.xlu0 %5850  ;;  %v5861_v28 = vsel %vm1307_vm5, %v5853_v63, %v5845_v45  ;;  %v5857_v31 = vsel %vm1307_vm5, %v5845_v45, %v5853_v63  ;;  %v6187_v13 = vrot.slane %v9393_v6, %v10722_v19 }
 0x98c   : > { %v5860_v24 = vsel %vm1307_vm5, %v5851_v21, %v5843_v8  ;;  %v5881_v32 = vmul.f32 %v5871_v58, %v5861_v28  ;;  %v5856_v33 = vsel %vm1307_vm5, %v5843_v8, %v5851_v21  ;;  %v5880_v46 = vmul.f32 %v5867_v15, %v5857_v31  ;;  %v5835_v31 = vld [vmem:[#allocation4 + $0x428] sm:$0xff] }
 0x98d   : > { %9376 = vmatmul.mubr.msk.f32.gmra.mrb[26].mxu1 %vm443_vm0, %v5520_v14  ;;  %v5879_v34 = vmul.f32 %v5871_v58, %v5860_v24  ;;  %v5878_v47 = vmul.f32 %v5867_v15, %v5856_v33 }
 0x98e   : > { %v5999_v25 = vpop.permute.xlu1 %5998  ;;  %5660 = vmatprep.mubr.f32.mxu1 %v13354_v0 }
 0x98f   : > { %v5997_v5 = vpop.permute.xlu0 %5996  ;;  %v9820_v55 = vpack.c.bf16 %v5881_v32, %v5879_v34  ;;  %v9822_v1 = vpack.c.bf16 %v5880_v46, %v5878_v47 }
 0x991   : > { %9377 = vmatmul.mubr.msk.f32.gmra.mrb[28].mxu1 %vm443_vm0, %v5521_v50 }
 0x992   : > { %v6007_v37 = vpop.permute.xlu1 %6006  ;;  %5800 = vmatprep.mubr.f32.mxu1 %v13354_v0 }
 0x993   : > { %v6017_v40 = vsel %vm1467_vm6, %v6007_v37, %v5999_v25  ;;  %v6005_v41 = vpop.permute.xlu0 %6004  ;;  %v6013_v44 = vsel %vm1467_vm6, %v5999_v25, %v6007_v37  ;;  %v5836_v37 = vld [vmem:[#allocation4 + $0x430] sm:$0xff] }
 0x994   : > { %v6035_v48 = vmul.f32 %v6029_v30, %v6017_v40  ;;  %v6016_v51 = vsel %vm1467_vm6, %v6005_v41, %v5997_v5  ;;  %v6012_v53 = vsel %vm1467_vm6, %v5997_v5, %v6005_v41  ;;  %v6034_v45 = vmul.f32 %v6025_v3, %v6013_v44  ;;  %v5993_v44 = vld [vmem:[#allocation4 + $0x448] sm:$0xff] }
 0x995   : > { %v6033_v52 = vmul.f32 %v6029_v30, %v6016_v51  ;;  %9379 = vmatmul.mubr.msk.f32.vlgmr.msra.gmra.mrb[22].mxu1 %vm443_vm0, %v5676_v38  ;;  %v6032_v62 = vmul.f32 %v6025_v3, %v6012_v53  ;;  %v6183_v40 = vrot.slane %v9393_v6, %v10716_v18  ;;  %v5837_v51 = vld [vmem:[#allocation4 + $0x438] sm:$0xff]  ;;  %v5994_v6 = vld [vmem:[#allocation4 + $0x450] sm:$0xff] }
 0x996   : > { %9819 = vmatpush1.bf16.msra.mxu1 %v9818_v39  ;;  %v6003_v58 = vpop.permute.xlu1 %6002  ;;  %5806 = vmatprep.mubr.f32.mxu1 %v13354_v0 }
 0x997   : > { %9821 = vmatprep.subr.bf16.mxu1 %v9820_v55  ;;  %v6001_v60 = vpop.permute.xlu0 %6000  ;;  %v9824_v61 = vpack.c.bf16 %v6035_v48, %v6033_v52  ;;  %v9826_v23 = vpack.c.bf16 %v6034_v45, %v6032_v62  ;;  %v6153_v45 = vld [vmem:[#allocation4 + $0x478] sm:$0xff] }
 0x999   : > { %9380 = vmatmul.mubr.msk.f32.gmra.mrb[24].mxu1 %vm443_vm0, %v5677_v59 }
 0x99a   : > { %9823 = vmatpush1.bf16.msra.mxu1 %v9822_v1  ;;  %v6011_v2 = vpop.permute.xlu1 %6010  ;;  %5812 = vmatprep.mubr.f32.mxu1 %v13354_v0  ;;  %v5992_v1 = vld [vmem:[#allocation4 + $0x440] sm:$0xff] }
 0x99b   : > { %9825 = vmatprep.subr.bf16.mxu1 %v9824_v61  ;;  %v6009_v4 = vpop.permute.xlu0 %6008  ;;  %v6019_v7 = vsel %vm1467_vm6, %v6011_v2, %v6003_v58  ;;  %v6015_v54 = vsel %vm1467_vm6, %v6003_v58, %v6011_v2 }
 0x99c   : > { %v6018_v9 = vsel %vm1467_vm6, %v6009_v4, %v6001_v60  ;;  %v6039_v63 = vmul.f32 %v6029_v30, %v6019_v7  ;;  %v6014_v14 = vsel %vm1467_vm6, %v6001_v60, %v6009_v4  ;;  %v6038_v24 = vmul.f32 %v6025_v3, %v6015_v54  ;;  %v5995_v7 = vld [vmem:[#allocation4 + $0x458] sm:$0xff] }
 0x99d   : > { %9381 = vmatmul.mubr.msk.f32.gmra.mrb[26].mxu1 %vm443_vm0, %v5678_v11  ;;  %v6037_v15 = vmul.f32 %v6029_v30, %v6018_v9  ;;  %v6036_v25 = vmul.f32 %v6025_v3, %v6014_v14  ;;  %v6150_v9 = vld [vmem:[#allocation4 + $0x460] sm:$0xff] }
 0x99e   : > { %v6157_v12 = vpop.permute.xlu1 %6156  ;;  %5818 = vmatprep.mubr.f32.mxu1 %v13354_v0 }
 0x99f   : > { %v6155_v8 = vpop.permute.xlu0 %6154  ;;  %v9828_v5 = vpack.c.bf16 %v6039_v63, %v6037_v15  ;;  %v9830_v34 = vpack.c.bf16 %v6038_v24, %v6036_v25 }
 0x9a1   : > { %9382 = vmatmul.mubr.msk.f32.gmra.mrb[28].mxu1 %vm443_vm0, %v5679_v36  ;;  %v6152_v36 = vld [vmem:[#allocation4 + $0x470] sm:$0xff] }
 0x9a2   : > { %v6165_v21 = vpop.permute.xlu1 %6164  ;;  %5958 = vmatprep.mubr.f32.mxu1 %v13354_v0 }
 0x9a3   : > { %v6175_v26 = vsel %vm1627_vm8, %v6165_v21, %v6157_v12  ;;  %v6163_v28 = vpop.permute.xlu0 %6162  ;;  %v6171_v41 = vsel %vm1627_vm8, %v6157_v12, %v6165_v21  ;;  %v6151_v12 = vld [vmem:[#allocation4 + $0x468] sm:$0xff] }
 0x9a4   : > { %v6193_v50 = vmul.f32 %v6187_v13, %v6175_v26  ;;  %v6174_v56 = vsel %vm1627_vm8, %v6163_v28, %v6155_v8  ;;  %v6170_v46 = vsel %vm1627_vm8, %v6155_v8, %v6163_v28  ;;  %v6192_v52 = vmul.f32 %v6183_v40, %v6171_v41 }
 0x9a5   : > { %v6191_v57 = vmul.f32 %v6187_v13, %v6174_v56  ;;  %9384 = vmatmul.mubr.msk.f32.vlgmr.msra.gmra.mrb[22].mxu1 %vm443_vm0, %v5834_v22  ;;  %v6190_v55 = vmul.f32 %v6183_v40, %v6170_v46 }
 0x9a6   : > { %9827 = vmatpush1.bf16.msra.mxu1 %v9826_v23  ;;  %v6161_v30 = vpop.permute.xlu1 %6160  ;;  %5964 = vmatprep.mubr.f32.mxu1 %v13354_v0 }
 0x9a7   : > { %9829 = vmatprep.subr.bf16.mxu1 %v9828_v5  ;;  %v6159_v32 = vpop.permute.xlu0 %6158  ;;  %v9832_v33 = vpack.c.bf16 %v6193_v50, %v6191_v57  ;;  %v9834_v2 = vpack.c.bf16 %v6192_v52, %v6190_v55 }
 0x9a9   : > { %9385 = vmatmul.mubr.msk.f32.gmra.mrb[24].mxu1 %vm443_vm0, %v5835_v31 }
 0x9aa   : > { %9831 = vmatpush1.bf16.msra.mxu1 %v9830_v34  ;;  %5970 = vmatprep.mubr.f32.mxu1 %v13354_v0  ;;  %v6169_v38 = vpop.permute.xlu1 %6168 }
 0x9ab   : > { %9833 = vmatprep.subr.bf16.mxu1 %v9832_v33  ;;  %v6167_v39 = vpop.permute.xlu0 %6166  ;;  %v6177_v47 = vsel %vm1627_vm8, %v6169_v38, %v6161_v30  ;;  %v6173_v58 = vsel %vm1627_vm8, %v6161_v30, %v6169_v38 }
 0x9ac   : > { %v6176_v48 = vsel %vm1627_vm8, %v6167_v39, %v6159_v32  ;;  %v6197_v59 = vmul.f32 %v6187_v13, %v6177_v47  ;;  %v6172_v60 = vsel %vm1627_vm8, %v6159_v32, %v6167_v39  ;;  %v6196_v11 = vmul.f32 %v6183_v40, %v6173_v58  ;;  %v6398_v47 = vld [vmem:[%s13342_s1] ss:$8 sm:$0x3] }
 0x9ad   : > { %9386 = vmatmul.mubr.msk.f32.gmra.mrb[26].mxu1 %vm443_vm0, %v5836_v37  ;;  %v6195_v61 = vmul.f32 %v6187_v13, %v6176_v48  ;;  %v6194_v3 = vmul.f32 %v6183_v40, %v6172_v60  ;;  %v6403_v52 = vrot.slane %v6398_v47, %v10716_v18  ;;  %v6407_v55 = vrot.slane %v6398_v47, %v10722_v19 }
 0x9ae   : > { %5976 = vmatprep.mubr.f32.mxu1 %v13354_v0 }
 0x9af   : > { %v9836_v4 = vpack.c.bf16 %v6197_v59, %v6195_v61  ;;  %v9838_v53 = vpack.c.bf16 %v6196_v11, %v6194_v3 }
 0x9b1   : > { %9387 = vmatmul.mubr.msk.f32.gmra.mrb[28].mxu1 %vm443_vm0, %v5837_v51 }
 0x9b2   : > { %6116 = vmatprep.mubr.f32.mxu1 %v13354_v0 }
 0x9b5   : > { %9389 = vmatmul.mubr.msk.f32.vlgmr.msra.gmra.mrb[22].mxu1 %vm443_vm0, %v5992_v1 }
 0x9b6   : > { %9835 = vmatpush1.bf16.msra.mxu1 %v9834_v2  ;;  %6122 = vmatprep.mubr.f32.mxu1 %v13354_v0 }
 0x9b7   : > { %9837 = vmatprep.subr.bf16.mxu1 %v9836_v4 }
 0x9b9   : > { %9390 = vmatmul.mubr.msk.f32.gmra.mrb[24].mxu1 %vm443_vm0, %v5993_v44 }
 0x9ba   : > { %9839 = vmatpush1.bf16.msra.mxu1 %v9838_v53  ;;  %6128 = vmatprep.mubr.f32.mxu1 %v13354_v0  ;;  %v9398_v53 = vld [vmem:[%s13344_s3 + $0x80] sm:$0xff] }
 0x9bb   : > { %9912 = vmatprep.subr.bf16.mxu1 %v10450_v10  ;;  %v6315_v15 = vpop.permute.xlu1 %6314 }
 0x9bc   : > { %v6310_v62 = vpop.permute.xlu0 %6309 }
 0x9bd   : > { %9391 = vmatmul.mubr.msk.f32.gmra.mrb[26].mxu1 %vm443_vm0, %v5994_v6 }
 0x9be   : > { %6134 = vmatprep.mubr.f32.mxu1 %v13354_v0 }
 0x9bf   : > { %v6325_v32 = vpop.permute.xlu1 %6324 }
 0x9c0   : > { %v6320_v25 = vpop.permute.xlu0 %6319 }
 0x9c1   : > { %9392 = vmatmul.mubr.msk.f32.gmra.mrb[28].mxu1 %vm443_vm0, %v5995_v7 }
 0x9c2   : > { %6274 = vmatprep.mubr.f32.mxu1 %v13354_v0 }
 0x9c5   : > { %9394 = vmatmul.mubr.msk.f32.vlgmr.msra.gmra.mrb[22].mxu1 %vm443_vm0, %v6150_v9 }
 0x9c6   : > { %6280 = vmatprep.mubr.f32.mxu1 %v13354_v0 }
 0x9c9   : > { %9395 = vmatmul.mubr.msk.f32.gmra.mrb[24].mxu1 %vm443_vm0, %v6151_v12 }
 0x9ca   : > { %6286 = vmatprep.mubr.f32.mxu1 %v13354_v0 }
 0x9cd   : > { %9396 = vmatmul.mubr.msk.f32.gmra.mrb[26].mxu1 %vm443_vm0, %v6152_v36 }
 0x9ce   : > { %6292 = vmatprep.mubr.f32.mxu1 %v13354_v0 }
 0x9d1   : > { %9397 = vmatmul.mubr.msk.f32.gmra.mrb[28].mxu1 %vm443_vm0, %v6153_v45 }
 0x9d2   : > { %9535 = vmatprep.mubr.msk.f32.mxu1 %vm10451_vm9, %v13354_v0 }
 0xa98   : > { %v6276_v8 = vpop.f32.mrb[22].mxu1 }
 0xa99   : > { %v6327_v13 = vadd.f32 %v6310_v62, %v6276_v8  ;;  %v6278_v54 = vpop.f32.mrb[23].mxu1  ;;  %v9399_v8 = vld [vmem:[%s13344_s3 + $0x88] sm:$0xff] }
 0xa9a   : > { %v6328_v14 = vadd.f32 %v6310_v62, %v6278_v54  ;;  %v9400_v62 = vld [vmem:[%s13344_s3 + $0x90] sm:$0xff] }
 0xa9b   : > { %v12273_v63 = vmax.f32 %v6327_v13, 0.0 }
 0xa9c   : > { %v6282_v21 = vpop.f32.mrb[24].mxu1  ;;  %v12277_v26 = vmax.f32 %v6328_v14, 0.0 }
 0xa9d   : > { %v6329_v22 = vadd.f32 %v6315_v15, %v6282_v21  ;;  %6374 = vrot.lane.b32.xlu0 %v12273_v63, %s10447_s23  ;;  %v6284_v23 = vpop.f32.mrb[25].mxu1 }
 0xa9e   : > { %v6330_v24 = vadd.f32 %v6315_v15, %v6284_v23 }
 0xa9f   : > { %v12279_v28 = vmax.f32 %v6329_v22, 0.0 }
 0xaa0   : > { %v6288_v50 = vpop.f32.mrb[26].mxu1  ;;  %v12285_v5 = vmax.f32 %v6330_v24, 0.0 }
 0xaa1   : > { %v6331_v56 = vadd.f32 %v6320_v25, %v6288_v50  ;;  %6382 = vrot.lane.b32.xlu0 %v12277_v26, %s10447_s23  ;;  %v6290_v57 = vpop.f32.mrb[27].mxu1  ;;  %6376 = vrot.lane.b32.xlu1 %v12279_v28, %s10447_s23 }
 0xaa2   : > { %v6332_v31 = vadd.f32 %v6320_v25, %v6290_v57  ;;  %v9401_v25 = vld [vmem:[%s13344_s3 + $0x98] sm:$0xff] }
 0xaa3   : > { %v12287_v30 = vmax.f32 %v6331_v56, 0.0 }
 0xaa4   : > { %v6294_v33 = vpop.f32.mrb[28].mxu1  ;;  %v12293_v38 = vmax.f32 %v6332_v31, 0.0 }
 0xaa5   : > { %v6333_v34 = vadd.f32 %v6325_v32, %v6294_v33  ;;  %6378 = vrot.lane.b32.xlu0 %v12287_v30, %s10447_s23  ;;  %v6296_v37 = vpop.f32.mrb[29].mxu1  ;;  %6384 = vrot.lane.b32.xlu1 %v12285_v5, %s10447_s23  ;;  %v9848_v33 = vpack.c.bf16 %v12285_v5, %v12277_v26 }
 0xaa6   : > { %v6334_v40 = vadd.f32 %v6325_v32, %v6296_v37  ;;  %v9410_v32 = vld [vmem:[%s13342_s1 + $0x1] ss:$8 sm:$0x3] }
 0xaa7   : > { %v12295_v39 = vmax.f32 %v6333_v34, 0.0  ;;  %v6370_v34 = vld [vmem:[#allocation4 + $0x480] sm:$0xff]  ;;  %v6658_v37 = vrot.slane %v9410_v32, %v10722_v19 }
 0xaa8   : > { %v12301_v41 = vmax.f32 %v6334_v40, 0.0 }
 0xaa9   : > { %6386 = vrot.lane.b32.xlu0 %v12293_v38, %s10447_s23  ;;  %6380 = vrot.lane.b32.xlu1 %v12295_v39, %s10447_s23 }
 0xaad   : > { %6625 = vrot.lane.b32.xlu0 %v12273_v63, %s10441_s17  ;;  %6388 = vrot.lane.b32.xlu1 %v12301_v41, %s10447_s23 }
 0xab1   : > { %6633 = vrot.lane.b32.xlu0 %v12277_v26, %s10441_s17  ;;  %6627 = vrot.lane.b32.xlu1 %v12279_v28, %s10441_s17 }
 0xab5   : > { %6629 = vrot.lane.b32.xlu0 %v12287_v30, %s10441_s17  ;;  %6635 = vrot.lane.b32.xlu1 %v12285_v5, %s10441_s17 }
 0xab9   : > { %6637 = vrot.lane.b32.xlu0 %v12293_v38, %s10441_s17  ;;  %6631 = vrot.lane.b32.xlu1 %v12295_v39, %s10441_s17 }
 0xabd   : > { %6783 = vrot.lane.b32.xlu0 %v12273_v63, %s10442_s18  ;;  %6639 = vrot.lane.b32.xlu1 %v12301_v41, %s10441_s17 }
 0xac1   : > { %6791 = vrot.lane.b32.xlu0 %v12277_v26, %s10442_s18  ;;  %6785 = vrot.lane.b32.xlu1 %v12279_v28, %s10442_s18 }
 0xac5   : > { %6787 = vrot.lane.b32.xlu0 %v12287_v30, %s10442_s18  ;;  %6793 = vrot.lane.b32.xlu1 %v12285_v5, %s10442_s18 }
 0xac9   : > { %6795 = vrot.lane.b32.xlu0 %v12293_v38, %s10442_s18  ;;  %6789 = vrot.lane.b32.xlu1 %v12295_v39, %s10442_s18 }
 0xacd   : > { %6941 = vrot.lane.b32.xlu0 %v12273_v63, %s10443_s19  ;;  %6797 = vrot.lane.b32.xlu1 %v12301_v41, %s10442_s18 }
 0xad1   : > { %6949 = vrot.lane.b32.xlu0 %v12277_v26, %s10443_s19  ;;  %6943 = vrot.lane.b32.xlu1 %v12279_v28, %s10443_s19 }
 0xad5   : > { %6945 = vrot.lane.b32.xlu0 %v12287_v30, %s10443_s19  ;;  %6951 = vrot.lane.b32.xlu1 %v12285_v5, %s10443_s19 }
 0xad9   : > { %6953 = vrot.lane.b32.xlu0 %v12293_v38, %s10443_s19  ;;  %6947 = vrot.lane.b32.xlu1 %v12295_v39, %s10443_s19 }
 0xadd   : > { %7099 = vrot.lane.b32.xlu0 %v12273_v63, %s10444_s20  ;;  %6955 = vrot.lane.b32.xlu1 %v12301_v41, %s10443_s19 }
 0xae1   : > { %7107 = vrot.lane.b32.xlu0 %v12277_v26, %s10444_s20  ;;  %7101 = vrot.lane.b32.xlu1 %v12279_v28, %s10444_s20 }
 0xae5   : > { %7103 = vrot.lane.b32.xlu0 %v12287_v30, %s10444_s20  ;;  %7109 = vrot.lane.b32.xlu1 %v12285_v5, %s10444_s20 }
 0xae9   : > { %7111 = vrot.lane.b32.xlu0 %v12293_v38, %s10444_s20  ;;  %7105 = vrot.lane.b32.xlu1 %v12295_v39, %s10444_s20 }
 0xaed   : > { %7257 = vrot.lane.b32.xlu0 %v12273_v63, %s10445_s21  ;;  %7113 = vrot.lane.b32.xlu1 %v12301_v41, %s10444_s20 }
 0xaf1   : > { %7265 = vrot.lane.b32.xlu0 %v12277_v26, %s10445_s21  ;;  %7259 = vrot.lane.b32.xlu1 %v12279_v28, %s10445_s21 }
 0xaf5   : > { %7261 = vrot.lane.b32.xlu0 %v12287_v30, %s10445_s21  ;;  %7267 = vrot.lane.b32.xlu1 %v12285_v5, %s10445_s21 }
 0xaf9   : > { %7269 = vrot.lane.b32.xlu0 %v12293_v38, %s10445_s21  ;;  %7263 = vrot.lane.b32.xlu1 %v12295_v39, %s10445_s21 }
 0xafd   : > { %7415 = vrot.lane.b32.xlu0 %v12273_v63, %s10446_s22  ;;  %7271 = vrot.lane.b32.xlu1 %v12301_v41, %s10445_s21 }
 0xb01   : > { %7423 = vrot.lane.b32.xlu0 %v12277_v26, %s10446_s22  ;;  %7417 = vrot.lane.b32.xlu1 %v12279_v28, %s10446_s22 }
 0xb05   : > { %7419 = vrot.lane.b32.xlu0 %v12287_v30, %s10446_s22  ;;  %7425 = vrot.lane.b32.xlu1 %v12285_v5, %s10446_s22 }
 0xb09   : > { %7427 = vrot.lane.b32.xlu0 %v12293_v38, %s10446_s22  ;;  %7421 = vrot.lane.b32.xlu1 %v12295_v39, %s10446_s22 }
 0xb0d   : > { %7573 = vrot.lane.b32.xlu0 %v12273_v63, %s10448_s24  ;;  %7429 = vrot.lane.b32.xlu1 %v12301_v41, %s10446_s22 }
 0xb0f   : > { %v6375_v46 = vpop.permute.xlu0 %6374 }
 0xb11   : > { %7581 = vrot.lane.b32.xlu0 %v12277_v26, %s10448_s24  ;;  %7575 = vrot.lane.b32.xlu1 %v12279_v28, %s10448_s24  ;;  %v9852_v26 = vpack.c.bf16 %v12301_v41, %v12293_v38 }
 0xb13   : > { %v6383_v48 = vpop.permute.xlu0 %6382  ;;  %v6377_v51 = vpop.permute.xlu1 %6376 }
 0xb14   : > { %v6394_v58 = vsel %vm414_vm7, %v6383_v48, %v6375_v46  ;;  %v6390_v59 = vsel %vm414_vm7, %v6375_v46, %v6383_v48 }
 0xb15   : > { %7577 = vrot.lane.b32.xlu0 %v12287_v30, %s10448_s24  ;;  %7583 = vrot.lane.b32.xlu1 %v12285_v5, %s10448_s24  ;;  %v6410_v1 = vmul.f32 %v6403_v52, %v6394_v58  ;;  %v6411_v3 = vmul.f32 %v6407_v55, %v6390_v59  ;;  %v6371_v5 = vld [vmem:[#allocation4 + $0x488] sm:$0xff] }
 0xb17   : > { %v6379_v60 = vpop.permute.xlu0 %6378  ;;  %v6385_v61 = vpop.permute.xlu1 %6384 }
 0xb18   : > { %v6391_v2 = vsel %vm414_vm7, %v6377_v51, %v6385_v61  ;;  %v6395_v11 = vsel %vm414_vm7, %v6385_v61, %v6377_v51  ;;  %v9850_v51 = vpack.c.bf16 %v12279_v28, %v12273_v63  ;;  %v6372_v28 = vld [vmem:[#allocation4 + $0x490] sm:$0xff] }
 0xb19   : > { %v6412_v4 = vmul.f32 %v6403_v52, %v6395_v11  ;;  %v6413_v44 = vmul.f32 %v6407_v55, %v6391_v2  ;;  %7585 = vrot.lane.b32.xlu0 %v12293_v38, %s10448_s24  ;;  %7579 = vrot.lane.b32.xlu1 %v12295_v39, %s10448_s24  ;;  %v6373_v2 = vld [vmem:[#allocation4 + $0x498] sm:$0xff] }
 0xb1b   : > { %v9842_v6 = vpack.c.bf16 %v6412_v4, %v6410_v1  ;;  %v6387_v7 = vpop.permute.xlu0 %6386  ;;  %v6381_v9 = vpop.permute.xlu1 %6380  ;;  %v9840_v12 = vpack.c.bf16 %v6413_v44, %v6411_v3  ;;  %v6654_v1 = vrot.slane %v9410_v32, %v10716_v18 }
 0xb1c   : > { %v6396_v36 = vsel %vm414_vm7, %v6387_v7, %v6379_v60  ;;  %v6392_v45 = vsel %vm414_vm7, %v6379_v60, %v6387_v7  ;;  %v9854_v60 = vpack.c.bf16 %v12295_v39, %v12287_v30  ;;  %v9415_v39 = vld [vmem:[%s13342_s1 + $0x2] ss:$8 sm:$0x3] }
 0xb1d   : > { %7728 = vperm.xlu0 %10363, %v9398_v53   ;;  %7587 = vrot.lane.b32.xlu1 %v12301_v41, %s10448_s24  ;;  %v6414_v14 = vmul.f32 %v6403_v52, %v6396_v36  ;;  %v6415_v22 = vmul.f32 %v6407_v55, %v6392_v45  ;;  %v6365_v45 = vld [vmem:[#allocation4 + $0x500] sm:$0xff] }
 0xb1e   : > { %9841 = vmatprep.subr.bf16.mxu0 %v9840_v12 }
 0xb1f   : > { %9843 = vmatpush1.bf16.msra.mxu0 %v9842_v6  ;;  %v6626_v13 = vpop.permute.xlu0 %6625  ;;  %v6389_v54 = vpop.permute.xlu1 %6388 }
 0xb20   : > { %v6393_v15 = vsel %vm414_vm7, %v6381_v9, %v6389_v54  ;;  %v6397_v21 = vsel %vm414_vm7, %v6389_v54, %v6381_v9  ;;  %v6816_v9 = vrot.slane %v9415_v39, %v10722_v19 }
 0xb21   : > { %v6416_v23 = vmul.f32 %v6403_v52, %v6397_v21  ;;  %v6417_v24 = vmul.f32 %v6407_v55, %v6393_v15  ;;  %7738 = vperm.xlu0 %10363, %v9400_v62   ;;  %7733 = vperm.xlu1 %10364, %v9399_v8  }
 0xb23   : > { %v9846_v50 = vpack.c.bf16 %v6416_v23, %v6414_v14  ;;  %v6634_v56 = vpop.permute.xlu0 %6633  ;;  %v6628_v57 = vpop.permute.xlu1 %6627  ;;  %v9844_v31 = vpack.c.bf16 %v6417_v24, %v6415_v22 }
 0xb24   : > { %v6641_v47 = vsel %vm667_vm1, %v6626_v13, %v6634_v56  ;;  %v6645_v11 = vsel %vm667_vm1, %v6634_v56, %v6626_v13 }
 0xb25   : > { %7743 = vperm.xlu1 %10364, %v9401_v25   ;;  %9845 = vmatprep.subr.bf16.mxu0 %v9844_v31  ;;  %v6662_v55 = vmul.f32 %v6658_v37, %v6641_v47  ;;  %v6661_v12 = vmul.f32 %v6654_v1, %v6645_v11 }
 0xb26   : > { %9847 = vmatpush1.bf16.msra.mxu0 %v9846_v50  ;;  %v6366_v50 = vld [vmem:[#allocation4 + $0x508] sm:$0xff] }
 0xb27   : > { %v6630_v40 = vpop.permute.xlu0 %6629  ;;  %9849 = vmatprep.subr.bf16.mxu0 %v9848_v33  ;;  %v6636_v46 = vpop.permute.xlu1 %6635  ;;  %v6367_v33 = vld [vmem:[#allocation4 + $0x510] sm:$0xff] }
 0xb28   : > { %v6642_v48 = vsel %vm667_vm1, %v6628_v57, %v6636_v46  ;;  %v6646_v41 = vsel %vm667_vm1, %v6636_v46, %v6628_v57  ;;  %v6812_v46 = vrot.slane %v9415_v39, %v10716_v18 }
 0xb29   : > { %v6664_v52 = vmul.f32 %v6658_v37, %v6642_v48  ;;  %9402 = vmatmul.mubr.msk.f32.vlgmr.msra.gmra.mrb[16].mxu0 %vm443_vm0, %v6370_v34  ;;  %v6663_v44 = vmul.f32 %v6654_v1, %v6646_v41  ;;  %v9420_v48 = vld [vmem:[%s13342_s1 + $0x3] ss:$8 sm:$0x3] }
 0xb2a   : > { %9851 = vmatpush1.bf16.msra.mxu0 %v9850_v51  ;;  %6500 = vmatprep.mubr.f32.mxu0 %v13354_v0  ;;  %v6368_v51 = vld [vmem:[#allocation4 + $0x518] sm:$0xff] }
 0xb2b   : > { %v6638_v58 = vpop.permute.xlu0 %6637  ;;  %9853 = vmatprep.subr.bf16.mxu0 %v9852_v26  ;;  %v6632_v59 = vpop.permute.xlu1 %6631  ;;  %v9856_v63 = vpack.c.bf16 %v6664_v52, %v6662_v55  ;;  %v9858_v14 = vpack.c.bf16 %v6663_v44, %v6661_v12 }
 0xb2c   : > { %v6643_v53 = vsel %vm667_vm1, %v6630_v40, %v6638_v58  ;;  %v6647_v62 = vsel %vm667_vm1, %v6638_v58, %v6630_v40 }
 0xb2d   : > { %9403 = vmatmul.mubr.msk.f32.gmra.mrb[18].mxu0 %vm443_vm0, %v6371_v5  ;;  %v6666_v8 = vmul.f32 %v6658_v37, %v6643_v53  ;;  %v6665_v25 = vmul.f32 %v6654_v1, %v6647_v62  ;;  %v6623_v62 = vld [vmem:[#allocation4 + $0x4b0] sm:$0xff] }
 0xb2e   : > { %9855 = vmatpush1.bf16.msra.mxu0 %v9854_v60  ;;  %6506 = vmatprep.mubr.f32.mxu0 %v13354_v0 }
 0xb2f   : > { %v6784_v61 = vpop.permute.xlu0 %6783  ;;  %9857 = vmatprep.subr.bf16.mxu0 %v9856_v63  ;;  %v6640_v38 = vpop.permute.xlu1 %6639  ;;  %v6974_v63 = vrot.slane %v9420_v48, %v10722_v19 }
 0xb30   : > { %v6644_v30 = vsel %vm667_vm1, %v6632_v59, %v6640_v38  ;;  %v6648_v6 = vsel %vm667_vm1, %v6640_v38, %v6632_v59 }
 0xb31   : > { %9404 = vmatmul.mubr.msk.f32.gmra.mrb[20].mxu0 %vm443_vm0, %v6372_v28  ;;  %v6668_v7 = vmul.f32 %v6658_v37, %v6644_v30  ;;  %v6667_v15 = vmul.f32 %v6654_v1, %v6648_v6 }
 0xb32   : > { %6512 = vmatprep.mubr.f32.mxu0 %v13354_v0 }
 0xb33   : > { %v6792_v3 = vpop.permute.xlu0 %6791  ;;  %v6786_v4 = vpop.permute.xlu1 %6785  ;;  %v9860_v24 = vpack.c.bf16 %v6668_v7, %v6666_v8  ;;  %v9862_v32 = vpack.c.bf16 %v6667_v15, %v6665_v25  ;;  %v6622_v7 = vld [vmem:[#allocation4 + $0x4a8] sm:$0xff] }
 0xb34   : > { %v6799_v36 = vsel %vm827_vm2, %v6784_v61, %v6792_v3  ;;  %v6803_v52 = vsel %vm827_vm2, %v6792_v3, %v6784_v61  ;;  %v6621_v61 = vld [vmem:[#allocation4 + $0x4a0] sm:$0xff] }
 0xb35   : > { %9405 = vmatmul.mubr.msk.f32.gmra.mrb[22].mxu0 %vm443_vm0, %v6373_v2  ;;  %v6820_v22 = vmul.f32 %v6816_v9, %v6799_v36  ;;  %v6819_v28 = vmul.f32 %v6812_v46, %v6803_v52 }
 0xb36   : > { %6595 = vmatprep.mubr.f32.mxu0 %v13354_v0 }
 0xb37   : > { %v6788_v13 = vpop.permute.xlu0 %6787  ;;  %v6794_v54 = vpop.permute.xlu1 %6793 }
 0xb38   : > { %v6800_v21 = vsel %vm827_vm2, %v6786_v4, %v6794_v54  ;;  %v6804_v40 = vsel %vm827_vm2, %v6794_v54, %v6786_v4 }
 0xb39   : > { %v6822_v23 = vmul.f32 %v6816_v9, %v6800_v21  ;;  %9406 = vmatmul.mubr.msk.f32.vlgmr.msra.gmra.mrb[16].mxu0 %vm443_vm0, %v6365_v45  ;;  %v6821_v55 = vmul.f32 %v6812_v46, %v6804_v40  ;;  %v9425_v21 = vld [vmem:[%s13342_s1 + $0x5] ss:$8 sm:$0x3] }
 0xb3a   : > { %9859 = vmatpush1.bf16.msra.mxu0 %v9858_v14  ;;  %6601 = vmatprep.mubr.f32.mxu0 %v13354_v0  ;;  %v6970_v14 = vrot.slane %v9420_v48, %v10716_v18 }
 0xb3b   : > { %9861 = vmatprep.subr.bf16.mxu0 %v9860_v24  ;;  %v6796_v56 = vpop.permute.xlu0 %6795  ;;  %v6790_v57 = vpop.permute.xlu1 %6789  ;;  %v9864_v31 = vpack.c.bf16 %v6822_v23, %v6820_v22  ;;  %v9866_v2 = vpack.c.bf16 %v6821_v55, %v6819_v28  ;;  %v6624_v22 = vld [vmem:[#allocation4 + $0x4b8] sm:$0xff] }
 0xb3c   : > { %v6801_v58 = vsel %vm827_vm2, %v6788_v13, %v6796_v56  ;;  %v6805_v41 = vsel %vm827_vm2, %v6796_v56, %v6788_v13 }
 0xb3d   : > { %9407 = vmatmul.mubr.msk.f32.gmra.mrb[18].mxu0 %vm443_vm0, %v6366_v50  ;;  %v6824_v1 = vmul.f32 %v6816_v9, %v6801_v58  ;;  %v6823_v6 = vmul.f32 %v6812_v46, %v6805_v41  ;;  %v6781_v41 = vld [vmem:[#allocation4 + $0x4d0] sm:$0xff] }
 0xb3e   : > { %9863 = vmatpush1.bf16.msra.mxu0 %v9862_v32  ;;  %6607 = vmatprep.mubr.f32.mxu0 %v13354_v0  ;;  %v7132_v32 = vrot.slane %v9425_v21, %v10722_v19 }
 0xb3f   : > { %9865 = vmatprep.subr.bf16.mxu0 %v9864_v31  ;;  %v6942_v34 = vpop.permute.xlu0 %6941  ;;  %v6798_v37 = vpop.permute.xlu1 %6797 }
 0xb40   : > { %v6802_v47 = vsel %vm827_vm2, %v6790_v57, %v6798_v37  ;;  %v6806_v59 = vsel %vm827_vm2, %v6798_v37, %v6790_v57 }
 0xb41   : > { %9408 = vmatmul.mubr.msk.f32.gmra.mrb[20].mxu0 %vm443_vm0, %v6367_v33  ;;  %v6826_v60 = vmul.f32 %v6816_v9, %v6802_v47  ;;  %v6825_v11 = vmul.f32 %v6812_v46, %v6806_v59 }
 0xb42   : > { %6613 = vmatprep.mubr.f32.mxu0 %v13354_v0 }
 0xb43   : > { %v6950_v26 = vpop.permute.xlu0 %6949  ;;  %v6944_v5 = vpop.permute.xlu1 %6943  ;;  %v9868_v53 = vpack.c.bf16 %v6826_v60, %v6824_v1  ;;  %v9870_v45 = vpack.c.bf16 %v6825_v11, %v6823_v6  ;;  %v6780_v60 = vld [vmem:[#allocation4 + $0x4c8] sm:$0xff] }
 0xb44   : > { %v6957_v38 = vsel %vm987_vm3, %v6942_v34, %v6950_v26  ;;  %v6961_v23 = vsel %vm987_vm3, %v6950_v26, %v6942_v34  ;;  %v6779_v34 = vld [vmem:[#allocation4 + $0x4c0] sm:$0xff] }
 0xb45   : > { %9409 = vmatmul.mubr.msk.f32.gmra.mrb[22].mxu0 %vm443_vm0, %v6368_v51  ;;  %v6978_v4 = vmul.f32 %v6974_v63, %v6957_v38  ;;  %v6977_v33 = vmul.f32 %v6970_v14, %v6961_v23 }
 0xb46   : > { %6745 = vmatprep.mubr.f32.mxu0 %v13354_v0 }
 0xb47   : > { %v6946_v30 = vpop.permute.xlu0 %6945  ;;  %v6952_v39 = vpop.permute.xlu1 %6951 }
 0xb48   : > { %v6958_v3 = vsel %vm987_vm3, %v6944_v5, %v6952_v39  ;;  %v6962_v54 = vsel %vm987_vm3, %v6952_v39, %v6944_v5 }
 0xb49   : > { %v6980_v44 = vmul.f32 %v6974_v63, %v6958_v3  ;;  %9411 = vmatmul.mubr.msk.f32.vlgmr.msra.gmra.mrb[16].mxu0 %vm443_vm0, %v6621_v61  ;;  %v6979_v50 = vmul.f32 %v6970_v14, %v6962_v54  ;;  %v9430_v3 = vld [vmem:[%s13342_s1 + $0x6] ss:$8 sm:$0x3] }
 0xb4a   : > { %9867 = vmatpush1.bf16.msra.mxu0 %v9866_v2  ;;  %6751 = vmatprep.mubr.f32.mxu0 %v13354_v0  ;;  %v7128_v2 = vrot.slane %v9425_v21, %v10716_v18 }
 0xb4b   : > { %9869 = vmatprep.subr.bf16.mxu0 %v9868_v53  ;;  %v6954_v12 = vpop.permute.xlu0 %6953  ;;  %v6948_v9 = vpop.permute.xlu1 %6947  ;;  %v9872_v36 = vpack.c.bf16 %v6980_v44, %v6978_v4  ;;  %v9874_v51 = vpack.c.bf16 %v6979_v50, %v6977_v33  ;;  %v6782_v4 = vld [vmem:[#allocation4 + $0x4d8] sm:$0xff] }
 0xb4c   : > { %v6959_v56 = vsel %vm987_vm3, %v6946_v30, %v6954_v12  ;;  %v6963_v40 = vsel %vm987_vm3, %v6954_v12, %v6946_v30 }
 0xb4d   : > { %9412 = vmatmul.mubr.msk.f32.gmra.mrb[18].mxu0 %vm443_vm0, %v6622_v7  ;;  %v6982_v46 = vmul.f32 %v6974_v63, %v6959_v56  ;;  %v6981_v59 = vmul.f32 %v6970_v14, %v6963_v40  ;;  %v6939_v40 = vld [vmem:[#allocation4 + $0x4f0] sm:$0xff] }
 0xb4e   : > { %9871 = vmatpush1.bf16.msra.mxu0 %v9870_v45  ;;  %6757 = vmatprep.mubr.f32.mxu0 %v13354_v0  ;;  %v7290_v45 = vrot.slane %v9430_v3, %v10722_v19 }
 0xb4f   : > { %9873 = vmatprep.subr.bf16.mxu0 %v9872_v36  ;;  %v7100_v8 = vpop.permute.xlu0 %7099  ;;  %v6956_v13 = vpop.permute.xlu1 %6955 }
 0xb50   : > { %v6960_v15 = vsel %vm987_vm3, %v6948_v9, %v6956_v13  ;;  %v6964_v57 = vsel %vm987_vm3, %v6956_v13, %v6948_v9 }
 0xb51   : > { %9413 = vmatmul.mubr.msk.f32.gmra.mrb[20].mxu0 %vm443_vm0, %v6623_v62  ;;  %v6984_v31 = vmul.f32 %v6974_v63, %v6960_v15  ;;  %v6983_v52 = vmul.f32 %v6970_v14, %v6964_v57 }
 0xb52   : > { %6763 = vmatprep.mubr.f32.mxu0 %v13354_v0 }
 0xb53   : > { %v7108_v24 = vpop.permute.xlu0 %7107  ;;  %v7102_v25 = vpop.permute.xlu1 %7101  ;;  %v9876_v58 = vpack.c.bf16 %v6984_v31, %v6982_v46  ;;  %v9878_v61 = vpack.c.bf16 %v6983_v52, %v6981_v59  ;;  %v6938_v31 = vld [vmem:[#allocation4 + $0x4e8] sm:$0xff] }
 0xb54   : > { %v7119_v37 = vsel %vm1147_vm4, %v7108_v24, %v7100_v8  ;;  %v7115_v44 = vsel %vm1147_vm4, %v7100_v8, %v7108_v24  ;;  %v6937_v8 = vld [vmem:[#allocation4 + $0x4e0] sm:$0xff] }
 0xb55   : > { %9414 = vmatmul.mubr.msk.f32.gmra.mrb[22].mxu0 %vm443_vm0, %v6624_v22  ;;  %v7136_v5 = vmul.f32 %v7132_v32, %v7119_v37  ;;  %v7135_v62 = vmul.f32 %v7128_v2, %v7115_v44 }
 0xb56   : > { %6903 = vmatprep.mubr.f32.mxu0 %v13354_v0 }
 0xb57   : > { %v7104_v47 = vpop.permute.xlu0 %7103  ;;  %v7110_v48 = vpop.permute.xlu1 %7109 }
 0xb58   : > { %v7120_v26 = vsel %vm1147_vm4, %v7110_v48, %v7102_v25  ;;  %v7116_v39 = vsel %vm1147_vm4, %v7102_v25, %v7110_v48 }
 0xb59   : > { %v7138_v55 = vmul.f32 %v7132_v32, %v7120_v26  ;;  %9416 = vmatmul.mubr.msk.f32.vlgmr.msra.gmra.mrb[16].mxu0 %vm443_vm0, %v6779_v34  ;;  %v7137_v7 = vmul.f32 %v7128_v2, %v7116_v39  ;;  %v9435_v26 = vld [vmem:[%s13342_s1 + $0x7] ss:$8 sm:$0x3] }
 0xb5a   : > { %9875 = vmatpush1.bf16.msra.mxu0 %v9874_v51  ;;  %6909 = vmatprep.mubr.f32.mxu0 %v13354_v0  ;;  %v7286_v51 = vrot.slane %v9430_v3, %v10716_v18 }
 0xb5b   : > { %9877 = vmatprep.subr.bf16.mxu0 %v9876_v58  ;;  %v7112_v28 = vpop.permute.xlu0 %7111  ;;  %v7106_v63 = vpop.permute.xlu1 %7105  ;;  %v9880_v38 = vpack.c.bf16 %v7138_v55, %v7136_v5  ;;  %v9882_v22 = vpack.c.bf16 %v7137_v7, %v7135_v62  ;;  %v6940_v5 = vld [vmem:[#allocation4 + $0x4f8] sm:$0xff] }
 0xb5c   : > { %v7121_v12 = vsel %vm1147_vm4, %v7112_v28, %v7104_v47  ;;  %v7117_v54 = vsel %vm1147_vm4, %v7104_v47, %v7112_v28 }
 0xb5d   : > { %9417 = vmatmul.mubr.msk.f32.gmra.mrb[18].mxu0 %vm443_vm0, %v6780_v60  ;;  %v7140_v14 = vmul.f32 %v7132_v32, %v7121_v12  ;;  %v7139_v57 = vmul.f32 %v7128_v2, %v7117_v54  ;;  %v7097_v54 = vld [vmem:[#allocation4 + $0x530] sm:$0xff] }
 0xb5e   : > { %9879 = vmatpush1.bf16.msra.mxu0 %v9878_v61  ;;  %6915 = vmatprep.mubr.f32.mxu0 %v13354_v0  ;;  %v7448_v61 = vrot.slane %v9435_v26, %v10722_v19 }
 0xb5f   : > { %9881 = vmatprep.subr.bf16.mxu0 %v9880_v38  ;;  %v7258_v1 = vpop.permute.xlu0 %7257  ;;  %v7114_v30 = vpop.permute.xlu1 %7113 }
 0xb60   : > { %v7122_v11 = vsel %vm1147_vm4, %v7114_v30, %v7106_v63  ;;  %v7118_v9 = vsel %vm1147_vm4, %v7106_v63, %v7114_v30 }
 0xb61   : > { %9418 = vmatmul.mubr.msk.f32.gmra.mrb[20].mxu0 %vm443_vm0, %v6781_v41  ;;  %v7142_v36 = vmul.f32 %v7132_v32, %v7122_v11  ;;  %v7141_v23 = vmul.f32 %v7128_v2, %v7118_v9 }
 0xb62   : > { %6921 = vmatprep.mubr.f32.mxu0 %v13354_v0 }
 0xb63   : > { %v7266_v53 = vpop.permute.xlu0 %7265  ;;  %v7260_v6 = vpop.permute.xlu1 %7259  ;;  %v9884_v56 = vpack.c.bf16 %v7142_v36, %v7140_v14  ;;  %v9886_v34 = vpack.c.bf16 %v7141_v23, %v7139_v57  ;;  %v7096_v36 = vld [vmem:[#allocation4 + $0x528] sm:$0xff] }
 0xb64   : > { %v7277_v13 = vsel %vm1307_vm5, %v7266_v53, %v7258_v1  ;;  %v7273_v55 = vsel %vm1307_vm5, %v7258_v1, %v7266_v53  ;;  %v7095_v1 = vld [vmem:[#allocation4 + $0x520] sm:$0xff] }
 0xb65   : > { %9419 = vmatmul.mubr.msk.f32.gmra.mrb[22].mxu0 %vm443_vm0, %v6782_v4  ;;  %v7294_v25 = vmul.f32 %v7290_v45, %v7277_v13  ;;  %v7293_v41 = vmul.f32 %v7286_v51, %v7273_v55 }
 0xb66   : > { %7061 = vmatprep.mubr.f32.mxu0 %v13354_v0 }
 0xb67   : > { %v7262_v15 = vpop.permute.xlu0 %7261  ;;  %v7268_v21 = vpop.permute.xlu1 %7267 }
 0xb68   : > { %v7278_v24 = vsel %vm1307_vm5, %v7268_v21, %v7260_v6  ;;  %v7274_v48 = vsel %vm1307_vm5, %v7260_v6, %v7268_v21 }
 0xb69   : > { %v7296_v50 = vmul.f32 %v7290_v45, %v7278_v24  ;;  %9421 = vmatmul.mubr.msk.f32.vlgmr.msra.gmra.mrb[16].mxu0 %vm443_vm0, %v6937_v8  ;;  %v7295_v60 = vmul.f32 %v7286_v51, %v7274_v48  ;;  %v9440_v24 = vld [vmem:[%s13342_s1 + $0x10] ss:$8 sm:$0x3] }
 0xb6a   : > { %9883 = vmatpush1.bf16.msra.mxu0 %v9882_v22  ;;  %7067 = vmatprep.mubr.f32.mxu0 %v13354_v0  ;;  %v7444_v22 = vrot.slane %v9435_v26, %v10716_v18 }
 0xb6b   : > { %9885 = vmatprep.subr.bf16.mxu0 %v9884_v56  ;;  %v7270_v33 = vpop.permute.xlu0 %7269  ;;  %v7264_v32 = vpop.permute.xlu1 %7263  ;;  %v9888_v37 = vpack.c.bf16 %v7296_v50, %v7294_v25  ;;  %v9890_v4 = vpack.c.bf16 %v7295_v60, %v7293_v41  ;;  %v7098_v25 = vld [vmem:[#allocation4 + $0x538] sm:$0xff] }
 0xb6c   : > { %v7279_v28 = vsel %vm1307_vm5, %v7270_v33, %v7262_v15  ;;  %v7275_v39 = vsel %vm1307_vm5, %v7262_v15, %v7270_v33 }
 0xb6d   : > { %9422 = vmatmul.mubr.msk.f32.gmra.mrb[18].mxu0 %vm443_vm0, %v6938_v31  ;;  %v7298_v2 = vmul.f32 %v7290_v45, %v7279_v28  ;;  %v7297_v9 = vmul.f32 %v7286_v51, %v7275_v39 }
 0xb6e   : > { %9887 = vmatpush1.bf16.msra.mxu0 %v9886_v34  ;;  %7073 = vmatprep.mubr.f32.mxu0 %v13354_v0  ;;  %v7606_v34 = vrot.slane %v9440_v24, %v10722_v19 }
 0xb6f   : > { %9889 = vmatprep.subr.bf16.mxu0 %v9888_v37  ;;  %v7416_v46 = vpop.permute.xlu0 %7415  ;;  %v7272_v47 = vpop.permute.xlu1 %7271 }
 0xb70   : > { %v7280_v52 = vsel %vm1307_vm5, %v7272_v47, %v7264_v32  ;;  %v7276_v63 = vsel %vm1307_vm5, %v7264_v32, %v7272_v47 }
 0xb71   : > { %9423 = vmatmul.mubr.msk.f32.gmra.mrb[20].mxu0 %vm443_vm0, %v6939_v40  ;;  %v7300_v38 = vmul.f32 %v7290_v45, %v7280_v52  ;;  %v7299_v44 = vmul.f32 %v7286_v51, %v7276_v63  ;;  %v7254_v63 = vld [vmem:[#allocation4 + $0x548] sm:$0xff] }
 0xb72   : > { %7079 = vmatprep.mubr.f32.mxu0 %v13354_v0 }
 0xb73   : > { %v7424_v58 = vpop.permute.xlu0 %7423  ;;  %v7418_v59 = vpop.permute.xlu1 %7417  ;;  %v9892_v12 = vpack.c.bf16 %v7300_v38, %v7298_v2  ;;  %v9894_v8 = vpack.c.bf16 %v7299_v44, %v7297_v9  ;;  %v7256_v44 = vld [vmem:[#allocation4 + $0x558] sm:$0xff] }
 0xb74   : > { %v7435_v30 = vsel %vm1467_vm6, %v7424_v58, %v7416_v46  ;;  %v7431_v50 = vsel %vm1467_vm6, %v7416_v46, %v7424_v58  ;;  %v7253_v46 = vld [vmem:[#allocation4 + $0x540] sm:$0xff] }
 0xb75   : > { %9424 = vmatmul.mubr.msk.f32.gmra.mrb[22].mxu0 %vm443_vm0, %v6940_v5  ;;  %v7452_v6 = vmul.f32 %v7448_v61, %v7435_v30  ;;  %v7451_v40 = vmul.f32 %v7444_v22, %v7431_v50  ;;  %v7570_v50 = vld [vmem:[#allocation4 + $0x588] sm:$0xff] }
 0xb76   : > { %7219 = vmatprep.mubr.f32.mxu0 %v13354_v0 }
 0xb77   : > { %v7420_v11 = vpop.permute.xlu0 %7419  ;;  %v7426_v3 = vpop.permute.xlu1 %7425 }
 0xb78   : > { %v7436_v53 = vsel %vm1467_vm6, %v7426_v3, %v7418_v59  ;;  %v7432_v21 = vsel %vm1467_vm6, %v7418_v59, %v7426_v3  ;;  %v7602_v3 = vrot.slane %v9440_v24, %v10716_v18  ;;  %v7414_v24 = vld [vmem:[#allocation4 + $0x578] sm:$0xff] }
 0xb79   : > { %v7454_v7 = vmul.f32 %v7448_v61, %v7436_v53  ;;  %9426 = vmatmul.mubr.msk.f32.vlgmr.msra.gmra.mrb[16].mxu0 %vm443_vm0, %v7095_v1  ;;  %v7453_v31 = vmul.f32 %v7444_v22, %v7432_v21  ;;  %v7255_v1 = vld [vmem:[#allocation4 + $0x550] sm:$0xff]  ;;  %v7412_v21 = vld [vmem:[#allocation4 + $0x568] sm:$0xff] }
 0xb7a   : > { %9891 = vmatpush1.bf16.msra.mxu0 %v9890_v4  ;;  %7225 = vmatprep.mubr.f32.mxu0 %v13354_v0 }
 0xb7b   : > { %9893 = vmatprep.subr.bf16.mxu0 %v9892_v12  ;;  %v7428_v62 = vpop.permute.xlu0 %7427  ;;  %v7422_v45 = vpop.permute.xlu1 %7421  ;;  %v9896_v13 = vpack.c.bf16 %v7454_v7, %v7452_v6  ;;  %v9898_v26 = vpack.c.bf16 %v7453_v31, %v7451_v40 }
 0xb7c   : > { %v7437_v33 = vsel %vm1467_vm6, %v7428_v62, %v7420_v11  ;;  %v7433_v48 = vsel %vm1467_vm6, %v7420_v11, %v7428_v62  ;;  %v7411_v62 = vld [vmem:[#allocation4 + $0x560] sm:$0xff] }
 0xb7d   : > { %9427 = vmatmul.mubr.msk.f32.gmra.mrb[18].mxu0 %vm443_vm0, %v7096_v36  ;;  %v7456_v51 = vmul.f32 %v7448_v61, %v7437_v33  ;;  %v7455_v28 = vmul.f32 %v7444_v22, %v7433_v48 }
 0xb7e   : > { %9895 = vmatpush1.bf16.msra.mxu0 %v9894_v8  ;;  %7231 = vmatprep.mubr.f32.mxu0 %v13354_v0 }
 0xb7f   : > { %9897 = vmatprep.subr.bf16.mxu0 %v9896_v13  ;;  %v7574_v14 = vpop.permute.xlu0 %7573  ;;  %v7430_v15 = vpop.permute.xlu1 %7429 }
 0xb80   : > { %v7438_v23 = vsel %vm1467_vm6, %v7430_v15, %v7422_v45  ;;  %v7434_v32 = vsel %vm1467_vm6, %v7422_v45, %v7430_v15 }
 0xb81   : > { %9428 = vmatmul.mubr.msk.f32.gmra.mrb[20].mxu0 %vm443_vm0, %v7097_v54  ;;  %v7458_v37 = vmul.f32 %v7448_v61, %v7438_v23  ;;  %v7457_v5 = vmul.f32 %v7444_v22, %v7434_v32  ;;  %v7413_v23 = vld [vmem:[#allocation4 + $0x570] sm:$0xff] }
 0xb82   : > { %7237 = vmatprep.mubr.f32.mxu0 %v13354_v0 }
 0xb83   : > { %v7582_v56 = vpop.permute.xlu0 %7581  ;;  %v7576_v57 = vpop.permute.xlu1 %7575  ;;  %v9900_v60 = vpack.c.bf16 %v7458_v37, %v7456_v51  ;;  %v9902_v30 = vpack.c.bf16 %v7457_v5, %v7455_v28 }
 0xb84   : > { %v7593_v47 = vsel %vm1627_vm8, %v7582_v56, %v7574_v14  ;;  %v7589_v53 = vsel %vm1627_vm8, %v7574_v14, %v7582_v56  ;;  %v7571_v56 = vld [vmem:[#allocation4 + $0x590] sm:$0xff] }
 0xb85   : > { %9429 = vmatmul.mubr.msk.f32.gmra.mrb[22].mxu0 %vm443_vm0, %v7098_v25  ;;  %v7610_v58 = vmul.f32 %v7606_v34, %v7593_v47  ;;  %v7609_v36 = vmul.f32 %v7602_v3, %v7589_v53  ;;  %v7569_v25 = vld [vmem:[#allocation4 + $0x580] sm:$0xff] }
 0xb86   : > { %7377 = vmatprep.mubr.f32.mxu0 %v13354_v0 }
 0xb87   : > { %v7584_v52 = vpop.permute.xlu1 %7583  ;;  %v7578_v38 = vpop.permute.xlu0 %7577 }
 0xb88   : > { %v7594_v55 = vsel %vm1627_vm8, %v7584_v52, %v7576_v57  ;;  %v7590_v2 = vsel %vm1627_vm8, %v7576_v57, %v7584_v52  ;;  %v7572_v57 = vld [vmem:[#allocation4 + $0x598] sm:$0xff] }
 0xb89   : > { %v7612_v59 = vmul.f32 %v7606_v34, %v7594_v55  ;;  %9431 = vmatmul.mubr.msk.f32.vlgmr.msra.gmra.mrb[16].mxu0 %vm443_vm0, %v7253_v46  ;;  %v7611_v6 = vmul.f32 %v7602_v3, %v7590_v2  ;;  %v9453_v2 = vld [vmem:[%s13348_s7 + $0x28] sm:$0xff] }
 0xb8a   : > { %9899 = vmatpush1.bf16.msra.mxu0 %v9898_v26  ;;  %7383 = vmatprep.mubr.f32.mxu0 %v13354_v0 }
 0xb8b   : > { %9901 = vmatprep.subr.bf16.mxu0 %v9900_v60  ;;  %v7580_v41 = vpop.permute.xlu1 %7579  ;;  %v9904_v61 = vpack.c.bf16 %v7612_v59, %v7610_v58  ;;  %v7586_v11 = vpop.permute.xlu0 %7585  ;;  %v9906_v8 = vpack.c.bf16 %v7611_v6, %v7609_v36 }
 0xb8c   : > { %v7595_v7 = vsel %vm1627_vm8, %v7586_v11, %v7578_v38  ;;  %v7591_v45 = vsel %vm1627_vm8, %v7578_v38, %v7586_v11  ;;  %v9454_v11 = vld [vmem:[%s13348_s7 + $0x30] sm:$0xff] }
 0xb8d   : > { %9432 = vmatmul.mubr.msk.f32.gmra.mrb[18].mxu0 %vm443_vm0, %v7254_v63  ;;  %v7614_v13 = vmul.f32 %v7606_v34, %v7595_v7  ;;  %v7613_v15 = vmul.f32 %v7602_v3, %v7591_v45 }
 0xb8e   : > { %9903 = vmatpush1.bf16.msra.mxu0 %v9902_v30  ;;  %7389 = vmatprep.mubr.f32.mxu0 %v13354_v0 }
 0xb8f   : > { %9905 = vmatprep.subr.bf16.mxu0 %v9904_v61  ;;  %v7588_v39 = vpop.permute.xlu1 %7587 }
 0xb90   : > { %v7596_v4 = vsel %vm1627_vm8, %v7588_v39, %v7580_v41  ;;  %v7592_v12 = vsel %vm1627_vm8, %v7580_v41, %v7588_v39  ;;  %v9446_v39 = vld [vmem:[%s13346_s5 + $0x8] sm:$0xff] }
 0xb91   : > { %9433 = vmatmul.mubr.msk.f32.gmra.mrb[20].mxu0 %vm443_vm0, %v7255_v1  ;;  %v7616_v9 = vmul.f32 %v7606_v34, %v7596_v4  ;;  %v7615_v54 = vmul.f32 %v7602_v3, %v7592_v12  ;;  %v9452_v3 = vld [vmem:[%s13348_s7 + $0x20] sm:$0xff]  ;;  %v9455_v4 = vld [vmem:[%s13348_s7 + $0x38] sm:$0xff] }
 0xb92   : > { %7395 = vmatprep.mubr.f32.mxu0 %v13354_v0 }
 0xb93   : > { %v9908_v14 = vpack.c.bf16 %v7616_v9, %v7614_v13  ;;  %v9910_v22 = vpack.c.bf16 %v7615_v54, %v7613_v15  ;;  %v9448_v54 = vld [vmem:[%s13347_s6 + $0x20] sm:$0xff] }
 0xb95   : > { %9434 = vmatmul.mubr.msk.f32.gmra.mrb[22].mxu0 %vm443_vm0, %v7256_v44 }
 0xb96   : > { %7535 = vmatprep.mubr.f32.mxu0 %v13354_v0 }
 0xb99   : > { %9436 = vmatmul.mubr.msk.f32.vlgmr.msra.gmra.mrb[16].mxu0 %vm443_vm0, %v7411_v62 }
 0xb9a   : > { %9907 = vmatpush1.bf16.msra.mxu0 %v9906_v8  ;;  %7541 = vmatprep.mubr.f32.mxu0 %v13354_v0  ;;  %v9445_v8 = vld [vmem:[%s13345_s4 + $0x8] sm:$0xff] }
 0xb9b   : > { %9909 = vmatprep.subr.bf16.mxu0 %v9908_v14 }
 0xb9c   : > { %v7729_v31 = vpop.permute.xlu0 %7728 }
 0xb9d   : > { %9437 = vmatmul.mubr.msk.f32.gmra.mrb[18].mxu0 %vm443_vm0, %v7412_v21 }
 0xb9e   : > { %9911 = vmatpush1.bf16.msra.mxu0 %v9910_v22  ;;  %7547 = vmatprep.mubr.f32.mxu0 %v13354_v0 }
 0xba0   : > { %v7734_v40 = vpop.permute.xlu1 %7733  ;;  %v7739_v26 = vpop.permute.xlu0 %7738 }
 0xba1   : > { %9438 = vmatmul.mubr.msk.f32.gmra.mrb[20].mxu0 %vm443_vm0, %v7413_v23  ;;  %v9449_v23 = vld [vmem:[%s13347_s6 + $0x28] sm:$0xff] }
 0xba2   : > { %7553 = vmatprep.mubr.f32.mxu0 %v13354_v0 }
 0xba4   : > { %v7744_v28 = vpop.permute.xlu1 %7743 }
 0xba5   : > { %9439 = vmatmul.mubr.msk.f32.gmra.mrb[22].mxu0 %vm443_vm0, %v7414_v24  ;;  %v9450_v24 = vld [vmem:[%s13347_s6 + $0x30] sm:$0xff] }
 0xba6   : > { %7693 = vmatprep.mubr.f32.mxu0 %v13354_v0 }
 0xba9   : > { %9441 = vmatmul.mubr.msk.f32.vlgmr.msra.gmra.mrb[16].mxu0 %vm443_vm0, %v7569_v25  ;;  %v9451_v25 = vld [vmem:[%s13347_s6 + $0x38] sm:$0xff] }
 0xbaa   : > { %7699 = vmatprep.mubr.f32.mxu0 %v13354_v0 }
 0xbad   : > { %9442 = vmatmul.mubr.msk.f32.gmra.mrb[18].mxu0 %vm443_vm0, %v7570_v50 }
 0xbae   : > { %7705 = vmatprep.mubr.f32.mxu0 %v13354_v0 }
 0xbb1   : > { %9443 = vmatmul.mubr.msk.f32.gmra.mrb[20].mxu0 %vm443_vm0, %v7571_v56 }
 0xbb2   : > { %7711 = vmatprep.mubr.f32.mxu0 %v13354_v0 }
 0xbb5   : > { %9444 = vmatmul.mubr.msk.f32.gmra.mrb[22].mxu0 %vm443_vm0, %v7572_v57 }
 0xc7c   : > { %v7695_v33 = vpop.f32.mrb[16].mxu0 }
 0xc7d   : > { %v7746_v32 = vadd.f32 %v7729_v31, %v7695_v33  ;;  %v7697_v37 = vpop.f32.mrb[17].mxu0 }
 0xc7e   : > { %v7747_v34 = vadd.f32 %v7729_v31, %v7697_v37 }
 0xc80   : > { %v7770_v47 = vadd.f32 %v7747_v34, %v7746_v32  ;;  %v7701_v46 = vpop.f32.mrb[18].mxu0 }
 0xc81   : > { %v7748_v48 = vadd.f32 %v7734_v40, %v7701_v46  ;;  %v7703_v51 = vpop.f32.mrb[19].mxu0 }
 0xc82   : > { %v7749_v52 = vadd.f32 %v7734_v40, %v7703_v51  ;;  %7771 = vadd.xlane.f32.xlu0 %v7770_v47 }
 0xc84   : > { %v7773_v5 = vadd.f32 %v7749_v52, %v7748_v48  ;;  %v7707_v55 = vpop.f32.mrb[20].mxu0 }
 0xc85   : > { %v7750_v58 = vadd.f32 %v7739_v26, %v7707_v55  ;;  %v7709_v59 = vpop.f32.mrb[21].mxu0 }
 0xc86   : > { %v7751_v60 = vadd.f32 %v7739_v26, %v7709_v59  ;;  %7774 = vadd.xlane.f32.xlu1 %v7773_v5 }
 0xc88   : > { %v7776_v63 = vadd.f32 %v7751_v60, %v7750_v58  ;;  %v7713_v38 = vpop.f32.mrb[22].mxu0 }
 0xc89   : > { %v7752_v41 = vadd.f32 %v7744_v28, %v7713_v38  ;;  %v7715_v61 = vpop.f32.mrb[23].mxu0 }
 0xc8a   : > { %v7753_v30 = vadd.f32 %v7744_v28, %v7715_v61  ;;  %7777 = vadd.xlane.f32.xlu0 %v7776_v63 }
 0xc8c   : > { %v7779_v1 = vadd.f32 %v7753_v30, %v7752_v41 }
 0xc8e   : > { %7780 = vadd.xlane.f32.xlu0 %v7779_v1 }
 0xc97   : > { %7792 = vperm.xlu1 %10364, %v9446_v39  }
 0xc9b   : > { %7886 = vperm.xlu1 %10364, %v9453_v2  }
 0xc9f   : > { %7891 = vperm.xlu1 %10364, %v9454_v11  }
 0xca4   : > { %7881 = vperm.xlu0 %10363, %v9452_v3  }
 0xca8   : > { %7896 = vperm.xlu0 %10363, %v9455_v4  }
 0xd0f   : > { %v7772_v44 = vpop.xlane.xlu0 %7771 }
 0xd10   : > { %v12691_v6 = vmul.f32 0.00390625, %v7772_v44 }
 0xd13   : > { %v7775_v53 = vpop.xlane.xlu1 %7774 }
 0xd14   : > { %v12693_v7 = vmul.f32 0.00390625, %v7775_v53 }
 0xd16   : > { %v9913_v12 = vpack.c.bf16 %v12693_v7, %v12691_v6 }
 0xd17   : > { %v7778_v9 = vpop.xlane.xlu0 %7777 }
 0xd18   : > { %9914 = vmatpush3.bf16.msra.mxu1 %v9913_v12  ;;  %v12698_v62 = vmul.f32 0.00390625, %v7778_v9 }
 0xd19   : > { %9915 = vmatprep.subr.bf16.mxu1 %v10450_v10  ;;  %v7793_v10 = vpop.permute.xlu1 %7792 }
 0xd1b   : > { %v7781_v36 = vpop.xlane.xlu0 %7780 }
 0xd1c   : > { %v12700_v45 = vmul.f32 0.00390625, %v7781_v36 }
 0xd1d   : > { %v7887_v56 = vpop.permute.xlu1 %7886 }
 0xd1e   : > { %v9916_v13 = vpack.c.bf16 %v12700_v45, %v12698_v62 }
 0xd20   : > { %9917 = vmatpush3.bf16.msra.mxu1 %v9916_v13 }
 0xd21   : > { %v7892_v46 = vpop.permute.xlu1 %7891 }
 0xd23   : > { %9536 = vmatmul.mubr.msk.f32.vlgmr.msra.gmra.mrb[30].mxu1 %vm443_vm0, %v9445_v8  ;;  %v7882_v50 = vpop.permute.xlu0 %7881 }
 0xd24   : > { %9540 = vmatprep.mubr.msk.f32.mxu1 %vm4766_vm10, %v9448_v54 }
 0xd27   : > { %v7897_v34 = vpop.permute.xlu0 %7896 }
 0xdf6   : > { %v7864_v14 = vpop.f32.mrb[30].mxu1 }
 0xdf7   : > { %v7865_v15 = vadd.f32 %v7864_v14, %v7793_v10  ;;  %v9537_v21 = vpop.f32.mrb[31].mxu1 }
 0xdf9   : > { %v7873_v22 = vmax.f32 %v7865_v15, 0.0 }
 0xdfb   : > { %9538 = vmatprep.subr.mxu1 %v7873_v22 }
 0xdfc   : > { %9539 = vmatpush3.msra.mxu1 %v7873_v22 }
 0xdfd   : > { %9541 = vmatmul.mubr.msk.f32.vlgmr.msra.gmra.mrb[32].mxu1 %vm4766_vm10, %v9449_v23 }
 0xdfe   : > { %9543 = vmatprep.mubr.msk.f32.mxu1 %vm4766_vm10, %v9450_v24 }
 0xe01   : > { %9544 = vmatmul.mubr.msk.f32.gmra.mrb[34].mxu1 %vm4766_vm10, %v9451_v25 }
 0xe02   : > { %8187 = vmatprep.mubr.f32.mxu1 %v13354_v0 }
 0xed0   : > { %v9542_v57 = vpop.f32.mrb[32].mxu1 }
 0xed1   : > { %v7983_v31 = vadd.f32 %v9542_v57, %v7887_v56  ;;  %v7977_v33 = vpop.f32.mrb[33].mxu1 }
 0xed2   : > { %v7978_v32 = vadd.f32 %v7977_v33, %v7882_v50 }
 0xed3   : > { %v7997_v37 = vsub.f32 0.0, %v7983_v31  ;;  %v12901_v31 = vld [vmem:[%s13342_s1 + $0x1] ss:$8 sm:$0x3] }
 0xed4   : > { %v7996_v40 = vsub.f32 0.0, %v7978_v32  ;;  %v9545_v47 = vpop.f32.mrb[34].mxu1 }
 0xed5   : > { %v8002_v48 = vmul.f32 1.442695, %v7997_v37  ;;  %v7993_v51 = vadd.f32 %v9545_v47, %v7897_v34  ;;  %v7987_v52 = vpop.f32.mrb[35].mxu1 }
 0xed6   : > { %v8000_v26 = vmul.f32 1.442695, %v7996_v40  ;;  %v7988_v5 = vadd.f32 %v7987_v52, %v7892_v46  ;;  %v12911_v40 = vrot.slane %v12901_v31, %v10716_v18  ;;  %v8072_v46 = vld [vmem:[%s13350_s9] sm:$0xff] }
 0xed7   : > { %10381 = vpow2.f32 %v8002_v48  ;;  %v7999_v55 = vsub.f32 0.0, %v7993_v51 }
 0xed8   : > { %10383 = vpow2.f32 %v8000_v26  ;;  %v7998_v58 = vsub.f32 0.0, %v7988_v5 }
 0xed9   : > { %v8006_v59 = vmul.f32 1.442695, %v7999_v55  ;;  %v12939_v55 = vld [vmem:[%s13342_s1 + $0x2] ss:$8 sm:$0x3] }
 0xeda   : > { %v8004_v60 = vmul.f32 1.442695, %v7998_v58 }
 0xedb   : > { %10385 = vpow2.f32 %v8006_v59 }
 0xedc   : > { %10387 = vpow2.f32 %v8004_v60 }
 0xee1   : > { %v10382_v28 = vpop.eup %10381 }
 0xee2   : > { %v10384_v63 = vpop.eup %10383  ;;  %v8009_v38 = vadd.f32 1.0, %v10382_v28  ;;  %v12949_v28 = vrot.slane %v12939_v55, %v10716_v18 }
 0xee3   : > { %v8008_v41 = vadd.f32 1.0, %v10384_v63 }
 0xee4   : > { %10389 = vrcp.f32 %v8009_v38 }
 0xee5   : > { %v10386_v61 = vpop.eup %10385  ;;  %10391 = vrcp.f32 %v8008_v41 }
 0xee6   : > { %v10388_v30 = vpop.eup %10387  ;;  %v8011_v1 = vadd.f32 1.0, %v10386_v61 }
 0xee7   : > { %v8010_v39 = vadd.f32 1.0, %v10388_v30 }
 0xee8   : > { %10393 = vrcp.f32 %v8011_v1 }
 0xee9   : > { %10395 = vrcp.f32 %v8010_v39  ;;  %v12972_v39 = vld [vmem:[%s13342_s1 + $0x3] ss:$8 sm:$0x3] }
 0xeee   : > { %v10390_v2 = vpop.eup %10389 }
 0xeef   : > { %v10392_v11 = vpop.eup %10391  ;;  %v8025_v3 = vmul.f32 %v10390_v2, %v12693_v7 }
 0xef0   : > { %v8024_v4 = vmul.f32 %v10392_v11, %v12691_v6 }
 0xef1   : > { %8035 = vperm.xlu0 %10363, %v8025_v3  }
 0xef2   : > { %v10394_v44 = vpop.eup %10393  ;;  %8030 = vperm.xlu1 %10364, %v8024_v4   ;;  %v12982_v4 = vrot.slane %v12972_v39, %v10716_v18 }
 0xef3   : > { %v10396_v53 = vpop.eup %10395  ;;  %v8027_v12 = vmul.f32 %v10394_v44, %v12700_v45 }
 0xef4   : > { %v8026_v9 = vmul.f32 %v10396_v53, %v12698_v62 }
 0xef5   : > { %8045 = vperm.xlu0 %10363, %v8027_v12  }
 0xef6   : > { %8040 = vperm.xlu1 %10364, %v8026_v9  }
 0xf70   : > { %v8036_v36 = vpop.permute.xlu0 %8035 }
 0xf71   : > { %v12730_v13 = vadd.f32 %v8036_v36, %v11860_v27  ;;  %v8031_v8 = vpop.permute.xlu1 %8030  ;;  %v12740_v6 = vadd.f32 %v8036_v36, %v11870_v16 }
 0xf72   : > { %v12733_v54 = vadd.f32 %v8031_v8, %v11863_v29  ;;  %v12743_v7 = vadd.f32 %v8031_v8, %v11873_v20 }
 0xf73   : > { %8078 = vrot.lane.b32.xlu0 %v12730_v13, %s10447_s23 }
 0xf74   : > { %8076 = vrot.lane.b32.xlu1 %v12733_v54, %s10447_s23  ;;  %v8046_v27 = vpop.permute.xlu0 %8045 }
 0xf75   : > { %v8041_v29 = vpop.permute.xlu1 %8040  ;;  %v12798_v16 = vadd.f32 %v8046_v27, %v11880_v35  ;;  %v12808_v62 = vadd.f32 %v8046_v27, %v11890_v42  ;;  %v8100_v35 = vld [vmem:[%s13342_s1] ss:$8 sm:$0x3]  ;;  %v13005_v27 = vld [vmem:[%s13342_s1 + $0x5] ss:$8 sm:$0x3] }
 0xf76   : > { %v12801_v20 = vadd.f32 %v8041_v29, %v11883_v43  ;;  %v12811_v45 = vadd.f32 %v8041_v29, %v11893_v49  ;;  %v12875_v49 = vrot.slane %v8100_v35, %v10716_v18  ;;  %v12878_v10 = vrot.slane %v8100_v35, %v10722_v19 }
 0xf77   : > { %8086 = vrot.lane.b32.xlu0 %v12740_v6, %s10447_s23 }
 0xf78   : > { %8084 = vrot.lane.b32.xlu1 %v12743_v7, %s10447_s23 }
 0xf7b   : > { %8272 = vrot.lane.b32.xlu0 %v12730_v13, %s10441_s17 }
 0xf7c   : > { %8270 = vrot.lane.b32.xlu1 %v12733_v54, %s10441_s17 }
 0xf7f   : > { %8280 = vrot.lane.b32.xlu0 %v12740_v6, %s10441_s17 }
 0xf80   : > { %8278 = vrot.lane.b32.xlu1 %v12743_v7, %s10441_s17 }
 0xf83   : > { %8394 = vrot.lane.b32.xlu0 %v12730_v13, %s10442_s18 }
 0xf84   : > { %8392 = vrot.lane.b32.xlu1 %v12733_v54, %s10442_s18 }
 0xf87   : > { %8402 = vrot.lane.b32.xlu0 %v12740_v6, %s10442_s18 }
 0xf88   : > { %8400 = vrot.lane.b32.xlu1 %v12743_v7, %s10442_s18 }
 0xf8b   : > { %8516 = vrot.lane.b32.xlu0 %v12730_v13, %s10443_s19 }
 0xf8c   : > { %8514 = vrot.lane.b32.xlu1 %v12733_v54, %s10443_s19 }
 0xf8f   : > { %8524 = vrot.lane.b32.xlu0 %v12740_v6, %s10443_s19 }
 0xf90   : > { %8522 = vrot.lane.b32.xlu1 %v12743_v7, %s10443_s19 }
 0xf93   : > { %8638 = vrot.lane.b32.xlu0 %v12730_v13, %s10444_s20 }
 0xf94   : > { %8636 = vrot.lane.b32.xlu1 %v12733_v54, %s10444_s20 }
 0xf97   : > { %8646 = vrot.lane.b32.xlu0 %v12740_v6, %s10444_s20 }
 0xf98   : > { %8644 = vrot.lane.b32.xlu1 %v12743_v7, %s10444_s20 }
 0xf9b   : > { %8760 = vrot.lane.b32.xlu0 %v12730_v13, %s10445_s21 }
 0xf9c   : > { %8758 = vrot.lane.b32.xlu1 %v12733_v54, %s10445_s21 }
 0xf9f   : > { %8768 = vrot.lane.b32.xlu0 %v12740_v6, %s10445_s21 }
 0xfa0   : > { %8766 = vrot.lane.b32.xlu1 %v12743_v7, %s10445_s21 }
 0xfa3   : > { %8882 = vrot.lane.b32.xlu0 %v12730_v13, %s10446_s22 }
 0xfa4   : > { %8880 = vrot.lane.b32.xlu1 %v12733_v54, %s10446_s22 }
 0xfa7   : > { %8890 = vrot.lane.b32.xlu0 %v12740_v6, %s10446_s22 }
 0xfa8   : > { %8888 = vrot.lane.b32.xlu1 %v12743_v7, %s10446_s22 }
 0xfab   : > { %8082 = vrot.lane.b32.xlu0 %v12798_v16, %s10447_s23 }
 0xfac   : > { %8080 = vrot.lane.b32.xlu1 %v12801_v20, %s10447_s23 }
 0xfaf   : > { %8090 = vrot.lane.b32.xlu0 %v12808_v62, %s10447_s23 }
 0xfb0   : > { %8088 = vrot.lane.b32.xlu1 %v12811_v45, %s10447_s23 }
 0xfb3   : > { %8276 = vrot.lane.b32.xlu0 %v12798_v16, %s10441_s17 }
 0xfb4   : > { %9002 = vrot.lane.b32.xlu1 %v12733_v54, %s10448_s24 }
 0xfb7   : > { %8284 = vrot.lane.b32.xlu0 %v12808_v62, %s10441_s17 }
 0xfb8   : > { %9010 = vrot.lane.b32.xlu1 %v12743_v7, %s10448_s24 }
 0xfbb   : > { %8398 = vrot.lane.b32.xlu0 %v12798_v16, %s10442_s18 }
 0xfbc   : > { %8274 = vrot.lane.b32.xlu1 %v12801_v20, %s10441_s17 }
 0xfbf   : > { %8406 = vrot.lane.b32.xlu0 %v12808_v62, %s10442_s18 }
 0xfc0   : > { %8282 = vrot.lane.b32.xlu1 %v12811_v45, %s10441_s17  ;;  %s9487_s17 = sshll.u32 %s13407_s14, 4 }
 0xfc3   : > { %8520 = vrot.lane.b32.xlu0 %v12798_v16, %s10443_s19 }
 0xfc4   : > { %8396 = vrot.lane.b32.xlu1 %v12801_v20, %s10442_s18 }
 0xfc7   : > { %8528 = vrot.lane.b32.xlu0 %v12808_v62, %s10443_s19 }
 0xfc8   : > { %8404 = vrot.lane.b32.xlu1 %v12811_v45, %s10442_s18 }
 0xfcb   : > { %8642 = vrot.lane.b32.xlu0 %v12798_v16, %s10444_s20 }
 0xfcc   : > { %8518 = vrot.lane.b32.xlu1 %v12801_v20, %s10443_s19 }
 0xfcf   : > { %8650 = vrot.lane.b32.xlu0 %v12808_v62, %s10444_s20 }
 0xfd0   : > { %8526 = vrot.lane.b32.xlu1 %v12811_v45, %s10443_s19 }
 0xfd3   : > { %8764 = vrot.lane.b32.xlu0 %v12798_v16, %s10445_s21 }
 0xfd4   : > { %8640 = vrot.lane.b32.xlu1 %v12801_v20, %s10444_s20 }
 0xfd7   : > { %8772 = vrot.lane.b32.xlu0 %v12808_v62, %s10445_s21 }
 0xfd8   : > { %8648 = vrot.lane.b32.xlu1 %v12811_v45, %s10444_s20  ;;  %s374_s20 = scalar_lea.vmem %s13351_s10, %s9487_s17 }
 0xfdb   : > { %8886 = vrot.lane.b32.xlu0 %v12798_v16, %s10446_s22 }
 0xfdc   : > { %8762 = vrot.lane.b32.xlu1 %v12801_v20, %s10445_s21 }
 0xfdf   : > { %8894 = vrot.lane.b32.xlu0 %v12808_v62, %s10446_s22 }
 0xfe0   : > { %8770 = vrot.lane.b32.xlu1 %v12811_v45, %s10445_s21 }
 0xfe3   : > { %9004 = vrot.lane.b32.xlu0 %v12730_v13, %s10448_s24 }
 0xfe4   : > { %8884 = vrot.lane.b32.xlu1 %v12801_v20, %s10446_s22 }
 0xfe5   : > { %v8079_v43 = vpop.permute.xlu0 %8078 }
 0xfe6   : > { %v8077_v42 = vpop.permute.xlu1 %8076 }
 0xfe7   : > { %9012 = vrot.lane.b32.xlu0 %v12740_v6, %s10448_s24 }
 0xfe8   : > { %8892 = vrot.lane.b32.xlu1 %v12811_v45, %s10446_s22 }
 0xfe9   : > { %v8087_v14 = vpop.permute.xlu0 %8086 }
 0xfea   : > { %v8093_v15 = vsel %vm414_vm7, %v8079_v43, %v8087_v14  ;;  %v8097_v21 = vsel %vm414_vm7, %v8087_v14, %v8079_v43  ;;  %v8085_v22 = vpop.permute.xlu1 %8084 }
 0xfeb   : > { %v8114_v23 = vmul.f32 %v12875_v49, %v8097_v21  ;;  %v8115_v24 = vmul.f32 %v12878_v10, %v8093_v15  ;;  %v8092_v25 = vsel %vm414_vm7, %v8077_v42, %v8085_v22  ;;  %v8096_v50 = vsel %vm414_vm7, %v8085_v22, %v8077_v42  ;;  %9008 = vrot.lane.b32.xlu0 %v12798_v16, %s10448_s24 }
 0xfec   : > { %v8112_v56 = vmul.f32 %v12875_v49, %v8096_v50  ;;  %v8113_v57 = vmul.f32 %v12878_v10, %v8092_v25  ;;  %9006 = vrot.lane.b32.xlu1 %v12801_v20, %s10448_s24  ;;  %v13015_v42 = vrot.slane %v13005_v27, %v10716_v18  ;;  %v13038_v25 = vld [vmem:[%s13342_s1 + $0x6] ss:$8 sm:$0x3] }
 0xfed   : > { %v12903_v33 = vpop.permute.xlu0 %8272 }
 0xfee   : > { %v9920_v32 = vpack.c.bf16 %v8114_v23, %v8112_v56  ;;  %v12905_v37 = vpop.permute.xlu1 %8270  ;;  %v9918_v34 = vpack.c.bf16 %v8115_v24, %v8113_v57 }
 0xfef   : > { %9016 = vrot.lane.b32.xlu0 %v12808_v62, %s10448_s24 }
 0xff0   : > { %9014 = vrot.lane.b32.xlu1 %v12811_v45, %s10448_s24  ;;  %9919 = vmatprep.subr.bf16.mxu1 %v9918_v34 }
 0xff1   : > { %v12915_v47 = vpop.permute.xlu0 %8280  ;;  %9921 = vmatpush1.bf16.msra.mxu1 %v9920_v32  ;;  %v13048_v32 = vrot.slane %v13038_v25, %v10716_v18 }
 0xff2   : > { %v8291_v48 = vsel %vm667_vm1, %v12915_v47, %v12903_v33  ;;  %v12924_v51 = vpop.permute.xlu1 %8278 }
 0xff3   : > { %v12927_v52 = vmul.f32 %v12911_v40, %v8291_v48  ;;  %v8290_v26 = vsel %vm667_vm1, %v12924_v51, %v12905_v37  ;;  %13376 = vst [vmem:[#allocation8_spill] sm:$0xff] %v13048_v32 }
 0xff4   : > { %v12934_v5 = vmul.f32 %v12911_v40, %v8290_v26  ;;  %9124 = vperm.xlu1 %10364, %v8072_v46  }
 0xff5   : > { %v12941_v58 = vpop.permute.xlu0 %8394 }
 0xff6   : > { %v12945_v60 = vpop.permute.xlu1 %8392 }
 0xff9   : > { %v12951_v63 = vpop.permute.xlu0 %8402 }
 0xffa   : > { %v8413_v38 = vsel %vm827_vm2, %v12951_v63, %v12941_v58  ;;  %v12957_v41 = vpop.permute.xlu1 %8400 }
 0xffb   : > { %v12960_v61 = vmul.f32 %v12949_v28, %v8413_v38  ;;  %v8412_v30 = vsel %vm827_vm2, %v12957_v41, %v12945_v60 }
 0xffc   : > { %v12967_v1 = vmul.f32 %v12949_v28, %v8412_v30 }
 0xffd   : > { %v12974_v2 = vpop.permute.xlu0 %8516 }
 0xffe   : > { %v12978_v3 = vpop.permute.xlu1 %8514 }
0x1001   : > { %v12984_v44 = vpop.permute.xlu0 %8524 }
0x1002   : > { %v8535_v53 = vsel %vm987_vm3, %v12984_v44, %v12974_v2  ;;  %v12990_v12 = vpop.permute.xlu1 %8522 }
0x1003   : > { %v12993_v9 = vmul.f32 %v12982_v4, %v8535_v53  ;;  %v8534_v36 = vsel %vm987_vm3, %v12990_v12, %v12978_v3  ;;  %v13071_v53 = vld [vmem:[%s13342_s1 + $0x7] ss:$8 sm:$0x3] }
0x1004   : > { %v13000_v8 = vmul.f32 %v12982_v4, %v8534_v36  ;;  %13379 = vst [vmem:[#allocation11_spill] sm:$0xff] %v13071_v53 }
0x1005   : > { %v13007_v29 = vpop.permute.xlu0 %8638 }
0x1006   : > { %v13011_v43 = vpop.permute.xlu1 %8636 }
0x1009   : > { %v13017_v14 = vpop.permute.xlu0 %8646 }
0x100a   : > { %v8653_v15 = vsel %vm1147_vm4, %v13007_v29, %v13017_v14  ;;  %v13023_v21 = vpop.permute.xlu1 %8644 }
0x100b   : > { %v13026_v22 = vmul.f32 %v13015_v42, %v8653_v15  ;;  %v8652_v23 = vsel %vm1147_vm4, %v13011_v43, %v13023_v21 }
0x100c   : > { %v13033_v24 = vmul.f32 %v13015_v42, %v8652_v23 }
0x100d   : > { %v13040_v50 = vpop.permute.xlu0 %8760 }
0x100e   : > { %v13044_v57 = vpop.permute.xlu1 %8758 }
0x1011   : > { %v13050_v34 = vpop.permute.xlu0 %8768 }
0x1012   : > { %v8775_v46 = vsel %vm1307_vm5, %v13040_v50, %v13050_v34  ;;  %v13056_v48 = vpop.permute.xlu1 %8766 }
0x1013   : > { %v13059_v26 = vmul.f32 %v13048_v32, %v8775_v46  ;;  %v8774_v38 = vsel %vm1307_vm5, %v13044_v57, %v13056_v48  ;;  %v13081_v46 = vrot.slane %v13071_v53, %v10716_v18 }
0x1014   : > { %v13066_v30 = vmul.f32 %v13048_v32, %v8774_v38 }
0x1015   : > { %13377 = vst [vmem:[#allocation9_spill] sm:$0xff] %v13059_v26  ;;  %v13073_v36 = vpop.permute.xlu0 %8882  ;;  %13382 = vst [vmem:[#allocation14_spill] sm:$0xff] %v13081_v46 }
0x1016   : > { %13378 = vst [vmem:[#allocation10_spill] sm:$0xff] %v13066_v30  ;;  %13380 = vst [vmem:[#allocation12_spill] sm:$0xff] %v13073_v36  ;;  %v13077_v23 = vpop.permute.xlu1 %8880 }
0x1017   : > { %13381 = vst [vmem:[#allocation13_spill] sm:$0xff] %v13077_v23 }
0x1019   : > { %v13083_v56 = vpop.permute.xlu0 %8890 }
0x101a   : > { %13383 = vst [vmem:[#allocation15_spill] sm:$0xff] %v13083_v56  ;;  %v8897_v38 = vsel %vm1467_vm6, %v13073_v36, %v13083_v56  ;;  %v13089_v35 = vpop.permute.xlu1 %8888 }
0x101b   : > { %13384 = vst [vmem:[#allocation16_spill] sm:$0xff] %v13089_v35  ;;  %v13092_v11 = vmul.f32 %v13081_v46, %v8897_v38  ;;  %v8896_v15 = vsel %vm1467_vm6, %v13077_v23, %v13089_v35 }
0x101c   : > { %v13099_v59 = vmul.f32 %v13081_v46, %v8896_v15 }
0x101d   : > { %13385 = vst [vmem:[#allocation17_spill] sm:$0xff] %v13092_v11  ;;  %v8083_v0 = vpop.permute.xlu0 %8082 }
0x101e   : > { %13386 = vst [vmem:[#allocation18_spill] sm:$0xff] %v13099_v59  ;;  %v8081_v30 = vpop.permute.xlu1 %8080 }
0x1021   : > { %v8091_v26 = vpop.permute.xlu0 %8090 }
0x1022   : > { %v8095_v32 = vsel %vm414_vm7, %v8083_v0, %v8091_v26  ;;  %v8099_v38 = vsel %vm414_vm7, %v8091_v26, %v8083_v0  ;;  %v8089_v56 = vpop.permute.xlu1 %8088  ;;  %v8303_v26 = vrot.slane %v12901_v31, %v10722_v19 }
0x1023   : > { %v8118_v36 = vmul.f32 %v12875_v49, %v8099_v38  ;;  %v8119_v35 = vmul.f32 %v12878_v10, %v8095_v32  ;;  %v8094_v15 = vsel %vm414_vm7, %v8081_v30, %v8089_v56  ;;  %v8098_v46 = vsel %vm414_vm7, %v8089_v56, %v8081_v30 }
0x1024   : > { %v8116_v18 = vmul.f32 %v12875_v49, %v8098_v46  ;;  %v8117_v59 = vmul.f32 %v12878_v10, %v8094_v15  ;;  %v9926_v32 = vpack.c.bf16 %v12740_v6, %v12743_v7  ;;  %v8287_v56 = vsel %vm667_vm1, %v12903_v33, %v12915_v47  ;;  %v8075_v10 = vld [vmem:[%s13349_s8] sm:$0xff] }
0x1025   : > { %v8277_v11 = vpop.permute.xlu0 %8276  ;;  %v9928_v6 = vpack.c.bf16 %v12730_v13, %v12733_v54  ;;  %v8309_v7 = vmul.f32 %v8303_v26, %v8287_v56  ;;  %v9930_v33 = vpack.c.bf16 %v12808_v62, %v12811_v45  ;;  %v13387_v47 = vmov 0.0  }
0x1026   : > { %v9924_v23 = vpack.c.bf16 %v8118_v36, %v8116_v18  ;;  %v13115_v53 = vpop.permute.xlu1 %9002  ;;  %v9922_v0 = vpack.c.bf16 %v8119_v35, %v8117_v59  ;;  %v8286_v18 = vsel %vm667_vm1, %v12905_v37, %v12924_v51  ;;  %v8425_v35 = vrot.slane %v12939_v55, %v10722_v19 }
0x1027   : > { %v8307_v59 = vmul.f32 %v8303_v26, %v8286_v18  ;;  %v9932_v30 = vpack.c.bf16 %v12798_v16, %v12801_v20  ;;  %v8409_v13 = vsel %vm827_vm2, %v12941_v58, %v12951_v63  ;;  %v8408_v54 = vsel %vm827_vm2, %v12945_v60, %v12957_v41  ;;  %v9460_v16 = vld [vmem:[%s13349_s8 + $0x20] sm:$0xff] }
0x1028   : > { %9923 = vmatprep.subr.bf16.mxu1 %v9922_v0  ;;  %v8431_v58 = vmul.f32 %v8425_v35, %v8409_v13  ;;  %v8429_v63 = vmul.f32 %v8425_v35, %v8408_v54  ;;  %v13388_v0 = vpack.c.bf16 %v12927_v52, %v12934_v5  ;;  %v13389_v13 = vpack.c.bf16 %v12960_v61, %v12967_v1 }
0x1029   : > { %v8285_v49 = vpop.permute.xlu0 %8284  ;;  %9925 = vmatpush1.bf16.msra.mxu1 %v9924_v23  ;;  %v9934_v62 = vpack.c.bf16 %v8309_v7, %v8307_v59 }
0x102a   : > { %9927 = vmatprep.subr.bf16.mxu1 %v9926_v32  ;;  %v13132_v31 = vpop.permute.xlu1 %9010  ;;  %v8289_v45 = vsel %vm667_vm1, %v8277_v11, %v8285_v49  ;;  %v8293_v55 = vsel %vm667_vm1, %v8285_v49, %v8277_v11  ;;  %v8547_v49 = vrot.slane %v12972_v39, %v10722_v19  ;;  %v9942_v52 = vpack.c.bf16 %v8431_v58, %v8429_v63  ;;  %v9463_v39 = vld [vmem:[%s13349_s8 + $0x8] sm:$0xff] }
0x102b   : > { %v8312_v23 = vmul.f32 %v12911_v40, %v8293_v55  ;;  %v8313_v46 = vmul.f32 %v8303_v26, %v8289_v45  ;;  %v8669_v55 = vrot.slane %v13005_v27, %v10722_v19  ;;  %v9466_v27 = vld [vmem:[%s13349_s8 + $0x10] sm:$0xff] }
0x102c   : > { %9461 = vmatmul.mubr.msk.f32.vlgmr.msra.gmra.mrb[36].mxu1 %vm443_vm0, %v8075_v10 }
0x102d   : > { %v8399_v37 = vpop.permute.xlu0 %8398  ;;  %9929 = vmatpush1.bf16.msra.mxu1 %v9928_v6  ;;  %8261 = vmatprep.mubr.f32.mxu1 %v13387_v47 }
0x102e   : > { %9931 = vmatprep.subr.bf16.mxu1 %v9930_v33  ;;  %v8275_v51 = vpop.permute.xlu1 %8274 }
0x1031   : > { %v8407_v36 = vpop.permute.xlu0 %8406  ;;  %9933 = vmatpush1.bf16.msra.mxu1 %v9932_v30 }
0x1032   : > { %9935 = vmatprep.subr.bf16.mxu1 %v9934_v62  ;;  %v8283_v20 = vpop.permute.xlu1 %8282  ;;  %v8411_v5 = vsel %vm827_vm2, %v8399_v37, %v8407_v36  ;;  %v8415_v10 = vsel %vm827_vm2, %v8407_v36, %v8399_v37 }
0x1033   : > { %v8288_v60 = vsel %vm667_vm1, %v8275_v51, %v8283_v20  ;;  %v8292_v41 = vsel %vm667_vm1, %v8283_v20, %v8275_v51  ;;  %v8434_v59 = vmul.f32 %v12949_v28, %v8415_v10  ;;  %v8435_v33 = vmul.f32 %v8425_v35, %v8411_v5 }
0x1034   : > { %v8310_v11 = vmul.f32 %v12911_v40, %v8292_v41  ;;  %v8311_v38 = vmul.f32 %v8303_v26, %v8288_v60  ;;  %9462 = vmatmul.mubr.msk.f32.vlgmr.msra.gmra.mrb[36].mxu1 %vm443_vm0, %v9460_v16  ;;  %v8531_v40 = vsel %vm987_vm3, %v12974_v2, %v12984_v44  ;;  %v8530_v26 = vsel %vm987_vm3, %v12978_v3, %v12990_v12 }
0x1035   : > { %v8521_v15 = vpop.permute.xlu0 %8520  ;;  %9937 = vmatpush1.bf16.msra.mxu1 %v13388_v0  ;;  %8381 = vmatprep.mubr.f32.mxu1 %v13387_v47  ;;  %v8553_v44 = vmul.f32 %v8547_v49, %v8531_v40  ;;  %v8551_v7 = vmul.f32 %v8547_v49, %v8530_v26  ;;  %v8791_v0 = vrot.slane %v13038_v25, %v10722_v19  ;;  %v9469_v25 = vld [vmem:[%s13349_s8 + $0x18] sm:$0xff] }
0x1036   : > { %v9940_v32 = vpack.c.bf16 %v8312_v23, %v8310_v11  ;;  %v8397_v56 = vpop.permute.xlu1 %8396  ;;  %v9938_v18 = vpack.c.bf16 %v8313_v46, %v8311_v38  ;;  %v13390_v46 = vpack.c.bf16 %v12993_v9, %v13000_v8 }
0x1037   : > { %v9950_v61 = vpack.c.bf16 %v8553_v44, %v8551_v7  ;;  %v13392_v7 = vld [vmem:[#allocation11_spill] sm:$0xff] }
0x1038   : > { %9939 = vmatprep.subr.bf16.mxu1 %v9938_v18 }
0x1039   : > { %v8529_v6 = vpop.permute.xlu0 %8528  ;;  %9941 = vmatpush1.bf16.msra.mxu1 %v9940_v32  ;;  %v8778_v32 = vsel %vm1307_vm5, %v13056_v48, %v13044_v57 }
0x103a   : > { %9943 = vmatprep.subr.bf16.mxu1 %v9942_v52  ;;  %v8405_v2 = vpop.permute.xlu1 %8404  ;;  %v8533_v1 = vsel %vm987_vm3, %v8521_v15, %v8529_v6  ;;  %v8537_v36 = vsel %vm987_vm3, %v8529_v6, %v8521_v15  ;;  %v13391_v6 = vpack.c.bf16 %v13026_v22, %v13033_v24 }
0x103b   : > { %v8410_v3 = vsel %vm827_vm2, %v8397_v56, %v8405_v2  ;;  %v8414_v12 = vsel %vm827_vm2, %v8405_v2, %v8397_v56  ;;  %v8556_v58 = vmul.f32 %v12982_v4, %v8537_v36  ;;  %v8557_v63 = vmul.f32 %v8547_v49, %v8533_v1 }
0x103c   : > { %v8432_v37 = vmul.f32 %v12949_v28, %v8414_v12  ;;  %v8433_v51 = vmul.f32 %v8425_v35, %v8410_v3  ;;  %9465 = vmatmul.mubr.msk.f32.vlgmr.msra.gmra.mrb[36].mxu1 %vm443_vm0, %v9463_v39  ;;  %v8657_v28 = vsel %vm1147_vm4, %v13017_v14, %v13007_v29  ;;  %v8656_v35 = vsel %vm1147_vm4, %v13023_v21, %v13011_v43  ;;  %v13393_v12 = vld [vmem:[#allocation12_spill] sm:$0xff] }
0x103d   : > { %v8643_v30 = vpop.permute.xlu0 %8642  ;;  %9945 = vmatpush1.bf16.msra.mxu1 %v13389_v13  ;;  %8503 = vmatprep.mubr.f32.mxu1 %v13387_v47  ;;  %v8675_v14 = vmul.f32 %v8669_v55, %v8657_v28  ;;  %v8673_v20 = vmul.f32 %v8669_v55, %v8656_v35  ;;  %v8913_v3 = vrot.slane %v13392_v7, %v10722_v19 }
0x103e   : > { %v9948_v54 = vpack.c.bf16 %v8434_v59, %v8432_v37  ;;  %v8519_v62 = vpop.permute.xlu1 %8518  ;;  %v9946_v45 = vpack.c.bf16 %v8435_v33, %v8433_v51  ;;  %v13394_v59 = vld [vmem:[#allocation15_spill] sm:$0xff]  ;;  %v13395_v33 = vld [vmem:[#allocation13_spill] sm:$0xff]  ;;  %v13396_v37 = vld [vmem:[#allocation16_spill] sm:$0xff] }
0x103f   : > { %v9958_v9 = vpack.c.bf16 %v8675_v14, %v8673_v20  ;;  %v8900_v51 = vsel %vm1467_vm6, %v13396_v37, %v13395_v33  ;;  %v13398_v14 = vld [vmem:[#allocation9_spill] sm:$0xff]  ;;  %v13399_v20 = vld [vmem:[#allocation10_spill] sm:$0xff] }
0x1040   : > { %9947 = vmatprep.subr.bf16.mxu1 %v9946_v45 }
0x1041   : > { %v8651_v16 = vpop.permute.xlu0 %8650  ;;  %9949 = vmatpush1.bf16.msra.mxu1 %v9948_v54  ;;  %v9472_v54 = vld [vmem:[%s13349_s8 + $0x28] sm:$0xff] }
0x1042   : > { %9951 = vmatprep.subr.bf16.mxu1 %v9950_v61  ;;  %v8527_v29 = vpop.permute.xlu1 %8526  ;;  %v8655_v8 = vsel %vm1147_vm4, %v8643_v30, %v8651_v16  ;;  %v8659_v56 = vsel %vm1147_vm4, %v8651_v16, %v8643_v30  ;;  %v13397_v61 = vld [vmem:[#allocation8_spill] sm:$0xff] }
0x1043   : > { %v8532_v43 = vsel %vm987_vm3, %v8519_v62, %v8527_v29  ;;  %v8536_v21 = vsel %vm987_vm3, %v8527_v29, %v8519_v62  ;;  %v8678_v40 = vmul.f32 %v13015_v42, %v8655_v8  ;;  %v8679_v26 = vmul.f32 %v8669_v55, %v8659_v56  ;;  %v13402_v56 = vld [vmem:[#allocation14_spill] sm:$0xff] }
0x1044   : > { %v8554_v60 = vmul.f32 %v12982_v4, %v8536_v21  ;;  %v8555_v41 = vmul.f32 %v8547_v49, %v8532_v43  ;;  %9468 = vmatmul.mubr.msk.f32.vlgmr.msra.gmra.mrb[36].mxu1 %vm443_vm0, %v9466_v27  ;;  %v8779_v4 = vsel %vm1307_vm5, %v13050_v34, %v13040_v50  ;;  %v8795_v49 = vmul.f32 %v8791_v0, %v8778_v32 }
0x1045   : > { %v8765_v23 = vpop.permute.xlu0 %8764  ;;  %9953 = vmatpush1.bf16.msra.mxu1 %v13390_v46  ;;  %8625 = vmatprep.mubr.f32.mxu1 %v13387_v47  ;;  %v8797_v34 = vmul.f32 %v8791_v0, %v8779_v4  ;;  %v13400_v43 = vpack.c.bf16 %v13398_v14, %v13399_v20  ;;  %v9022_v32 = vsel %vm1627_vm8, %v13132_v31, %v13115_v53 }
0x1046   : > { %v9956_v11 = vpack.c.bf16 %v8556_v58, %v8554_v60  ;;  %v8641_v38 = vpop.permute.xlu1 %8640  ;;  %v9954_v15 = vpack.c.bf16 %v8557_v63, %v8555_v41  ;;  %v9482_v60 = vld [vmem:[%s13342_s1 + $0x10] ss:$8 sm:$0x3] }
0x1047   : > { %v9966_v22 = vpack.c.bf16 %v8797_v34, %v8795_v49  ;;  %v9035_v4 = vrot.slane %v9482_v60, %v10722_v19 }
0x1048   : > { %9955 = vmatprep.subr.bf16.mxu1 %v9954_v15  ;;  %v13401_v15 = vld [vmem:[#allocation7_spill] sm:$0xff] }
0x1049   : > { %v8773_v18 = vpop.permute.xlu0 %8772  ;;  %9957 = vmatpush1.bf16.msra.mxu1 %v9956_v11 }
0x104a   : > { %9959 = vmatprep.subr.bf16.mxu1 %v9958_v9  ;;  %v8649_v50 = vpop.permute.xlu1 %8648  ;;  %v8777_v24 = vsel %vm1307_vm5, %v8765_v23, %v8773_v18  ;;  %v8781_v30 = vsel %vm1307_vm5, %v8773_v18, %v8765_v23 }
0x104b   : > { %v8654_v57 = vsel %vm1147_vm4, %v8641_v38, %v8649_v50  ;;  %v8658_v48 = vsel %vm1147_vm4, %v8649_v50, %v8641_v38  ;;  %v8800_v1 = vmul.f32 %v13397_v61, %v8777_v24  ;;  %v8801_v36 = vmul.f32 %v8791_v0, %v8781_v30  ;;  %v9475_v38 = vld [vmem:[%s13349_s8 + $0x30] sm:$0xff] }
0x104c   : > { %v8676_v52 = vmul.f32 %v13015_v42, %v8654_v57  ;;  %v8677_v5 = vmul.f32 %v8669_v55, %v8658_v48  ;;  %9471 = vmatmul.mubr.msk.f32.vlgmr.msra.gmra.mrb[36].mxu1 %vm443_vm0, %v9469_v25  ;;  %v8901_v42 = vsel %vm1467_vm6, %v13394_v59, %v13393_v12  ;;  %v8917_v55 = vmul.f32 %v8913_v3, %v8900_v51 }
0x104d   : > { %v8887_v10 = vpop.permute.xlu0 %8886  ;;  %9961 = vmatpush1.bf16.msra.mxu1 %v13391_v6  ;;  %8747 = vmatprep.mubr.f32.mxu1 %v13387_v47  ;;  %v8919_v45 = vmul.f32 %v8913_v3, %v8901_v42  ;;  %v9039_v6 = vmul.f32 %v9035_v4, %v9022_v32 }
0x104e   : > { %v9964_v39 = vpack.c.bf16 %v8678_v40, %v8676_v52  ;;  %v8763_v2 = vpop.permute.xlu1 %8762  ;;  %v9962_v44 = vpack.c.bf16 %v8679_v26, %v8677_v5  ;;  %v9018_v40 = vsel %vm1627_vm8, %v13115_v53, %v13132_v31  ;;  %v13403_v52 = vld [vmem:[#allocation17_spill] sm:$0xff]  ;;  %v13404_v5 = vld [vmem:[#allocation18_spill] sm:$0xff] }
0x104f   : > { %v9974_v23 = vpack.c.bf16 %v8919_v45, %v8917_v55  ;;  %v9478_v53 = vld [vmem:[%s13349_s8 + $0x38] sm:$0xff]  ;;  %v9481_v55 = vld [vmem:[%s13349_s8 + $0x40] sm:$0xff] }
0x1050   : > { %9963 = vmatprep.subr.bf16.mxu1 %v9962_v44 }
0x1051   : > { %v8895_v13 = vpop.permute.xlu0 %8894  ;;  %9965 = vmatpush1.bf16.msra.mxu1 %v9964_v39 }
0x1052   : > { %9967 = vmatprep.subr.bf16.mxu1 %v9966_v22  ;;  %v8771_v62 = vpop.permute.xlu1 %8770  ;;  %v8899_v41 = vsel %vm1467_vm6, %v8887_v10, %v8895_v13  ;;  %v8903_v46 = vsel %vm1467_vm6, %v8895_v13, %v8887_v10  ;;  %v13405_v10 = vpack.c.bf16 %v13403_v52, %v13404_v5 }
0x1053   : > { %v8776_v28 = vsel %vm1307_vm5, %v8763_v2, %v8771_v62  ;;  %v8780_v35 = vsel %vm1307_vm5, %v8771_v62, %v8763_v2  ;;  %v8922_v18 = vmul.f32 %v13402_v56, %v8899_v41  ;;  %v8923_v34 = vmul.f32 %v8913_v3, %v8903_v46 }
0x1054   : > { %v8798_v16 = vmul.f32 %v13397_v61, %v8776_v28  ;;  %v8799_v27 = vmul.f32 %v8791_v0, %v8780_v35  ;;  %9474 = vmatmul.mubr.msk.f32.vlgmr.msra.gmra.mrb[36].mxu1 %vm443_vm0, %v9472_v54  ;;  %v9031_v0 = vrot.slane %v9482_v60, %v13401_v15 }
0x1055   : > { %v9005_v29 = vpop.permute.xlu0 %9004  ;;  %9969 = vmatpush1.bf16.msra.mxu1 %v13400_v43  ;;  %8869 = vmatprep.mubr.f32.mxu1 %v13387_v47 }
0x1056   : > { %v9972_v21 = vpack.c.bf16 %v8800_v1, %v8798_v16  ;;  %v8885_v58 = vpop.permute.xlu1 %8884  ;;  %v9970_v63 = vpack.c.bf16 %v8801_v36, %v8799_v27 }
0x1058   : > { %9971 = vmatprep.subr.bf16.mxu1 %v9970_v63 }
0x1059   : > { %v9013_v11 = vpop.permute.xlu0 %9012  ;;  %9973 = vmatpush1.bf16.msra.mxu1 %v9972_v21 }
0x105a   : > { %v9023_v9 = vsel %vm1627_vm8, %v9013_v11, %v9005_v29  ;;  %9975 = vmatprep.subr.bf16.mxu1 %v9974_v23  ;;  %v8893_v8 = vpop.permute.xlu1 %8892  ;;  %v9019_v25 = vsel %vm1627_vm8, %v9005_v29, %v9013_v11 }
0x105b   : > { %v8898_v50 = vsel %vm1467_vm6, %v8885_v58, %v8893_v8  ;;  %v8902_v19 = vsel %vm1467_vm6, %v8893_v8, %v8885_v58  ;;  %v9041_v49 = vmul.f32 %v9035_v4, %v9023_v9  ;;  %v9040_v39 = vmul.f32 %v9031_v0, %v9019_v25 }
0x105c   : > { %v8920_v57 = vmul.f32 %v13402_v56, %v8898_v50  ;;  %v8921_v48 = vmul.f32 %v8913_v3, %v8902_v19  ;;  %9477 = vmatmul.mubr.msk.f32.vlgmr.msra.gmra.mrb[36].mxu1 %vm443_vm0, %v9475_v38  ;;  %v9038_v3 = vmul.f32 %v9031_v0, %v9018_v40 }
0x105d   : > { %v9009_v26 = vpop.permute.xlu0 %9008  ;;  %9977 = vmatpush1.bf16.msra.mxu1 %v13405_v10  ;;  %8991 = vmatprep.mubr.f32.mxu1 %v13387_v47  ;;  %v9982_v12 = vpack.c.bf16 %v9041_v49, %v9039_v6 }
0x105e   : > { %v9980_v2 = vpack.c.bf16 %v8922_v18, %v8920_v57  ;;  %v9007_v44 = vpop.permute.xlu1 %9006  ;;  %v9978_v7 = vpack.c.bf16 %v8923_v34, %v8921_v48  ;;  %v9984_v31 = vpack.c.bf16 %v9040_v39, %v9038_v3 }
0x1060   : > { %9979 = vmatprep.subr.bf16.mxu1 %v9978_v7 }
0x1061   : > { %v9017_v59 = vpop.permute.xlu0 %9016  ;;  %9981 = vmatpush1.bf16.msra.mxu1 %v9980_v2 }
0x1062   : > { %v9021_v42 = vsel %vm1627_vm8, %v9009_v26, %v9017_v59  ;;  %v9025_v33 = vsel %vm1627_vm8, %v9017_v59, %v9009_v26  ;;  %9983 = vmatprep.subr.bf16.mxu1 %v9982_v12  ;;  %v9015_v37 = vpop.permute.xlu1 %9014 }
0x1063   : > { %v9044_v51 = vmul.f32 %v9031_v0, %v9021_v42  ;;  %v9045_v22 = vmul.f32 %v9035_v4, %v9025_v33  ;;  %v9020_v24 = vsel %vm1627_vm8, %v9007_v44, %v9015_v37  ;;  %v9024_v30 = vsel %vm1627_vm8, %v9015_v37, %v9007_v44 }
0x1064   : > { %v9042_v13 = vmul.f32 %v9031_v0, %v9020_v24  ;;  %v9043_v54 = vmul.f32 %v9035_v4, %v9024_v30  ;;  %9480 = vmatmul.mubr.msk.f32.vlgmr.msra.gmra.mrb[36].mxu1 %vm443_vm0, %v9478_v53 }
0x1065   : > { %9985 = vmatpush1.bf16.msra.mxu1 %v9984_v31  ;;  %9113 = vmatprep.mubr.f32.mxu1 %v13387_v47 }
0x1066   : > { %v9988_v62 = vpack.c.bf16 %v9044_v51, %v9042_v13  ;;  %v9986_v45 = vpack.c.bf16 %v9045_v22, %v9043_v54 }
0x1068   : > { %9987 = vmatprep.subr.bf16.mxu1 %v9986_v45 }
0x1069   : > { %9989 = vmatpush1.bf16.msra.mxu1 %v9988_v62 }
0x106c   : > { %9483 = vmatmul.mubr.msk.f32.vlgmr.msra.gmra.mrb[36].mxu1 %vm443_vm0, %v9481_v55 }
0x1073   : > { %v9125_v17 = vpop.permute.xlu1 %9124 }
0x113f   : > { %v9115_v28 = vpop.f32.mrb[36].mxu1 }
0x1140   : > { %v9127_v35 = vadd.f32 %v9125_v17, %v9115_v28  ;;  %v9117_v61 = vpop.f32.mrb[37].mxu1 }
0x1141   : > { %v9128_v47 = vadd.f32 %v9125_v17, %v9117_v61 }
0x1142   : > { %9129 = vst [vmem:[%s374_s20] sm:$0xff] %v9127_v35 }
0x1143   : > { %9130 = vst [vmem:[%s374_s20 + $0x8] sm:$0xff] %v9128_v47 }
0x1144 PF: > { %s21_s13 = sadd.s32 1, %s10435_s13  }
0x1145   : > { %p18_p3 = scmp.ge.s32.totalorder %s21_s13, 4  }
0x1147   :  { %20 = sbr.rel (!%p18_p3) target bundleno = 1 (0x1), region = 162 }
0x114e   :  { %9152 = vsyncpa [#allocation5], 1 }
0x114f   :  { %9154 = vsyncpa [#allocation5 + $0x1], 1 }

</bundles_post_ra>
